<compile_context>
chip_gen: v6e
topology: v6e:2x2x1
jax: 0.10.0
libtpu: 0.0.40
codegen_flags: <defaults>
</compile_context>

<pallas_src>
from functools import partial

import numpy as np
import jax
import jax.numpy as jnp
from jax.experimental import pallas as pl
from jax.experimental.pallas import tpu as pltpu


# ----------------------------- configuration --------------------------------
class Args:
    crop_size = 16      # H = W
    pred_len = 2        # T
    patch_size = 4
    dim_feature = 4     # Cin = Cout
    dim_hidden = 32     # embed_dim
    num_layers = 2      # depth of the single Swin stage
    num_heads = 4
    window_size = 2


# ------------------------------ static Swin geometry --------------------------
def _relative_position_index(ws):
    coords = np.stack(np.meshgrid(np.arange(ws), np.arange(ws), indexing='ij'))
    cf = coords.reshape(2, -1)
    rel = (cf[:, :, None] - cf[:, None, :]).transpose(1, 2, 0).astype(np.int64)
    rel[:, :, 0] += ws - 1
    rel[:, :, 1] += ws - 1
    rel[:, :, 0] *= 2 * ws - 1
    return rel.sum(-1)                      # (N, N)


def _build_attn_bias(rel_tables, cfg):
    """Precompute, per layer, the (nH, L, L) additive attention bias in ORIGINAL
    token order.  It folds together:
      - relative-position bias (per within-window position pair),
      - the window structure (pairs in different windows get -1e9),
      - the SW-MSA shift mask (-100) for shifted layers.
    Dense softmax over L with this bias == the reference windowed softmax."""
    ph = cfg.patch_size
    Hp = cfg.crop_size * cfg.pred_len // ph
    Wp = cfg.crop_size // ph
    ws = min(Hp, Wp) if min(Hp, Wp) <= cfg.window_size else cfg.window_size
    L = Hp * Wp
    N = ws * ws
    nH = cfg.num_heads
    rel_idx = _relative_position_index(ws).reshape(-1)            # (N*N,)
    rows = np.repeat(np.arange(Hp), Wp)
    cols = np.tile(np.arange(Wp), Hp)

    biases = []
    for li, rt in enumerate(rel_tables):
        shift = 0 if (li % 2 == 0 or min(Hp, Wp) <= cfg.window_size) else ws // 2
        # position of every original token after the cyclic (-shift, -shift) roll
        rr = (rows - shift) % Hp
        cc = (cols - shift) % Wp
        win_id = (rr // ws) * (Wp // ws) + (cc // ws)              # (L,)
        n_in = (rr % ws) * ws + (cc % ws)                          # within-window index
        same_win = (win_id[:, None] == win_id[None, :])            # (L, L) bool

        if shift > 0:
            img = np.zeros((Hp, Wp), np.float32)
            cnt = 0
            for hs in (slice(0, -ws), slice(-ws, -shift), slice(-shift, None)):
                for wsl in (slice(0, -ws), slice(-ws, -shift), slice(-shift, None)):
                    img[hs, wsl] = cnt
                    cnt += 1
            region = img[rr, cc]
            shift_mask = np.where(region[:, None] != region[None, :],
                                  -100.0, 0.0).astype(np.float32)
        else:
            shift_mask = np.zeros((L, L), np.float32)

        rel_bias = rt[rel_idx].reshape(N, N, nH).transpose(2, 0, 1)          # (nH, N, N)
        pair_bias = rel_bias[:, n_in[:, None], n_in[None, :]]                # (nH, L, L)
        combined = jnp.where(jnp.asarray(same_win)[None, :, :],
                             pair_bias + jnp.asarray(shift_mask)[None, :, :],
                             jnp.float32(-1e9))
        biases.append(combined.astype(jnp.float32))
    return jnp.stack(biases)                                                  # (nl, nH, L, L)


# ------------------------------ fused Pallas kernel ----------------------------
def _fused_swin_kernel(patches_ref, pw_ref, pb_ref, peg_ref, peb_ref,
                       n1g_ref, n1b_ref, qkvw_ref, qkvb_ref, bias_ref,
                       projw_ref, projb_ref, n2g_ref, n2b_ref,
                       fc1w_ref, fc1b_ref, fc2w_ref, fc2b_ref,
                       ng_ref, nb_ref, hw_ref, hb_ref,
                       out_ref, *, num_layers, num_heads, head_dim, scale, eps):
    f32 = jnp.float32

    def layernorm(x, g, b):
        mu = jnp.mean(x, axis=-1, keepdims=True)
        xc = x - mu
        var = jnp.mean(xc * xc, axis=-1, keepdims=True)
        return xc * jax.lax.rsqrt(var + eps) * g + b

    def erf(x):
        # TODO(synk): native erf lowering in Mosaic is not guaranteed; use the
        # Abramowitz&Stegun 7.1.26 rational approximation (|err| < 1.5e-7, f32-exact).
        p = 0.3275911
        a1, a2, a3, a4, a5 = (0.254829592, -0.284496736, 1.421413741,
                              -1.453152027, 1.061405429)
        ax = jnp.abs(x)
        t = 1.0 / (1.0 + p * ax)
        poly = ((((a5 * t + a4) * t + a3) * t + a2) * t + a1) * t
        y = 1.0 - poly * jnp.exp(-ax * ax)
        return jnp.where(x < 0, -y, y)

    def gelu(x):                                  # exact-erf GELU
        return 0.5 * x * (1.0 + erf(x * 0.7071067811865476))

    # ---- patch embed: Conv2d(k=s=patch) == patch-matmul, then LayerNorm ----
    # patches_ref holds ALL batch elements stacked along tokens: (B*L, Cin*ph*ph)
    x = jnp.dot(patches_ref[...], pw_ref[...], preferred_element_type=f32) + pb_ref[...]
    x = layernorm(x, peg_ref[...], peb_ref[...])                  # (B*L, C)
    C = num_heads * head_dim

    for li in range(num_layers):                  # static unroll over Swin blocks
        # -------- (S)W-MSA: window structure / shift / rel-pos bias / batch
        #          block-diagonal all live in the precomputed additive bias
        #          (out-of-window or cross-batch pairs = -1e9). --------
        shortcut = x
        xn = layernorm(x, n1g_ref[li], n1b_ref[li])
        qkv = jnp.dot(xn, qkvw_ref[li], preferred_element_type=f32) + qkvb_ref[li]  # (B*L, 3C)
        proj_w = projw_ref[li]                                     # (C, C)

        attn_acc = None
        for h in range(num_heads):                # static unroll over heads
            lo = h * head_dim
            q = qkv[:, lo:lo + head_dim] * scale                   # (B*L, hd)
            k = qkv[:, C + lo:C + lo + head_dim]
            v = qkv[:, 2 * C + lo:2 * C + lo + head_dim]
            s = jax.lax.dot_general(q, k, (((1,), (1,)), ((), ())),
                                    preferred_element_type=f32)    # (B*L, B*L), q @ k^T
            s = s + bias_ref[li, h]
            s = s - jnp.max(s, axis=-1, keepdims=True)
            p = jnp.exp(s)
            p = p * pl.reciprocal(jnp.sum(p, axis=-1, keepdims=True), approx=True)
            o_h = jnp.dot(p, v, preferred_element_type=f32)        # (B*L, hd)
            # fold the output projection per head: concat(heads) @ W == sum_h o_h @ W[h]
            part = jnp.dot(o_h, proj_w[lo:lo + head_dim, :], preferred_element_type=f32)
            attn_acc = part if attn_acc is None else attn_acc + part

        x = shortcut + attn_acc + projb_ref[li]

        # -------- MLP (fc1 -> GELU -> fc2) --------
        xn2 = layernorm(x, n2g_ref[li], n2b_ref[li])
        h1 = jnp.dot(xn2, fc1w_ref[li], preferred_element_type=f32) + fc1b_ref[li]
        h1 = gelu(h1)
        h2 = jnp.dot(h1, fc2w_ref[li], preferred_element_type=f32) + fc2b_ref[li]
        x = x + h2

    # ---- final norm + per-token head (pool='none') ----
    xf = layernorm(x, ng_ref[...], nb_ref[...])
    out_ref[...] = jnp.dot(xf, hw_ref[...], preferred_element_type=f32) + hb_ref[...]


def _full_spec(shape):
    """Full-array block; single grid step, index_map always (0,...,0)."""
    zeros = (0,) * len(shape)
    return pl.BlockSpec(shape, lambda i, _z=zeros: _z)


# ------------------------------ parameters ------------------------------------
def init_params(key, cfg):
    C = cfg.dim_hidden
    Cin = cfg.dim_feature
    ph = cfg.patch_size
    nH = cfg.num_heads
    nl = cfg.num_layers
    Hp = cfg.crop_size * cfg.pred_len // ph
    Wp = cfg.crop_size // ph
    ws = min(Hp, Wp) if min(Hp, Wp) <= cfg.window_size else cfg.window_size
    num_classes = ph * ph * Cin
    keys = iter(jax.random.split(key, 8 + 8 * nl))

    def w(shape, scale=0.02):
        return jax.random.normal(next(keys), shape, jnp.float32) * scale

    rel_tables = [w(((2 * ws - 1) * (2 * ws - 1), nH)) for _ in range(nl)]

    params = dict(
        patch_w=w((Cin * ph * ph, C)),                       # Conv2d weight, reshaped
        patch_b=jnp.zeros((1, C), jnp.float32),
        pe_g=jnp.ones((1, C), jnp.float32), pe_b=jnp.zeros((1, C), jnp.float32),
        n1g=jnp.ones((nl, 1, C), jnp.float32), n1b=jnp.zeros((nl, 1, C), jnp.float32),
        qkv_w=jnp.stack([w((C, 3 * C)) for _ in range(nl)]),
        qkv_b=jnp.zeros((nl, 1, 3 * C), jnp.float32),
        rel_tables=jnp.stack(rel_tables),                    # learnable source of attn_bias
        proj_w=jnp.stack([w((C, C)) for _ in range(nl)]),
        proj_b=jnp.zeros((nl, 1, C), jnp.float32),
        n2g=jnp.ones((nl, 1, C), jnp.float32), n2b=jnp.zeros((nl, 1, C), jnp.float32),
        fc1_w=jnp.stack([w((C, 4 * C)) for _ in range(nl)]),
        fc1_b=jnp.zeros((nl, 1, 4 * C), jnp.float32),
        fc2_w=jnp.stack([w((4 * C, C)) for _ in range(nl)]),
        fc2_b=jnp.zeros((nl, 1, C), jnp.float32),
        norm_g=jnp.ones((1, C), jnp.float32), norm_b=jnp.zeros((1, C), jnp.float32),
        head_w=w((C, num_classes)), head_b=jnp.zeros((1, num_classes), jnp.float32),
    )
    # precomputed once (rel-pos bias + window mask + shift mask), not re-gathered per forward
    params['attn_bias'] = _build_attn_bias(rel_tables, cfg)   # (nl, nH, L, L)
    return params


# ------------------------------ forward pass ----------------------------------
def traffic_swin_forward(params, x, *, cfg):
    B, T, H, W, Cin = x.shape
    ph = cfg.patch_size
    h, w_ = H // ph, W // ph
    Cout = cfg.dim_feature
    C = cfg.dim_hidden
    nH = cfg.num_heads
    hd = C // nH
    Himg, Wimg = T * H, W
    Hp, Wp = Himg // ph, Wimg // ph
    L = Hp * Wp
    BL = B * L
    Kp = Cin * ph * ph
    nc = ph * ph * Cout

    # Conv2d(k=s=patch_size) -> non-overlapping patch extraction, channel-first
    # per-patch flattening to match the conv-weight layout (tiny XLA layout plumbing),
    # then fold the batch into the token dimension so the kernel runs ONE grid step.
    patches = (x.reshape(B, Hp, ph, Wp, ph, Cin)
                .transpose(0, 1, 3, 5, 2, 4)
                .reshape(BL, Kp))

    # Expand the per-layer (nH, L, L) bias to (nH, B*L, B*L): diagonal batch blocks keep
    # the fused window/shift/rel-pos bias, cross-batch pairs get -1e9 (exp -> exactly 0).
    batch_ids = jnp.arange(BL, dtype=jnp.int32) // L
    same_batch = (batch_ids[:, None] == batch_ids[None, :])
    attn_bias = jnp.where(same_batch[None, None, :, :],
                          jnp.tile(params['attn_bias'], (1, 1, B, B)),
                          jnp.float32(-1e9))                                # (nl, nH, BL, BL)

    kern = partial(_fused_swin_kernel, num_layers=cfg.num_layers,
                   num_heads=nH, head_dim=hd, scale=hd ** -0.5, eps=1e-6)

    inputs = (patches, params['patch_w'], params['patch_b'],
              params['pe_g'], params['pe_b'],
              params['n1g'], params['n1b'],
              params['qkv_w'], params['qkv_b'], attn_bias,
              params['proj_w'], params['proj_b'],
              params['n2g'], params['n2b'],
              params['fc1_w'], params['fc1_b'],
              params['fc2_w'], params['fc2_b'],
              params['norm_g'], params['norm_b'],
              params['head_w'], params['head_b'])

    in_specs = [_full_spec(a.shape) for a in inputs]

    logits = pl.pallas_call(
        kern,
        out_shape=jax.ShapeDtypeStruct((BL, nc), jnp.float32),
        grid=(1,),                                   # whole batch in one invocation
        in_specs=in_specs,
        out_specs=_full_spec((BL, nc)),
        compiler_params=pltpu.CompilerParams(
            dimension_semantics=("arbitrary",)),
    )(*inputs)

    out = logits.reshape(B, T, h, w_, ph, ph, Cout)
    out = out.transpose(0, 1, 2, 4, 3, 5, 6).reshape(B, T, h * ph, w_ * ph, Cout)
    return out


# ------------------------------ main ------------------------------------------
if __name__ == "__main__":
    cfg = Args()
    key = jax.random.PRNGKey(0)
    kx, kp = jax.random.split(key)
    x = jax.random.normal(
        kx, (2, cfg.pred_len, cfg.crop_size, cfg.crop_size, cfg.dim_feature), jnp.float32)
    params = init_params(kp, cfg)

    fwd = jax.jit(partial(traffic_swin_forward, cfg=cfg))
    out = fwd(params, x)
    jax.block_until_ready(out)

    assert out.shape == (2, cfg.pred_len, cfg.crop_size, cfg.crop_size, cfg.dim_feature), out.shape
    assert out.dtype == jnp.float32
    print("KERNEL_OK")
</pallas_src>

<mosaic_0001>
module attributes {stable_mosaic.version = 11 : i64} {
  func.func @_fused_swin_kernel(%arg0: i32, %arg1: memref<64x64xf32, #tpu.memory_space<vmem>>, %arg2: memref<64x32xf32, #tpu.memory_space<vmem>>, %arg3: memref<1x32xf32, #tpu.memory_space<vmem>>, %arg4: memref<1x32xf32, #tpu.memory_space<vmem>>, %arg5: memref<1x32xf32, #tpu.memory_space<vmem>>, %arg6: memref<2x1x32xf32, #tpu.memory_space<vmem>>, %arg7: memref<2x1x32xf32, #tpu.memory_space<vmem>>, %arg8: memref<2x32x96xf32, #tpu.memory_space<vmem>>, %arg9: memref<2x1x96xf32, #tpu.memory_space<vmem>>, %arg10: memref<2x4x64x64xf32, #tpu.memory_space<vmem>>, %arg11: memref<2x32x32xf32, #tpu.memory_space<vmem>>, %arg12: memref<2x1x32xf32, #tpu.memory_space<vmem>>, %arg13: memref<2x1x32xf32, #tpu.memory_space<vmem>>, %arg14: memref<2x1x32xf32, #tpu.memory_space<vmem>>, %arg15: memref<2x32x128xf32, #tpu.memory_space<vmem>>, %arg16: memref<2x1x128xf32, #tpu.memory_space<vmem>>, %arg17: memref<2x128x32xf32, #tpu.memory_space<vmem>>, %arg18: memref<2x1x32xf32, #tpu.memory_space<vmem>>, %arg19: memref<1x32xf32, #tpu.memory_space<vmem>>, %arg20: memref<1x32xf32, #tpu.memory_space<vmem>>, %arg21: memref<32x64xf32, #tpu.memory_space<vmem>>, %arg22: memref<1x64xf32, #tpu.memory_space<vmem>>, %arg23: memref<64x64xf32, #tpu.memory_space<vmem>>) attributes {dimension_semantics = [#tpu.dimension_semantics<arbitrary>], iteration_bounds = array<i64: 1>, scalar_prefetch = 0 : i64, scratch_operands = 0 : i64, tpu.core_type = #tpu.core_type<tc>, window_params = [{pipeline_mode = #tpu.pipeline_mode<synchronous>, transform_indices = @transform_0, window_bounds = array<i64: 64, 64>}, {pipeline_mode = #tpu.pipeline_mode<synchronous>, transform_indices = @transform_1, window_bounds = array<i64: 64, 32>}, {pipeline_mode = #tpu.pipeline_mode<synchronous>, transform_indices = @transform_2, window_bounds = array<i64: 1, 32>}, {pipeline_mode = #tpu.pipeline_mode<synchronous>, transform_indices = @transform_3, window_bounds = array<i64: 1, 32>}, {pipeline_mode = #tpu.pipeline_mode<synchronous>, transform_indices = @transform_4, window_bounds = array<i64: 1, 32>}, {pipeline_mode = #tpu.pipeline_mode<synchronous>, transform_indices = @transform_5, window_bounds = array<i64: 2, 1, 32>}, {pipeline_mode = #tpu.pipeline_mode<synchronous>, transform_indices = @transform_6, window_bounds = array<i64: 2, 1, 32>}, {pipeline_mode = #tpu.pipeline_mode<synchronous>, transform_indices = @transform_7, window_bounds = array<i64: 2, 32, 96>}, {pipeline_mode = #tpu.pipeline_mode<synchronous>, transform_indices = @transform_8, window_bounds = array<i64: 2, 1, 96>}, {pipeline_mode = #tpu.pipeline_mode<synchronous>, transform_indices = @transform_9, window_bounds = array<i64: 2, 4, 64, 64>}, {pipeline_mode = #tpu.pipeline_mode<synchronous>, transform_indices = @transform_10, window_bounds = array<i64: 2, 32, 32>}, {pipeline_mode = #tpu.pipeline_mode<synchronous>, transform_indices = @transform_11, window_bounds = array<i64: 2, 1, 32>}, {pipeline_mode = #tpu.pipeline_mode<synchronous>, transform_indices = @transform_12, window_bounds = array<i64: 2, 1, 32>}, {pipeline_mode = #tpu.pipeline_mode<synchronous>, transform_indices = @transform_13, window_bounds = array<i64: 2, 1, 32>}, {pipeline_mode = #tpu.pipeline_mode<synchronous>, transform_indices = @transform_14, window_bounds = array<i64: 2, 32, 128>}, {pipeline_mode = #tpu.pipeline_mode<synchronous>, transform_indices = @transform_15, window_bounds = array<i64: 2, 1, 128>}, {pipeline_mode = #tpu.pipeline_mode<synchronous>, transform_indices = @transform_16, window_bounds = array<i64: 2, 128, 32>}, {pipeline_mode = #tpu.pipeline_mode<synchronous>, transform_indices = @transform_17, window_bounds = array<i64: 2, 1, 32>}, {pipeline_mode = #tpu.pipeline_mode<synchronous>, transform_indices = @transform_18, window_bounds = array<i64: 1, 32>}, {pipeline_mode = #tpu.pipeline_mode<synchronous>, transform_indices = @transform_19, window_bounds = array<i64: 1, 32>}, {pipeline_mode = #tpu.pipeline_mode<synchronous>, transform_indices = @transform_20, window_bounds = array<i64: 32, 64>}, {pipeline_mode = #tpu.pipeline_mode<synchronous>, transform_indices = @transform_21, window_bounds = array<i64: 1, 64>}, {pipeline_mode = #tpu.pipeline_mode<synchronous>, transform_indices = @transform_22, window_bounds = array<i64: 64, 64>}]} {
    %c0 = arith.constant 0 : index
    %c0_0 = arith.constant 0 : index
    %0 = vector.load %arg1[%c0, %c0_0] : memref<64x64xf32, #tpu.memory_space<vmem>>, vector<64x64xf32>
    %c0_1 = arith.constant 0 : index
    %c0_2 = arith.constant 0 : index
    %1 = vector.load %arg2[%c0_1, %c0_2] : memref<64x32xf32, #tpu.memory_space<vmem>>, vector<64x32xf32>
    %cst = arith.constant dense<0.000000e+00> : vector<64x32xf32>
    %2 = tpu.matmul %0, %1, %cst {dimension_numbers = #tpu.dot_dimension_numbers<[1], [0], [0], [1], [0, 0, 1, 1], [], []>} : vector<64x64xf32>, vector<64x32xf32>, vector<64x32xf32> -> vector<64x32xf32>
    %c0_3 = arith.constant 0 : index
    %c0_4 = arith.constant 0 : index
    %3 = vector.load %arg3[%c0_3, %c0_4] : memref<1x32xf32, #tpu.memory_space<vmem>>, vector<1x32xf32>
    %4 = vector.broadcast %3 : vector<1x32xf32> to vector<64x32xf32>
    %5 = arith.addf %2, %4 : vector<64x32xf32>
    %c0_5 = arith.constant 0 : index
    %c0_6 = arith.constant 0 : index
    %6 = vector.load %arg4[%c0_5, %c0_6] : memref<1x32xf32, #tpu.memory_space<vmem>>, vector<1x32xf32>
    %c0_7 = arith.constant 0 : index
    %c0_8 = arith.constant 0 : index
    %7 = vector.load %arg5[%c0_7, %c0_8] : memref<1x32xf32, #tpu.memory_space<vmem>>, vector<1x32xf32>
    %cst_9 = arith.constant dense<0.000000e+00> : vector<64xf32>
    %8 = vector.multi_reduction <add>, %5, %cst_9 [1] : vector<64x32xf32> to vector<64xf32>
    %9 = vector.shape_cast %8 : vector<64xf32> to vector<64x1xf32>
    %cst_10 = arith.constant 3.200000e+01 : f32
    %10 = vector.broadcast %cst_10 : f32 to vector<64x1xf32>
    %11 = arith.divf %9, %10 : vector<64x1xf32>
    %12 = vector.broadcast %11 : vector<64x1xf32> to vector<64x32xf32>
    %13 = arith.subf %5, %12 : vector<64x32xf32>
    %14 = arith.mulf %13, %13 : vector<64x32xf32>
    %cst_11 = arith.constant dense<0.000000e+00> : vector<64xf32>
    %15 = vector.multi_reduction <add>, %14, %cst_11 [1] : vector<64x32xf32> to vector<64xf32>
    %16 = vector.shape_cast %15 : vector<64xf32> to vector<64x1xf32>
    %cst_12 = arith.constant 3.200000e+01 : f32
    %17 = vector.broadcast %cst_12 : f32 to vector<64x1xf32>
    %18 = arith.divf %16, %17 : vector<64x1xf32>
    %cst_13 = arith.constant 9.99999997E-7 : f32
    %19 = vector.broadcast %cst_13 : f32 to vector<64x1xf32>
    %20 = arith.addf %18, %19 : vector<64x1xf32>
    %21 = math.rsqrt %20 : vector<64x1xf32>
    %22 = vector.broadcast %21 : vector<64x1xf32> to vector<64x32xf32>
    %23 = arith.mulf %13, %22 : vector<64x32xf32>
    %24 = vector.broadcast %6 : vector<1x32xf32> to vector<64x32xf32>
    %25 = arith.mulf %23, %24 : vector<64x32xf32>
    %26 = vector.broadcast %7 : vector<1x32xf32> to vector<64x32xf32>
    %27 = arith.addf %25, %26 : vector<64x32xf32>
    %c0_14 = arith.constant 0 : index
    %c0_15 = arith.constant 0 : index
    %c0_16 = arith.constant 0 : index
    %28 = vector.load %arg6[%c0_14, %c0_15, %c0_16] : memref<2x1x32xf32, #tpu.memory_space<vmem>>, vector<1x1x32xf32>
    %29 = vector.shape_cast %28 : vector<1x1x32xf32> to vector<1x32xf32>
    %c0_17 = arith.constant 0 : index
    %c0_18 = arith.constant 0 : index
    %c0_19 = arith.constant 0 : index
    %30 = vector.load %arg7[%c0_17, %c0_18, %c0_19] : memref<2x1x32xf32, #tpu.memory_space<vmem>>, vector<1x1x32xf32>
    %31 = vector.shape_cast %30 : vector<1x1x32xf32> to vector<1x32xf32>
    %cst_20 = arith.constant dense<0.000000e+00> : vector<64xf32>
    %32 = vector.multi_reduction <add>, %27, %cst_20 [1] : vector<64x32xf32> to vector<64xf32>
    %33 = vector.shape_cast %32 : vector<64xf32> to vector<64x1xf32>
    %cst_21 = arith.constant 3.200000e+01 : f32
    %34 = vector.broadcast %cst_21 : f32 to vector<64x1xf32>
    %35 = arith.divf %33, %34 : vector<64x1xf32>
    %36 = vector.broadcast %35 : vector<64x1xf32> to vector<64x32xf32>
    %37 = arith.subf %27, %36 : vector<64x32xf32>
    %38 = arith.mulf %37, %37 : vector<64x32xf32>
    %cst_22 = arith.constant dense<0.000000e+00> : vector<64xf32>
    %39 = vector.multi_reduction <add>, %38, %cst_22 [1] : vector<64x32xf32> to vector<64xf32>
    %40 = vector.shape_cast %39 : vector<64xf32> to vector<64x1xf32>
    %cst_23 = arith.constant 3.200000e+01 : f32
    %41 = vector.broadcast %cst_23 : f32 to vector<64x1xf32>
    %42 = arith.divf %40, %41 : vector<64x1xf32>
    %cst_24 = arith.constant 9.99999997E-7 : f32
    %43 = vector.broadcast %cst_24 : f32 to vector<64x1xf32>
    %44 = arith.addf %42, %43 : vector<64x1xf32>
    %45 = math.rsqrt %44 : vector<64x1xf32>
    %46 = vector.broadcast %45 : vector<64x1xf32> to vector<64x32xf32>
    %47 = arith.mulf %37, %46 : vector<64x32xf32>
    %48 = vector.broadcast %29 : vector<1x32xf32> to vector<64x32xf32>
    %49 = arith.mulf %47, %48 : vector<64x32xf32>
    %50 = vector.broadcast %31 : vector<1x32xf32> to vector<64x32xf32>
    %51 = arith.addf %49, %50 : vector<64x32xf32>
    %c0_25 = arith.constant 0 : index
    %c0_26 = arith.constant 0 : index
    %c0_27 = arith.constant 0 : index
    %52 = vector.load %arg8[%c0_25, %c0_26, %c0_27] : memref<2x32x96xf32, #tpu.memory_space<vmem>>, vector<1x32x96xf32>
    %53 = vector.shape_cast %52 : vector<1x32x96xf32> to vector<32x96xf32>
    %cst_28 = arith.constant dense<0.000000e+00> : vector<64x96xf32>
    %54 = tpu.matmul %51, %53, %cst_28 {dimension_numbers = #tpu.dot_dimension_numbers<[1], [0], [0], [1], [0, 0, 1, 1], [], []>} : vector<64x32xf32>, vector<32x96xf32>, vector<64x96xf32> -> vector<64x96xf32>
    %c0_29 = arith.constant 0 : index
    %c0_30 = arith.constant 0 : index
    %c0_31 = arith.constant 0 : index
    %55 = vector.load %arg9[%c0_29, %c0_30, %c0_31] : memref<2x1x96xf32, #tpu.memory_space<vmem>>, vector<1x1x96xf32>
    %56 = vector.shape_cast %55 : vector<1x1x96xf32> to vector<1x96xf32>
    %57 = vector.broadcast %56 : vector<1x96xf32> to vector<64x96xf32>
    %58 = arith.addf %54, %57 : vector<64x96xf32>
    %c0_32 = arith.constant 0 : index
    %c0_33 = arith.constant 0 : index
    %c0_34 = arith.constant 0 : index
    %59 = vector.load %arg11[%c0_32, %c0_33, %c0_34] : memref<2x32x32xf32, #tpu.memory_space<vmem>>, vector<1x32x32xf32>
    %60 = vector.shape_cast %59 : vector<1x32x32xf32> to vector<32x32xf32>
    %61 = vector.extract_strided_slice %58 {offsets = [0, 0], sizes = [64, 8], strides = [1, 1]} : vector<64x96xf32> to vector<64x8xf32>
    %cst_35 = arith.constant 0.353553385 : f32
    %62 = vector.broadcast %cst_35 : f32 to vector<64x8xf32>
    %63 = arith.mulf %61, %62 : vector<64x8xf32>
    %64 = vector.extract_strided_slice %58 {offsets = [0, 32], sizes = [64, 8], strides = [1, 1]} : vector<64x96xf32> to vector<64x8xf32>
    %65 = vector.extract_strided_slice %58 {offsets = [0, 64], sizes = [64, 8], strides = [1, 1]} : vector<64x96xf32> to vector<64x8xf32>
    %cst_36 = arith.constant dense<0.000000e+00> : vector<64x64xf32>
    %66 = tpu.matmul %63, %64, %cst_36 {dimension_numbers = #tpu.dot_dimension_numbers<[1], [1], [0], [0], [0, 0, 1, 0], [], []>} : vector<64x8xf32>, vector<64x8xf32>, vector<64x64xf32> -> vector<64x64xf32>
    %c0_37 = arith.constant 0 : index
    %c0_38 = arith.constant 0 : index
    %c0_39 = arith.constant 0 : index
    %c0_40 = arith.constant 0 : index
    %67 = vector.load %arg10[%c0_37, %c0_38, %c0_39, %c0_40] : memref<2x4x64x64xf32, #tpu.memory_space<vmem>>, vector<1x1x64x64xf32>
    %68 = vector.shape_cast %67 : vector<1x1x64x64xf32> to vector<64x64xf32>
    %69 = arith.addf %66, %68 : vector<64x64xf32>
    %cst_41 = arith.constant dense<0xFF800000> : vector<64xf32>
    %70 = vector.multi_reduction <maximumf>, %69, %cst_41 [1] : vector<64x64xf32> to vector<64xf32>
    %71 = vector.shape_cast %70 : vector<64xf32> to vector<64x1xf32>
    %72 = vector.broadcast %71 : vector<64x1xf32> to vector<64x64xf32>
    %73 = arith.subf %69, %72 : vector<64x64xf32>
    %74 = math.exp %73 : vector<64x64xf32>
    %cst_42 = arith.constant dense<0.000000e+00> : vector<64xf32>
    %75 = vector.multi_reduction <add>, %74, %cst_42 [1] : vector<64x64xf32> to vector<64xf32>
    %76 = vector.shape_cast %75 : vector<64xf32> to vector<64x1xf32>
    %77 = tpu.reciprocal %76 {approx = true} : vector<64x1xf32> -> vector<64x1xf32>
    %78 = vector.broadcast %77 : vector<64x1xf32> to vector<64x64xf32>
    %79 = arith.mulf %74, %78 : vector<64x64xf32>
    %cst_43 = arith.constant dense<0.000000e+00> : vector<64x8xf32>
    %80 = tpu.matmul %79, %65, %cst_43 {dimension_numbers = #tpu.dot_dimension_numbers<[1], [0], [0], [1], [0, 0, 1, 1], [], []>} : vector<64x64xf32>, vector<64x8xf32>, vector<64x8xf32> -> vector<64x8xf32>
    %81 = vector.extract_strided_slice %60 {offsets = [0, 0], sizes = [8, 32], strides = [1, 1]} : vector<32x32xf32> to vector<8x32xf32>
    %cst_44 = arith.constant dense<0.000000e+00> : vector<64x32xf32>
    %82 = tpu.matmul %80, %81, %cst_44 {dimension_numbers = #tpu.dot_dimension_numbers<[1], [0], [0], [1], [0, 0, 1, 1], [], []>} : vector<64x8xf32>, vector<8x32xf32>, vector<64x32xf32> -> vector<64x32xf32>
    %83 = vector.extract_strided_slice %58 {offsets = [0, 8], sizes = [64, 8], strides = [1, 1]} : vector<64x96xf32> to vector<64x8xf32>
    %cst_45 = arith.constant 0.353553385 : f32
    %84 = vector.broadcast %cst_45 : f32 to vector<64x8xf32>
    %85 = arith.mulf %83, %84 : vector<64x8xf32>
    %86 = vector.extract_strided_slice %58 {offsets = [0, 40], sizes = [64, 8], strides = [1, 1]} : vector<64x96xf32> to vector<64x8xf32>
    %87 = vector.extract_strided_slice %58 {offsets = [0, 72], sizes = [64, 8], strides = [1, 1]} : vector<64x96xf32> to vector<64x8xf32>
    %cst_46 = arith.constant dense<0.000000e+00> : vector<64x64xf32>
    %88 = tpu.matmul %85, %86, %cst_46 {dimension_numbers = #tpu.dot_dimension_numbers<[1], [1], [0], [0], [0, 0, 1, 0], [], []>} : vector<64x8xf32>, vector<64x8xf32>, vector<64x64xf32> -> vector<64x64xf32>
    %c0_47 = arith.constant 0 : index
    %c1 = arith.constant 1 : index
    %c0_48 = arith.constant 0 : index
    %c0_49 = arith.constant 0 : index
    %89 = vector.load %arg10[%c0_47, %c1, %c0_48, %c0_49] : memref<2x4x64x64xf32, #tpu.memory_space<vmem>>, vector<1x1x64x64xf32>
    %90 = vector.shape_cast %89 : vector<1x1x64x64xf32> to vector<64x64xf32>
    %91 = arith.addf %88, %90 : vector<64x64xf32>
    %cst_50 = arith.constant dense<0xFF800000> : vector<64xf32>
    %92 = vector.multi_reduction <maximumf>, %91, %cst_50 [1] : vector<64x64xf32> to vector<64xf32>
    %93 = vector.shape_cast %92 : vector<64xf32> to vector<64x1xf32>
    %94 = vector.broadcast %93 : vector<64x1xf32> to vector<64x64xf32>
    %95 = arith.subf %91, %94 : vector<64x64xf32>
    %96 = math.exp %95 : vector<64x64xf32>
    %cst_51 = arith.constant dense<0.000000e+00> : vector<64xf32>
    %97 = vector.multi_reduction <add>, %96, %cst_51 [1] : vector<64x64xf32> to vector<64xf32>
    %98 = vector.shape_cast %97 : vector<64xf32> to vector<64x1xf32>
    %99 = tpu.reciprocal %98 {approx = true} : vector<64x1xf32> -> vector<64x1xf32>
    %100 = vector.broadcast %99 : vector<64x1xf32> to vector<64x64xf32>
    %101 = arith.mulf %96, %100 : vector<64x64xf32>
    %cst_52 = arith.constant dense<0.000000e+00> : vector<64x8xf32>
    %102 = tpu.matmul %101, %87, %cst_52 {dimension_numbers = #tpu.dot_dimension_numbers<[1], [0], [0], [1], [0, 0, 1, 1], [], []>} : vector<64x64xf32>, vector<64x8xf32>, vector<64x8xf32> -> vector<64x8xf32>
    %103 = vector.extract_strided_slice %60 {offsets = [8, 0], sizes = [8, 32], strides = [1, 1]} : vector<32x32xf32> to vector<8x32xf32>
    %cst_53 = arith.constant dense<0.000000e+00> : vector<64x32xf32>
    %104 = tpu.matmul %102, %103, %cst_53 {dimension_numbers = #tpu.dot_dimension_numbers<[1], [0], [0], [1], [0, 0, 1, 1], [], []>} : vector<64x8xf32>, vector<8x32xf32>, vector<64x32xf32> -> vector<64x32xf32>
    %105 = arith.addf %82, %104 : vector<64x32xf32>
    %106 = vector.extract_strided_slice %58 {offsets = [0, 16], sizes = [64, 8], strides = [1, 1]} : vector<64x96xf32> to vector<64x8xf32>
    %cst_54 = arith.constant 0.353553385 : f32
    %107 = vector.broadcast %cst_54 : f32 to vector<64x8xf32>
    %108 = arith.mulf %106, %107 : vector<64x8xf32>
    %109 = vector.extract_strided_slice %58 {offsets = [0, 48], sizes = [64, 8], strides = [1, 1]} : vector<64x96xf32> to vector<64x8xf32>
    %110 = vector.extract_strided_slice %58 {offsets = [0, 80], sizes = [64, 8], strides = [1, 1]} : vector<64x96xf32> to vector<64x8xf32>
    %cst_55 = arith.constant dense<0.000000e+00> : vector<64x64xf32>
    %111 = tpu.matmul %108, %109, %cst_55 {dimension_numbers = #tpu.dot_dimension_numbers<[1], [1], [0], [0], [0, 0, 1, 0], [], []>} : vector<64x8xf32>, vector<64x8xf32>, vector<64x64xf32> -> vector<64x64xf32>
    %c0_56 = arith.constant 0 : index
    %c2 = arith.constant 2 : index
    %c0_57 = arith.constant 0 : index
    %c0_58 = arith.constant 0 : index
    %112 = vector.load %arg10[%c0_56, %c2, %c0_57, %c0_58] : memref<2x4x64x64xf32, #tpu.memory_space<vmem>>, vector<1x1x64x64xf32>
    %113 = vector.shape_cast %112 : vector<1x1x64x64xf32> to vector<64x64xf32>
    %114 = arith.addf %111, %113 : vector<64x64xf32>
    %cst_59 = arith.constant dense<0xFF800000> : vector<64xf32>
    %115 = vector.multi_reduction <maximumf>, %114, %cst_59 [1] : vector<64x64xf32> to vector<64xf32>
    %116 = vector.shape_cast %115 : vector<64xf32> to vector<64x1xf32>
    %117 = vector.broadcast %116 : vector<64x1xf32> to vector<64x64xf32>
    %118 = arith.subf %114, %117 : vector<64x64xf32>
    %119 = math.exp %118 : vector<64x64xf32>
    %cst_60 = arith.constant dense<0.000000e+00> : vector<64xf32>
    %120 = vector.multi_reduction <add>, %119, %cst_60 [1] : vector<64x64xf32> to vector<64xf32>
    %121 = vector.shape_cast %120 : vector<64xf32> to vector<64x1xf32>
    %122 = tpu.reciprocal %121 {approx = true} : vector<64x1xf32> -> vector<64x1xf32>
    %123 = vector.broadcast %122 : vector<64x1xf32> to vector<64x64xf32>
    %124 = arith.mulf %119, %123 : vector<64x64xf32>
    %cst_61 = arith.constant dense<0.000000e+00> : vector<64x8xf32>
    %125 = tpu.matmul %124, %110, %cst_61 {dimension_numbers = #tpu.dot_dimension_numbers<[1], [0], [0], [1], [0, 0, 1, 1], [], []>} : vector<64x64xf32>, vector<64x8xf32>, vector<64x8xf32> -> vector<64x8xf32>
    %126 = vector.extract_strided_slice %60 {offsets = [16, 0], sizes = [8, 32], strides = [1, 1]} : vector<32x32xf32> to vector<8x32xf32>
    %cst_62 = arith.constant dense<0.000000e+00> : vector<64x32xf32>
    %127 = tpu.matmul %125, %126, %cst_62 {dimension_numbers = #tpu.dot_dimension_numbers<[1], [0], [0], [1], [0, 0, 1, 1], [], []>} : vector<64x8xf32>, vector<8x32xf32>, vector<64x32xf32> -> vector<64x32xf32>
    %128 = arith.addf %105, %127 : vector<64x32xf32>
    %129 = vector.extract_strided_slice %58 {offsets = [0, 24], sizes = [64, 8], strides = [1, 1]} : vector<64x96xf32> to vector<64x8xf32>
    %cst_63 = arith.constant 0.353553385 : f32
    %130 = vector.broadcast %cst_63 : f32 to vector<64x8xf32>
    %131 = arith.mulf %129, %130 : vector<64x8xf32>
    %132 = vector.extract_strided_slice %58 {offsets = [0, 56], sizes = [64, 8], strides = [1, 1]} : vector<64x96xf32> to vector<64x8xf32>
    %133 = vector.extract_strided_slice %58 {offsets = [0, 88], sizes = [64, 8], strides = [1, 1]} : vector<64x96xf32> to vector<64x8xf32>
    %cst_64 = arith.constant dense<0.000000e+00> : vector<64x64xf32>
    %134 = tpu.matmul %131, %132, %cst_64 {dimension_numbers = #tpu.dot_dimension_numbers<[1], [1], [0], [0], [0, 0, 1, 0], [], []>} : vector<64x8xf32>, vector<64x8xf32>, vector<64x64xf32> -> vector<64x64xf32>
    %c0_65 = arith.constant 0 : index
    %c3 = arith.constant 3 : index
    %c0_66 = arith.constant 0 : index
    %c0_67 = arith.constant 0 : index
    %135 = vector.load %arg10[%c0_65, %c3, %c0_66, %c0_67] : memref<2x4x64x64xf32, #tpu.memory_space<vmem>>, vector<1x1x64x64xf32>
    %136 = vector.shape_cast %135 : vector<1x1x64x64xf32> to vector<64x64xf32>
    %137 = arith.addf %134, %136 : vector<64x64xf32>
    %cst_68 = arith.constant dense<0xFF800000> : vector<64xf32>
    %138 = vector.multi_reduction <maximumf>, %137, %cst_68 [1] : vector<64x64xf32> to vector<64xf32>
    %139 = vector.shape_cast %138 : vector<64xf32> to vector<64x1xf32>
    %140 = vector.broadcast %139 : vector<64x1xf32> to vector<64x64xf32>
    %141 = arith.subf %137, %140 : vector<64x64xf32>
    %142 = math.exp %141 : vector<64x64xf32>
    %cst_69 = arith.constant dense<0.000000e+00> : vector<64xf32>
    %143 = vector.multi_reduction <add>, %142, %cst_69 [1] : vector<64x64xf32> to vector<64xf32>
    %144 = vector.shape_cast %143 : vector<64xf32> to vector<64x1xf32>
    %145 = tpu.reciprocal %144 {approx = true} : vector<64x1xf32> -> vector<64x1xf32>
    %146 = vector.broadcast %145 : vector<64x1xf32> to vector<64x64xf32>
    %147 = arith.mulf %142, %146 : vector<64x64xf32>
    %cst_70 = arith.constant dense<0.000000e+00> : vector<64x8xf32>
    %148 = tpu.matmul %147, %133, %cst_70 {dimension_numbers = #tpu.dot_dimension_numbers<[1], [0], [0], [1], [0, 0, 1, 1], [], []>} : vector<64x64xf32>, vector<64x8xf32>, vector<64x8xf32> -> vector<64x8xf32>
    %149 = vector.extract_strided_slice %60 {offsets = [24, 0], sizes = [8, 32], strides = [1, 1]} : vector<32x32xf32> to vector<8x32xf32>
    %cst_71 = arith.constant dense<0.000000e+00> : vector<64x32xf32>
    %150 = tpu.matmul %148, %149, %cst_71 {dimension_numbers = #tpu.dot_dimension_numbers<[1], [0], [0], [1], [0, 0, 1, 1], [], []>} : vector<64x8xf32>, vector<8x32xf32>, vector<64x32xf32> -> vector<64x32xf32>
    %151 = arith.addf %128, %150 : vector<64x32xf32>
    %152 = arith.addf %27, %151 : vector<64x32xf32>
    %c0_72 = arith.constant 0 : index
    %c0_73 = arith.constant 0 : index
    %c0_74 = arith.constant 0 : index
    %153 = vector.load %arg12[%c0_72, %c0_73, %c0_74] : memref<2x1x32xf32, #tpu.memory_space<vmem>>, vector<1x1x32xf32>
    %154 = vector.shape_cast %153 : vector<1x1x32xf32> to vector<1x32xf32>
    %155 = vector.broadcast %154 : vector<1x32xf32> to vector<64x32xf32>
    %156 = arith.addf %152, %155 : vector<64x32xf32>
    %c0_75 = arith.constant 0 : index
    %c0_76 = arith.constant 0 : index
    %c0_77 = arith.constant 0 : index
    %157 = vector.load %arg13[%c0_75, %c0_76, %c0_77] : memref<2x1x32xf32, #tpu.memory_space<vmem>>, vector<1x1x32xf32>
    %158 = vector.shape_cast %157 : vector<1x1x32xf32> to vector<1x32xf32>
    %c0_78 = arith.constant 0 : index
    %c0_79 = arith.constant 0 : index
    %c0_80 = arith.constant 0 : index
    %159 = vector.load %arg14[%c0_78, %c0_79, %c0_80] : memref<2x1x32xf32, #tpu.memory_space<vmem>>, vector<1x1x32xf32>
    %160 = vector.shape_cast %159 : vector<1x1x32xf32> to vector<1x32xf32>
    %cst_81 = arith.constant dense<0.000000e+00> : vector<64xf32>
    %161 = vector.multi_reduction <add>, %156, %cst_81 [1] : vector<64x32xf32> to vector<64xf32>
    %162 = vector.shape_cast %161 : vector<64xf32> to vector<64x1xf32>
    %cst_82 = arith.constant 3.200000e+01 : f32
    %163 = vector.broadcast %cst_82 : f32 to vector<64x1xf32>
    %164 = arith.divf %162, %163 : vector<64x1xf32>
    %165 = vector.broadcast %164 : vector<64x1xf32> to vector<64x32xf32>
    %166 = arith.subf %156, %165 : vector<64x32xf32>
    %167 = arith.mulf %166, %166 : vector<64x32xf32>
    %cst_83 = arith.constant dense<0.000000e+00> : vector<64xf32>
    %168 = vector.multi_reduction <add>, %167, %cst_83 [1] : vector<64x32xf32> to vector<64xf32>
    %169 = vector.shape_cast %168 : vector<64xf32> to vector<64x1xf32>
    %cst_84 = arith.constant 3.200000e+01 : f32
    %170 = vector.broadcast %cst_84 : f32 to vector<64x1xf32>
    %171 = arith.divf %169, %170 : vector<64x1xf32>
    %cst_85 = arith.constant 9.99999997E-7 : f32
    %172 = vector.broadcast %cst_85 : f32 to vector<64x1xf32>
    %173 = arith.addf %171, %172 : vector<64x1xf32>
    %174 = math.rsqrt %173 : vector<64x1xf32>
    %175 = vector.broadcast %174 : vector<64x1xf32> to vector<64x32xf32>
    %176 = arith.mulf %166, %175 : vector<64x32xf32>
    %177 = vector.broadcast %158 : vector<1x32xf32> to vector<64x32xf32>
    %178 = arith.mulf %176, %177 : vector<64x32xf32>
    %179 = vector.broadcast %160 : vector<1x32xf32> to vector<64x32xf32>
    %180 = arith.addf %178, %179 : vector<64x32xf32>
    %c0_86 = arith.constant 0 : index
    %c0_87 = arith.constant 0 : index
    %c0_88 = arith.constant 0 : index
    %181 = vector.load %arg15[%c0_86, %c0_87, %c0_88] : memref<2x32x128xf32, #tpu.memory_space<vmem>>, vector<1x32x128xf32>
    %182 = vector.shape_cast %181 : vector<1x32x128xf32> to vector<32x128xf32>
    %cst_89 = arith.constant dense<0.000000e+00> : vector<64x128xf32>
    %183 = tpu.matmul %180, %182, %cst_89 {dimension_numbers = #tpu.dot_dimension_numbers<[1], [0], [0], [1], [0, 0, 1, 1], [], []>} : vector<64x32xf32>, vector<32x128xf32>, vector<64x128xf32> -> vector<64x128xf32>
    %c0_90 = arith.constant 0 : index
    %c0_91 = arith.constant 0 : index
    %c0_92 = arith.constant 0 : index
    %184 = vector.load %arg16[%c0_90, %c0_91, %c0_92] : memref<2x1x128xf32, #tpu.memory_space<vmem>>, vector<1x1x128xf32>
    %185 = vector.shape_cast %184 : vector<1x1x128xf32> to vector<1x128xf32>
    %186 = vector.broadcast %185 : vector<1x128xf32> to vector<64x128xf32>
    %187 = arith.addf %183, %186 : vector<64x128xf32>
    %cst_93 = arith.constant 5.000000e-01 : f32
    %188 = vector.broadcast %cst_93 : f32 to vector<64x128xf32>
    %189 = arith.mulf %188, %187 : vector<64x128xf32>
    %cst_94 = arith.constant 0.707106769 : f32
    %190 = vector.broadcast %cst_94 : f32 to vector<64x128xf32>
    %191 = arith.mulf %187, %190 : vector<64x128xf32>
    %192 = math.absf %191 : vector<64x128xf32>
    %cst_95 = arith.constant 0.327591091 : f32
    %193 = vector.broadcast %cst_95 : f32 to vector<64x128xf32>
    %194 = arith.mulf %193, %192 : vector<64x128xf32>
    %cst_96 = arith.constant 1.000000e+00 : f32
    %195 = vector.broadcast %cst_96 : f32 to vector<64x128xf32>
    %196 = arith.addf %195, %194 : vector<64x128xf32>
    %cst_97 = arith.constant 1.000000e+00 : f32
    %197 = vector.broadcast %cst_97 : f32 to vector<64x128xf32>
    %198 = arith.divf %197, %196 : vector<64x128xf32>
    %cst_98 = arith.constant 1.06140542 : f32
    %199 = vector.broadcast %cst_98 : f32 to vector<64x128xf32>
    %200 = arith.mulf %199, %198 : vector<64x128xf32>
    %cst_99 = arith.constant -1.45315206 : f32
    %201 = vector.broadcast %cst_99 : f32 to vector<64x128xf32>
    %202 = arith.addf %200, %201 : vector<64x128xf32>
    %203 = arith.mulf %202, %198 : vector<64x128xf32>
    %cst_100 = arith.constant 1.42141378 : f32
    %204 = vector.broadcast %cst_100 : f32 to vector<64x128xf32>
    %205 = arith.addf %203, %204 : vector<64x128xf32>
    %206 = arith.mulf %205, %198 : vector<64x128xf32>
    %cst_101 = arith.constant -0.284496725 : f32
    %207 = vector.broadcast %cst_101 : f32 to vector<64x128xf32>
    %208 = arith.addf %206, %207 : vector<64x128xf32>
    %209 = arith.mulf %208, %198 : vector<64x128xf32>
    %cst_102 = arith.constant 0.254829586 : f32
    %210 = vector.broadcast %cst_102 : f32 to vector<64x128xf32>
    %211 = arith.addf %209, %210 : vector<64x128xf32>
    %212 = arith.mulf %211, %198 : vector<64x128xf32>
    %cst_103 = arith.constant 0.000000e+00 : f32
    %213 = vector.broadcast %cst_103 : f32 to vector<64x128xf32>
    %214 = arith.subf %213, %192 : vector<64x128xf32>
    %215 = arith.mulf %214, %192 : vector<64x128xf32>
    %216 = math.exp %215 : vector<64x128xf32>
    %217 = arith.mulf %212, %216 : vector<64x128xf32>
    %cst_104 = arith.constant 1.000000e+00 : f32
    %218 = vector.broadcast %cst_104 : f32 to vector<64x128xf32>
    %219 = arith.subf %218, %217 : vector<64x128xf32>
    %cst_105 = arith.constant 0.000000e+00 : f32
    %220 = vector.broadcast %cst_105 : f32 to vector<64x128xf32>
    %221 = arith.cmpf olt, %191, %220 : vector<64x128xf32>
    %cst_106 = arith.constant 0.000000e+00 : f32
    %222 = vector.broadcast %cst_106 : f32 to vector<64x128xf32>
    %223 = arith.subf %222, %219 : vector<64x128xf32>
    %224 = arith.select %221, %223, %219 : vector<64x128xi1>, vector<64x128xf32>
    %cst_107 = arith.constant 1.000000e+00 : f32
    %225 = vector.broadcast %cst_107 : f32 to vector<64x128xf32>
    %226 = arith.addf %225, %224 : vector<64x128xf32>
    %227 = arith.mulf %189, %226 : vector<64x128xf32>
    %c0_108 = arith.constant 0 : index
    %c0_109 = arith.constant 0 : index
    %c0_110 = arith.constant 0 : index
    %228 = vector.load %arg17[%c0_108, %c0_109, %c0_110] : memref<2x128x32xf32, #tpu.memory_space<vmem>>, vector<1x128x32xf32>
    %229 = vector.shape_cast %228 : vector<1x128x32xf32> to vector<128x32xf32>
    %cst_111 = arith.constant dense<0.000000e+00> : vector<64x32xf32>
    %230 = tpu.matmul %227, %229, %cst_111 {dimension_numbers = #tpu.dot_dimension_numbers<[1], [0], [0], [1], [0, 0, 1, 1], [], []>} : vector<64x128xf32>, vector<128x32xf32>, vector<64x32xf32> -> vector<64x32xf32>
    %c0_112 = arith.constant 0 : index
    %c0_113 = arith.constant 0 : index
    %c0_114 = arith.constant 0 : index
    %231 = vector.load %arg18[%c0_112, %c0_113, %c0_114] : memref<2x1x32xf32, #tpu.memory_space<vmem>>, vector<1x1x32xf32>
    %232 = vector.shape_cast %231 : vector<1x1x32xf32> to vector<1x32xf32>
    %233 = vector.broadcast %232 : vector<1x32xf32> to vector<64x32xf32>
    %234 = arith.addf %230, %233 : vector<64x32xf32>
    %235 = arith.addf %156, %234 : vector<64x32xf32>
    %c1_115 = arith.constant 1 : index
    %c0_116 = arith.constant 0 : index
    %c0_117 = arith.constant 0 : index
    %236 = vector.load %arg6[%c1_115, %c0_116, %c0_117] : memref<2x1x32xf32, #tpu.memory_space<vmem>>, vector<1x1x32xf32>
    %237 = vector.shape_cast %236 : vector<1x1x32xf32> to vector<1x32xf32>
    %c1_118 = arith.constant 1 : index
    %c0_119 = arith.constant 0 : index
    %c0_120 = arith.constant 0 : index
    %238 = vector.load %arg7[%c1_118, %c0_119, %c0_120] : memref<2x1x32xf32, #tpu.memory_space<vmem>>, vector<1x1x32xf32>
    %239 = vector.shape_cast %238 : vector<1x1x32xf32> to vector<1x32xf32>
    %cst_121 = arith.constant dense<0.000000e+00> : vector<64xf32>
    %240 = vector.multi_reduction <add>, %235, %cst_121 [1] : vector<64x32xf32> to vector<64xf32>
    %241 = vector.shape_cast %240 : vector<64xf32> to vector<64x1xf32>
    %cst_122 = arith.constant 3.200000e+01 : f32
    %242 = vector.broadcast %cst_122 : f32 to vector<64x1xf32>
    %243 = arith.divf %241, %242 : vector<64x1xf32>
    %244 = vector.broadcast %243 : vector<64x1xf32> to vector<64x32xf32>
    %245 = arith.subf %235, %244 : vector<64x32xf32>
    %246 = arith.mulf %245, %245 : vector<64x32xf32>
    %cst_123 = arith.constant dense<0.000000e+00> : vector<64xf32>
    %247 = vector.multi_reduction <add>, %246, %cst_123 [1] : vector<64x32xf32> to vector<64xf32>
    %248 = vector.shape_cast %247 : vector<64xf32> to vector<64x1xf32>
    %cst_124 = arith.constant 3.200000e+01 : f32
    %249 = vector.broadcast %cst_124 : f32 to vector<64x1xf32>
    %250 = arith.divf %248, %249 : vector<64x1xf32>
    %cst_125 = arith.constant 9.99999997E-7 : f32
    %251 = vector.broadcast %cst_125 : f32 to vector<64x1xf32>
    %252 = arith.addf %250, %251 : vector<64x1xf32>
    %253 = math.rsqrt %252 : vector<64x1xf32>
    %254 = vector.broadcast %253 : vector<64x1xf32> to vector<64x32xf32>
    %255 = arith.mulf %245, %254 : vector<64x32xf32>
    %256 = vector.broadcast %237 : vector<1x32xf32> to vector<64x32xf32>
    %257 = arith.mulf %255, %256 : vector<64x32xf32>
    %258 = vector.broadcast %239 : vector<1x32xf32> to vector<64x32xf32>
    %259 = arith.addf %257, %258 : vector<64x32xf32>
    %c1_126 = arith.constant 1 : index
    %c0_127 = arith.constant 0 : index
    %c0_128 = arith.constant 0 : index
    %260 = vector.load %arg8[%c1_126, %c0_127, %c0_128] : memref<2x32x96xf32, #tpu.memory_space<vmem>>, vector<1x32x96xf32>
    %261 = vector.shape_cast %260 : vector<1x32x96xf32> to vector<32x96xf32>
    %cst_129 = arith.constant dense<0.000000e+00> : vector<64x96xf32>
    %262 = tpu.matmul %259, %261, %cst_129 {dimension_numbers = #tpu.dot_dimension_numbers<[1], [0], [0], [1], [0, 0, 1, 1], [], []>} : vector<64x32xf32>, vector<32x96xf32>, vector<64x96xf32> -> vector<64x96xf32>
    %c1_130 = arith.constant 1 : index
    %c0_131 = arith.constant 0 : index
    %c0_132 = arith.constant 0 : index
    %263 = vector.load %arg9[%c1_130, %c0_131, %c0_132] : memref<2x1x96xf32, #tpu.memory_space<vmem>>, vector<1x1x96xf32>
    %264 = vector.shape_cast %263 : vector<1x1x96xf32> to vector<1x96xf32>
    %265 = vector.broadcast %264 : vector<1x96xf32> to vector<64x96xf32>
    %266 = arith.addf %262, %265 : vector<64x96xf32>
    %c1_133 = arith.constant 1 : index
    %c0_134 = arith.constant 0 : index
    %c0_135 = arith.constant 0 : index
    %267 = vector.load %arg11[%c1_133, %c0_134, %c0_135] : memref<2x32x32xf32, #tpu.memory_space<vmem>>, vector<1x32x32xf32>
    %268 = vector.shape_cast %267 : vector<1x32x32xf32> to vector<32x32xf32>
    %269 = vector.extract_strided_slice %266 {offsets = [0, 0], sizes = [64, 8], strides = [1, 1]} : vector<64x96xf32> to vector<64x8xf32>
    %cst_136 = arith.constant 0.353553385 : f32
    %270 = vector.broadcast %cst_136 : f32 to vector<64x8xf32>
    %271 = arith.mulf %269, %270 : vector<64x8xf32>
    %272 = vector.extract_strided_slice %266 {offsets = [0, 32], sizes = [64, 8], strides = [1, 1]} : vector<64x96xf32> to vector<64x8xf32>
    %273 = vector.extract_strided_slice %266 {offsets = [0, 64], sizes = [64, 8], strides = [1, 1]} : vector<64x96xf32> to vector<64x8xf32>
    %cst_137 = arith.constant dense<0.000000e+00> : vector<64x64xf32>
    %274 = tpu.matmul %271, %272, %cst_137 {dimension_numbers = #tpu.dot_dimension_numbers<[1], [1], [0], [0], [0, 0, 1, 0], [], []>} : vector<64x8xf32>, vector<64x8xf32>, vector<64x64xf32> -> vector<64x64xf32>
    %c1_138 = arith.constant 1 : index
    %c0_139 = arith.constant 0 : index
    %c0_140 = arith.constant 0 : index
    %c0_141 = arith.constant 0 : index
    %275 = vector.load %arg10[%c1_138, %c0_139, %c0_140, %c0_141] : memref<2x4x64x64xf32, #tpu.memory_space<vmem>>, vector<1x1x64x64xf32>
    %276 = vector.shape_cast %275 : vector<1x1x64x64xf32> to vector<64x64xf32>
    %277 = arith.addf %274, %276 : vector<64x64xf32>
    %cst_142 = arith.constant dense<0xFF800000> : vector<64xf32>
    %278 = vector.multi_reduction <maximumf>, %277, %cst_142 [1] : vector<64x64xf32> to vector<64xf32>
    %279 = vector.shape_cast %278 : vector<64xf32> to vector<64x1xf32>
    %280 = vector.broadcast %279 : vector<64x1xf32> to vector<64x64xf32>
    %281 = arith.subf %277, %280 : vector<64x64xf32>
    %282 = math.exp %281 : vector<64x64xf32>
    %cst_143 = arith.constant dense<0.000000e+00> : vector<64xf32>
    %283 = vector.multi_reduction <add>, %282, %cst_143 [1] : vector<64x64xf32> to vector<64xf32>
    %284 = vector.shape_cast %283 : vector<64xf32> to vector<64x1xf32>
    %285 = tpu.reciprocal %284 {approx = true} : vector<64x1xf32> -> vector<64x1xf32>
    %286 = vector.broadcast %285 : vector<64x1xf32> to vector<64x64xf32>
    %287 = arith.mulf %282, %286 : vector<64x64xf32>
    %cst_144 = arith.constant dense<0.000000e+00> : vector<64x8xf32>
    %288 = tpu.matmul %287, %273, %cst_144 {dimension_numbers = #tpu.dot_dimension_numbers<[1], [0], [0], [1], [0, 0, 1, 1], [], []>} : vector<64x64xf32>, vector<64x8xf32>, vector<64x8xf32> -> vector<64x8xf32>
    %289 = vector.extract_strided_slice %268 {offsets = [0, 0], sizes = [8, 32], strides = [1, 1]} : vector<32x32xf32> to vector<8x32xf32>
    %cst_145 = arith.constant dense<0.000000e+00> : vector<64x32xf32>
    %290 = tpu.matmul %288, %289, %cst_145 {dimension_numbers = #tpu.dot_dimension_numbers<[1], [0], [0], [1], [0, 0, 1, 1], [], []>} : vector<64x8xf32>, vector<8x32xf32>, vector<64x32xf32> -> vector<64x32xf32>
    %291 = vector.extract_strided_slice %266 {offsets = [0, 8], sizes = [64, 8], strides = [1, 1]} : vector<64x96xf32> to vector<64x8xf32>
    %cst_146 = arith.constant 0.353553385 : f32
    %292 = vector.broadcast %cst_146 : f32 to vector<64x8xf32>
    %293 = arith.mulf %291, %292 : vector<64x8xf32>
    %294 = vector.extract_strided_slice %266 {offsets = [0, 40], sizes = [64, 8], strides = [1, 1]} : vector<64x96xf32> to vector<64x8xf32>
    %295 = vector.extract_strided_slice %266 {offsets = [0, 72], sizes = [64, 8], strides = [1, 1]} : vector<64x96xf32> to vector<64x8xf32>
    %cst_147 = arith.constant dense<0.000000e+00> : vector<64x64xf32>
    %296 = tpu.matmul %293, %294, %cst_147 {dimension_numbers = #tpu.dot_dimension_numbers<[1], [1], [0], [0], [0, 0, 1, 0], [], []>} : vector<64x8xf32>, vector<64x8xf32>, vector<64x64xf32> -> vector<64x64xf32>
    %c1_148 = arith.constant 1 : index
    %c1_149 = arith.constant 1 : index
    %c0_150 = arith.constant 0 : index
    %c0_151 = arith.constant 0 : index
    %297 = vector.load %arg10[%c1_148, %c1_149, %c0_150, %c0_151] : memref<2x4x64x64xf32, #tpu.memory_space<vmem>>, vector<1x1x64x64xf32>
    %298 = vector.shape_cast %297 : vector<1x1x64x64xf32> to vector<64x64xf32>
    %299 = arith.addf %296, %298 : vector<64x64xf32>
    %cst_152 = arith.constant dense<0xFF800000> : vector<64xf32>
    %300 = vector.multi_reduction <maximumf>, %299, %cst_152 [1] : vector<64x64xf32> to vector<64xf32>
    %301 = vector.shape_cast %300 : vector<64xf32> to vector<64x1xf32>
    %302 = vector.broadcast %301 : vector<64x1xf32> to vector<64x64xf32>
    %303 = arith.subf %299, %302 : vector<64x64xf32>
    %304 = math.exp %303 : vector<64x64xf32>
    %cst_153 = arith.constant dense<0.000000e+00> : vector<64xf32>
    %305 = vector.multi_reduction <add>, %304, %cst_153 [1] : vector<64x64xf32> to vector<64xf32>
    %306 = vector.shape_cast %305 : vector<64xf32> to vector<64x1xf32>
    %307 = tpu.reciprocal %306 {approx = true} : vector<64x1xf32> -> vector<64x1xf32>
    %308 = vector.broadcast %307 : vector<64x1xf32> to vector<64x64xf32>
    %309 = arith.mulf %304, %308 : vector<64x64xf32>
    %cst_154 = arith.constant dense<0.000000e+00> : vector<64x8xf32>
    %310 = tpu.matmul %309, %295, %cst_154 {dimension_numbers = #tpu.dot_dimension_numbers<[1], [0], [0], [1], [0, 0, 1, 1], [], []>} : vector<64x64xf32>, vector<64x8xf32>, vector<64x8xf32> -> vector<64x8xf32>
    %311 = vector.extract_strided_slice %268 {offsets = [8, 0], sizes = [8, 32], strides = [1, 1]} : vector<32x32xf32> to vector<8x32xf32>
    %cst_155 = arith.constant dense<0.000000e+00> : vector<64x32xf32>
    %312 = tpu.matmul %310, %311, %cst_155 {dimension_numbers = #tpu.dot_dimension_numbers<[1], [0], [0], [1], [0, 0, 1, 1], [], []>} : vector<64x8xf32>, vector<8x32xf32>, vector<64x32xf32> -> vector<64x32xf32>
    %313 = arith.addf %290, %312 : vector<64x32xf32>
    %314 = vector.extract_strided_slice %266 {offsets = [0, 16], sizes = [64, 8], strides = [1, 1]} : vector<64x96xf32> to vector<64x8xf32>
    %cst_156 = arith.constant 0.353553385 : f32
    %315 = vector.broadcast %cst_156 : f32 to vector<64x8xf32>
    %316 = arith.mulf %314, %315 : vector<64x8xf32>
    %317 = vector.extract_strided_slice %266 {offsets = [0, 48], sizes = [64, 8], strides = [1, 1]} : vector<64x96xf32> to vector<64x8xf32>
    %318 = vector.extract_strided_slice %266 {offsets = [0, 80], sizes = [64, 8], strides = [1, 1]} : vector<64x96xf32> to vector<64x8xf32>
    %cst_157 = arith.constant dense<0.000000e+00> : vector<64x64xf32>
    %319 = tpu.matmul %316, %317, %cst_157 {dimension_numbers = #tpu.dot_dimension_numbers<[1], [1], [0], [0], [0, 0, 1, 0], [], []>} : vector<64x8xf32>, vector<64x8xf32>, vector<64x64xf32> -> vector<64x64xf32>
    %c1_158 = arith.constant 1 : index
    %c2_159 = arith.constant 2 : index
    %c0_160 = arith.constant 0 : index
    %c0_161 = arith.constant 0 : index
    %320 = vector.load %arg10[%c1_158, %c2_159, %c0_160, %c0_161] : memref<2x4x64x64xf32, #tpu.memory_space<vmem>>, vector<1x1x64x64xf32>
    %321 = vector.shape_cast %320 : vector<1x1x64x64xf32> to vector<64x64xf32>
    %322 = arith.addf %319, %321 : vector<64x64xf32>
    %cst_162 = arith.constant dense<0xFF800000> : vector<64xf32>
    %323 = vector.multi_reduction <maximumf>, %322, %cst_162 [1] : vector<64x64xf32> to vector<64xf32>
    %324 = vector.shape_cast %323 : vector<64xf32> to vector<64x1xf32>
    %325 = vector.broadcast %324 : vector<64x1xf32> to vector<64x64xf32>
    %326 = arith.subf %322, %325 : vector<64x64xf32>
    %327 = math.exp %326 : vector<64x64xf32>
    %cst_163 = arith.constant dense<0.000000e+00> : vector<64xf32>
    %328 = vector.multi_reduction <add>, %327, %cst_163 [1] : vector<64x64xf32> to vector<64xf32>
    %329 = vector.shape_cast %328 : vector<64xf32> to vector<64x1xf32>
    %330 = tpu.reciprocal %329 {approx = true} : vector<64x1xf32> -> vector<64x1xf32>
    %331 = vector.broadcast %330 : vector<64x1xf32> to vector<64x64xf32>
    %332 = arith.mulf %327, %331 : vector<64x64xf32>
    %cst_164 = arith.constant dense<0.000000e+00> : vector<64x8xf32>
    %333 = tpu.matmul %332, %318, %cst_164 {dimension_numbers = #tpu.dot_dimension_numbers<[1], [0], [0], [1], [0, 0, 1, 1], [], []>} : vector<64x64xf32>, vector<64x8xf32>, vector<64x8xf32> -> vector<64x8xf32>
    %334 = vector.extract_strided_slice %268 {offsets = [16, 0], sizes = [8, 32], strides = [1, 1]} : vector<32x32xf32> to vector<8x32xf32>
    %cst_165 = arith.constant dense<0.000000e+00> : vector<64x32xf32>
    %335 = tpu.matmul %333, %334, %cst_165 {dimension_numbers = #tpu.dot_dimension_numbers<[1], [0], [0], [1], [0, 0, 1, 1], [], []>} : vector<64x8xf32>, vector<8x32xf32>, vector<64x32xf32> -> vector<64x32xf32>
    %336 = arith.addf %313, %335 : vector<64x32xf32>
    %337 = vector.extract_strided_slice %266 {offsets = [0, 24], sizes = [64, 8], strides = [1, 1]} : vector<64x96xf32> to vector<64x8xf32>
    %cst_166 = arith.constant 0.353553385 : f32
    %338 = vector.broadcast %cst_166 : f32 to vector<64x8xf32>
    %339 = arith.mulf %337, %338 : vector<64x8xf32>
    %340 = vector.extract_strided_slice %266 {offsets = [0, 56], sizes = [64, 8], strides = [1, 1]} : vector<64x96xf32> to vector<64x8xf32>
    %341 = vector.extract_strided_slice %266 {offsets = [0, 88], sizes = [64, 8], strides = [1, 1]} : vector<64x96xf32> to vector<64x8xf32>
    %cst_167 = arith.constant dense<0.000000e+00> : vector<64x64xf32>
    %342 = tpu.matmul %339, %340, %cst_167 {dimension_numbers = #tpu.dot_dimension_numbers<[1], [1], [0], [0], [0, 0, 1, 0], [], []>} : vector<64x8xf32>, vector<64x8xf32>, vector<64x64xf32> -> vector<64x64xf32>
    %c1_168 = arith.constant 1 : index
    %c3_169 = arith.constant 3 : index
    %c0_170 = arith.constant 0 : index
    %c0_171 = arith.constant 0 : index
    %343 = vector.load %arg10[%c1_168, %c3_169, %c0_170, %c0_171] : memref<2x4x64x64xf32, #tpu.memory_space<vmem>>, vector<1x1x64x64xf32>
    %344 = vector.shape_cast %343 : vector<1x1x64x64xf32> to vector<64x64xf32>
    %345 = arith.addf %342, %344 : vector<64x64xf32>
    %cst_172 = arith.constant dense<0xFF800000> : vector<64xf32>
    %346 = vector.multi_reduction <maximumf>, %345, %cst_172 [1] : vector<64x64xf32> to vector<64xf32>
    %347 = vector.shape_cast %346 : vector<64xf32> to vector<64x1xf32>
    %348 = vector.broadcast %347 : vector<64x1xf32> to vector<64x64xf32>
    %349 = arith.subf %345, %348 : vector<64x64xf32>
    %350 = math.exp %349 : vector<64x64xf32>
    %cst_173 = arith.constant dense<0.000000e+00> : vector<64xf32>
    %351 = vector.multi_reduction <add>, %350, %cst_173 [1] : vector<64x64xf32> to vector<64xf32>
    %352 = vector.shape_cast %351 : vector<64xf32> to vector<64x1xf32>
    %353 = tpu.reciprocal %352 {approx = true} : vector<64x1xf32> -> vector<64x1xf32>
    %354 = vector.broadcast %353 : vector<64x1xf32> to vector<64x64xf32>
    %355 = arith.mulf %350, %354 : vector<64x64xf32>
    %cst_174 = arith.constant dense<0.000000e+00> : vector<64x8xf32>
    %356 = tpu.matmul %355, %341, %cst_174 {dimension_numbers = #tpu.dot_dimension_numbers<[1], [0], [0], [1], [0, 0, 1, 1], [], []>} : vector<64x64xf32>, vector<64x8xf32>, vector<64x8xf32> -> vector<64x8xf32>
    %357 = vector.extract_strided_slice %268 {offsets = [24, 0], sizes = [8, 32], strides = [1, 1]} : vector<32x32xf32> to vector<8x32xf32>
    %cst_175 = arith.constant dense<0.000000e+00> : vector<64x32xf32>
    %358 = tpu.matmul %356, %357, %cst_175 {dimension_numbers = #tpu.dot_dimension_numbers<[1], [0], [0], [1], [0, 0, 1, 1], [], []>} : vector<64x8xf32>, vector<8x32xf32>, vector<64x32xf32> -> vector<64x32xf32>
    %359 = arith.addf %336, %358 : vector<64x32xf32>
    %360 = arith.addf %235, %359 : vector<64x32xf32>
    %c1_176 = arith.constant 1 : index
    %c0_177 = arith.constant 0 : index
    %c0_178 = arith.constant 0 : index
    %361 = vector.load %arg12[%c1_176, %c0_177, %c0_178] : memref<2x1x32xf32, #tpu.memory_space<vmem>>, vector<1x1x32xf32>
    %362 = vector.shape_cast %361 : vector<1x1x32xf32> to vector<1x32xf32>
    %363 = vector.broadcast %362 : vector<1x32xf32> to vector<64x32xf32>
    %364 = arith.addf %360, %363 : vector<64x32xf32>
    %c1_179 = arith.constant 1 : index
    %c0_180 = arith.constant 0 : index
    %c0_181 = arith.constant 0 : index
    %365 = vector.load %arg13[%c1_179, %c0_180, %c0_181] : memref<2x1x32xf32, #tpu.memory_space<vmem>>, vector<1x1x32xf32>
    %366 = vector.shape_cast %365 : vector<1x1x32xf32> to vector<1x32xf32>
    %c1_182 = arith.constant 1 : index
    %c0_183 = arith.constant 0 : index
    %c0_184 = arith.constant 0 : index
    %367 = vector.load %arg14[%c1_182, %c0_183, %c0_184] : memref<2x1x32xf32, #tpu.memory_space<vmem>>, vector<1x1x32xf32>
    %368 = vector.shape_cast %367 : vector<1x1x32xf32> to vector<1x32xf32>
    %cst_185 = arith.constant dense<0.000000e+00> : vector<64xf32>
    %369 = vector.multi_reduction <add>, %364, %cst_185 [1] : vector<64x32xf32> to vector<64xf32>
    %370 = vector.shape_cast %369 : vector<64xf32> to vector<64x1xf32>
    %cst_186 = arith.constant 3.200000e+01 : f32
    %371 = vector.broadcast %cst_186 : f32 to vector<64x1xf32>
    %372 = arith.divf %370, %371 : vector<64x1xf32>
    %373 = vector.broadcast %372 : vector<64x1xf32> to vector<64x32xf32>
    %374 = arith.subf %364, %373 : vector<64x32xf32>
    %375 = arith.mulf %374, %374 : vector<64x32xf32>
    %cst_187 = arith.constant dense<0.000000e+00> : vector<64xf32>
    %376 = vector.multi_reduction <add>, %375, %cst_187 [1] : vector<64x32xf32> to vector<64xf32>
    %377 = vector.shape_cast %376 : vector<64xf32> to vector<64x1xf32>
    %cst_188 = arith.constant 3.200000e+01 : f32
    %378 = vector.broadcast %cst_188 : f32 to vector<64x1xf32>
    %379 = arith.divf %377, %378 : vector<64x1xf32>
    %cst_189 = arith.constant 9.99999997E-7 : f32
    %380 = vector.broadcast %cst_189 : f32 to vector<64x1xf32>
    %381 = arith.addf %379, %380 : vector<64x1xf32>
    %382 = math.rsqrt %381 : vector<64x1xf32>
    %383 = vector.broadcast %382 : vector<64x1xf32> to vector<64x32xf32>
    %384 = arith.mulf %374, %383 : vector<64x32xf32>
    %385 = vector.broadcast %366 : vector<1x32xf32> to vector<64x32xf32>
    %386 = arith.mulf %384, %385 : vector<64x32xf32>
    %387 = vector.broadcast %368 : vector<1x32xf32> to vector<64x32xf32>
    %388 = arith.addf %386, %387 : vector<64x32xf32>
    %c1_190 = arith.constant 1 : index
    %c0_191 = arith.constant 0 : index
    %c0_192 = arith.constant 0 : index
    %389 = vector.load %arg15[%c1_190, %c0_191, %c0_192] : memref<2x32x128xf32, #tpu.memory_space<vmem>>, vector<1x32x128xf32>
    %390 = vector.shape_cast %389 : vector<1x32x128xf32> to vector<32x128xf32>
    %cst_193 = arith.constant dense<0.000000e+00> : vector<64x128xf32>
    %391 = tpu.matmul %388, %390, %cst_193 {dimension_numbers = #tpu.dot_dimension_numbers<[1], [0], [0], [1], [0, 0, 1, 1], [], []>} : vector<64x32xf32>, vector<32x128xf32>, vector<64x128xf32> -> vector<64x128xf32>
    %c1_194 = arith.constant 1 : index
    %c0_195 = arith.constant 0 : index
    %c0_196 = arith.constant 0 : index
    %392 = vector.load %arg16[%c1_194, %c0_195, %c0_196] : memref<2x1x128xf32, #tpu.memory_space<vmem>>, vector<1x1x128xf32>
    %393 = vector.shape_cast %392 : vector<1x1x128xf32> to vector<1x128xf32>
    %394 = vector.broadcast %393 : vector<1x128xf32> to vector<64x128xf32>
    %395 = arith.addf %391, %394 : vector<64x128xf32>
    %cst_197 = arith.constant 5.000000e-01 : f32
    %396 = vector.broadcast %cst_197 : f32 to vector<64x128xf32>
    %397 = arith.mulf %396, %395 : vector<64x128xf32>
    %cst_198 = arith.constant 0.707106769 : f32
    %398 = vector.broadcast %cst_198 : f32 to vector<64x128xf32>
    %399 = arith.mulf %395, %398 : vector<64x128xf32>
    %400 = math.absf %399 : vector<64x128xf32>
    %cst_199 = arith.constant 0.327591091 : f32
    %401 = vector.broadcast %cst_199 : f32 to vector<64x128xf32>
    %402 = arith.mulf %401, %400 : vector<64x128xf32>
    %cst_200 = arith.constant 1.000000e+00 : f32
    %403 = vector.broadcast %cst_200 : f32 to vector<64x128xf32>
    %404 = arith.addf %403, %402 : vector<64x128xf32>
    %cst_201 = arith.constant 1.000000e+00 : f32
    %405 = vector.broadcast %cst_201 : f32 to vector<64x128xf32>
    %406 = arith.divf %405, %404 : vector<64x128xf32>
    %cst_202 = arith.constant 1.06140542 : f32
    %407 = vector.broadcast %cst_202 : f32 to vector<64x128xf32>
    %408 = arith.mulf %407, %406 : vector<64x128xf32>
    %cst_203 = arith.constant -1.45315206 : f32
    %409 = vector.broadcast %cst_203 : f32 to vector<64x128xf32>
    %410 = arith.addf %408, %409 : vector<64x128xf32>
    %411 = arith.mulf %410, %406 : vector<64x128xf32>
    %cst_204 = arith.constant 1.42141378 : f32
    %412 = vector.broadcast %cst_204 : f32 to vector<64x128xf32>
    %413 = arith.addf %411, %412 : vector<64x128xf32>
    %414 = arith.mulf %413, %406 : vector<64x128xf32>
    %cst_205 = arith.constant -0.284496725 : f32
    %415 = vector.broadcast %cst_205 : f32 to vector<64x128xf32>
    %416 = arith.addf %414, %415 : vector<64x128xf32>
    %417 = arith.mulf %416, %406 : vector<64x128xf32>
    %cst_206 = arith.constant 0.254829586 : f32
    %418 = vector.broadcast %cst_206 : f32 to vector<64x128xf32>
    %419 = arith.addf %417, %418 : vector<64x128xf32>
    %420 = arith.mulf %419, %406 : vector<64x128xf32>
    %cst_207 = arith.constant 0.000000e+00 : f32
    %421 = vector.broadcast %cst_207 : f32 to vector<64x128xf32>
    %422 = arith.subf %421, %400 : vector<64x128xf32>
    %423 = arith.mulf %422, %400 : vector<64x128xf32>
    %424 = math.exp %423 : vector<64x128xf32>
    %425 = arith.mulf %420, %424 : vector<64x128xf32>
    %cst_208 = arith.constant 1.000000e+00 : f32
    %426 = vector.broadcast %cst_208 : f32 to vector<64x128xf32>
    %427 = arith.subf %426, %425 : vector<64x128xf32>
    %cst_209 = arith.constant 0.000000e+00 : f32
    %428 = vector.broadcast %cst_209 : f32 to vector<64x128xf32>
    %429 = arith.cmpf olt, %399, %428 : vector<64x128xf32>
    %cst_210 = arith.constant 0.000000e+00 : f32
    %430 = vector.broadcast %cst_210 : f32 to vector<64x128xf32>
    %431 = arith.subf %430, %427 : vector<64x128xf32>
    %432 = arith.select %429, %431, %427 : vector<64x128xi1>, vector<64x128xf32>
    %cst_211 = arith.constant 1.000000e+00 : f32
    %433 = vector.broadcast %cst_211 : f32 to vector<64x128xf32>
    %434 = arith.addf %433, %432 : vector<64x128xf32>
    %435 = arith.mulf %397, %434 : vector<64x128xf32>
    %c1_212 = arith.constant 1 : index
    %c0_213 = arith.constant 0 : index
    %c0_214 = arith.constant 0 : index
    %436 = vector.load %arg17[%c1_212, %c0_213, %c0_214] : memref<2x128x32xf32, #tpu.memory_space<vmem>>, vector<1x128x32xf32>
    %437 = vector.shape_cast %436 : vector<1x128x32xf32> to vector<128x32xf32>
    %cst_215 = arith.constant dense<0.000000e+00> : vector<64x32xf32>
    %438 = tpu.matmul %435, %437, %cst_215 {dimension_numbers = #tpu.dot_dimension_numbers<[1], [0], [0], [1], [0, 0, 1, 1], [], []>} : vector<64x128xf32>, vector<128x32xf32>, vector<64x32xf32> -> vector<64x32xf32>
    %c1_216 = arith.constant 1 : index
    %c0_217 = arith.constant 0 : index
    %c0_218 = arith.constant 0 : index
    %439 = vector.load %arg18[%c1_216, %c0_217, %c0_218] : memref<2x1x32xf32, #tpu.memory_space<vmem>>, vector<1x1x32xf32>
    %440 = vector.shape_cast %439 : vector<1x1x32xf32> to vector<1x32xf32>
    %441 = vector.broadcast %440 : vector<1x32xf32> to vector<64x32xf32>
    %442 = arith.addf %438, %441 : vector<64x32xf32>
    %443 = arith.addf %364, %442 : vector<64x32xf32>
    %c0_219 = arith.constant 0 : index
    %c0_220 = arith.constant 0 : index
    %444 = vector.load %arg19[%c0_219, %c0_220] : memref<1x32xf32, #tpu.memory_space<vmem>>, vector<1x32xf32>
    %c0_221 = arith.constant 0 : index
    %c0_222 = arith.constant 0 : index
    %445 = vector.load %arg20[%c0_221, %c0_222] : memref<1x32xf32, #tpu.memory_space<vmem>>, vector<1x32xf32>
    %cst_223 = arith.constant dense<0.000000e+00> : vector<64xf32>
    %446 = vector.multi_reduction <add>, %443, %cst_223 [1] : vector<64x32xf32> to vector<64xf32>
    %447 = vector.shape_cast %446 : vector<64xf32> to vector<64x1xf32>
    %cst_224 = arith.constant 3.200000e+01 : f32
    %448 = vector.broadcast %cst_224 : f32 to vector<64x1xf32>
    %449 = arith.divf %447, %448 : vector<64x1xf32>
    %450 = vector.broadcast %449 : vector<64x1xf32> to vector<64x32xf32>
    %451 = arith.subf %443, %450 : vector<64x32xf32>
    %452 = arith.mulf %451, %451 : vector<64x32xf32>
    %cst_225 = arith.constant dense<0.000000e+00> : vector<64xf32>
    %453 = vector.multi_reduction <add>, %452, %cst_225 [1] : vector<64x32xf32> to vector<64xf32>
    %454 = vector.shape_cast %453 : vector<64xf32> to vector<64x1xf32>
    %cst_226 = arith.constant 3.200000e+01 : f32
    %455 = vector.broadcast %cst_226 : f32 to vector<64x1xf32>
    %456 = arith.divf %454, %455 : vector<64x1xf32>
    %cst_227 = arith.constant 9.99999997E-7 : f32
    %457 = vector.broadcast %cst_227 : f32 to vector<64x1xf32>
    %458 = arith.addf %456, %457 : vector<64x1xf32>
    %459 = math.rsqrt %458 : vector<64x1xf32>
    %460 = vector.broadcast %459 : vector<64x1xf32> to vector<64x32xf32>
    %461 = arith.mulf %451, %460 : vector<64x32xf32>
    %462 = vector.broadcast %444 : vector<1x32xf32> to vector<64x32xf32>
    %463 = arith.mulf %461, %462 : vector<64x32xf32>
    %464 = vector.broadcast %445 : vector<1x32xf32> to vector<64x32xf32>
    %465 = arith.addf %463, %464 : vector<64x32xf32>
    %c0_228 = arith.constant 0 : index
    %c0_229 = arith.constant 0 : index
    %466 = vector.load %arg21[%c0_228, %c0_229] : memref<32x64xf32, #tpu.memory_space<vmem>>, vector<32x64xf32>
    %cst_230 = arith.constant dense<0.000000e+00> : vector<64x64xf32>
    %467 = tpu.matmul %465, %466, %cst_230 {dimension_numbers = #tpu.dot_dimension_numbers<[1], [0], [0], [1], [0, 0, 1, 1], [], []>} : vector<64x32xf32>, vector<32x64xf32>, vector<64x64xf32> -> vector<64x64xf32>
    %c0_231 = arith.constant 0 : index
    %c0_232 = arith.constant 0 : index
    %468 = vector.load %arg22[%c0_231, %c0_232] : memref<1x64xf32, #tpu.memory_space<vmem>>, vector<1x64xf32>
    %469 = vector.broadcast %468 : vector<1x64xf32> to vector<64x64xf32>
    %470 = arith.addf %467, %469 : vector<64x64xf32>
    %c0_233 = arith.constant 0 : index
    %c0_234 = arith.constant 0 : index
    %471 = vector.load %arg23[%c0_233, %c0_234] : memref<64x64xf32, #tpu.memory_space<vmem>>, vector<64x64xf32>
    tpu.vector_store %arg23[%c0_233, %c0_234], %470 {strides = array<i32>} : memref<64x64xf32, #tpu.memory_space<vmem>>, vector<64x64xf32>,
    return
  }
  func.func @transform_0(%arg0: i32) -> (i32, i32) {
    %c0_i32 = arith.constant 0 : i32
    %c0_i32_0 = arith.constant 0 : i32
    %c0_i32_1 = arith.constant 0 : i32
    return %c0_i32, %c0_i32_0 : i32, i32
  }
  func.func @transform_1(%arg0: i32) -> (i32, i32) {
    %c0_i32 = arith.constant 0 : i32
    %c0_i32_0 = arith.constant 0 : i32
    %c0_i32_1 = arith.constant 0 : i32
    return %c0_i32, %c0_i32_0 : i32, i32
  }
  func.func @transform_2(%arg0: i32) -> (i32, i32) {
    %c0_i32 = arith.constant 0 : i32
    %c0_i32_0 = arith.constant 0 : i32
    %c0_i32_1 = arith.constant 0 : i32
    return %c0_i32, %c0_i32_0 : i32, i32
  }
  func.func @transform_3(%arg0: i32) -> (i32, i32) {
    %c0_i32 = arith.constant 0 : i32
    %c0_i32_0 = arith.constant 0 : i32
    %c0_i32_1 = arith.constant 0 : i32
    return %c0_i32, %c0_i32_0 : i32, i32
  }
  func.func @transform_4(%arg0: i32) -> (i32, i32) {
    %c0_i32 = arith.constant 0 : i32
    %c0_i32_0 = arith.constant 0 : i32
    %c0_i32_1 = arith.constant 0 : i32
    return %c0_i32, %c0_i32_0 : i32, i32
  }
  func.func @transform_5(%arg0: i32) -> (i32, i32, i32) {
    %c0_i32 = arith.constant 0 : i32
    %c0_i32_0 = arith.constant 0 : i32
    %c0_i32_1 = arith.constant 0 : i32
    %c0_i32_2 = arith.constant 0 : i32
    return %c0_i32, %c0_i32_0, %c0_i32_1 : i32, i32, i32
  }
  func.func @transform_6(%arg0: i32) -> (i32, i32, i32) {
    %c0_i32 = arith.constant 0 : i32
    %c0_i32_0 = arith.constant 0 : i32
    %c0_i32_1 = arith.constant 0 : i32
    %c0_i32_2 = arith.constant 0 : i32
    return %c0_i32, %c0_i32_0, %c0_i32_1 : i32, i32, i32
  }
  func.func @transform_7(%arg0: i32) -> (i32, i32, i32) {
    %c0_i32 = arith.constant 0 : i32
    %c0_i32_0 = arith.constant 0 : i32
    %c0_i32_1 = arith.constant 0 : i32
    %c0_i32_2 = arith.constant 0 : i32
    return %c0_i32, %c0_i32_0, %c0_i32_1 : i32, i32, i32
  }
  func.func @transform_8(%arg0: i32) -> (i32, i32, i32) {
    %c0_i32 = arith.constant 0 : i32
    %c0_i32_0 = arith.constant 0 : i32
    %c0_i32_1 = arith.constant 0 : i32
    %c0_i32_2 = arith.constant 0 : i32
    return %c0_i32, %c0_i32_0, %c0_i32_1 : i32, i32, i32
  }
  func.func @transform_9(%arg0: i32) -> (i32, i32, i32, i32) {
    %c0_i32 = arith.constant 0 : i32
    %c0_i32_0 = arith.constant 0 : i32
    %c0_i32_1 = arith.constant 0 : i32
    %c0_i32_2 = arith.constant 0 : i32
    %c0_i32_3 = arith.constant 0 : i32
    return %c0_i32, %c0_i32_0, %c0_i32_1, %c0_i32_2 : i32, i32, i32, i32
  }
  func.func @transform_10(%arg0: i32) -> (i32, i32, i32) {
    %c0_i32 = arith.constant 0 : i32
    %c0_i32_0 = arith.constant 0 : i32
    %c0_i32_1 = arith.constant 0 : i32
    %c0_i32_2 = arith.constant 0 : i32
    return %c0_i32, %c0_i32_0, %c0_i32_1 : i32, i32, i32
  }
  func.func @transform_11(%arg0: i32) -> (i32, i32, i32) {
    %c0_i32 = arith.constant 0 : i32
    %c0_i32_0 = arith.constant 0 : i32
    %c0_i32_1 = arith.constant 0 : i32
    %c0_i32_2 = arith.constant 0 : i32
    return %c0_i32, %c0_i32_0, %c0_i32_1 : i32, i32, i32
  }
  func.func @transform_12(%arg0: i32) -> (i32, i32, i32) {
    %c0_i32 = arith.constant 0 : i32
    %c0_i32_0 = arith.constant 0 : i32
    %c0_i32_1 = arith.constant 0 : i32
    %c0_i32_2 = arith.constant 0 : i32
    return %c0_i32, %c0_i32_0, %c0_i32_1 : i32, i32, i32
  }
  func.func @transform_13(%arg0: i32) -> (i32, i32, i32) {
    %c0_i32 = arith.constant 0 : i32
    %c0_i32_0 = arith.constant 0 : i32
    %c0_i32_1 = arith.constant 0 : i32
    %c0_i32_2 = arith.constant 0 : i32
    return %c0_i32, %c0_i32_0, %c0_i32_1 : i32, i32, i32
  }
  func.func @transform_14(%arg0: i32) -> (i32, i32, i32) {
    %c0_i32 = arith.constant 0 : i32
    %c0_i32_0 = arith.constant 0 : i32
    %c0_i32_1 = arith.constant 0 : i32
    %c0_i32_2 = arith.constant 0 : i32
    return %c0_i32, %c0_i32_0, %c0_i32_1 : i32, i32, i32
  }
  func.func @transform_15(%arg0: i32) -> (i32, i32, i32) {
    %c0_i32 = arith.constant 0 : i32
    %c0_i32_0 = arith.constant 0 : i32
    %c0_i32_1 = arith.constant 0 : i32
    %c0_i32_2 = arith.constant 0 : i32
    return %c0_i32, %c0_i32_0, %c0_i32_1 : i32, i32, i32
  }
  func.func @transform_16(%arg0: i32) -> (i32, i32, i32) {
    %c0_i32 = arith.constant 0 : i32
    %c0_i32_0 = arith.constant 0 : i32
    %c0_i32_1 = arith.constant 0 : i32
    %c0_i32_2 = arith.constant 0 : i32
    return %c0_i32, %c0_i32_0, %c0_i32_1 : i32, i32, i32
  }
  func.func @transform_17(%arg0: i32) -> (i32, i32, i32) {
    %c0_i32 = arith.constant 0 : i32
    %c0_i32_0 = arith.constant 0 : i32
    %c0_i32_1 = arith.constant 0 : i32
    %c0_i32_2 = arith.constant 0 : i32
    return %c0_i32, %c0_i32_0, %c0_i32_1 : i32, i32, i32
  }
  func.func @transform_18(%arg0: i32) -> (i32, i32) {
    %c0_i32 = arith.constant 0 : i32
    %c0_i32_0 = arith.constant 0 : i32
    %c0_i32_1 = arith.constant 0 : i32
    return %c0_i32, %c0_i32_0 : i32, i32
  }
  func.func @transform_19(%arg0: i32) -> (i32, i32) {
    %c0_i32 = arith.constant 0 : i32
    %c0_i32_0 = arith.constant 0 : i32
    %c0_i32_1 = arith.constant 0 : i32
    return %c0_i32, %c0_i32_0 : i32, i32
  }
  func.func @transform_20(%arg0: i32) -> (i32, i32) {
    %c0_i32 = arith.constant 0 : i32
    %c0_i32_0 = arith.constant 0 : i32
    %c0_i32_1 = arith.constant 0 : i32
    return %c0_i32, %c0_i32_0 : i32, i32
  }
  func.func @transform_21(%arg0: i32) -> (i32, i32) {
    %c0_i32 = arith.constant 0 : i32
    %c0_i32_0 = arith.constant 0 : i32
    %c0_i32_1 = arith.constant 0 : i32
    return %c0_i32, %c0_i32_0 : i32, i32
  }
  func.func @transform_22(%arg0: i32) -> (i32, i32) {
    %c0_i32 = arith.constant 0 : i32
    %c0_i32_0 = arith.constant 0 : i32
    %c0_i32_1 = arith.constant 0 : i32
    return %c0_i32, %c0_i32_0 : i32, i32
  }
}

</mosaic_0001>

<bundles_post_ra>
// kernel: tile.9
= control target key start
LH: loop header
LB: loop body
LE: loop exit
PB: predicated region body
PF: predicated region fallthrough
CT: control target
= control target key end

     0   :  { %vm2563_vm0 = vcmask 1047556   ;;  %s4985_s10 = smov 32   ;;  %vm2565_vm1 = vcmask 261120   ;;  %vm3142_vm2 = vcmask 523520   ;;  %s7359_s0 = inlined_call_operand.vmem [shape: f32[2,4,2,32,2,32], index: 0, kind: input, shape index: {}]   ;;  %s7360_s1 = inlined_call_operand.vmem [shape: f32[2,4,64,64], index: 1, kind: output, shape index: {}]  }
   0x1   :  { %v4851_v0 = vld [vmem:[%s7359_s0 + $0xe] sm:$0x3]  ;;  %v4852_v1 = vld [vmem:[%s7359_s0 + $0xc] sm:$0x3]  ;;  %v4853_v2 = vld [vmem:[%s7359_s0 + $0xa] sm:$0x3] }
   0x2   :  { %2529 = vst [vmem:[#allocation0 + $0x38] sm:$0x3] %v4851_v0  ;;  %2534 = vst [vmem:[#allocation0 + $0x30] sm:$0x3] %v4852_v1  ;;  %v4854_v3 = vld [vmem:[%s7359_s0 + $0x8] sm:$0x3] }
   0x3   :  { %2539 = vst [vmem:[#allocation0 + $0x28] sm:$0x3] %v4853_v2  ;;  %v4855_v4 = vld [vmem:[%s7359_s0 + $0x6] sm:$0x3]  ;;  %v4856_v5 = vld [vmem:[%s7359_s0 + $0x4] sm:$0x3] }
   0x4   :  { %2544 = vst [vmem:[#allocation0 + $0x20] sm:$0x3] %v4854_v3  ;;  %2549 = vst [vmem:[#allocation0 + $0x18] sm:$0x3] %v4855_v4  ;;  %v4857_v6 = vld [vmem:[%s7359_s0 + $0x2] sm:$0x3] }
   0x5   :  { %2554 = vst [vmem:[#allocation0 + $0x10] sm:$0x3] %v4856_v5  ;;  %v2559_v7 = vld [vmem:[%s7359_s0] sm:$0x3]  ;;  %2558 = vst [vmem:[#allocation0 + $0x8] sm:$0x3] %v4857_v6 }
   0x6   :  { %2560 = vst [vmem:[#allocation0] sm:$0x3] %v2559_v7  ;;  %v4787_v8 = vld [vmem:[%s7359_s0 + $0x8e] sm:$0x3]  ;;  %v4788_v9 = vld [vmem:[%s7359_s0 + $0x8c] sm:$0x3] }
   0x7   :  { %v4789_v10 = vld [vmem:[%s7359_s0 + $0x8a] sm:$0x3]  ;;  %2209 = vst [vmem:[#allocation0 + $0x238] sm:$0x3] %v4787_v8  ;;  %2214 = vst [vmem:[#allocation0 + $0x230] sm:$0x3] %v4788_v9 }
   0x8   :  { %2219 = vst [vmem:[#allocation0 + $0x228] sm:$0x3] %v4789_v10  ;;  %v4790_v11 = vld [vmem:[%s7359_s0 + $0x88] sm:$0x3]  ;;  %v4791_v12 = vld [vmem:[%s7359_s0 + $0x86] sm:$0x3] }
   0x9   :  { %v4792_v13 = vld [vmem:[%s7359_s0 + $0x84] sm:$0x3]  ;;  %2224 = vst [vmem:[#allocation0 + $0x220] sm:$0x3] %v4790_v11  ;;  %2229 = vst [vmem:[#allocation0 + $0x218] sm:$0x3] %v4791_v12 }
   0xa   :  { %2234 = vst [vmem:[#allocation0 + $0x210] sm:$0x3] %v4792_v13  ;;  %v4793_v14 = vld [vmem:[%s7359_s0 + $0x82] sm:$0x3]  ;;  %v4794_v15 = vld [vmem:[%s7359_s0 + $0x80] sm:$0x3] }
   0xb   :  { %v4819_v16 = vld [vmem:[%s7359_s0 + $0x4e] sm:$0x3]  ;;  %2239 = vst [vmem:[#allocation0 + $0x208] sm:$0x3] %v4793_v14  ;;  %2244 = vst [vmem:[#allocation0 + $0x200] sm:$0x3] %v4794_v15 }
   0xc   :  { %2369 = vst [vmem:[#allocation0 + $0x138] sm:$0x3] %v4819_v16  ;;  %v4820_v17 = vld [vmem:[%s7359_s0 + $0x4c] sm:$0x3]  ;;  %v4821_v18 = vld [vmem:[%s7359_s0 + $0x4a] sm:$0x3] }
   0xd   :  { %v4822_v19 = vld [vmem:[%s7359_s0 + $0x48] sm:$0x3]  ;;  %2374 = vst [vmem:[#allocation0 + $0x130] sm:$0x3] %v4820_v17  ;;  %2379 = vst [vmem:[#allocation0 + $0x128] sm:$0x3] %v4821_v18 }
   0xe   :  { %2384 = vst [vmem:[#allocation0 + $0x120] sm:$0x3] %v4822_v19  ;;  %v4823_v20 = vld [vmem:[%s7359_s0 + $0x46] sm:$0x3]  ;;  %v4824_v21 = vld [vmem:[%s7359_s0 + $0x44] sm:$0x3] }
   0xf   :  { %v4825_v22 = vld [vmem:[%s7359_s0 + $0x42] sm:$0x3]  ;;  %2389 = vst [vmem:[#allocation0 + $0x118] sm:$0x3] %v4823_v20  ;;  %2394 = vst [vmem:[#allocation0 + $0x110] sm:$0x3] %v4824_v21 }
  0x10   :  { %2399 = vst [vmem:[#allocation0 + $0x108] sm:$0x3] %v4825_v22  ;;  %v4826_v23 = vld [vmem:[%s7359_s0 + $0x40] sm:$0x3]  ;;  %v4755_v24 = vld [vmem:[%s7359_s0 + $0xce] sm:$0x3] }
  0x11   :  { %v4756_v25 = vld [vmem:[%s7359_s0 + $0xcc] sm:$0x3]  ;;  %v3137_v26 = vld [vmem:[#allocation0 + $0x1] ss:$8 sm:$0xf0]  }
  0x12   :  { %2404 = vst [vmem:[#allocation0 + $0x100] sm:$0x3] %v4826_v23  ;;  %2049 = vst [vmem:[#allocation0 + $0x338] sm:$0x3] %v4755_v24  ;;  %v4757_v27 = vld [vmem:[%s7359_s0 + $0xca] sm:$0x3] }
  0x13   :  { %2054 = vst [vmem:[#allocation0 + $0x330] sm:$0x3] %v4756_v25  ;;  %v3135_v28 = vld [vmem:[#allocation0 + $0x1] ss:$8 sm:$0xf]  }
  0x14   :  { %2059 = vst [vmem:[#allocation0 + $0x328] sm:$0x3] %v4757_v27  ;;  %v4758_v29 = vld [vmem:[%s7359_s0 + $0xc8] sm:$0x3]  ;;  %v3139_v30 = vsel %vm2563_vm0, %v3137_v26, %v3135_v28  ;;  %v4759_v31 = vld [vmem:[%s7359_s0 + $0xc6] sm:$0x3] }
  0x15   :  { %2064 = vst [vmem:[#allocation0 + $0x320] sm:$0x3] %v4758_v29  ;;  %v4760_v32 = vld [vmem:[%s7359_s0 + $0xc4] sm:$0x3]  ;;  %v4761_v33 = vld [vmem:[%s7359_s0 + $0xc2] sm:$0x3]  ;;  %3140 = vrot.lane.b32.xlu0 %v3139_v30, %s4985_s10 }
  0x16   :  { %v3158_v34 = vld [vmem:[#allocation0 + $0x201] ss:$8 sm:$0xf0]   ;;  %2069 = vst [vmem:[#allocation0 + $0x318] sm:$0x3] %v4759_v31 }
  0x17   :  { %2074 = vst [vmem:[#allocation0 + $0x310] sm:$0x3] %v4760_v32  ;;  %2079 = vst [vmem:[#allocation0 + $0x308] sm:$0x3] %v4761_v33  ;;  %v4762_v35 = vld [vmem:[%s7359_s0 + $0xc0] sm:$0x3] }
  0x18   :  { %v3156_v36 = vld [vmem:[#allocation0 + $0x201] ss:$8 sm:$0xf]   ;;  %2084 = vst [vmem:[#allocation0 + $0x300] sm:$0x3] %v4762_v35 }
  0x19   :  { %v4723_v37 = vld [vmem:[%s7359_s0 + $0x10e] sm:$0x3]  ;;  %v3160_v38 = vsel %vm2563_vm0, %v3158_v34, %v3156_v36  ;;  %v3147_v39 = vld [vmem:[#allocation0 + $0x101] ss:$8 sm:$0xf0]  }
  0x1a   :  { %1889 = vst [vmem:[#allocation0 + $0x438] sm:$0x3] %v4723_v37  ;;  %v4724_v40 = vld [vmem:[%s7359_s0 + $0x10c] sm:$0x3]  ;;  %3161 = vrot.lane.b32.xlu1 %v3160_v38, %s4985_s10  ;;  %v4725_v41 = vld [vmem:[%s7359_s0 + $0x10a] sm:$0x3] }
  0x1b   :  { %1894 = vst [vmem:[#allocation0 + $0x430] sm:$0x3] %v4724_v40  ;;  %v4726_v42 = vld [vmem:[%s7359_s0 + $0x108] sm:$0x3]  ;;  %v4727_v43 = vld [vmem:[%s7359_s0 + $0x106] sm:$0x3] }
  0x1c   :  { %v3145_v44 = vld [vmem:[#allocation0 + $0x101] ss:$8 sm:$0xf]   ;;  %1899 = vst [vmem:[#allocation0 + $0x428] sm:$0x3] %v4725_v41 }
  0x1d   :  { %1904 = vst [vmem:[#allocation0 + $0x420] sm:$0x3] %v4726_v42  ;;  %1909 = vst [vmem:[#allocation0 + $0x418] sm:$0x3] %v4727_v43  ;;  %v4728_v45 = vld [vmem:[%s7359_s0 + $0x104] sm:$0x3]  ;;  %v3149_v46 = vsel %vm2563_vm0, %v3147_v39, %v3145_v44 }
  0x1e   :  { %1914 = vst [vmem:[#allocation0 + $0x410] sm:$0x3] %v4728_v45  ;;  %v4729_v47 = vld [vmem:[%s7359_s0 + $0x102] sm:$0x3]  ;;  %v4730_v48 = vld [vmem:[%s7359_s0 + $0x100] sm:$0x3]  ;;  %3150 = vrot.lane.b32.xlu0 %v3149_v46, %s4985_s10 }
  0x1f   :  { %v4691_v49 = vld [vmem:[%s7359_s0 + $0x14e] sm:$0x3]  ;;  %v3169_v50 = vld [vmem:[#allocation0 + $0x301] ss:$8 sm:$0xf0]  }
  0x20   :  { %1919 = vst [vmem:[#allocation0 + $0x408] sm:$0x3] %v4729_v47  ;;  %1924 = vst [vmem:[#allocation0 + $0x400] sm:$0x3] %v4730_v48  ;;  %v4692_v51 = vld [vmem:[%s7359_s0 + $0x14c] sm:$0x3] }
  0x21   :  { %1729 = vst [vmem:[#allocation0 + $0x538] sm:$0x3] %v4691_v49  ;;  %1734 = vst [vmem:[#allocation0 + $0x530] sm:$0x3] %v4692_v51  ;;  %v4693_v52 = vld [vmem:[%s7359_s0 + $0x14a] sm:$0x3] }
  0x22   :  { %v4694_v53 = vld [vmem:[%s7359_s0 + $0x148] sm:$0x3]  ;;  %v4695_v54 = vld [vmem:[%s7359_s0 + $0x146] sm:$0x3]  ;;  %1739 = vst [vmem:[#allocation0 + $0x528] sm:$0x3] %v4693_v52 }
  0x23   :  { %v3167_v55 = vld [vmem:[#allocation0 + $0x301] ss:$8 sm:$0xf]   ;;  %1744 = vst [vmem:[#allocation0 + $0x520] sm:$0x3] %v4694_v53 }
  0x24   :  { %1749 = vst [vmem:[#allocation0 + $0x518] sm:$0x3] %v4695_v54  ;;  %v4696_v56 = vld [vmem:[%s7359_s0 + $0x144] sm:$0x3]  ;;  %v3171_v57 = vsel %vm2563_vm0, %v3169_v50, %v3167_v55  ;;  %v4697_v58 = vld [vmem:[%s7359_s0 + $0x142] sm:$0x3] }
  0x25   :  { %1754 = vst [vmem:[#allocation0 + $0x510] sm:$0x3] %v4696_v56  ;;  %v4698_v59 = vld [vmem:[%s7359_s0 + $0x140] sm:$0x3]  ;;  %v4659_v60 = vld [vmem:[%s7359_s0 + $0x18e] sm:$0x3]  ;;  %3172 = vrot.lane.b32.xlu1 %v3171_v57, %s4985_s10 }
  0x26   :  { %1759 = vst [vmem:[#allocation0 + $0x508] sm:$0x3] %v4697_v58  ;;  %1764 = vst [vmem:[#allocation0 + $0x500] sm:$0x3] %v4698_v59  ;;  %v4660_v61 = vld [vmem:[%s7359_s0 + $0x18c] sm:$0x3] }
  0x27   :  { %1569 = vst [vmem:[#allocation0 + $0x638] sm:$0x3] %v4659_v60  ;;  %v4661_v62 = vld [vmem:[%s7359_s0 + $0x18a] sm:$0x3]  ;;  %v4662_v63 = vld [vmem:[%s7359_s0 + $0x188] sm:$0x3] }
  0x28   :  { %v3180_v0 = vld [vmem:[#allocation0 + $0x401] ss:$8 sm:$0xf0]   ;;  %1574 = vst [vmem:[#allocation0 + $0x630] sm:$0x3] %v4660_v61 }
  0x29   :  { %1579 = vst [vmem:[#allocation0 + $0x628] sm:$0x3] %v4661_v62  ;;  %1584 = vst [vmem:[#allocation0 + $0x620] sm:$0x3] %v4662_v63  ;;  %v4663_v1 = vld [vmem:[%s7359_s0 + $0x186] sm:$0x3] }
  0x2a   :  { %1589 = vst [vmem:[#allocation0 + $0x618] sm:$0x3] %v4663_v1  ;;  %v4664_v2 = vld [vmem:[%s7359_s0 + $0x184] sm:$0x3]  ;;  %v4665_v3 = vld [vmem:[%s7359_s0 + $0x182] sm:$0x3] }
  0x2b   :  { %v4666_v4 = vld [vmem:[%s7359_s0 + $0x180] sm:$0x3]  ;;  %1594 = vst [vmem:[#allocation0 + $0x610] sm:$0x3] %v4664_v2  ;;  %1599 = vst [vmem:[#allocation0 + $0x608] sm:$0x3] %v4665_v3 }
  0x2c   :  { %v3178_v5 = vld [vmem:[#allocation0 + $0x401] ss:$8 sm:$0xf]   ;;  %1604 = vst [vmem:[#allocation0 + $0x600] sm:$0x3] %v4666_v4 }
  0x2d   :  { %v4627_v6 = vld [vmem:[%s7359_s0 + $0x1ce] sm:$0x3]  ;;  %v3182_v7 = vsel %vm2563_vm0, %v3180_v0, %v3178_v5  ;;  %v4628_v8 = vld [vmem:[%s7359_s0 + $0x1cc] sm:$0x3]  ;;  %v4629_v9 = vld [vmem:[%s7359_s0 + $0x1ca] sm:$0x3] }
  0x2e   :  { %1409 = vst [vmem:[#allocation0 + $0x738] sm:$0x3] %v4627_v6  ;;  %v4630_v10 = vld [vmem:[%s7359_s0 + $0x1c8] sm:$0x3]  ;;  %3183 = vrot.lane.b32.xlu0 %v3182_v7, %s4985_s10  ;;  %1414 = vst [vmem:[#allocation0 + $0x730] sm:$0x3] %v4628_v8 }
  0x2f   :  { %v3191_v11 = vld [vmem:[#allocation0 + $0x501] ss:$8 sm:$0xf0]   ;;  %1419 = vst [vmem:[#allocation0 + $0x728] sm:$0x3] %v4629_v9 }
  0x30   :  { %1424 = vst [vmem:[#allocation0 + $0x720] sm:$0x3] %v4630_v10  ;;  %v4631_v12 = vld [vmem:[%s7359_s0 + $0x1c6] sm:$0x3]  ;;  %v4632_v13 = vld [vmem:[%s7359_s0 + $0x1c4] sm:$0x3] }
  0x31   :  { %1429 = vst [vmem:[#allocation0 + $0x718] sm:$0x3] %v4631_v12  ;;  %v4633_v14 = vld [vmem:[%s7359_s0 + $0x1c2] sm:$0x3]  ;;  %v4634_v15 = vld [vmem:[%s7359_s0 + $0x1c0] sm:$0x3] }
  0x32   :  { %v3189_v16 = vld [vmem:[#allocation0 + $0x501] ss:$8 sm:$0xf]   ;;  %1434 = vst [vmem:[#allocation0 + $0x710] sm:$0x3] %v4632_v13 }
  0x33   :  { %1439 = vst [vmem:[#allocation0 + $0x708] sm:$0x3] %v4633_v14  ;;  %1444 = vst [vmem:[#allocation0 + $0x700] sm:$0x3] %v4634_v15  ;;  %v4595_v17 = vld [vmem:[%s7359_s0 + $0x20e] sm:$0x3]  ;;  %v3193_v18 = vsel %vm2563_vm0, %v3191_v11, %v3189_v16 }
  0x34   :  { %v3202_v19 = vld [vmem:[#allocation0 + $0x601] ss:$8 sm:$0xf0]   ;;  %1249 = vst [vmem:[#allocation0 + $0x838] sm:$0x3] %v4595_v17  ;;  %3194 = vrot.lane.b32.xlu1 %v3193_v18, %s4985_s10 }
  0x35   :  { %v4596_v20 = vld [vmem:[%s7359_s0 + $0x20c] sm:$0x3]  ;;  %v4597_v21 = vld [vmem:[%s7359_s0 + $0x20a] sm:$0x3]  ;;  %v4598_v22 = vld [vmem:[%s7359_s0 + $0x208] sm:$0x3] }
  0x36   :  { %1254 = vst [vmem:[#allocation0 + $0x830] sm:$0x3] %v4596_v20  ;;  %v4599_v23 = vld [vmem:[%s7359_s0 + $0x206] sm:$0x3]  ;;  %1259 = vst [vmem:[#allocation0 + $0x828] sm:$0x3] %v4597_v21 }
  0x37   :  { %v3200_v24 = vld [vmem:[#allocation0 + $0x601] ss:$8 sm:$0xf]   ;;  %1264 = vst [vmem:[#allocation0 + $0x820] sm:$0x3] %v4598_v22 }
  0x38   :  { %1269 = vst [vmem:[#allocation0 + $0x818] sm:$0x3] %v4599_v23  ;;  %v4600_v25 = vld [vmem:[%s7359_s0 + $0x204] sm:$0x3]  ;;  %v3204_v26 = vsel %vm2563_vm0, %v3202_v19, %v3200_v24  ;;  %v4601_v27 = vld [vmem:[%s7359_s0 + $0x202] sm:$0x3] }
  0x39   :  { %1274 = vst [vmem:[#allocation0 + $0x810] sm:$0x3] %v4600_v25  ;;  %v4602_v28 = vld [vmem:[%s7359_s0 + $0x200] sm:$0x3]  ;;  %v4563_v29 = vld [vmem:[%s7359_s0 + $0x24e] sm:$0x3]  ;;  %3205 = vrot.lane.b32.xlu0 %v3204_v26, %s4985_s10 }
  0x3a   :  { %v3213_v30 = vld [vmem:[#allocation0 + $0x701] ss:$8 sm:$0xf0]   ;;  %1279 = vst [vmem:[#allocation0 + $0x808] sm:$0x3] %v4601_v27 }
  0x3b   :  { %1284 = vst [vmem:[#allocation0 + $0x800] sm:$0x3] %v4602_v28  ;;  %1089 = vst [vmem:[#allocation0 + $0x938] sm:$0x3] %v4563_v29  ;;  %v4564_v31 = vld [vmem:[%s7359_s0 + $0x24c] sm:$0x3] }
  0x3c   :  { %1094 = vst [vmem:[#allocation0 + $0x930] sm:$0x3] %v4564_v31  ;;  %v4565_v32 = vld [vmem:[%s7359_s0 + $0x24a] sm:$0x3]  ;;  %v4566_v33 = vld [vmem:[%s7359_s0 + $0x248] sm:$0x3] }
  0x3d   :  { %v4567_v34 = vld [vmem:[%s7359_s0 + $0x246] sm:$0x3]  ;;  %v3211_v35 = vld [vmem:[#allocation0 + $0x701] ss:$8 sm:$0xf]  }
  0x3e   :  { %1099 = vst [vmem:[#allocation0 + $0x928] sm:$0x3] %v4565_v32  ;;  %1104 = vst [vmem:[#allocation0 + $0x920] sm:$0x3] %v4566_v33  ;;  %v4568_v36 = vld [vmem:[%s7359_s0 + $0x244] sm:$0x3]  ;;  %v3215_v37 = vsel %vm2563_vm0, %v3213_v30, %v3211_v35 }
  0x3f   :  { %1109 = vst [vmem:[#allocation0 + $0x918] sm:$0x3] %v4567_v34  ;;  %1114 = vst [vmem:[#allocation0 + $0x910] sm:$0x3] %v4568_v36  ;;  %v4569_v38 = vld [vmem:[%s7359_s0 + $0x242] sm:$0x3]  ;;  %3216 = vrot.lane.b32.xlu1 %v3215_v37, %s4985_s10 }
  0x40   :  { %v4570_v39 = vld [vmem:[%s7359_s0 + $0x240] sm:$0x3]  ;;  %v4531_v40 = vld [vmem:[%s7359_s0 + $0x28e] sm:$0x3]  ;;  %1119 = vst [vmem:[#allocation0 + $0x908] sm:$0x3] %v4569_v38 }
  0x41   :  { %1124 = vst [vmem:[#allocation0 + $0x900] sm:$0x3] %v4570_v39  ;;  %929 = vst [vmem:[#allocation0 + $0xa38] sm:$0x3] %v4531_v40  ;;  %v4532_v41 = vld [vmem:[%s7359_s0 + $0x28c] sm:$0x3] }
  0x42   :  { %v4533_v42 = vld [vmem:[%s7359_s0 + $0x28a] sm:$0x3]  ;;  %v4534_v43 = vld [vmem:[%s7359_s0 + $0x288] sm:$0x3]  ;;  %934 = vst [vmem:[#allocation0 + $0xa30] sm:$0x3] %v4532_v41 }
  0x43   :  { %v3224_v44 = vld [vmem:[#allocation0 + $0x801] ss:$8 sm:$0xf0]   ;;  %939 = vst [vmem:[#allocation0 + $0xa28] sm:$0x3] %v4533_v42 }
  0x44   :  { %944 = vst [vmem:[#allocation0 + $0xa20] sm:$0x3] %v4534_v43  ;;  %v4535_v45 = vld [vmem:[%s7359_s0 + $0x286] sm:$0x3]  ;;  %v4536_v46 = vld [vmem:[%s7359_s0 + $0x284] sm:$0x3] }
  0x45   :  { %949 = vst [vmem:[#allocation0 + $0xa18] sm:$0x3] %v4535_v45  ;;  %v4537_v47 = vld [vmem:[%s7359_s0 + $0x282] sm:$0x3]  ;;  %v4538_v48 = vld [vmem:[%s7359_s0 + $0x280] sm:$0x3] }
  0x46   :  { %v3222_v49 = vld [vmem:[#allocation0 + $0x801] ss:$8 sm:$0xf]   ;;  %954 = vst [vmem:[#allocation0 + $0xa10] sm:$0x3] %v4536_v46 }
  0x47   :  { %959 = vst [vmem:[#allocation0 + $0xa08] sm:$0x3] %v4537_v47  ;;  %964 = vst [vmem:[#allocation0 + $0xa00] sm:$0x3] %v4538_v48  ;;  %v4499_v50 = vld [vmem:[%s7359_s0 + $0x2ce] sm:$0x3]  ;;  %v3226_v51 = vsel %vm2563_vm0, %v3224_v44, %v3222_v49 }
  0x48   :  { %769 = vst [vmem:[#allocation0 + $0xb38] sm:$0x3] %v4499_v50  ;;  %v4500_v52 = vld [vmem:[%s7359_s0 + $0x2cc] sm:$0x3]  ;;  %v4501_v53 = vld [vmem:[%s7359_s0 + $0x2ca] sm:$0x3]  ;;  %3227 = vrot.lane.b32.xlu0 %v3226_v51, %s4985_s10 }
  0x49   :  { %v4502_v54 = vld [vmem:[%s7359_s0 + $0x2c8] sm:$0x3]  ;;  %774 = vst [vmem:[#allocation0 + $0xb30] sm:$0x3] %v4500_v52  ;;  %779 = vst [vmem:[#allocation0 + $0xb28] sm:$0x3] %v4501_v53 }
  0x4a   :  { %v3235_v55 = vld [vmem:[#allocation0 + $0x901] ss:$8 sm:$0xf0]   ;;  %784 = vst [vmem:[#allocation0 + $0xb20] sm:$0x3] %v4502_v54 }
  0x4b   :  { %v4503_v56 = vld [vmem:[%s7359_s0 + $0x2c6] sm:$0x3]  ;;  %v4504_v57 = vld [vmem:[%s7359_s0 + $0x2c4] sm:$0x3]  ;;  %v4505_v58 = vld [vmem:[%s7359_s0 + $0x2c2] sm:$0x3] }
  0x4c   :  { %789 = vst [vmem:[#allocation0 + $0xb18] sm:$0x3] %v4503_v56  ;;  %v4506_v59 = vld [vmem:[%s7359_s0 + $0x2c0] sm:$0x3]  ;;  %794 = vst [vmem:[#allocation0 + $0xb10] sm:$0x3] %v4504_v57 }
  0x4d   :  { %v3233_v60 = vld [vmem:[#allocation0 + $0x901] ss:$8 sm:$0xf]   ;;  %799 = vst [vmem:[#allocation0 + $0xb08] sm:$0x3] %v4505_v58 }
  0x4e   :  { %804 = vst [vmem:[#allocation0 + $0xb00] sm:$0x3] %v4506_v59  ;;  %v4467_v61 = vld [vmem:[%s7359_s0 + $0x30e] sm:$0x3]  ;;  %v3237_v62 = vsel %vm2563_vm0, %v3235_v55, %v3233_v60  ;;  %v4468_v0 = vld [vmem:[%s7359_s0 + $0x30c] sm:$0x3] }
  0x4f   :  { %v3246_v63 = vld [vmem:[#allocation0 + $0xa01] ss:$8 sm:$0xf0]   ;;  %609 = vst [vmem:[#allocation0 + $0xc38] sm:$0x3] %v4467_v61  ;;  %3238 = vrot.lane.b32.xlu1 %v3237_v62, %s4985_s10 }
  0x50   :  { %614 = vst [vmem:[#allocation0 + $0xc30] sm:$0x3] %v4468_v0  ;;  %v4469_v1 = vld [vmem:[%s7359_s0 + $0x30a] sm:$0x3]  ;;  %v4470_v2 = vld [vmem:[%s7359_s0 + $0x308] sm:$0x3] }
  0x51   :  { %v4471_v3 = vld [vmem:[%s7359_s0 + $0x306] sm:$0x3]  ;;  %v3244_v4 = vld [vmem:[#allocation0 + $0xa01] ss:$8 sm:$0xf]  }
  0x52   :  { %619 = vst [vmem:[#allocation0 + $0xc28] sm:$0x3] %v4469_v1  ;;  %624 = vst [vmem:[#allocation0 + $0xc20] sm:$0x3] %v4470_v2  ;;  %v4472_v5 = vld [vmem:[%s7359_s0 + $0x304] sm:$0x3]  ;;  %v3248_v6 = vsel %vm2563_vm0, %v3246_v63, %v3244_v4 }
  0x53   :  { %629 = vst [vmem:[#allocation0 + $0xc18] sm:$0x3] %v4471_v3  ;;  %634 = vst [vmem:[#allocation0 + $0xc10] sm:$0x3] %v4472_v5  ;;  %v4473_v7 = vld [vmem:[%s7359_s0 + $0x302] sm:$0x3]  ;;  %3249 = vrot.lane.b32.xlu0 %v3248_v6, %s4985_s10 }
  0x54   :  { %v4474_v8 = vld [vmem:[%s7359_s0 + $0x300] sm:$0x3]  ;;  %v4435_v9 = vld [vmem:[%s7359_s0 + $0x34e] sm:$0x3]  ;;  %639 = vst [vmem:[#allocation0 + $0xc08] sm:$0x3] %v4473_v7 }
  0x55   :  { %v3257_v10 = vld [vmem:[#allocation0 + $0xb01] ss:$8 sm:$0xf0]   ;;  %644 = vst [vmem:[#allocation0 + $0xc00] sm:$0x3] %v4474_v8 }
  0x56   :  { %449 = vst [vmem:[#allocation0 + $0xd38] sm:$0x3] %v4435_v9  ;;  %v4436_v11 = vld [vmem:[%s7359_s0 + $0x34c] sm:$0x3]  ;;  %v4437_v12 = vld [vmem:[%s7359_s0 + $0x34a] sm:$0x3] }
  0x57   :  { %454 = vst [vmem:[#allocation0 + $0xd30] sm:$0x3] %v4436_v11  ;;  %v4438_v13 = vld [vmem:[%s7359_s0 + $0x348] sm:$0x3]  ;;  %v4439_v14 = vld [vmem:[%s7359_s0 + $0x346] sm:$0x3] }
  0x58   :  { %v3255_v15 = vld [vmem:[#allocation0 + $0xb01] ss:$8 sm:$0xf]   ;;  %459 = vst [vmem:[#allocation0 + $0xd28] sm:$0x3] %v4437_v12 }
  0x59   :  { %464 = vst [vmem:[#allocation0 + $0xd20] sm:$0x3] %v4438_v13  ;;  %469 = vst [vmem:[#allocation0 + $0xd18] sm:$0x3] %v4439_v14  ;;  %v4440_v16 = vld [vmem:[%s7359_s0 + $0x344] sm:$0x3]  ;;  %v3259_v17 = vsel %vm2563_vm0, %v3257_v10, %v3255_v15 }
  0x5a   :  { %474 = vst [vmem:[#allocation0 + $0xd10] sm:$0x3] %v4440_v16  ;;  %v4441_v18 = vld [vmem:[%s7359_s0 + $0x342] sm:$0x3]  ;;  %v4442_v19 = vld [vmem:[%s7359_s0 + $0x340] sm:$0x3]  ;;  %3260 = vrot.lane.b32.xlu1 %v3259_v17, %s4985_s10 }
  0x5b   :  { %v4403_v20 = vld [vmem:[%s7359_s0 + $0x38e] sm:$0x3]  ;;  %479 = vst [vmem:[#allocation0 + $0xd08] sm:$0x3] %v4441_v18  ;;  %484 = vst [vmem:[#allocation0 + $0xd00] sm:$0x3] %v4442_v19 }
  0x5c   :  { %289 = vst [vmem:[#allocation0 + $0xe38] sm:$0x3] %v4403_v20  ;;  %v4404_v21 = vld [vmem:[%s7359_s0 + $0x38c] sm:$0x3]  ;;  %v4405_v22 = vld [vmem:[%s7359_s0 + $0x38a] sm:$0x3] }
  0x5d   :  { %v4406_v23 = vld [vmem:[%s7359_s0 + $0x388] sm:$0x3]  ;;  %294 = vst [vmem:[#allocation0 + $0xe30] sm:$0x3] %v4404_v21  ;;  %299 = vst [vmem:[#allocation0 + $0xe28] sm:$0x3] %v4405_v22 }
  0x5e   :  { %v3268_v24 = vld [vmem:[#allocation0 + $0xc01] ss:$8 sm:$0xf0]   ;;  %304 = vst [vmem:[#allocation0 + $0xe20] sm:$0x3] %v4406_v23 }
  0x5f   :  { %v4407_v25 = vld [vmem:[%s7359_s0 + $0x386] sm:$0x3]  ;;  %v4408_v26 = vld [vmem:[%s7359_s0 + $0x384] sm:$0x3]  ;;  %v4409_v27 = vld [vmem:[%s7359_s0 + $0x382] sm:$0x3] }
  0x60   :  { %309 = vst [vmem:[#allocation0 + $0xe18] sm:$0x3] %v4407_v25  ;;  %v4410_v28 = vld [vmem:[%s7359_s0 + $0x380] sm:$0x3]  ;;  %314 = vst [vmem:[#allocation0 + $0xe10] sm:$0x3] %v4408_v26 }
  0x61   :  { %v3266_v29 = vld [vmem:[#allocation0 + $0xc01] ss:$8 sm:$0xf]   ;;  %319 = vst [vmem:[#allocation0 + $0xe08] sm:$0x3] %v4409_v27 }
  0x62   :  { %324 = vst [vmem:[#allocation0 + $0xe00] sm:$0x3] %v4410_v28  ;;  %v4371_v30 = vld [vmem:[%s7359_s0 + $0x3ce] sm:$0x3]  ;;  %v3270_v31 = vsel %vm2563_vm0, %v3268_v24, %v3266_v29  ;;  %v4372_v32 = vld [vmem:[%s7359_s0 + $0x3cc] sm:$0x3] }
  0x63   :  { %129 = vst [vmem:[#allocation0 + $0xf38] sm:$0x3] %v4371_v30  ;;  %v4373_v33 = vld [vmem:[%s7359_s0 + $0x3ca] sm:$0x3]  ;;  %v4374_v34 = vld [vmem:[%s7359_s0 + $0x3c8] sm:$0x3]  ;;  %3271 = vrot.lane.b32.xlu0 %v3270_v31, %s4985_s10 }
  0x64   :  { %v3279_v35 = vld [vmem:[#allocation0 + $0xd01] ss:$8 sm:$0xf0]   ;;  %134 = vst [vmem:[#allocation0 + $0xf30] sm:$0x3] %v4372_v32 }
  0x65   :  { %139 = vst [vmem:[#allocation0 + $0xf28] sm:$0x3] %v4373_v33  ;;  %144 = vst [vmem:[#allocation0 + $0xf20] sm:$0x3] %v4374_v34  ;;  %v4375_v36 = vld [vmem:[%s7359_s0 + $0x3c6] sm:$0x3] }
  0x66   :  { %149 = vst [vmem:[#allocation0 + $0xf18] sm:$0x3] %v4375_v36  ;;  %v4376_v37 = vld [vmem:[%s7359_s0 + $0x3c4] sm:$0x3]  ;;  %v4377_v38 = vld [vmem:[%s7359_s0 + $0x3c2] sm:$0x3] }
  0x67   :  { %v4378_v39 = vld [vmem:[%s7359_s0 + $0x3c0] sm:$0x3]  ;;  %154 = vst [vmem:[#allocation0 + $0xf10] sm:$0x3] %v4376_v37  ;;  %159 = vst [vmem:[#allocation0 + $0xf08] sm:$0x3] %v4377_v38 }
  0x68   :  { %v3277_v40 = vld [vmem:[#allocation0 + $0xd01] ss:$8 sm:$0xf]   ;;  %164 = vst [vmem:[#allocation0 + $0xf00] sm:$0x3] %v4378_v39 }
  0x69   :  { %v4843_v41 = vld [vmem:[%s7359_s0 + $0x1e] sm:$0x3]  ;;  %v3281_v42 = vsel %vm2563_vm0, %v3279_v35, %v3277_v40  ;;  %v3290_v43 = vld [vmem:[#allocation0 + $0xe01] ss:$8 sm:$0xf0]  }
  0x6a   :  { %2489 = vst [vmem:[#allocation0 + $0x78] sm:$0x3] %v4843_v41  ;;  %v4844_v44 = vld [vmem:[%s7359_s0 + $0x1c] sm:$0x3]  ;;  %3282 = vrot.lane.b32.xlu1 %v3281_v42, %s4985_s10  ;;  %v4845_v45 = vld [vmem:[%s7359_s0 + $0x1a] sm:$0x3] }
  0x6b   :  { %2494 = vst [vmem:[#allocation0 + $0x70] sm:$0x3] %v4844_v44  ;;  %v4846_v46 = vld [vmem:[%s7359_s0 + $0x18] sm:$0x3]  ;;  %v4847_v47 = vld [vmem:[%s7359_s0 + $0x16] sm:$0x3] }
  0x6c   :  { %v3288_v48 = vld [vmem:[#allocation0 + $0xe01] ss:$8 sm:$0xf]   ;;  %2499 = vst [vmem:[#allocation0 + $0x68] sm:$0x3] %v4845_v45 }
  0x6d   :  { %2504 = vst [vmem:[#allocation0 + $0x60] sm:$0x3] %v4846_v46  ;;  %2509 = vst [vmem:[#allocation0 + $0x58] sm:$0x3] %v4847_v47  ;;  %v4848_v49 = vld [vmem:[%s7359_s0 + $0x14] sm:$0x3]  ;;  %v3292_v50 = vsel %vm2563_vm0, %v3290_v43, %v3288_v48 }
  0x6e   :  { %2514 = vst [vmem:[#allocation0 + $0x50] sm:$0x3] %v4848_v49  ;;  %v4849_v51 = vld [vmem:[%s7359_s0 + $0x12] sm:$0x3]  ;;  %v4850_v52 = vld [vmem:[%s7359_s0 + $0x10] sm:$0x3]  ;;  %3293 = vrot.lane.b32.xlu0 %v3292_v50, %s4985_s10 }
  0x6f   :  { %v4811_v53 = vld [vmem:[%s7359_s0 + $0x5e] sm:$0x3]  ;;  %v3301_v54 = vld [vmem:[#allocation0 + $0xf01] ss:$8 sm:$0xf0]  }
  0x70   :  { %2519 = vst [vmem:[#allocation0 + $0x48] sm:$0x3] %v4849_v51  ;;  %2524 = vst [vmem:[#allocation0 + $0x40] sm:$0x3] %v4850_v52  ;;  %v4812_v55 = vld [vmem:[%s7359_s0 + $0x5c] sm:$0x3] }
  0x71   :  { %2329 = vst [vmem:[#allocation0 + $0x178] sm:$0x3] %v4811_v53  ;;  %2334 = vst [vmem:[#allocation0 + $0x170] sm:$0x3] %v4812_v55  ;;  %v4813_v56 = vld [vmem:[%s7359_s0 + $0x5a] sm:$0x3] }
  0x72   :  { %v4814_v57 = vld [vmem:[%s7359_s0 + $0x58] sm:$0x3]  ;;  %v4815_v58 = vld [vmem:[%s7359_s0 + $0x56] sm:$0x3]  ;;  %2339 = vst [vmem:[#allocation0 + $0x168] sm:$0x3] %v4813_v56 }
  0x73   :  { %v3299_v59 = vld [vmem:[#allocation0 + $0xf01] ss:$8 sm:$0xf]   ;;  %2344 = vst [vmem:[#allocation0 + $0x160] sm:$0x3] %v4814_v57 }
  0x74   :  { %2349 = vst [vmem:[#allocation0 + $0x158] sm:$0x3] %v4815_v58  ;;  %v4816_v60 = vld [vmem:[%s7359_s0 + $0x54] sm:$0x3]  ;;  %v3303_v61 = vsel %vm2563_vm0, %v3301_v54, %v3299_v59  ;;  %v4817_v62 = vld [vmem:[%s7359_s0 + $0x52] sm:$0x3] }
  0x75   :  { %2354 = vst [vmem:[#allocation0 + $0x150] sm:$0x3] %v4816_v60  ;;  %v4818_v63 = vld [vmem:[%s7359_s0 + $0x50] sm:$0x3]  ;;  %v4779_v0 = vld [vmem:[%s7359_s0 + $0x9e] sm:$0x3]  ;;  %3304 = vrot.lane.b32.xlu1 %v3303_v61, %s4985_s10 }
  0x76   :  { %2359 = vst [vmem:[#allocation0 + $0x148] sm:$0x3] %v4817_v62  ;;  %2364 = vst [vmem:[#allocation0 + $0x140] sm:$0x3] %v4818_v63  ;;  %v4780_v1 = vld [vmem:[%s7359_s0 + $0x9c] sm:$0x3] }
  0x77   :  { %2169 = vst [vmem:[#allocation0 + $0x278] sm:$0x3] %v4779_v0  ;;  %v4781_v2 = vld [vmem:[%s7359_s0 + $0x9a] sm:$0x3]  ;;  %v4782_v3 = vld [vmem:[%s7359_s0 + $0x98] sm:$0x3] }
  0x78   :  { %v3312_v4 = vld [vmem:[#allocation0 + $0x41] ss:$8 sm:$0xf0]   ;;  %2174 = vst [vmem:[#allocation0 + $0x270] sm:$0x3] %v4780_v1 }
  0x79   :  { %2179 = vst [vmem:[#allocation0 + $0x268] sm:$0x3] %v4781_v2  ;;  %2184 = vst [vmem:[#allocation0 + $0x260] sm:$0x3] %v4782_v3  ;;  %v4783_v5 = vld [vmem:[%s7359_s0 + $0x96] sm:$0x3] }
  0x7a   :  { %2189 = vst [vmem:[#allocation0 + $0x258] sm:$0x3] %v4783_v5  ;;  %v4784_v6 = vld [vmem:[%s7359_s0 + $0x94] sm:$0x3]  ;;  %v4785_v7 = vld [vmem:[%s7359_s0 + $0x92] sm:$0x3] }
  0x7b   :  { %v4786_v8 = vld [vmem:[%s7359_s0 + $0x90] sm:$0x3]  ;;  %2194 = vst [vmem:[#allocation0 + $0x250] sm:$0x3] %v4784_v6  ;;  %2199 = vst [vmem:[#allocation0 + $0x248] sm:$0x3] %v4785_v7 }
  0x7c   :  { %v3310_v9 = vld [vmem:[#allocation0 + $0x41] ss:$8 sm:$0xf]   ;;  %2204 = vst [vmem:[#allocation0 + $0x240] sm:$0x3] %v4786_v8 }
  0x7d   :  { %v4747_v10 = vld [vmem:[%s7359_s0 + $0xde] sm:$0x3]  ;;  %v3314_v11 = vsel %vm2563_vm0, %v3312_v4, %v3310_v9  ;;  %v4748_v12 = vld [vmem:[%s7359_s0 + $0xdc] sm:$0x3]  ;;  %v4749_v13 = vld [vmem:[%s7359_s0 + $0xda] sm:$0x3] }
  0x7e   :  { %2009 = vst [vmem:[#allocation0 + $0x378] sm:$0x3] %v4747_v10  ;;  %v4750_v14 = vld [vmem:[%s7359_s0 + $0xd8] sm:$0x3]  ;;  %3315 = vrot.lane.b32.xlu0 %v3314_v11, %s4985_s10  ;;  %2014 = vst [vmem:[#allocation0 + $0x370] sm:$0x3] %v4748_v12 }
  0x7f   :  { %v3323_v15 = vld [vmem:[#allocation0 + $0x141] ss:$8 sm:$0xf0]   ;;  %2019 = vst [vmem:[#allocation0 + $0x368] sm:$0x3] %v4749_v13 }
  0x80   :  { %2024 = vst [vmem:[#allocation0 + $0x360] sm:$0x3] %v4750_v14  ;;  %v4751_v16 = vld [vmem:[%s7359_s0 + $0xd6] sm:$0x3]  ;;  %v4752_v17 = vld [vmem:[%s7359_s0 + $0xd4] sm:$0x3] }
  0x81   :  { %2029 = vst [vmem:[#allocation0 + $0x358] sm:$0x3] %v4751_v16  ;;  %v4753_v18 = vld [vmem:[%s7359_s0 + $0xd2] sm:$0x3]  ;;  %v4754_v19 = vld [vmem:[%s7359_s0 + $0xd0] sm:$0x3] }
  0x82   :  { %v3321_v20 = vld [vmem:[#allocation0 + $0x141] ss:$8 sm:$0xf]   ;;  %2034 = vst [vmem:[#allocation0 + $0x350] sm:$0x3] %v4752_v17 }
  0x83   :  { %2039 = vst [vmem:[#allocation0 + $0x348] sm:$0x3] %v4753_v18  ;;  %2044 = vst [vmem:[#allocation0 + $0x340] sm:$0x3] %v4754_v19  ;;  %v4715_v21 = vld [vmem:[%s7359_s0 + $0x11e] sm:$0x3]  ;;  %v3325_v22 = vsel %vm2563_vm0, %v3323_v15, %v3321_v20 }
  0x84   :  { %v3334_v23 = vld [vmem:[#allocation0 + $0x241] ss:$8 sm:$0xf0]   ;;  %1849 = vst [vmem:[#allocation0 + $0x478] sm:$0x3] %v4715_v21  ;;  %3326 = vrot.lane.b32.xlu1 %v3325_v22, %s4985_s10 }
  0x85   :  { %v4716_v24 = vld [vmem:[%s7359_s0 + $0x11c] sm:$0x3]  ;;  %v4717_v25 = vld [vmem:[%s7359_s0 + $0x11a] sm:$0x3]  ;;  %v4718_v26 = vld [vmem:[%s7359_s0 + $0x118] sm:$0x3] }
  0x86   :  { %1854 = vst [vmem:[#allocation0 + $0x470] sm:$0x3] %v4716_v24  ;;  %v4719_v27 = vld [vmem:[%s7359_s0 + $0x116] sm:$0x3]  ;;  %1859 = vst [vmem:[#allocation0 + $0x468] sm:$0x3] %v4717_v25 }
  0x87   :  { %v3332_v28 = vld [vmem:[#allocation0 + $0x241] ss:$8 sm:$0xf]   ;;  %1864 = vst [vmem:[#allocation0 + $0x460] sm:$0x3] %v4718_v26 }
  0x88   :  { %1869 = vst [vmem:[#allocation0 + $0x458] sm:$0x3] %v4719_v27  ;;  %v4720_v29 = vld [vmem:[%s7359_s0 + $0x114] sm:$0x3]  ;;  %v3336_v30 = vsel %vm2563_vm0, %v3334_v23, %v3332_v28  ;;  %v4721_v31 = vld [vmem:[%s7359_s0 + $0x112] sm:$0x3] }
  0x89   :  { %1874 = vst [vmem:[#allocation0 + $0x450] sm:$0x3] %v4720_v29  ;;  %v4722_v32 = vld [vmem:[%s7359_s0 + $0x110] sm:$0x3]  ;;  %v4683_v33 = vld [vmem:[%s7359_s0 + $0x15e] sm:$0x3]  ;;  %3337 = vrot.lane.b32.xlu0 %v3336_v30, %s4985_s10 }
  0x8a   :  { %v3345_v34 = vld [vmem:[#allocation0 + $0x341] ss:$8 sm:$0xf0]   ;;  %1879 = vst [vmem:[#allocation0 + $0x448] sm:$0x3] %v4721_v31 }
  0x8b   :  { %1884 = vst [vmem:[#allocation0 + $0x440] sm:$0x3] %v4722_v32  ;;  %1689 = vst [vmem:[#allocation0 + $0x578] sm:$0x3] %v4683_v33  ;;  %v4684_v35 = vld [vmem:[%s7359_s0 + $0x15c] sm:$0x3] }
  0x8c   :  { %1694 = vst [vmem:[#allocation0 + $0x570] sm:$0x3] %v4684_v35  ;;  %v4685_v36 = vld [vmem:[%s7359_s0 + $0x15a] sm:$0x3]  ;;  %v4686_v37 = vld [vmem:[%s7359_s0 + $0x158] sm:$0x3] }
  0x8d   :  { %v4687_v38 = vld [vmem:[%s7359_s0 + $0x156] sm:$0x3]  ;;  %v3343_v39 = vld [vmem:[#allocation0 + $0x341] ss:$8 sm:$0xf]  }
  0x8e   :  { %1699 = vst [vmem:[#allocation0 + $0x568] sm:$0x3] %v4685_v36  ;;  %1704 = vst [vmem:[#allocation0 + $0x560] sm:$0x3] %v4686_v37  ;;  %v4688_v40 = vld [vmem:[%s7359_s0 + $0x154] sm:$0x3]  ;;  %v3347_v41 = vsel %vm2563_vm0, %v3345_v34, %v3343_v39 }
  0x8f   :  { %1709 = vst [vmem:[#allocation0 + $0x558] sm:$0x3] %v4687_v38  ;;  %1714 = vst [vmem:[#allocation0 + $0x550] sm:$0x3] %v4688_v40  ;;  %v4689_v42 = vld [vmem:[%s7359_s0 + $0x152] sm:$0x3]  ;;  %3348 = vrot.lane.b32.xlu1 %v3347_v41, %s4985_s10 }
  0x90   :  { %v4690_v43 = vld [vmem:[%s7359_s0 + $0x150] sm:$0x3]  ;;  %v4651_v44 = vld [vmem:[%s7359_s0 + $0x19e] sm:$0x3]  ;;  %1719 = vst [vmem:[#allocation0 + $0x548] sm:$0x3] %v4689_v42 }
  0x91   :  { %1724 = vst [vmem:[#allocation0 + $0x540] sm:$0x3] %v4690_v43  ;;  %1529 = vst [vmem:[#allocation0 + $0x678] sm:$0x3] %v4651_v44  ;;  %v4652_v45 = vld [vmem:[%s7359_s0 + $0x19c] sm:$0x3] }
  0x92   :  { %v4653_v46 = vld [vmem:[%s7359_s0 + $0x19a] sm:$0x3]  ;;  %v4654_v47 = vld [vmem:[%s7359_s0 + $0x198] sm:$0x3]  ;;  %1534 = vst [vmem:[#allocation0 + $0x670] sm:$0x3] %v4652_v45 }
  0x93   :  { %v3356_v48 = vld [vmem:[#allocation0 + $0x441] ss:$8 sm:$0xf0]   ;;  %1539 = vst [vmem:[#allocation0 + $0x668] sm:$0x3] %v4653_v46 }
  0x94   :  { %1544 = vst [vmem:[#allocation0 + $0x660] sm:$0x3] %v4654_v47  ;;  %v4655_v49 = vld [vmem:[%s7359_s0 + $0x196] sm:$0x3]  ;;  %v4656_v50 = vld [vmem:[%s7359_s0 + $0x194] sm:$0x3] }
  0x95   :  { %1549 = vst [vmem:[#allocation0 + $0x658] sm:$0x3] %v4655_v49  ;;  %v4657_v51 = vld [vmem:[%s7359_s0 + $0x192] sm:$0x3]  ;;  %v4658_v52 = vld [vmem:[%s7359_s0 + $0x190] sm:$0x3] }
  0x96   :  { %v3354_v53 = vld [vmem:[#allocation0 + $0x441] ss:$8 sm:$0xf]   ;;  %1554 = vst [vmem:[#allocation0 + $0x650] sm:$0x3] %v4656_v50 }
  0x97   :  { %1559 = vst [vmem:[#allocation0 + $0x648] sm:$0x3] %v4657_v51  ;;  %1564 = vst [vmem:[#allocation0 + $0x640] sm:$0x3] %v4658_v52  ;;  %v4619_v54 = vld [vmem:[%s7359_s0 + $0x1de] sm:$0x3]  ;;  %v3358_v55 = vsel %vm2563_vm0, %v3356_v48, %v3354_v53 }
  0x98   :  { %1369 = vst [vmem:[#allocation0 + $0x778] sm:$0x3] %v4619_v54  ;;  %v4620_v56 = vld [vmem:[%s7359_s0 + $0x1dc] sm:$0x3]  ;;  %v4621_v57 = vld [vmem:[%s7359_s0 + $0x1da] sm:$0x3]  ;;  %3359 = vrot.lane.b32.xlu0 %v3358_v55, %s4985_s10 }
  0x99   :  { %v4622_v58 = vld [vmem:[%s7359_s0 + $0x1d8] sm:$0x3]  ;;  %1374 = vst [vmem:[#allocation0 + $0x770] sm:$0x3] %v4620_v56  ;;  %1379 = vst [vmem:[#allocation0 + $0x768] sm:$0x3] %v4621_v57 }
  0x9a   :  { %v3367_v59 = vld [vmem:[#allocation0 + $0x541] ss:$8 sm:$0xf0]   ;;  %1384 = vst [vmem:[#allocation0 + $0x760] sm:$0x3] %v4622_v58 }
  0x9b   :  { %v4623_v60 = vld [vmem:[%s7359_s0 + $0x1d6] sm:$0x3]  ;;  %v4624_v61 = vld [vmem:[%s7359_s0 + $0x1d4] sm:$0x3]  ;;  %v4625_v62 = vld [vmem:[%s7359_s0 + $0x1d2] sm:$0x3] }
  0x9c   :  { %1389 = vst [vmem:[#allocation0 + $0x758] sm:$0x3] %v4623_v60  ;;  %v4626_v63 = vld [vmem:[%s7359_s0 + $0x1d0] sm:$0x3]  ;;  %1394 = vst [vmem:[#allocation0 + $0x750] sm:$0x3] %v4624_v61 }
  0x9d   :  { %v3365_v0 = vld [vmem:[#allocation0 + $0x541] ss:$8 sm:$0xf]   ;;  %1399 = vst [vmem:[#allocation0 + $0x748] sm:$0x3] %v4625_v62 }
  0x9e   :  { %1404 = vst [vmem:[#allocation0 + $0x740] sm:$0x3] %v4626_v63  ;;  %v4587_v1 = vld [vmem:[%s7359_s0 + $0x21e] sm:$0x3]  ;;  %v3369_v2 = vsel %vm2563_vm0, %v3367_v59, %v3365_v0  ;;  %v4588_v4 = vld [vmem:[%s7359_s0 + $0x21c] sm:$0x3] }
  0x9f   :  { %v3378_v3 = vld [vmem:[#allocation0 + $0x641] ss:$8 sm:$0xf0]   ;;  %1209 = vst [vmem:[#allocation0 + $0x878] sm:$0x3] %v4587_v1  ;;  %3370 = vrot.lane.b32.xlu1 %v3369_v2, %s4985_s10 }
  0xa0   :  { %1214 = vst [vmem:[#allocation0 + $0x870] sm:$0x3] %v4588_v4  ;;  %v4589_v5 = vld [vmem:[%s7359_s0 + $0x21a] sm:$0x3]  ;;  %v4590_v6 = vld [vmem:[%s7359_s0 + $0x218] sm:$0x3] }
  0xa1   :  { %v4591_v7 = vld [vmem:[%s7359_s0 + $0x216] sm:$0x3]  ;;  %v3376_v8 = vld [vmem:[#allocation0 + $0x641] ss:$8 sm:$0xf]  }
  0xa2   :  { %1219 = vst [vmem:[#allocation0 + $0x868] sm:$0x3] %v4589_v5  ;;  %1224 = vst [vmem:[#allocation0 + $0x860] sm:$0x3] %v4590_v6  ;;  %v4592_v9 = vld [vmem:[%s7359_s0 + $0x214] sm:$0x3]  ;;  %v3380_v10 = vsel %vm2563_vm0, %v3378_v3, %v3376_v8 }
  0xa3   :  { %1229 = vst [vmem:[#allocation0 + $0x858] sm:$0x3] %v4591_v7  ;;  %1234 = vst [vmem:[#allocation0 + $0x850] sm:$0x3] %v4592_v9  ;;  %v4593_v11 = vld [vmem:[%s7359_s0 + $0x212] sm:$0x3]  ;;  %3381 = vrot.lane.b32.xlu0 %v3380_v10, %s4985_s10 }
  0xa4   :  { %v4594_v12 = vld [vmem:[%s7359_s0 + $0x210] sm:$0x3]  ;;  %v4555_v13 = vld [vmem:[%s7359_s0 + $0x25e] sm:$0x3]  ;;  %1239 = vst [vmem:[#allocation0 + $0x848] sm:$0x3] %v4593_v11 }
  0xa5   :  { %v3389_v14 = vld [vmem:[#allocation0 + $0x741] ss:$8 sm:$0xf0]   ;;  %1244 = vst [vmem:[#allocation0 + $0x840] sm:$0x3] %v4594_v12 }
  0xa6   :  { %1049 = vst [vmem:[#allocation0 + $0x978] sm:$0x3] %v4555_v13  ;;  %v4556_v15 = vld [vmem:[%s7359_s0 + $0x25c] sm:$0x3]  ;;  %v4557_v16 = vld [vmem:[%s7359_s0 + $0x25a] sm:$0x3] }
  0xa7   :  { %1054 = vst [vmem:[#allocation0 + $0x970] sm:$0x3] %v4556_v15  ;;  %v4558_v17 = vld [vmem:[%s7359_s0 + $0x258] sm:$0x3]  ;;  %v4559_v18 = vld [vmem:[%s7359_s0 + $0x256] sm:$0x3] }
  0xa8   :  { %v3387_v19 = vld [vmem:[#allocation0 + $0x741] ss:$8 sm:$0xf]   ;;  %1059 = vst [vmem:[#allocation0 + $0x968] sm:$0x3] %v4557_v16 }
  0xa9   :  { %1064 = vst [vmem:[#allocation0 + $0x960] sm:$0x3] %v4558_v17  ;;  %1069 = vst [vmem:[#allocation0 + $0x958] sm:$0x3] %v4559_v18  ;;  %v4560_v20 = vld [vmem:[%s7359_s0 + $0x254] sm:$0x3]  ;;  %v3391_v21 = vsel %vm2563_vm0, %v3389_v14, %v3387_v19 }
  0xaa   :  { %1074 = vst [vmem:[#allocation0 + $0x950] sm:$0x3] %v4560_v20  ;;  %v4561_v22 = vld [vmem:[%s7359_s0 + $0x252] sm:$0x3]  ;;  %v4562_v23 = vld [vmem:[%s7359_s0 + $0x250] sm:$0x3]  ;;  %3392 = vrot.lane.b32.xlu1 %v3391_v21, %s4985_s10 }
  0xab   :  { %v4523_v24 = vld [vmem:[%s7359_s0 + $0x29e] sm:$0x3]  ;;  %1079 = vst [vmem:[#allocation0 + $0x948] sm:$0x3] %v4561_v22  ;;  %1084 = vst [vmem:[#allocation0 + $0x940] sm:$0x3] %v4562_v23 }
  0xac   :  { %889 = vst [vmem:[#allocation0 + $0xa78] sm:$0x3] %v4523_v24  ;;  %v4524_v25 = vld [vmem:[%s7359_s0 + $0x29c] sm:$0x3]  ;;  %v4525_v26 = vld [vmem:[%s7359_s0 + $0x29a] sm:$0x3] }
  0xad   :  { %v4526_v27 = vld [vmem:[%s7359_s0 + $0x298] sm:$0x3]  ;;  %894 = vst [vmem:[#allocation0 + $0xa70] sm:$0x3] %v4524_v25  ;;  %899 = vst [vmem:[#allocation0 + $0xa68] sm:$0x3] %v4525_v26 }
  0xae   :  { %v3400_v28 = vld [vmem:[#allocation0 + $0x841] ss:$8 sm:$0xf0]   ;;  %904 = vst [vmem:[#allocation0 + $0xa60] sm:$0x3] %v4526_v27 }
  0xaf   :  { %v4527_v29 = vld [vmem:[%s7359_s0 + $0x296] sm:$0x3]  ;;  %v4528_v30 = vld [vmem:[%s7359_s0 + $0x294] sm:$0x3]  ;;  %v4529_v31 = vld [vmem:[%s7359_s0 + $0x292] sm:$0x3] }
  0xb0   :  { %909 = vst [vmem:[#allocation0 + $0xa58] sm:$0x3] %v4527_v29  ;;  %v4530_v32 = vld [vmem:[%s7359_s0 + $0x290] sm:$0x3]  ;;  %914 = vst [vmem:[#allocation0 + $0xa50] sm:$0x3] %v4528_v30  ;;  %v5829_v29 = vpop.permute.xlu0 %3140  }
  0xb1   :  { %v3398_v33 = vld [vmem:[#allocation0 + $0x841] ss:$8 sm:$0xf]   ;;  %919 = vst [vmem:[#allocation0 + $0xa48] sm:$0x3] %v4529_v31 }
  0xb2   :  { %924 = vst [vmem:[#allocation0 + $0xa40] sm:$0x3] %v4530_v32  ;;  %v4491_v34 = vld [vmem:[%s7359_s0 + $0x2de] sm:$0x3]  ;;  %v3402_v35 = vsel %vm2563_vm0, %v3400_v28, %v3398_v33  ;;  %v4492_v36 = vld [vmem:[%s7359_s0 + $0x2dc] sm:$0x3] }
  0xb3   :  { %729 = vst [vmem:[#allocation0 + $0xb78] sm:$0x3] %v4491_v34  ;;  %v4493_v37 = vld [vmem:[%s7359_s0 + $0x2da] sm:$0x3]  ;;  %v4494_v38 = vld [vmem:[%s7359_s0 + $0x2d8] sm:$0x3]  ;;  %3403 = vrot.lane.b32.xlu0 %v3402_v35, %s4985_s10 }
  0xb4   :  { %v3411_v39 = vld [vmem:[#allocation0 + $0x941] ss:$8 sm:$0xf0]   ;;  %734 = vst [vmem:[#allocation0 + $0xb70] sm:$0x3] %v4492_v36 }
  0xb5   :  { %739 = vst [vmem:[#allocation0 + $0xb68] sm:$0x3] %v4493_v37  ;;  %744 = vst [vmem:[#allocation0 + $0xb60] sm:$0x3] %v4494_v38  ;;  %v4495_v40 = vld [vmem:[%s7359_s0 + $0x2d6] sm:$0x3] }
  0xb6   :  { %749 = vst [vmem:[#allocation0 + $0xb58] sm:$0x3] %v4495_v40  ;;  %v4496_v41 = vld [vmem:[%s7359_s0 + $0x2d4] sm:$0x3]  ;;  %v4497_v42 = vld [vmem:[%s7359_s0 + $0x2d2] sm:$0x3] }
  0xb7   :  { %v4498_v43 = vld [vmem:[%s7359_s0 + $0x2d0] sm:$0x3]  ;;  %754 = vst [vmem:[#allocation0 + $0xb50] sm:$0x3] %v4496_v41  ;;  %759 = vst [vmem:[#allocation0 + $0xb48] sm:$0x3] %v4497_v42 }
  0xb8   :  { %v3409_v44 = vld [vmem:[#allocation0 + $0x941] ss:$8 sm:$0xf]   ;;  %764 = vst [vmem:[#allocation0 + $0xb40] sm:$0x3] %v4498_v43 }
  0xb9   :  { %v4459_v45 = vld [vmem:[%s7359_s0 + $0x31e] sm:$0x3]  ;;  %v3413_v46 = vsel %vm2563_vm0, %v3411_v39, %v3409_v44  ;;  %v3422_v47 = vld [vmem:[#allocation0 + $0xa41] ss:$8 sm:$0xf0]   ;;  %v5854_v39 = vpop.permute.xlu1 %3161  }
  0xba   :  { %569 = vst [vmem:[#allocation0 + $0xc78] sm:$0x3] %v4459_v45  ;;  %v4460_v48 = vld [vmem:[%s7359_s0 + $0x31c] sm:$0x3]  ;;  %3414 = vrot.lane.b32.xlu1 %v3413_v46, %s4985_s10  ;;  %v4461_v49 = vld [vmem:[%s7359_s0 + $0x31a] sm:$0x3] }
  0xbb   :  { %574 = vst [vmem:[#allocation0 + $0xc70] sm:$0x3] %v4460_v48  ;;  %v4462_v50 = vld [vmem:[%s7359_s0 + $0x318] sm:$0x3]  ;;  %v4463_v51 = vld [vmem:[%s7359_s0 + $0x316] sm:$0x3] }
  0xbc   :  { %v3420_v52 = vld [vmem:[#allocation0 + $0xa41] ss:$8 sm:$0xf]   ;;  %579 = vst [vmem:[#allocation0 + $0xc68] sm:$0x3] %v4461_v49 }
  0xbd   :  { %584 = vst [vmem:[#allocation0 + $0xc60] sm:$0x3] %v4462_v50  ;;  %589 = vst [vmem:[#allocation0 + $0xc58] sm:$0x3] %v4463_v51  ;;  %v4464_v53 = vld [vmem:[%s7359_s0 + $0x314] sm:$0x3]  ;;  %v3424_v54 = vsel %vm2563_vm0, %v3422_v47, %v3420_v52  ;;  %v5872_v47 = vpop.permute.xlu0 %3150  }
  0xbe   :  { %594 = vst [vmem:[#allocation0 + $0xc50] sm:$0x3] %v4464_v53  ;;  %v4465_v55 = vld [vmem:[%s7359_s0 + $0x312] sm:$0x3]  ;;  %v4466_v56 = vld [vmem:[%s7359_s0 + $0x310] sm:$0x3]  ;;  %3425 = vrot.lane.b32.xlu0 %v3424_v54, %s4985_s10 }
  0xbf   :  { %v4427_v57 = vld [vmem:[%s7359_s0 + $0x35e] sm:$0x3]  ;;  %v3433_v58 = vld [vmem:[#allocation0 + $0xb41] ss:$8 sm:$0xf0]  }
  0xc0   :  { %599 = vst [vmem:[#allocation0 + $0xc48] sm:$0x3] %v4465_v55  ;;  %604 = vst [vmem:[#allocation0 + $0xc40] sm:$0x3] %v4466_v56  ;;  %v4428_v59 = vld [vmem:[%s7359_s0 + $0x35c] sm:$0x3] }
  0xc1   :  { %409 = vst [vmem:[#allocation0 + $0xd78] sm:$0x3] %v4427_v57  ;;  %414 = vst [vmem:[#allocation0 + $0xd70] sm:$0x3] %v4428_v59  ;;  %v4429_v60 = vld [vmem:[%s7359_s0 + $0x35a] sm:$0x3] }
  0xc2   :  { %v4430_v61 = vld [vmem:[%s7359_s0 + $0x358] sm:$0x3]  ;;  %v4431_v62 = vld [vmem:[%s7359_s0 + $0x356] sm:$0x3]  ;;  %419 = vst [vmem:[#allocation0 + $0xd68] sm:$0x3] %v4429_v60  ;;  %v5906_v60 = vpop.permute.xlu1 %3172  }
  0xc3   :  { %v3431_v63 = vld [vmem:[#allocation0 + $0xb41] ss:$8 sm:$0xf]   ;;  %424 = vst [vmem:[#allocation0 + $0xd60] sm:$0x3] %v4430_v61 }
  0xc4   :  { %429 = vst [vmem:[#allocation0 + $0xd58] sm:$0x3] %v4431_v62  ;;  %v4432_v0 = vld [vmem:[%s7359_s0 + $0x354] sm:$0x3]  ;;  %v3435_v1 = vsel %vm2563_vm0, %v3433_v58, %v3431_v63  ;;  %v4433_v2 = vld [vmem:[%s7359_s0 + $0x352] sm:$0x3] }
  0xc5   :  { %434 = vst [vmem:[#allocation0 + $0xd50] sm:$0x3] %v4432_v0  ;;  %v4434_v3 = vld [vmem:[%s7359_s0 + $0x350] sm:$0x3]  ;;  %v4395_v4 = vld [vmem:[%s7359_s0 + $0x39e] sm:$0x3]  ;;  %3436 = vrot.lane.b32.xlu1 %v3435_v1, %s4985_s10 }
  0xc6   :  { %439 = vst [vmem:[#allocation0 + $0xd48] sm:$0x3] %v4433_v2  ;;  %444 = vst [vmem:[#allocation0 + $0xd40] sm:$0x3] %v4434_v3  ;;  %v4396_v5 = vld [vmem:[%s7359_s0 + $0x39c] sm:$0x3] }
  0xc7   :  { %249 = vst [vmem:[#allocation0 + $0xe78] sm:$0x3] %v4395_v4  ;;  %v4397_v6 = vld [vmem:[%s7359_s0 + $0x39a] sm:$0x3]  ;;  %v4398_v7 = vld [vmem:[%s7359_s0 + $0x398] sm:$0x3] }
  0xc8   :  { %v3444_v8 = vld [vmem:[#allocation0 + $0xc41] ss:$8 sm:$0xf0]   ;;  %254 = vst [vmem:[#allocation0 + $0xe70] sm:$0x3] %v4396_v5 }
  0xc9   :  { %259 = vst [vmem:[#allocation0 + $0xe68] sm:$0x3] %v4397_v6  ;;  %264 = vst [vmem:[#allocation0 + $0xe60] sm:$0x3] %v4398_v7  ;;  %v4399_v9 = vld [vmem:[%s7359_s0 + $0x396] sm:$0x3] }
  0xca   :  { %269 = vst [vmem:[#allocation0 + $0xe58] sm:$0x3] %v4399_v9  ;;  %v4400_v10 = vld [vmem:[%s7359_s0 + $0x394] sm:$0x3]  ;;  %v4401_v11 = vld [vmem:[%s7359_s0 + $0x392] sm:$0x3] }
  0xcb   :  { %v4402_v12 = vld [vmem:[%s7359_s0 + $0x390] sm:$0x3]  ;;  %274 = vst [vmem:[#allocation0 + $0xe50] sm:$0x3] %v4400_v10  ;;  %279 = vst [vmem:[#allocation0 + $0xe48] sm:$0x3] %v4401_v11  ;;  %v5937_v10 = vpop.permute.xlu0 %3183  }
  0xcc   :  { %v3442_v13 = vld [vmem:[#allocation0 + $0xc41] ss:$8 sm:$0xf]   ;;  %284 = vst [vmem:[#allocation0 + $0xe40] sm:$0x3] %v4402_v12 }
  0xcd   :  { %v4363_v14 = vld [vmem:[%s7359_s0 + $0x3de] sm:$0x3]  ;;  %v3446_v15 = vsel %vm2563_vm0, %v3444_v8, %v3442_v13  ;;  %v4364_v16 = vld [vmem:[%s7359_s0 + $0x3dc] sm:$0x3]  ;;  %v4365_v17 = vld [vmem:[%s7359_s0 + $0x3da] sm:$0x3] }
  0xce   :  { %89 = vst [vmem:[#allocation0 + $0xf78] sm:$0x3] %v4363_v14  ;;  %v4366_v18 = vld [vmem:[%s7359_s0 + $0x3d8] sm:$0x3]  ;;  %3447 = vrot.lane.b32.xlu0 %v3446_v15, %s4985_s10  ;;  %94 = vst [vmem:[#allocation0 + $0xf70] sm:$0x3] %v4364_v16 }
  0xcf   :  { %v3455_v19 = vld [vmem:[#allocation0 + $0xd41] ss:$8 sm:$0xf0]   ;;  %99 = vst [vmem:[#allocation0 + $0xf68] sm:$0x3] %v4365_v17 }
  0xd0   :  { %104 = vst [vmem:[#allocation0 + $0xf60] sm:$0x3] %v4366_v18  ;;  %v4367_v20 = vld [vmem:[%s7359_s0 + $0x3d6] sm:$0x3]  ;;  %v4368_v21 = vld [vmem:[%s7359_s0 + $0x3d4] sm:$0x3] }
  0xd1   :  { %109 = vst [vmem:[#allocation0 + $0xf58] sm:$0x3] %v4367_v20  ;;  %v4369_v22 = vld [vmem:[%s7359_s0 + $0x3d2] sm:$0x3]  ;;  %v4370_v23 = vld [vmem:[%s7359_s0 + $0x3d0] sm:$0x3] }
  0xd2   :  { %v3453_v24 = vld [vmem:[#allocation0 + $0xd41] ss:$8 sm:$0xf]   ;;  %114 = vst [vmem:[#allocation0 + $0xf50] sm:$0x3] %v4368_v21 }
  0xd3   :  { %119 = vst [vmem:[#allocation0 + $0xf48] sm:$0x3] %v4369_v22  ;;  %124 = vst [vmem:[#allocation0 + $0xf40] sm:$0x3] %v4370_v23  ;;  %v4835_v25 = vld [vmem:[%s7359_s0 + $0x2e] sm:$0x3]  ;;  %v3457_v26 = vsel %vm2563_vm0, %v3455_v19, %v3453_v24  ;;  %v5966_v23 = vpop.permute.xlu1 %3194  }
  0xd4   :  { %v3466_v27 = vld [vmem:[#allocation0 + $0xe41] ss:$8 sm:$0xf0]   ;;  %2449 = vst [vmem:[#allocation0 + $0xb8] sm:$0x3] %v4835_v25  ;;  %3458 = vrot.lane.b32.xlu1 %v3457_v26, %s4985_s10 }
  0xd5   :  { %v4836_v28 = vld [vmem:[%s7359_s0 + $0x2c] sm:$0x3]  ;;  %v4837_v30 = vld [vmem:[%s7359_s0 + $0x2a] sm:$0x3]  ;;  %v4838_v31 = vld [vmem:[%s7359_s0 + $0x28] sm:$0x3] }
  0xd6   :  { %2454 = vst [vmem:[#allocation0 + $0xb0] sm:$0x3] %v4836_v28  ;;  %v4839_v32 = vld [vmem:[%s7359_s0 + $0x26] sm:$0x3]  ;;  %2459 = vst [vmem:[#allocation0 + $0xa8] sm:$0x3] %v4837_v30 }
  0xd7   :  { %v3464_v33 = vld [vmem:[#allocation0 + $0xe41] ss:$8 sm:$0xf]   ;;  %2464 = vst [vmem:[#allocation0 + $0xa0] sm:$0x3] %v4838_v31 }
  0xd8   :  { %2469 = vst [vmem:[#allocation0 + $0x98] sm:$0x3] %v4839_v32  ;;  %v4840_v34 = vld [vmem:[%s7359_s0 + $0x24] sm:$0x3]  ;;  %v3468_v35 = vsel %vm2563_vm0, %v3466_v27, %v3464_v33  ;;  %v4841_v36 = vld [vmem:[%s7359_s0 + $0x22] sm:$0x3]  ;;  %v5984_v32 = vpop.permute.xlu0 %3205  }
  0xd9   :  { %2474 = vst [vmem:[#allocation0 + $0x90] sm:$0x3] %v4840_v34  ;;  %v4842_v37 = vld [vmem:[%s7359_s0 + $0x20] sm:$0x3]  ;;  %v4803_v38 = vld [vmem:[%s7359_s0 + $0x6e] sm:$0x3]  ;;  %3469 = vrot.lane.b32.xlu0 %v3468_v35, %s4985_s10 }
  0xda   :  { %v3477_v40 = vld [vmem:[#allocation0 + $0xf41] ss:$8 sm:$0xf0]   ;;  %2479 = vst [vmem:[#allocation0 + $0x88] sm:$0x3] %v4841_v36 }
  0xdb   :  { %2484 = vst [vmem:[#allocation0 + $0x80] sm:$0x3] %v4842_v37  ;;  %2289 = vst [vmem:[#allocation0 + $0x1b8] sm:$0x3] %v4803_v38  ;;  %v4804_v41 = vld [vmem:[%s7359_s0 + $0x6c] sm:$0x3] }
  0xdc   :  { %2294 = vst [vmem:[#allocation0 + $0x1b0] sm:$0x3] %v4804_v41  ;;  %v4805_v42 = vld [vmem:[%s7359_s0 + $0x6a] sm:$0x3]  ;;  %v4806_v43 = vld [vmem:[%s7359_s0 + $0x68] sm:$0x3] }
  0xdd   :  { %v4807_v44 = vld [vmem:[%s7359_s0 + $0x66] sm:$0x3]  ;;  %v3475_v45 = vld [vmem:[#allocation0 + $0xf41] ss:$8 sm:$0xf]  }
  0xde   :  { %2299 = vst [vmem:[#allocation0 + $0x1a8] sm:$0x3] %v4805_v42  ;;  %2304 = vst [vmem:[#allocation0 + $0x1a0] sm:$0x3] %v4806_v43  ;;  %v4808_v46 = vld [vmem:[%s7359_s0 + $0x64] sm:$0x3]  ;;  %v3479_v48 = vsel %vm2563_vm0, %v3477_v40, %v3475_v45 }
  0xdf   :  { %2309 = vst [vmem:[#allocation0 + $0x198] sm:$0x3] %v4807_v44  ;;  %2314 = vst [vmem:[#allocation0 + $0x190] sm:$0x3] %v4808_v46  ;;  %v4809_v49 = vld [vmem:[%s7359_s0 + $0x62] sm:$0x3]  ;;  %3480 = vrot.lane.b32.xlu1 %v3479_v48, %s4985_s10  ;;  %v6018_v46 = vpop.permute.xlu1 %3216  }
  0xe0   :  { %v4810_v50 = vld [vmem:[%s7359_s0 + $0x60] sm:$0x3]  ;;  %v4771_v51 = vld [vmem:[%s7359_s0 + $0xae] sm:$0x3]  ;;  %2319 = vst [vmem:[#allocation0 + $0x188] sm:$0x3] %v4809_v49 }
  0xe1   :  { %2324 = vst [vmem:[#allocation0 + $0x180] sm:$0x3] %v4810_v50  ;;  %2129 = vst [vmem:[#allocation0 + $0x2b8] sm:$0x3] %v4771_v51  ;;  %v4772_v52 = vld [vmem:[%s7359_s0 + $0xac] sm:$0x3] }
  0xe2   :  { %v4773_v53 = vld [vmem:[%s7359_s0 + $0xaa] sm:$0x3]  ;;  %v4774_v54 = vld [vmem:[%s7359_s0 + $0xa8] sm:$0x3]  ;;  %2134 = vst [vmem:[#allocation0 + $0x2b0] sm:$0x3] %v4772_v52 }
  0xe3   :  { %v3488_v55 = vld [vmem:[#allocation0 + $0x81] ss:$8 sm:$0xf0]   ;;  %2139 = vst [vmem:[#allocation0 + $0x2a8] sm:$0x3] %v4773_v53 }
  0xe4   :  { %2144 = vst [vmem:[#allocation0 + $0x2a0] sm:$0x3] %v4774_v54  ;;  %v4775_v56 = vld [vmem:[%s7359_s0 + $0xa6] sm:$0x3]  ;;  %v4776_v57 = vld [vmem:[%s7359_s0 + $0xa4] sm:$0x3] }
  0xe5   :  { %2149 = vst [vmem:[#allocation0 + $0x298] sm:$0x3] %v4775_v56  ;;  %v4777_v58 = vld [vmem:[%s7359_s0 + $0xa2] sm:$0x3]  ;;  %v4778_v59 = vld [vmem:[%s7359_s0 + $0xa0] sm:$0x3] }
  0xe6   :  { %v3486_v61 = vld [vmem:[#allocation0 + $0x81] ss:$8 sm:$0xf]   ;;  %2154 = vst [vmem:[#allocation0 + $0x290] sm:$0x3] %v4776_v57 }
  0xe7   :  { %2159 = vst [vmem:[#allocation0 + $0x288] sm:$0x3] %v4777_v58  ;;  %2164 = vst [vmem:[#allocation0 + $0x280] sm:$0x3] %v4778_v59  ;;  %v4739_v62 = vld [vmem:[%s7359_s0 + $0xee] sm:$0x3]  ;;  %v3490_v63 = vsel %vm2563_vm0, %v3488_v55, %v3486_v61 }
  0xe8   :  { %1969 = vst [vmem:[#allocation0 + $0x3b8] sm:$0x3] %v4739_v62  ;;  %v4740_v0 = vld [vmem:[%s7359_s0 + $0xec] sm:$0x3]  ;;  %v4741_v1 = vld [vmem:[%s7359_s0 + $0xea] sm:$0x3]  ;;  %3491 = vrot.lane.b32.xlu0 %v3490_v63, %s4985_s10  ;;  %v6049_v62 = vpop.permute.xlu0 %3227  }
  0xe9   :  { %v4742_v2 = vld [vmem:[%s7359_s0 + $0xe8] sm:$0x3]  ;;  %1974 = vst [vmem:[#allocation0 + $0x3b0] sm:$0x3] %v4740_v0  ;;  %1979 = vst [vmem:[#allocation0 + $0x3a8] sm:$0x3] %v4741_v1 }
  0xea   :  { %v3499_v3 = vld [vmem:[#allocation0 + $0x181] ss:$8 sm:$0xf0]   ;;  %1984 = vst [vmem:[#allocation0 + $0x3a0] sm:$0x3] %v4742_v2 }
  0xeb   :  { %v4743_v4 = vld [vmem:[%s7359_s0 + $0xe6] sm:$0x3]  ;;  %v4744_v5 = vld [vmem:[%s7359_s0 + $0xe4] sm:$0x3]  ;;  %v4745_v6 = vld [vmem:[%s7359_s0 + $0xe2] sm:$0x3] }
  0xec   :  { %1989 = vst [vmem:[#allocation0 + $0x398] sm:$0x3] %v4743_v4  ;;  %v4746_v7 = vld [vmem:[%s7359_s0 + $0xe0] sm:$0x3]  ;;  %1994 = vst [vmem:[#allocation0 + $0x390] sm:$0x3] %v4744_v5 }
  0xed   :  { %v3497_v8 = vld [vmem:[#allocation0 + $0x181] ss:$8 sm:$0xf]   ;;  %1999 = vst [vmem:[#allocation0 + $0x388] sm:$0x3] %v4745_v6 }
  0xee   :  { %2004 = vst [vmem:[#allocation0 + $0x380] sm:$0x3] %v4746_v7  ;;  %v4707_v9 = vld [vmem:[%s7359_s0 + $0x12e] sm:$0x3]  ;;  %v3501_v11 = vsel %vm2563_vm0, %v3499_v3, %v3497_v8  ;;  %v4708_v13 = vld [vmem:[%s7359_s0 + $0x12c] sm:$0x3] }
  0xef   :  { %v3510_v12 = vld [vmem:[#allocation0 + $0x281] ss:$8 sm:$0xf0]   ;;  %1809 = vst [vmem:[#allocation0 + $0x4b8] sm:$0x3] %v4707_v9  ;;  %3502 = vrot.lane.b32.xlu1 %v3501_v11, %s4985_s10 }
  0xf0   :  { %1814 = vst [vmem:[#allocation0 + $0x4b0] sm:$0x3] %v4708_v13  ;;  %v4709_v14 = vld [vmem:[%s7359_s0 + $0x12a] sm:$0x3]  ;;  %v4710_v15 = vld [vmem:[%s7359_s0 + $0x128] sm:$0x3] }
  0xf1   :  { %v4711_v16 = vld [vmem:[%s7359_s0 + $0x126] sm:$0x3]  ;;  %v3508_v17 = vld [vmem:[#allocation0 + $0x281] ss:$8 sm:$0xf]  }
  0xf2   :  { %1819 = vst [vmem:[#allocation0 + $0x4a8] sm:$0x3] %v4709_v14  ;;  %1824 = vst [vmem:[#allocation0 + $0x4a0] sm:$0x3] %v4710_v15  ;;  %v4712_v18 = vld [vmem:[%s7359_s0 + $0x124] sm:$0x3]  ;;  %v3512_v19 = vsel %vm2563_vm0, %v3510_v12, %v3508_v17  ;;  %v6078_v12 = vpop.permute.xlu1 %3238  }
  0xf3   :  { %1829 = vst [vmem:[#allocation0 + $0x498] sm:$0x3] %v4711_v16  ;;  %1834 = vst [vmem:[#allocation0 + $0x490] sm:$0x3] %v4712_v18  ;;  %v4713_v20 = vld [vmem:[%s7359_s0 + $0x122] sm:$0x3]  ;;  %3513 = vrot.lane.b32.xlu0 %v3512_v19, %s4985_s10 }
  0xf4   :  { %v4714_v21 = vld [vmem:[%s7359_s0 + $0x120] sm:$0x3]  ;;  %v4675_v22 = vld [vmem:[%s7359_s0 + $0x16e] sm:$0x3]  ;;  %1839 = vst [vmem:[#allocation0 + $0x488] sm:$0x3] %v4713_v20  ;;  %v6096_v20 = vpop.permute.xlu0 %3249  }
  0xf5   :  { %v3521_v24 = vld [vmem:[#allocation0 + $0x381] ss:$8 sm:$0xf0]   ;;  %1844 = vst [vmem:[#allocation0 + $0x480] sm:$0x3] %v4714_v21 }
  0xf6   :  { %1649 = vst [vmem:[#allocation0 + $0x5b8] sm:$0x3] %v4675_v22  ;;  %v4676_v25 = vld [vmem:[%s7359_s0 + $0x16c] sm:$0x3]  ;;  %v4677_v26 = vld [vmem:[%s7359_s0 + $0x16a] sm:$0x3] }
  0xf7   :  { %1654 = vst [vmem:[#allocation0 + $0x5b0] sm:$0x3] %v4676_v25  ;;  %v4678_v27 = vld [vmem:[%s7359_s0 + $0x168] sm:$0x3]  ;;  %v4679_v28 = vld [vmem:[%s7359_s0 + $0x166] sm:$0x3] }
  0xf8   :  { %v3519_v30 = vld [vmem:[#allocation0 + $0x381] ss:$8 sm:$0xf]   ;;  %1659 = vst [vmem:[#allocation0 + $0x5a8] sm:$0x3] %v4677_v26 }
  0xf9   :  { %1664 = vst [vmem:[#allocation0 + $0x5a0] sm:$0x3] %v4678_v27  ;;  %1669 = vst [vmem:[#allocation0 + $0x598] sm:$0x3] %v4679_v28  ;;  %v4680_v31 = vld [vmem:[%s7359_s0 + $0x164] sm:$0x3]  ;;  %v3523_v33 = vsel %vm2563_vm0, %v3521_v24, %v3519_v30 }
  0xfa   :  { %1674 = vst [vmem:[#allocation0 + $0x590] sm:$0x3] %v4680_v31  ;;  %v4681_v34 = vld [vmem:[%s7359_s0 + $0x162] sm:$0x3]  ;;  %v4682_v35 = vld [vmem:[%s7359_s0 + $0x160] sm:$0x3]  ;;  %3524 = vrot.lane.b32.xlu1 %v3523_v33, %s4985_s10 }
  0xfb   :  { %v4643_v36 = vld [vmem:[%s7359_s0 + $0x1ae] sm:$0x3]  ;;  %1679 = vst [vmem:[#allocation0 + $0x588] sm:$0x3] %v4681_v34  ;;  %1684 = vst [vmem:[#allocation0 + $0x580] sm:$0x3] %v4682_v35 }
  0xfc   :  { %1489 = vst [vmem:[#allocation0 + $0x6b8] sm:$0x3] %v4643_v36  ;;  %v4644_v37 = vld [vmem:[%s7359_s0 + $0x1ac] sm:$0x3]  ;;  %v4645_v38 = vld [vmem:[%s7359_s0 + $0x1aa] sm:$0x3]  ;;  %v6130_v36 = vpop.permute.xlu1 %3260  }
  0xfd   :  { %v4646_v40 = vld [vmem:[%s7359_s0 + $0x1a8] sm:$0x3]  ;;  %1494 = vst [vmem:[#allocation0 + $0x6b0] sm:$0x3] %v4644_v37  ;;  %1499 = vst [vmem:[#allocation0 + $0x6a8] sm:$0x3] %v4645_v38 }
  0xfe   :  { %v3532_v41 = vld [vmem:[#allocation0 + $0x481] ss:$8 sm:$0xf0]   ;;  %1504 = vst [vmem:[#allocation0 + $0x6a0] sm:$0x3] %v4646_v40 }
  0xff   :  { %v4647_v42 = vld [vmem:[%s7359_s0 + $0x1a6] sm:$0x3]  ;;  %v4648_v43 = vld [vmem:[%s7359_s0 + $0x1a4] sm:$0x3]  ;;  %v4649_v44 = vld [vmem:[%s7359_s0 + $0x1a2] sm:$0x3] }
 0x100   :  { %1509 = vst [vmem:[#allocation0 + $0x698] sm:$0x3] %v4647_v42  ;;  %v4650_v45 = vld [vmem:[%s7359_s0 + $0x1a0] sm:$0x3]  ;;  %1514 = vst [vmem:[#allocation0 + $0x690] sm:$0x3] %v4648_v43 }
 0x101   :  { %v3530_v48 = vld [vmem:[#allocation0 + $0x481] ss:$8 sm:$0xf]   ;;  %1519 = vst [vmem:[#allocation0 + $0x688] sm:$0x3] %v4649_v44 }
 0x102   :  { %1524 = vst [vmem:[#allocation0 + $0x680] sm:$0x3] %v4650_v45  ;;  %v4611_v49 = vld [vmem:[%s7359_s0 + $0x1ee] sm:$0x3]  ;;  %v3534_v50 = vsel %vm2563_vm0, %v3532_v41, %v3530_v48  ;;  %v4612_v51 = vld [vmem:[%s7359_s0 + $0x1ec] sm:$0x3] }
 0x103   :  { %1329 = vst [vmem:[#allocation0 + $0x7b8] sm:$0x3] %v4611_v49  ;;  %v4613_v52 = vld [vmem:[%s7359_s0 + $0x1ea] sm:$0x3]  ;;  %v4614_v53 = vld [vmem:[%s7359_s0 + $0x1e8] sm:$0x3]  ;;  %3535 = vrot.lane.b32.xlu0 %v3534_v50, %s4985_s10 }
 0x104   :  { %v3543_v54 = vld [vmem:[#allocation0 + $0x581] ss:$8 sm:$0xf0]   ;;  %1334 = vst [vmem:[#allocation0 + $0x7b0] sm:$0x3] %v4612_v51 }
 0x105   :  { %1339 = vst [vmem:[#allocation0 + $0x7a8] sm:$0x3] %v4613_v52  ;;  %1344 = vst [vmem:[#allocation0 + $0x7a0] sm:$0x3] %v4614_v53  ;;  %v4615_v55 = vld [vmem:[%s7359_s0 + $0x1e6] sm:$0x3]  ;;  %v6161_v53 = vpop.permute.xlu0 %3271  }
 0x106   :  { %1349 = vst [vmem:[#allocation0 + $0x798] sm:$0x3] %v4615_v55  ;;  %v4616_v56 = vld [vmem:[%s7359_s0 + $0x1e4] sm:$0x3]  ;;  %v4617_v57 = vld [vmem:[%s7359_s0 + $0x1e2] sm:$0x3] }
 0x107   :  { %v4618_v58 = vld [vmem:[%s7359_s0 + $0x1e0] sm:$0x3]  ;;  %1354 = vst [vmem:[#allocation0 + $0x790] sm:$0x3] %v4616_v56  ;;  %1359 = vst [vmem:[#allocation0 + $0x788] sm:$0x3] %v4617_v57 }
 0x108   :  { %v3541_v59 = vld [vmem:[#allocation0 + $0x581] ss:$8 sm:$0xf]   ;;  %1364 = vst [vmem:[#allocation0 + $0x780] sm:$0x3] %v4618_v58 }
 0x109   :  { %v4579_v61 = vld [vmem:[%s7359_s0 + $0x22e] sm:$0x3]  ;;  %v3545_v63 = vsel %vm2563_vm0, %v3543_v54, %v3541_v59  ;;  %v3554_v0 = vld [vmem:[#allocation0 + $0x681] ss:$8 sm:$0xf0]  }
 0x10a   :  { %1169 = vst [vmem:[#allocation0 + $0x8b8] sm:$0x3] %v4579_v61  ;;  %v4580_v1 = vld [vmem:[%s7359_s0 + $0x22c] sm:$0x3]  ;;  %3546 = vrot.lane.b32.xlu1 %v3545_v63, %s4985_s10  ;;  %v4581_v2 = vld [vmem:[%s7359_s0 + $0x22a] sm:$0x3] }
 0x10b   :  { %1174 = vst [vmem:[#allocation0 + $0x8b0] sm:$0x3] %v4580_v1  ;;  %v4582_v3 = vld [vmem:[%s7359_s0 + $0x228] sm:$0x3]  ;;  %v4583_v4 = vld [vmem:[%s7359_s0 + $0x226] sm:$0x3] }
 0x10c   :  { %v3552_v5 = vld [vmem:[#allocation0 + $0x681] ss:$8 sm:$0xf]   ;;  %1179 = vst [vmem:[#allocation0 + $0x8a8] sm:$0x3] %v4581_v2 }
 0x10d   :  { %1184 = vst [vmem:[#allocation0 + $0x8a0] sm:$0x3] %v4582_v3  ;;  %1189 = vst [vmem:[#allocation0 + $0x898] sm:$0x3] %v4583_v4  ;;  %v4584_v6 = vld [vmem:[%s7359_s0 + $0x224] sm:$0x3]  ;;  %v3556_v7 = vsel %vm2563_vm0, %v3554_v0, %v3552_v5  ;;  %v6190_v4 = vpop.permute.xlu1 %3282  }
 0x10e   :  { %1194 = vst [vmem:[#allocation0 + $0x890] sm:$0x3] %v4584_v6  ;;  %v4585_v8 = vld [vmem:[%s7359_s0 + $0x222] sm:$0x3]  ;;  %v4586_v9 = vld [vmem:[%s7359_s0 + $0x220] sm:$0x3]  ;;  %3557 = vrot.lane.b32.xlu0 %v3556_v7, %s4985_s10 }
 0x10f   :  { %v4547_v11 = vld [vmem:[%s7359_s0 + $0x26e] sm:$0x3]  ;;  %v3565_v13 = vld [vmem:[#allocation0 + $0x781] ss:$8 sm:$0xf0]  }
 0x110   :  { %1199 = vst [vmem:[#allocation0 + $0x888] sm:$0x3] %v4585_v8  ;;  %1204 = vst [vmem:[#allocation0 + $0x880] sm:$0x3] %v4586_v9  ;;  %v4548_v14 = vld [vmem:[%s7359_s0 + $0x26c] sm:$0x3] }
 0x111   :  { %1009 = vst [vmem:[#allocation0 + $0x9b8] sm:$0x3] %v4547_v11  ;;  %1014 = vst [vmem:[#allocation0 + $0x9b0] sm:$0x3] %v4548_v14  ;;  %v4549_v15 = vld [vmem:[%s7359_s0 + $0x26a] sm:$0x3]  ;;  %v6208_v14 = vpop.permute.xlu0 %3293  }
 0x112   :  { %v4550_v16 = vld [vmem:[%s7359_s0 + $0x268] sm:$0x3]  ;;  %v4551_v17 = vld [vmem:[%s7359_s0 + $0x266] sm:$0x3]  ;;  %1019 = vst [vmem:[#allocation0 + $0x9a8] sm:$0x3] %v4549_v15 }
 0x113   :  { %v3563_v18 = vld [vmem:[#allocation0 + $0x781] ss:$8 sm:$0xf]   ;;  %1024 = vst [vmem:[#allocation0 + $0x9a0] sm:$0x3] %v4550_v16 }
 0x114   :  { %1029 = vst [vmem:[#allocation0 + $0x998] sm:$0x3] %v4551_v17  ;;  %v4552_v19 = vld [vmem:[%s7359_s0 + $0x264] sm:$0x3]  ;;  %v3567_v21 = vsel %vm2563_vm0, %v3565_v13, %v3563_v18  ;;  %v4553_v22 = vld [vmem:[%s7359_s0 + $0x262] sm:$0x3] }
 0x115   :  { %1034 = vst [vmem:[#allocation0 + $0x990] sm:$0x3] %v4552_v19  ;;  %v4554_v24 = vld [vmem:[%s7359_s0 + $0x260] sm:$0x3]  ;;  %v4515_v25 = vld [vmem:[%s7359_s0 + $0x2ae] sm:$0x3]  ;;  %3568 = vrot.lane.b32.xlu1 %v3567_v21, %s4985_s10 }
 0x116   :  { %1039 = vst [vmem:[#allocation0 + $0x988] sm:$0x3] %v4553_v22  ;;  %1044 = vst [vmem:[#allocation0 + $0x980] sm:$0x3] %v4554_v24  ;;  %v4516_v26 = vld [vmem:[%s7359_s0 + $0x2ac] sm:$0x3] }
 0x117   :  { %849 = vst [vmem:[#allocation0 + $0xab8] sm:$0x3] %v4515_v25  ;;  %v4517_v27 = vld [vmem:[%s7359_s0 + $0x2aa] sm:$0x3]  ;;  %v4518_v28 = vld [vmem:[%s7359_s0 + $0x2a8] sm:$0x3] }
 0x118   :  { %v3576_v30 = vld [vmem:[#allocation0 + $0x881] ss:$8 sm:$0xf0]   ;;  %854 = vst [vmem:[#allocation0 + $0xab0] sm:$0x3] %v4516_v26 }
 0x119   :  { %859 = vst [vmem:[#allocation0 + $0xaa8] sm:$0x3] %v4517_v27  ;;  %864 = vst [vmem:[#allocation0 + $0xaa0] sm:$0x3] %v4518_v28  ;;  %v4519_v31 = vld [vmem:[%s7359_s0 + $0x2a6] sm:$0x3] }
 0x11a   :  { %869 = vst [vmem:[#allocation0 + $0xa98] sm:$0x3] %v4519_v31  ;;  %v4520_v33 = vld [vmem:[%s7359_s0 + $0x2a4] sm:$0x3]  ;;  %v4521_v34 = vld [vmem:[%s7359_s0 + $0x2a2] sm:$0x3] }
 0x11b   :  { %v4522_v35 = vld [vmem:[%s7359_s0 + $0x2a0] sm:$0x3]  ;;  %874 = vst [vmem:[#allocation0 + $0xa90] sm:$0x3] %v4520_v33  ;;  %879 = vst [vmem:[#allocation0 + $0xa88] sm:$0x3] %v4521_v34 }
 0x11c   :  { %v3574_v37 = vld [vmem:[#allocation0 + $0x881] ss:$8 sm:$0xf]   ;;  %884 = vst [vmem:[#allocation0 + $0xa80] sm:$0x3] %v4522_v35 }
 0x11d   :  { %v4483_v38 = vld [vmem:[%s7359_s0 + $0x2ee] sm:$0x3]  ;;  %v3578_v40 = vsel %vm2563_vm0, %v3576_v30, %v3574_v37  ;;  %v4484_v41 = vld [vmem:[%s7359_s0 + $0x2ec] sm:$0x3]  ;;  %v4485_v42 = vld [vmem:[%s7359_s0 + $0x2ea] sm:$0x3]  ;;  %v6242_v30 = vpop.permute.xlu1 %3304  }
 0x11e   :  { %689 = vst [vmem:[#allocation0 + $0xbb8] sm:$0x3] %v4483_v38  ;;  %v4486_v43 = vld [vmem:[%s7359_s0 + $0x2e8] sm:$0x3]  ;;  %3579 = vrot.lane.b32.xlu0 %v3578_v40, %s4985_s10  ;;  %694 = vst [vmem:[#allocation0 + $0xbb0] sm:$0x3] %v4484_v41 }
 0x11f   :  { %v3587_v44 = vld [vmem:[#allocation0 + $0x981] ss:$8 sm:$0xf0]   ;;  %699 = vst [vmem:[#allocation0 + $0xba8] sm:$0x3] %v4485_v42 }
 0x120   :  { %704 = vst [vmem:[#allocation0 + $0xba0] sm:$0x3] %v4486_v43  ;;  %v4487_v45 = vld [vmem:[%s7359_s0 + $0x2e6] sm:$0x3]  ;;  %v4488_v48 = vld [vmem:[%s7359_s0 + $0x2e4] sm:$0x3] }
 0x121   :  { %709 = vst [vmem:[#allocation0 + $0xb98] sm:$0x3] %v4487_v45  ;;  %v4489_v49 = vld [vmem:[%s7359_s0 + $0x2e2] sm:$0x3]  ;;  %v4490_v50 = vld [vmem:[%s7359_s0 + $0x2e0] sm:$0x3] }
 0x122   :  { %v3585_v51 = vld [vmem:[#allocation0 + $0x981] ss:$8 sm:$0xf]   ;;  %714 = vst [vmem:[#allocation0 + $0xb90] sm:$0x3] %v4488_v48 }
 0x123   :  { %719 = vst [vmem:[#allocation0 + $0xb88] sm:$0x3] %v4489_v49  ;;  %724 = vst [vmem:[#allocation0 + $0xb80] sm:$0x3] %v4490_v50  ;;  %v4451_v52 = vld [vmem:[%s7359_s0 + $0x32e] sm:$0x3]  ;;  %v3589_v54 = vsel %vm2563_vm0, %v3587_v44, %v3585_v51  ;;  %v6273_v49 = vpop.permute.xlu0 %3315  }
 0x124   :  { %v3598_v55 = vld [vmem:[#allocation0 + $0xa81] ss:$8 sm:$0xf0]   ;;  %529 = vst [vmem:[#allocation0 + $0xcb8] sm:$0x3] %v4451_v52  ;;  %3590 = vrot.lane.b32.xlu1 %v3589_v54, %s4985_s10 }
 0x125   :  { %v4452_v56 = vld [vmem:[%s7359_s0 + $0x32c] sm:$0x3]  ;;  %v4453_v57 = vld [vmem:[%s7359_s0 + $0x32a] sm:$0x3]  ;;  %v4454_v58 = vld [vmem:[%s7359_s0 + $0x328] sm:$0x3] }
 0x126   :  { %534 = vst [vmem:[#allocation0 + $0xcb0] sm:$0x3] %v4452_v56  ;;  %v4455_v59 = vld [vmem:[%s7359_s0 + $0x326] sm:$0x3]  ;;  %539 = vst [vmem:[#allocation0 + $0xca8] sm:$0x3] %v4453_v57 }
 0x127   :  { %v3596_v61 = vld [vmem:[#allocation0 + $0xa81] ss:$8 sm:$0xf]   ;;  %544 = vst [vmem:[#allocation0 + $0xca0] sm:$0x3] %v4454_v58 }
 0x128   :  { %549 = vst [vmem:[#allocation0 + $0xc98] sm:$0x3] %v4455_v59  ;;  %v4456_v63 = vld [vmem:[%s7359_s0 + $0x324] sm:$0x3]  ;;  %v3600_v0 = vsel %vm2563_vm0, %v3598_v55, %v3596_v61  ;;  %v4457_v1 = vld [vmem:[%s7359_s0 + $0x322] sm:$0x3] }
 0x129   :  { %554 = vst [vmem:[#allocation0 + $0xc90] sm:$0x3] %v4456_v63  ;;  %v4458_v2 = vld [vmem:[%s7359_s0 + $0x320] sm:$0x3]  ;;  %v4419_v3 = vld [vmem:[%s7359_s0 + $0x36e] sm:$0x3]  ;;  %3601 = vrot.lane.b32.xlu0 %v3600_v0, %s4985_s10 }
 0x12a   :  { %v3609_v5 = vld [vmem:[#allocation0 + $0xb81] ss:$8 sm:$0xf0]   ;;  %559 = vst [vmem:[#allocation0 + $0xc88] sm:$0x3] %v4457_v1  ;;  %v6302_v1 = vpop.permute.xlu1 %3326  }
 0x12b   :  { %564 = vst [vmem:[#allocation0 + $0xc80] sm:$0x3] %v4458_v2  ;;  %369 = vst [vmem:[#allocation0 + $0xdb8] sm:$0x3] %v4419_v3  ;;  %v4420_v6 = vld [vmem:[%s7359_s0 + $0x36c] sm:$0x3] }
 0x12c   :  { %374 = vst [vmem:[#allocation0 + $0xdb0] sm:$0x3] %v4420_v6  ;;  %v4421_v7 = vld [vmem:[%s7359_s0 + $0x36a] sm:$0x3]  ;;  %v4422_v8 = vld [vmem:[%s7359_s0 + $0x368] sm:$0x3] }
 0x12d   :  { %v4423_v9 = vld [vmem:[%s7359_s0 + $0x366] sm:$0x3]  ;;  %v3607_v11 = vld [vmem:[#allocation0 + $0xb81] ss:$8 sm:$0xf]  }
 0x12e   :  { %379 = vst [vmem:[#allocation0 + $0xda8] sm:$0x3] %v4421_v7  ;;  %384 = vst [vmem:[#allocation0 + $0xda0] sm:$0x3] %v4422_v8  ;;  %v4424_v13 = vld [vmem:[%s7359_s0 + $0x364] sm:$0x3]  ;;  %v3611_v15 = vsel %vm2563_vm0, %v3609_v5, %v3607_v11  ;;  %v6320_v11 = vpop.permute.xlu0 %3337  }
 0x12f   :  { %389 = vst [vmem:[#allocation0 + $0xd98] sm:$0x3] %v4423_v9  ;;  %394 = vst [vmem:[#allocation0 + $0xd90] sm:$0x3] %v4424_v13  ;;  %v4425_v16 = vld [vmem:[%s7359_s0 + $0x362] sm:$0x3]  ;;  %3612 = vrot.lane.b32.xlu1 %v3611_v15, %s4985_s10 }
 0x130   :  { %v4426_v17 = vld [vmem:[%s7359_s0 + $0x360] sm:$0x3]  ;;  %v4387_v18 = vld [vmem:[%s7359_s0 + $0x3ae] sm:$0x3]  ;;  %399 = vst [vmem:[#allocation0 + $0xd88] sm:$0x3] %v4425_v16 }
 0x131   :  { %404 = vst [vmem:[#allocation0 + $0xd80] sm:$0x3] %v4426_v17  ;;  %209 = vst [vmem:[#allocation0 + $0xeb8] sm:$0x3] %v4387_v18  ;;  %v4388_v19 = vld [vmem:[%s7359_s0 + $0x3ac] sm:$0x3] }
 0x132   :  { %v4389_v21 = vld [vmem:[%s7359_s0 + $0x3aa] sm:$0x3]  ;;  %v4390_v22 = vld [vmem:[%s7359_s0 + $0x3a8] sm:$0x3]  ;;  %214 = vst [vmem:[#allocation0 + $0xeb0] sm:$0x3] %v4388_v19 }
 0x133   :  { %v3620_v24 = vld [vmem:[#allocation0 + $0xc81] ss:$8 sm:$0xf0]   ;;  %219 = vst [vmem:[#allocation0 + $0xea8] sm:$0x3] %v4389_v21 }
 0x134   :  { %224 = vst [vmem:[#allocation0 + $0xea0] sm:$0x3] %v4390_v22  ;;  %v4391_v25 = vld [vmem:[%s7359_s0 + $0x3a6] sm:$0x3]  ;;  %v4392_v26 = vld [vmem:[%s7359_s0 + $0x3a4] sm:$0x3] }
 0x135   :  { %229 = vst [vmem:[#allocation0 + $0xe98] sm:$0x3] %v4391_v25  ;;  %v4393_v27 = vld [vmem:[%s7359_s0 + $0x3a2] sm:$0x3]  ;;  %v4394_v28 = vld [vmem:[%s7359_s0 + $0x3a0] sm:$0x3] }
 0x136   :  { %v3618_v31 = vld [vmem:[#allocation0 + $0xc81] ss:$8 sm:$0xf]   ;;  %234 = vst [vmem:[#allocation0 + $0xe90] sm:$0x3] %v4392_v26 }
 0x137   :  { %239 = vst [vmem:[#allocation0 + $0xe88] sm:$0x3] %v4393_v27  ;;  %244 = vst [vmem:[#allocation0 + $0xe80] sm:$0x3] %v4394_v28  ;;  %v4355_v33 = vld [vmem:[%s7359_s0 + $0x3ee] sm:$0x3]  ;;  %v3622_v34 = vsel %vm2563_vm0, %v3620_v24, %v3618_v31  ;;  %v6354_v28 = vpop.permute.xlu1 %3348  }
 0x138   :  { %49 = vst [vmem:[#allocation0 + $0xfb8] sm:$0x3] %v4355_v33  ;;  %v4356_v35 = vld [vmem:[%s7359_s0 + $0x3ec] sm:$0x3]  ;;  %v4357_v37 = vld [vmem:[%s7359_s0 + $0x3ea] sm:$0x3]  ;;  %3623 = vrot.lane.b32.xlu0 %v3622_v34, %s4985_s10 }
 0x139   :  { %v4358_v38 = vld [vmem:[%s7359_s0 + $0x3e8] sm:$0x3]  ;;  %54 = vst [vmem:[#allocation0 + $0xfb0] sm:$0x3] %v4356_v35  ;;  %59 = vst [vmem:[#allocation0 + $0xfa8] sm:$0x3] %v4357_v37 }
 0x13a   :  { %v3631_v40 = vld [vmem:[#allocation0 + $0xd81] ss:$8 sm:$0xf0]   ;;  %64 = vst [vmem:[#allocation0 + $0xfa0] sm:$0x3] %v4358_v38 }
 0x13b   :  { %v4359_v41 = vld [vmem:[%s7359_s0 + $0x3e6] sm:$0x3]  ;;  %v4360_v42 = vld [vmem:[%s7359_s0 + $0x3e4] sm:$0x3]  ;;  %v4361_v43 = vld [vmem:[%s7359_s0 + $0x3e2] sm:$0x3] }
 0x13c   :  { %69 = vst [vmem:[#allocation0 + $0xf98] sm:$0x3] %v4359_v41  ;;  %v4362_v44 = vld [vmem:[%s7359_s0 + $0x3e0] sm:$0x3]  ;;  %74 = vst [vmem:[#allocation0 + $0xf90] sm:$0x3] %v4360_v42 }
 0x13d   :  { %v3629_v45 = vld [vmem:[#allocation0 + $0xd81] ss:$8 sm:$0xf]   ;;  %79 = vst [vmem:[#allocation0 + $0xf88] sm:$0x3] %v4361_v43 }
 0x13e   :  { %84 = vst [vmem:[#allocation0 + $0xf80] sm:$0x3] %v4362_v44  ;;  %v4827_v48 = vld [vmem:[%s7359_s0 + $0x3e] sm:$0x3]  ;;  %v3633_v50 = vsel %vm2563_vm0, %v3631_v40, %v3629_v45  ;;  %v4828_v52 = vld [vmem:[%s7359_s0 + $0x3c] sm:$0x3] }
 0x13f   :  { %v3642_v51 = vld [vmem:[#allocation0 + $0xe81] ss:$8 sm:$0xf0]   ;;  %2409 = vst [vmem:[#allocation0 + $0xf8] sm:$0x3] %v4827_v48  ;;  %3634 = vrot.lane.b32.xlu1 %v3633_v50, %s4985_s10  ;;  %v6385_v50 = vpop.permute.xlu0 %3359  }
 0x140   :  { %2414 = vst [vmem:[#allocation0 + $0xf0] sm:$0x3] %v4828_v52  ;;  %v4829_v54 = vld [vmem:[%s7359_s0 + $0x3a] sm:$0x3]  ;;  %v4830_v55 = vld [vmem:[%s7359_s0 + $0x38] sm:$0x3] }
 0x141   :  { %v4831_v56 = vld [vmem:[%s7359_s0 + $0x36] sm:$0x3]  ;;  %v3640_v57 = vld [vmem:[#allocation0 + $0xe81] ss:$8 sm:$0xf]  }
 0x142   :  { %2419 = vst [vmem:[#allocation0 + $0xe8] sm:$0x3] %v4829_v54  ;;  %2424 = vst [vmem:[#allocation0 + $0xe0] sm:$0x3] %v4830_v55  ;;  %v4832_v58 = vld [vmem:[%s7359_s0 + $0x34] sm:$0x3]  ;;  %v3644_v59 = vsel %vm2563_vm0, %v3642_v51, %v3640_v57 }
 0x143   :  { %2429 = vst [vmem:[#allocation0 + $0xd8] sm:$0x3] %v4831_v56  ;;  %2434 = vst [vmem:[#allocation0 + $0xd0] sm:$0x3] %v4832_v58  ;;  %v4833_v61 = vld [vmem:[%s7359_s0 + $0x32] sm:$0x3]  ;;  %3645 = vrot.lane.b32.xlu0 %v3644_v59, %s4985_s10 }
 0x144   :  { %v4834_v63 = vld [vmem:[%s7359_s0 + $0x30] sm:$0x3]  ;;  %v4795_v0 = vld [vmem:[%s7359_s0 + $0x7e] sm:$0x3]  ;;  %2439 = vst [vmem:[#allocation0 + $0xc8] sm:$0x3] %v4833_v61 }
 0x145   :  { %v3653_v2 = vld [vmem:[#allocation0 + $0xf81] ss:$8 sm:$0xf0]   ;;  %2444 = vst [vmem:[#allocation0 + $0xc0] sm:$0x3] %v4834_v63 }
 0x146   :  { %2249 = vst [vmem:[#allocation0 + $0x1f8] sm:$0x3] %v4795_v0  ;;  %v4796_v3 = vld [vmem:[%s7359_s0 + $0x7c] sm:$0x3]  ;;  %v4797_v5 = vld [vmem:[%s7359_s0 + $0x7a] sm:$0x3] }
 0x147   :  { %2254 = vst [vmem:[#allocation0 + $0x1f0] sm:$0x3] %v4796_v3  ;;  %v4798_v6 = vld [vmem:[%s7359_s0 + $0x78] sm:$0x3]  ;;  %v4799_v7 = vld [vmem:[%s7359_s0 + $0x76] sm:$0x3]  ;;  %v6414_v3 = vpop.permute.xlu1 %3370  }
 0x148   :  { %v3651_v8 = vld [vmem:[#allocation0 + $0xf81] ss:$8 sm:$0xf]   ;;  %2259 = vst [vmem:[#allocation0 + $0x1e8] sm:$0x3] %v4797_v5 }
 0x149   :  { %2264 = vst [vmem:[#allocation0 + $0x1e0] sm:$0x3] %v4798_v6  ;;  %2269 = vst [vmem:[#allocation0 + $0x1d8] sm:$0x3] %v4799_v7  ;;  %v4800_v9 = vld [vmem:[%s7359_s0 + $0x74] sm:$0x3]  ;;  %v3655_v13 = vsel %vm2563_vm0, %v3653_v2, %v3651_v8 }
 0x14a   :  { %2274 = vst [vmem:[#allocation0 + $0x1d0] sm:$0x3] %v4800_v9  ;;  %v4801_v15 = vld [vmem:[%s7359_s0 + $0x72] sm:$0x3]  ;;  %v4802_v16 = vld [vmem:[%s7359_s0 + $0x70] sm:$0x3]  ;;  %3656 = vrot.lane.b32.xlu1 %v3655_v13, %s4985_s10 }
 0x14b   :  { %v4763_v17 = vld [vmem:[%s7359_s0 + $0xbe] sm:$0x3]  ;;  %2279 = vst [vmem:[#allocation0 + $0x1c8] sm:$0x3] %v4801_v15  ;;  %2284 = vst [vmem:[#allocation0 + $0x1c0] sm:$0x3] %v4802_v16  ;;  %v6432_v16 = vpop.permute.xlu0 %3381  }
 0x14c   :  { %2089 = vst [vmem:[#allocation0 + $0x2f8] sm:$0x3] %v4763_v17  ;;  %v4764_v18 = vld [vmem:[%s7359_s0 + $0xbc] sm:$0x3]  ;;  %v4765_v19 = vld [vmem:[%s7359_s0 + $0xba] sm:$0x3] }
 0x14d   :  { %v4766_v21 = vld [vmem:[%s7359_s0 + $0xb8] sm:$0x3]  ;;  %2094 = vst [vmem:[#allocation0 + $0x2f0] sm:$0x3] %v4764_v18  ;;  %2099 = vst [vmem:[#allocation0 + $0x2e8] sm:$0x3] %v4765_v19 }
 0x14e   :  { %v3664_v22 = vld [vmem:[#allocation0 + $0xc1] ss:$8 sm:$0xf0]   ;;  %2104 = vst [vmem:[#allocation0 + $0x2e0] sm:$0x3] %v4766_v21 }
 0x14f   :  { %v4767_v24 = vld [vmem:[%s7359_s0 + $0xb6] sm:$0x3]  ;;  %v4768_v25 = vld [vmem:[%s7359_s0 + $0xb4] sm:$0x3]  ;;  %v4769_v26 = vld [vmem:[%s7359_s0 + $0xb2] sm:$0x3] }
 0x150   :  { %2109 = vst [vmem:[#allocation0 + $0x2d8] sm:$0x3] %v4767_v24  ;;  %v4770_v27 = vld [vmem:[%s7359_s0 + $0xb0] sm:$0x3]  ;;  %2114 = vst [vmem:[#allocation0 + $0x2d0] sm:$0x3] %v4768_v25 }
 0x151   :  { %v3662_v31 = vld [vmem:[#allocation0 + $0xc1] ss:$8 sm:$0xf]   ;;  %2119 = vst [vmem:[#allocation0 + $0x2c8] sm:$0x3] %v4769_v26 }
 0x152   :  { %2124 = vst [vmem:[#allocation0 + $0x2c0] sm:$0x3] %v4770_v27  ;;  %v4731_v33 = vld [vmem:[%s7359_s0 + $0xfe] sm:$0x3]  ;;  %v3666_v34 = vsel %vm2563_vm0, %v3664_v22, %v3662_v31  ;;  %v4732_v35 = vld [vmem:[%s7359_s0 + $0xfc] sm:$0x3] }
 0x153   :  { %1929 = vst [vmem:[#allocation0 + $0x3f8] sm:$0x3] %v4731_v33  ;;  %v4733_v37 = vld [vmem:[%s7359_s0 + $0xfa] sm:$0x3]  ;;  %v4734_v38 = vld [vmem:[%s7359_s0 + $0xf8] sm:$0x3]  ;;  %3667 = vrot.lane.b32.xlu0 %v3666_v34, %s4985_s10 }
 0x154   :  { %v3675_v40 = vld [vmem:[#allocation0 + $0x1c1] ss:$8 sm:$0xf0]   ;;  %1934 = vst [vmem:[#allocation0 + $0x3f0] sm:$0x3] %v4732_v35  ;;  %v6466_v35 = vpop.permute.xlu1 %3392  }
 0x155   :  { %1939 = vst [vmem:[#allocation0 + $0x3e8] sm:$0x3] %v4733_v37  ;;  %1944 = vst [vmem:[#allocation0 + $0x3e0] sm:$0x3] %v4734_v38  ;;  %v4735_v41 = vld [vmem:[%s7359_s0 + $0xf6] sm:$0x3] }
 0x156   :  { %1949 = vst [vmem:[#allocation0 + $0x3d8] sm:$0x3] %v4735_v41  ;;  %v4736_v42 = vld [vmem:[%s7359_s0 + $0xf4] sm:$0x3]  ;;  %v4737_v43 = vld [vmem:[%s7359_s0 + $0xf2] sm:$0x3] }
 0x157   :  { %v4738_v44 = vld [vmem:[%s7359_s0 + $0xf0] sm:$0x3]  ;;  %1954 = vst [vmem:[#allocation0 + $0x3d0] sm:$0x3] %v4736_v42  ;;  %1959 = vst [vmem:[#allocation0 + $0x3c8] sm:$0x3] %v4737_v43 }
 0x158   :  { %v3673_v45 = vld [vmem:[#allocation0 + $0x1c1] ss:$8 sm:$0xf]   ;;  %1964 = vst [vmem:[#allocation0 + $0x3c0] sm:$0x3] %v4738_v44 }
 0x159   :  { %v4699_v48 = vld [vmem:[%s7359_s0 + $0x13e] sm:$0x3]  ;;  %v3677_v51 = vsel %vm2563_vm0, %v3675_v40, %v3673_v45  ;;  %v3686_v52 = vld [vmem:[#allocation0 + $0x2c1] ss:$8 sm:$0xf0]  }
 0x15a   :  { %1769 = vst [vmem:[#allocation0 + $0x4f8] sm:$0x3] %v4699_v48  ;;  %v4700_v54 = vld [vmem:[%s7359_s0 + $0x13c] sm:$0x3]  ;;  %3678 = vrot.lane.b32.xlu1 %v3677_v51, %s4985_s10  ;;  %v4701_v55 = vld [vmem:[%s7359_s0 + $0x13a] sm:$0x3] }
 0x15b   :  { %1774 = vst [vmem:[#allocation0 + $0x4f0] sm:$0x3] %v4700_v54  ;;  %v4702_v56 = vld [vmem:[%s7359_s0 + $0x138] sm:$0x3]  ;;  %v4703_v57 = vld [vmem:[%s7359_s0 + $0x136] sm:$0x3] }
 0x15c   :  { %v3684_v58 = vld [vmem:[#allocation0 + $0x2c1] ss:$8 sm:$0xf]   ;;  %1779 = vst [vmem:[#allocation0 + $0x4e8] sm:$0x3] %v4701_v55 }
 0x15d   :  { %1784 = vst [vmem:[#allocation0 + $0x4e0] sm:$0x3] %v4702_v56  ;;  %1789 = vst [vmem:[#allocation0 + $0x4d8] sm:$0x3] %v4703_v57  ;;  %v4704_v59 = vld [vmem:[%s7359_s0 + $0x134] sm:$0x3]  ;;  %v3688_v61 = vsel %vm2563_vm0, %v3686_v52, %v3684_v58  ;;  %v6497_v56 = vpop.permute.xlu0 %3403  }
 0x15e   :  { %1794 = vst [vmem:[#allocation0 + $0x4d0] sm:$0x3] %v4704_v59  ;;  %v4705_v63 = vld [vmem:[%s7359_s0 + $0x132] sm:$0x3]  ;;  %v4706_v0 = vld [vmem:[%s7359_s0 + $0x130] sm:$0x3]  ;;  %3689 = vrot.lane.b32.xlu0 %v3688_v61, %s4985_s10 }
 0x15f   :  { %v4667_v2 = vld [vmem:[%s7359_s0 + $0x17e] sm:$0x3]  ;;  %v3697_v5 = vld [vmem:[#allocation0 + $0x3c1] ss:$8 sm:$0xf0]  }
 0x160   :  { %1799 = vst [vmem:[#allocation0 + $0x4c8] sm:$0x3] %v4705_v63  ;;  %1804 = vst [vmem:[#allocation0 + $0x4c0] sm:$0x3] %v4706_v0  ;;  %v4668_v6 = vld [vmem:[%s7359_s0 + $0x17c] sm:$0x3] }
 0x161   :  { %1609 = vst [vmem:[#allocation0 + $0x5f8] sm:$0x3] %v4667_v2  ;;  %1614 = vst [vmem:[#allocation0 + $0x5f0] sm:$0x3] %v4668_v6  ;;  %v4669_v7 = vld [vmem:[%s7359_s0 + $0x17a] sm:$0x3] }
 0x162   :  { %v4670_v8 = vld [vmem:[%s7359_s0 + $0x178] sm:$0x3]  ;;  %v4671_v9 = vld [vmem:[%s7359_s0 + $0x176] sm:$0x3]  ;;  %1619 = vst [vmem:[#allocation0 + $0x5e8] sm:$0x3] %v4669_v7 }
 0x163   :  { %v3695_v13 = vld [vmem:[#allocation0 + $0x3c1] ss:$8 sm:$0xf]   ;;  %1624 = vst [vmem:[#allocation0 + $0x5e0] sm:$0x3] %v4670_v8 }
 0x164   :  { %1629 = vst [vmem:[#allocation0 + $0x5d8] sm:$0x3] %v4671_v9  ;;  %v4672_v15 = vld [vmem:[%s7359_s0 + $0x174] sm:$0x3]  ;;  %v3699_v17 = vsel %vm2563_vm0, %v3697_v5, %v3695_v13  ;;  %v4673_v18 = vld [vmem:[%s7359_s0 + $0x172] sm:$0x3]  ;;  %v6526_v13 = vpop.permute.xlu1 %3414  }
 0x165   :  { %1634 = vst [vmem:[#allocation0 + $0x5d0] sm:$0x3] %v4672_v15  ;;  %v4674_v19 = vld [vmem:[%s7359_s0 + $0x170] sm:$0x3]  ;;  %v4635_v21 = vld [vmem:[%s7359_s0 + $0x1be] sm:$0x3]  ;;  %3700 = vrot.lane.b32.xlu1 %v3699_v17, %s4985_s10 }
 0x166   :  { %1639 = vst [vmem:[#allocation0 + $0x5c8] sm:$0x3] %v4673_v18  ;;  %1644 = vst [vmem:[#allocation0 + $0x5c0] sm:$0x3] %v4674_v19  ;;  %v4636_v22 = vld [vmem:[%s7359_s0 + $0x1bc] sm:$0x3] }
 0x167   :  { %1449 = vst [vmem:[#allocation0 + $0x6f8] sm:$0x3] %v4635_v21  ;;  %v4637_v24 = vld [vmem:[%s7359_s0 + $0x1ba] sm:$0x3]  ;;  %v4638_v25 = vld [vmem:[%s7359_s0 + $0x1b8] sm:$0x3] }
 0x168   :  { %v3708_v26 = vld [vmem:[#allocation0 + $0x4c1] ss:$8 sm:$0xf0]   ;;  %1454 = vst [vmem:[#allocation0 + $0x6f0] sm:$0x3] %v4636_v22 }
 0x169   :  { %1459 = vst [vmem:[#allocation0 + $0x6e8] sm:$0x3] %v4637_v24  ;;  %1464 = vst [vmem:[#allocation0 + $0x6e0] sm:$0x3] %v4638_v25  ;;  %v4639_v27 = vld [vmem:[%s7359_s0 + $0x1b6] sm:$0x3]  ;;  %v6544_v25 = vpop.permute.xlu0 %3425  }
 0x16a   :  { %1469 = vst [vmem:[#allocation0 + $0x6d8] sm:$0x3] %v4639_v27  ;;  %v4640_v31 = vld [vmem:[%s7359_s0 + $0x1b4] sm:$0x3]  ;;  %v4641_v33 = vld [vmem:[%s7359_s0 + $0x1b2] sm:$0x3] }
 0x16b   :  { %v4642_v34 = vld [vmem:[%s7359_s0 + $0x1b0] sm:$0x3]  ;;  %1474 = vst [vmem:[#allocation0 + $0x6d0] sm:$0x3] %v4640_v31  ;;  %1479 = vst [vmem:[#allocation0 + $0x6c8] sm:$0x3] %v4641_v33 }
 0x16c   :  { %v3706_v37 = vld [vmem:[#allocation0 + $0x4c1] ss:$8 sm:$0xf]   ;;  %1484 = vst [vmem:[#allocation0 + $0x6c0] sm:$0x3] %v4642_v34 }
 0x16d   :  { %v4603_v38 = vld [vmem:[%s7359_s0 + $0x1fe] sm:$0x3]  ;;  %v3710_v40 = vsel %vm2563_vm0, %v3708_v26, %v3706_v37  ;;  %v4604_v41 = vld [vmem:[%s7359_s0 + $0x1fc] sm:$0x3]  ;;  %v4605_v42 = vld [vmem:[%s7359_s0 + $0x1fa] sm:$0x3] }
 0x16e   :  { %1289 = vst [vmem:[#allocation0 + $0x7f8] sm:$0x3] %v4603_v38  ;;  %v4606_v43 = vld [vmem:[%s7359_s0 + $0x1f8] sm:$0x3]  ;;  %3711 = vrot.lane.b32.xlu0 %v3710_v40, %s4985_s10  ;;  %1294 = vst [vmem:[#allocation0 + $0x7f0] sm:$0x3] %v4604_v41 }
 0x16f   :  { %v3719_v44 = vld [vmem:[#allocation0 + $0x5c1] ss:$8 sm:$0xf0]   ;;  %1299 = vst [vmem:[#allocation0 + $0x7e8] sm:$0x3] %v4605_v42 }
 0x170   :  { %1304 = vst [vmem:[#allocation0 + $0x7e0] sm:$0x3] %v4606_v43  ;;  %v4607_v45 = vld [vmem:[%s7359_s0 + $0x1f6] sm:$0x3]  ;;  %v4608_v48 = vld [vmem:[%s7359_s0 + $0x1f4] sm:$0x3] }
 0x171   :  { %1309 = vst [vmem:[#allocation0 + $0x7d8] sm:$0x3] %v4607_v45  ;;  %v4609_v51 = vld [vmem:[%s7359_s0 + $0x1f2] sm:$0x3]  ;;  %v4610_v52 = vld [vmem:[%s7359_s0 + $0x1f0] sm:$0x3] }
 0x172   :  { %v3717_v54 = vld [vmem:[#allocation0 + $0x5c1] ss:$8 sm:$0xf]   ;;  %1314 = vst [vmem:[#allocation0 + $0x7d0] sm:$0x3] %v4608_v48 }
 0x173   :  { %1319 = vst [vmem:[#allocation0 + $0x7c8] sm:$0x3] %v4609_v51  ;;  %1324 = vst [vmem:[#allocation0 + $0x7c0] sm:$0x3] %v4610_v52  ;;  %v4571_v55 = vld [vmem:[%s7359_s0 + $0x23e] sm:$0x3]  ;;  %v3721_v57 = vsel %vm2563_vm0, %v3719_v44, %v3717_v54  ;;  %v6565_v44 = vpop.permute.xlu1 %3436  }
 0x174   :  { %v3730_v58 = vld [vmem:[#allocation0 + $0x6c1] ss:$8 sm:$0xf0]   ;;  %1129 = vst [vmem:[#allocation0 + $0x8f8] sm:$0x3] %v4571_v55  ;;  %3722 = vrot.lane.b32.xlu1 %v3721_v57, %s4985_s10 }
 0x175   :  { %v4572_v59 = vld [vmem:[%s7359_s0 + $0x23c] sm:$0x3]  ;;  %v4573_v61 = vld [vmem:[%s7359_s0 + $0x23a] sm:$0x3]  ;;  %v4574_v63 = vld [vmem:[%s7359_s0 + $0x238] sm:$0x3] }
 0x176   :  { %1134 = vst [vmem:[#allocation0 + $0x8f0] sm:$0x3] %v4572_v59  ;;  %v4575_v0 = vld [vmem:[%s7359_s0 + $0x236] sm:$0x3]  ;;  %1139 = vst [vmem:[#allocation0 + $0x8e8] sm:$0x3] %v4573_v61 }
 0x177   :  { %v3728_v2 = vld [vmem:[#allocation0 + $0x6c1] ss:$8 sm:$0xf]   ;;  %1144 = vst [vmem:[#allocation0 + $0x8e0] sm:$0x3] %v4574_v63 }
 0x178   :  { %1149 = vst [vmem:[#allocation0 + $0x8d8] sm:$0x3] %v4575_v0  ;;  %v4576_v5 = vld [vmem:[%s7359_s0 + $0x234] sm:$0x3]  ;;  %v3732_v6 = vsel %vm2563_vm0, %v3730_v58, %v3728_v2  ;;  %v4577_v7 = vld [vmem:[%s7359_s0 + $0x232] sm:$0x3]  ;;  %v6611_v2 = vpop.permute.xlu0 %3447  }
 0x179   :  { %1154 = vst [vmem:[#allocation0 + $0x8d0] sm:$0x3] %v4576_v5  ;;  %v4578_v8 = vld [vmem:[%s7359_s0 + $0x230] sm:$0x3]  ;;  %v4539_v9 = vld [vmem:[%s7359_s0 + $0x27e] sm:$0x3]  ;;  %3733 = vrot.lane.b32.xlu0 %v3732_v6, %s4985_s10 }
 0x17a   :  { %v3741_v15 = vld [vmem:[#allocation0 + $0x7c1] ss:$8 sm:$0xf0]   ;;  %1159 = vst [vmem:[#allocation0 + $0x8c8] sm:$0x3] %v4577_v7 }
 0x17b   :  { %1164 = vst [vmem:[#allocation0 + $0x8c0] sm:$0x3] %v4578_v8  ;;  %969 = vst [vmem:[#allocation0 + $0x9f8] sm:$0x3] %v4539_v9  ;;  %v4540_v17 = vld [vmem:[%s7359_s0 + $0x27c] sm:$0x3] }
 0x17c   :  { %974 = vst [vmem:[#allocation0 + $0x9f0] sm:$0x3] %v4540_v17  ;;  %v4541_v18 = vld [vmem:[%s7359_s0 + $0x27a] sm:$0x3]  ;;  %v4542_v19 = vld [vmem:[%s7359_s0 + $0x278] sm:$0x3] }
 0x17d   :  { %v4543_v21 = vld [vmem:[%s7359_s0 + $0x276] sm:$0x3]  ;;  %v3739_v22 = vld [vmem:[#allocation0 + $0x7c1] ss:$8 sm:$0xf]  }
 0x17e   :  { %979 = vst [vmem:[#allocation0 + $0x9e8] sm:$0x3] %v4541_v18  ;;  %984 = vst [vmem:[#allocation0 + $0x9e0] sm:$0x3] %v4542_v19  ;;  %v4544_v24 = vld [vmem:[%s7359_s0 + $0x274] sm:$0x3]  ;;  %v3743_v26 = vsel %vm2563_vm0, %v3741_v15, %v3739_v22 }
 0x17f   :  { %989 = vst [vmem:[#allocation0 + $0x9d8] sm:$0x3] %v4543_v21  ;;  %994 = vst [vmem:[#allocation0 + $0x9d0] sm:$0x3] %v4544_v24  ;;  %v4545_v27 = vld [vmem:[%s7359_s0 + $0x272] sm:$0x3]  ;;  %3744 = vrot.lane.b32.xlu1 %v3743_v26, %s4985_s10  ;;  %v6634_v26 = vpop.permute.xlu1 %3458  }
 0x180   :  { %v4546_v31 = vld [vmem:[%s7359_s0 + $0x270] sm:$0x3]  ;;  %v4507_v33 = vld [vmem:[%s7359_s0 + $0x2be] sm:$0x3]  ;;  %999 = vst [vmem:[#allocation0 + $0x9c8] sm:$0x3] %v4545_v27 }
 0x181   :  { %1004 = vst [vmem:[#allocation0 + $0x9c0] sm:$0x3] %v4546_v31  ;;  %v2561_v34 = vld [vmem:[#allocation0] ss:$8 sm:$0xf]  }
 0x182   :  { %v2562_v37 = vld [vmem:[#allocation0] ss:$8 sm:$0xf0]   ;;  %809 = vst [vmem:[#allocation0 + $0xaf8] sm:$0x3] %v4507_v33 }
 0x183   :  { %v3752_v38 = vld [vmem:[#allocation0 + $0x8c1] ss:$8 sm:$0xf0]   ;;  %v2564_v40 = vsel %vm2563_vm0, %v2562_v37, %v2561_v34  ;;  %v2631_v41 = vld [vmem:[#allocation0 + $0x200] ss:$8 sm:$0xf]  }
 0x184   :  { %2566 = vst.msk [vmem:[%s7360_s1] sm:$0xff] %vm2565_vm1, %v2564_v40   ;;  %v2633_v42 = vld [vmem:[#allocation0 + $0x200] ss:$8 sm:$0xf0]   ;;  %v4508_v43 = vld [vmem:[%s7359_s0 + $0x2bc] sm:$0x3]  ;;  %v6670_v40 = vpop.permute.xlu0 %3469  }
 0x185   :  { %v3750_v45 = vld [vmem:[#allocation0 + $0x8c1] ss:$8 sm:$0xf]   ;;  %3143 = vst.msk [vmem:[%s7360_s1] sm:$0xff] %vm3142_vm2, %v5829_v29   ;;  %v2635_v29 = vsel %vm2563_vm0, %v2633_v42, %v2631_v41  ;;  %814 = vst [vmem:[#allocation0 + $0xaf0] sm:$0x3] %v4508_v43 }
 0x186   :  { %v4509_v48 = vld [vmem:[%s7359_s0 + $0x2ba] sm:$0x3]  ;;  %v3754_v51 = vsel %vm2563_vm0, %v3752_v38, %v3750_v45  ;;  %4865 = vst.msk [vmem:[%s7360_s1 + $0x40] sm:$0xff] %vm2565_vm1, %v2635_v29   ;;  %v4510_v52 = vld [vmem:[%s7359_s0 + $0x2b8] sm:$0x3] }
 0x187   :  { %819 = vst [vmem:[#allocation0 + $0xae8] sm:$0x3] %v4509_v48  ;;  %v4511_v54 = vld [vmem:[%s7359_s0 + $0x2b6] sm:$0x3]  ;;  %v4512_v55 = vld [vmem:[%s7359_s0 + $0x2b4] sm:$0x3]  ;;  %3755 = vrot.lane.b32.xlu0 %v3754_v51, %s4985_s10 }
 0x188   :  { %v3763_v57 = vld [vmem:[#allocation0 + $0x9c1] ss:$8 sm:$0xf0]   ;;  %4922 = vst.msk [vmem:[%s7360_s1 + $0x40] sm:$0xff] %vm3142_vm2, %v5854_v39   ;;  %824 = vst [vmem:[#allocation0 + $0xae0] sm:$0x3] %v4510_v52 }
 0x189   :  { %829 = vst [vmem:[#allocation0 + $0xad8] sm:$0x3] %v4511_v54  ;;  %834 = vst [vmem:[#allocation0 + $0xad0] sm:$0x3] %v4512_v55  ;;  %v4513_v39 = vld [vmem:[%s7359_s0 + $0x2b2] sm:$0x3] }
 0x18a   :  { %839 = vst [vmem:[#allocation0 + $0xac8] sm:$0x3] %v4513_v39  ;;  %v4514_v58 = vld [vmem:[%s7359_s0 + $0x2b0] sm:$0x3]  ;;  %v4475_v59 = vld [vmem:[%s7359_s0 + $0x2fe] sm:$0x3] }
 0x18b   :  { %v4476_v61 = vld [vmem:[%s7359_s0 + $0x2fc] sm:$0x3]  ;;  %v3761_v63 = vld [vmem:[#allocation0 + $0x9c1] ss:$8 sm:$0xf]  }
 0x18c   :  { %844 = vst [vmem:[#allocation0 + $0xac0] sm:$0x3] %v4514_v58  ;;  %649 = vst [vmem:[#allocation0 + $0xbf8] sm:$0x3] %v4475_v59  ;;  %v4477_v0 = vld [vmem:[%s7359_s0 + $0x2fa] sm:$0x3]  ;;  %v3765_v5 = vsel %vm2563_vm0, %v3763_v57, %v3761_v63  ;;  %v6699_v58 = vpop.permute.xlu1 %3480  }
 0x18d   :  { %654 = vst [vmem:[#allocation0 + $0xbf0] sm:$0x3] %v4476_v61  ;;  %659 = vst [vmem:[#allocation0 + $0xbe8] sm:$0x3] %v4477_v0  ;;  %v4478_v6 = vld [vmem:[%s7359_s0 + $0x2f8] sm:$0x3]  ;;  %3766 = vrot.lane.b32.xlu1 %v3765_v5, %s4985_s10 }
 0x18e   :  { %v4479_v7 = vld [vmem:[%s7359_s0 + $0x2f6] sm:$0x3]  ;;  %v4480_v8 = vld [vmem:[%s7359_s0 + $0x2f4] sm:$0x3]  ;;  %664 = vst [vmem:[#allocation0 + $0xbe0] sm:$0x3] %v4478_v6 }
 0x18f   :  { %669 = vst [vmem:[#allocation0 + $0xbd8] sm:$0x3] %v4479_v7  ;;  %674 = vst [vmem:[#allocation0 + $0xbd0] sm:$0x3] %v4480_v8  ;;  %v4481_v9 = vld [vmem:[%s7359_s0 + $0x2f2] sm:$0x3] }
 0x190   :  { %v4482_v15 = vld [vmem:[%s7359_s0 + $0x2f0] sm:$0x3]  ;;  %v4443_v17 = vld [vmem:[%s7359_s0 + $0x33e] sm:$0x3]  ;;  %679 = vst [vmem:[#allocation0 + $0xbc8] sm:$0x3] %v4481_v9 }
 0x191   :  { %684 = vst [vmem:[#allocation0 + $0xbc0] sm:$0x3] %v4482_v15  ;;  %v2595_v18 = vld [vmem:[#allocation0 + $0x100] ss:$8 sm:$0xf]  }
 0x192   :  { %v2597_v19 = vld [vmem:[#allocation0 + $0x100] ss:$8 sm:$0xf0]   ;;  %489 = vst [vmem:[#allocation0 + $0xcf8] sm:$0x3] %v4443_v17 }
 0x193   :  { %v2599_v21 = vsel %vm2563_vm0, %v2597_v19, %v2595_v18  ;;  %v2667_v22 = vld [vmem:[#allocation0 + $0x300] ss:$8 sm:$0xf]   ;;  %v3774_v27 = vld [vmem:[#allocation0 + $0xac1] ss:$8 sm:$0xf0]   ;;  %v6728_v19 = vpop.permute.xlu0 %3491  }
 0x194   :  { %v2669_v24 = vld [vmem:[#allocation0 + $0x300] ss:$8 sm:$0xf0]   ;;  %4861 = vst.msk [vmem:[%s7360_s1 + $0x20] sm:$0xff] %vm2565_vm1, %v2599_v21   ;;  %v4444_v33 = vld [vmem:[%s7359_s0 + $0x33c] sm:$0x3] }
 0x195   :  { %v2671_v31 = vsel %vm2563_vm0, %v2669_v24, %v2667_v22  ;;  %4921 = vst.msk [vmem:[%s7360_s1 + $0x20] sm:$0xff] %vm3142_vm2, %v5872_v47   ;;  %494 = vst [vmem:[#allocation0 + $0xcf0] sm:$0x3] %v4444_v33  ;;  %v4445_v47 = vld [vmem:[%s7359_s0 + $0x33a] sm:$0x3] }
 0x196   :  { %4869 = vst.msk [vmem:[%s7360_s1 + $0x60] sm:$0xff] %vm2565_vm1, %v2671_v31   ;;  %v4446_v34 = vld [vmem:[%s7359_s0 + $0x338] sm:$0x3]  ;;  %v4447_v37 = vld [vmem:[%s7359_s0 + $0x336] sm:$0x3] }
 0x197   :  { %v3772_v38 = vld [vmem:[#allocation0 + $0xac1] ss:$8 sm:$0xf]   ;;  %4923 = vst.msk [vmem:[%s7360_s1 + $0x60] sm:$0xff] %vm3142_vm2, %v5906_v60   ;;  %499 = vst [vmem:[#allocation0 + $0xce8] sm:$0x3] %v4445_v47 }
 0x198   :  { %504 = vst [vmem:[#allocation0 + $0xce0] sm:$0x3] %v4446_v34  ;;  %509 = vst [vmem:[#allocation0 + $0xcd8] sm:$0x3] %v4447_v37  ;;  %v4448_v60 = vld [vmem:[%s7359_s0 + $0x334] sm:$0x3]  ;;  %v3776_v41 = vsel %vm2563_vm0, %v3774_v27, %v3772_v38 }
 0x199   :  { %514 = vst [vmem:[#allocation0 + $0xcd0] sm:$0x3] %v4448_v60  ;;  %v4449_v42 = vld [vmem:[%s7359_s0 + $0x332] sm:$0x3]  ;;  %v4450_v43 = vld [vmem:[%s7359_s0 + $0x330] sm:$0x3]  ;;  %3777 = vrot.lane.b32.xlu0 %v3776_v41, %s4985_s10  ;;  %v6765_v60 = vpop.permute.xlu1 %3502  }
 0x19a   :  { %v4411_v45 = vld [vmem:[%s7359_s0 + $0x37e] sm:$0x3]  ;;  %v3785_v29 = vld [vmem:[#allocation0 + $0xbc1] ss:$8 sm:$0xf0]  }
 0x19b   :  { %519 = vst [vmem:[#allocation0 + $0xcc8] sm:$0x3] %v4449_v42  ;;  %524 = vst [vmem:[#allocation0 + $0xcc0] sm:$0x3] %v4450_v43  ;;  %v4412_v48 = vld [vmem:[%s7359_s0 + $0x37c] sm:$0x3] }
 0x19c   :  { %329 = vst [vmem:[#allocation0 + $0xdf8] sm:$0x3] %v4411_v45  ;;  %v3783_v51 = vld [vmem:[#allocation0 + $0xbc1] ss:$8 sm:$0xf]  }
 0x19d   :  { %334 = vst [vmem:[#allocation0 + $0xdf0] sm:$0x3] %v4412_v48  ;;  %v4413_v52 = vld [vmem:[%s7359_s0 + $0x37a] sm:$0x3]  ;;  %v3787_v54 = vsel %vm2563_vm0, %v3785_v29, %v3783_v51  ;;  %v4414_v55 = vld [vmem:[%s7359_s0 + $0x378] sm:$0x3] }
 0x19e   :  { %339 = vst [vmem:[#allocation0 + $0xde8] sm:$0x3] %v4413_v52  ;;  %v4415_v57 = vld [vmem:[%s7359_s0 + $0x376] sm:$0x3]  ;;  %v4416_v39 = vld [vmem:[%s7359_s0 + $0x374] sm:$0x3]  ;;  %3788 = vrot.lane.b32.xlu1 %v3787_v54, %s4985_s10  ;;  %v6784_v54 = vpop.permute.xlu0 %3513  }
 0x19f   :  { %344 = vst [vmem:[#allocation0 + $0xde0] sm:$0x3] %v4414_v55  ;;  %349 = vst [vmem:[#allocation0 + $0xdd8] sm:$0x3] %v4415_v57  ;;  %v4417_v59 = vld [vmem:[%s7359_s0 + $0x372] sm:$0x3] }
 0x1a0   :  { %354 = vst [vmem:[#allocation0 + $0xdd0] sm:$0x3] %v4416_v39  ;;  %v4418_v61 = vld [vmem:[%s7359_s0 + $0x370] sm:$0x3]  ;;  %v4379_v63 = vld [vmem:[%s7359_s0 + $0x3be] sm:$0x3] }
 0x1a1   :  { %359 = vst [vmem:[#allocation0 + $0xdc8] sm:$0x3] %v4417_v59  ;;  %364 = vst [vmem:[#allocation0 + $0xdc0] sm:$0x3] %v4418_v61  ;;  %v4380_v15 = vld [vmem:[%s7359_s0 + $0x3bc] sm:$0x3] }
 0x1a2   :  { %v2703_v0 = vld [vmem:[#allocation0 + $0x400] ss:$8 sm:$0xf]   ;;  %169 = vst [vmem:[#allocation0 + $0xef8] sm:$0x3] %v4379_v63 }
 0x1a3   :  { %v2705_v5 = vld [vmem:[#allocation0 + $0x400] ss:$8 sm:$0xf0]   ;;  %v3796_v6 = vld [vmem:[#allocation0 + $0xcc1] ss:$8 sm:$0xf0]  }
 0x1a4   :  { %v2707_v7 = vsel %vm2563_vm0, %v2705_v5, %v2703_v0  ;;  %v2739_v8 = vld [vmem:[#allocation0 + $0x500] ss:$8 sm:$0xf]   ;;  %v3794_v17 = vld [vmem:[#allocation0 + $0xcc1] ss:$8 sm:$0xf]  }
 0x1a5   :  { %4873 = vst.msk [vmem:[%s7360_s1 + $0x80] sm:$0xff] %vm2565_vm1, %v2707_v7   ;;  %v2741_v9 = vld [vmem:[#allocation0 + $0x500] ss:$8 sm:$0xf0]   ;;  %174 = vst [vmem:[#allocation0 + $0xef0] sm:$0x3] %v4380_v15  ;;  %v3798_v21 = vsel %vm2563_vm0, %v3796_v6, %v3794_v17 }
 0x1a6   :  { %4924 = vst.msk [vmem:[%s7360_s1 + $0x80] sm:$0xff] %vm3142_vm2, %v5937_v10   ;;  %v2743_v10 = vsel %vm2563_vm0, %v2741_v9, %v2739_v8  ;;  %v4381_v18 = vld [vmem:[%s7359_s0 + $0x3ba] sm:$0x3]  ;;  %v4382_v22 = vld [vmem:[%s7359_s0 + $0x3b8] sm:$0x3]  ;;  %3799 = vrot.lane.b32.xlu0 %v3798_v21, %s4985_s10  ;;  %v6808_v8 = vpop.permute.xlu1 %3524  }
 0x1a7   :  { %4877 = vst.msk [vmem:[%s7360_s1 + $0xa0] sm:$0xff] %vm2565_vm1, %v2743_v10   ;;  %179 = vst [vmem:[#allocation0 + $0xee8] sm:$0x3] %v4381_v18  ;;  %v4383_v24 = vld [vmem:[%s7359_s0 + $0x3b6] sm:$0x3] }
 0x1a8   :  { %v4384_v27 = vld [vmem:[%s7359_s0 + $0x3b4] sm:$0x3]  ;;  %4925 = vst.msk [vmem:[%s7360_s1 + $0xa0] sm:$0xff] %vm3142_vm2, %v5966_v23   ;;  %184 = vst [vmem:[#allocation0 + $0xee0] sm:$0x3] %v4382_v22 }
 0x1a9   :  { %189 = vst [vmem:[#allocation0 + $0xed8] sm:$0x3] %v4383_v24  ;;  %194 = vst [vmem:[#allocation0 + $0xed0] sm:$0x3] %v4384_v27  ;;  %v4385_v23 = vld [vmem:[%s7359_s0 + $0x3b2] sm:$0x3] }
 0x1aa   :  { %v4386_v31 = vld [vmem:[%s7359_s0 + $0x3b0] sm:$0x3]  ;;  %v4347_v33 = vld [vmem:[%s7359_s0 + $0x3fe] sm:$0x3]  ;;  %199 = vst [vmem:[#allocation0 + $0xec8] sm:$0x3] %v4385_v23 }
 0x1ab   :  { %v3807_v47 = vld [vmem:[#allocation0 + $0xdc1] ss:$8 sm:$0xf0]   ;;  %204 = vst [vmem:[#allocation0 + $0xec0] sm:$0x3] %v4386_v31 }
 0x1ac   :  { %9 = vst [vmem:[#allocation0 + $0xff8] sm:$0x3] %v4347_v33  ;;  %v4348_v34 = vld [vmem:[%s7359_s0 + $0x3fc] sm:$0x3]  ;;  %v4349_v38 = vld [vmem:[%s7359_s0 + $0x3fa] sm:$0x3] }
 0x1ad   :  { %v3805_v37 = vld [vmem:[#allocation0 + $0xdc1] ss:$8 sm:$0xf]   ;;  %14 = vst [vmem:[#allocation0 + $0xff0] sm:$0x3] %v4348_v34 }
 0x1ae   :  { %v3809_v41 = vsel %vm2563_vm0, %v3807_v47, %v3805_v37  ;;  %19 = vst [vmem:[#allocation0 + $0xfe8] sm:$0x3] %v4349_v38  ;;  %v4350_v42 = vld [vmem:[%s7359_s0 + $0x3f8] sm:$0x3]  ;;  %v4351_v43 = vld [vmem:[%s7359_s0 + $0x3f6] sm:$0x3]  ;;  %v6848_v47 = vpop.permute.xlu0 %3535  }
 0x1af   :  { %v4352_v45 = vld [vmem:[%s7359_s0 + $0x3f4] sm:$0x3]  ;;  %3810 = vrot.lane.b32.xlu1 %v3809_v41, %s4985_s10  ;;  %24 = vst [vmem:[#allocation0 + $0xfe0] sm:$0x3] %v4350_v42  ;;  %29 = vst [vmem:[#allocation0 + $0xfd8] sm:$0x3] %v4351_v43 }
 0x1b0   :  { %34 = vst [vmem:[#allocation0 + $0xfd0] sm:$0x3] %v4352_v45  ;;  %v4353_v29 = vld [vmem:[%s7359_s0 + $0x3f2] sm:$0x3]  ;;  %v4354_v48 = vld [vmem:[%s7359_s0 + $0x3f0] sm:$0x3] }
 0x1b1   :  { %39 = vst [vmem:[#allocation0 + $0xfc8] sm:$0x3] %v4353_v29  ;;  %44 = vst [vmem:[#allocation0 + $0xfc0] sm:$0x3] %v4354_v48  ;;  %v6890_v48 = vpop.permute.xlu1 %3546  }
 0x1b2   :  { %v2775_v51 = vld [vmem:[#allocation0 + $0x600] ss:$8 sm:$0xf]   ;;  %v3818_v59 = vld [vmem:[#allocation0 + $0xec1] ss:$8 sm:$0xf0]  }
 0x1b3   :  { %v2777_v52 = vld [vmem:[#allocation0 + $0x600] ss:$8 sm:$0xf0]   ;;  %v3816_v0 = vld [vmem:[#allocation0 + $0xec1] ss:$8 sm:$0xf]  }
 0x1b4   :  { %v2779_v55 = vsel %vm2563_vm0, %v2777_v52, %v2775_v51  ;;  %v2811_v57 = vld [vmem:[#allocation0 + $0x700] ss:$8 sm:$0xf]   ;;  %v3820_v5 = vsel %vm2563_vm0, %v3818_v59, %v3816_v0 }
 0x1b5   :  { %v2813_v39 = vld [vmem:[#allocation0 + $0x700] ss:$8 sm:$0xf0]   ;;  %4881 = vst.msk [vmem:[%s7360_s1 + $0xc0] sm:$0xff] %vm2565_vm1, %v2779_v55   ;;  %3821 = vrot.lane.b32.xlu0 %v3820_v5, %s4985_s10 }
 0x1b6   :  { %v2815_v61 = vsel %vm2563_vm0, %v2813_v39, %v2811_v57  ;;  %v2847_v63 = vld [vmem:[#allocation0 + $0x800] ss:$8 sm:$0xf]   ;;  %4926 = vst.msk [vmem:[%s7360_s1 + $0xc0] sm:$0xff] %vm3142_vm2, %v5984_v32  }
 0x1b7   :  { %4885 = vst.msk [vmem:[%s7360_s1 + $0xe0] sm:$0xff] %vm2565_vm1, %v2815_v61   ;;  %v2849_v32 = vld [vmem:[#allocation0 + $0x800] ss:$8 sm:$0xf0]   ;;  %v6922_v61 = vpop.permute.xlu0 %3557  }
 0x1b8   :  { %4927 = vst.msk [vmem:[%s7360_s1 + $0xe0] sm:$0xff] %vm3142_vm2, %v6018_v46   ;;  %v2851_v46 = vsel %vm2563_vm0, %v2849_v32, %v2847_v63  ;;  %v2883_v6 = vld [vmem:[#allocation0 + $0x900] ss:$8 sm:$0xf]  }
 0x1b9   :  { %v2885_v7 = vld [vmem:[#allocation0 + $0x900] ss:$8 sm:$0xf0]   ;;  %4889 = vst.msk [vmem:[%s7360_s1 + $0x100] sm:$0xff] %vm2565_vm1, %v2851_v46  }
 0x1ba   :  { %v2887_v9 = vsel %vm2563_vm0, %v2885_v7, %v2883_v6  ;;  %v2919_v15 = vld [vmem:[#allocation0 + $0xa00] ss:$8 sm:$0xf]   ;;  %v3829_v10 = vld [vmem:[#allocation0 + $0xfc1] ss:$8 sm:$0xf0]  }
 0x1bb   :  { %v2921_v17 = vld [vmem:[#allocation0 + $0xa00] ss:$8 sm:$0xf0]   ;;  %4928 = vst.msk [vmem:[%s7360_s1 + $0x100] sm:$0xff] %vm3142_vm2, %v6049_v62  }
 0x1bc   :  { %4893 = vst.msk [vmem:[%s7360_s1 + $0x120] sm:$0xff] %vm2565_vm1, %v2887_v9   ;;  %v2923_v62 = vsel %vm2563_vm0, %v2921_v17, %v2919_v15  ;;  %v2955_v18 = vld [vmem:[#allocation0 + $0xb00] ss:$8 sm:$0xf]   ;;  %v6964_v15 = vpop.permute.xlu1 %3568  }
 0x1bd   :  { %v3827_v21 = vld [vmem:[#allocation0 + $0xfc1] ss:$8 sm:$0xf]   ;;  %4929 = vst.msk [vmem:[%s7360_s1 + $0x120] sm:$0xff] %vm3142_vm2, %v6078_v12  }
 0x1be   :  { %4897 = vst.msk [vmem:[%s7360_s1 + $0x140] sm:$0xff] %vm2565_vm1, %v2923_v62   ;;  %v2957_v12 = vld [vmem:[#allocation0 + $0xb00] ss:$8 sm:$0xf0]   ;;  %v3831_v22 = vsel %vm2563_vm0, %v3829_v10, %v3827_v21 }
 0x1bf   :  { %4930 = vst.msk [vmem:[%s7360_s1 + $0x140] sm:$0xff] %vm3142_vm2, %v6096_v20   ;;  %v2959_v20 = vsel %vm2563_vm0, %v2957_v12, %v2955_v18  ;;  %v2991_v24 = vld [vmem:[#allocation0 + $0xc00] ss:$8 sm:$0xf]   ;;  %3832 = vrot.lane.b32.xlu1 %v3831_v22, %s4985_s10 }
 0x1c0   :  { %v2993_v27 = vld [vmem:[#allocation0 + $0xc00] ss:$8 sm:$0xf0]   ;;  %4901 = vst.msk [vmem:[%s7360_s1 + $0x160] sm:$0xff] %vm2565_vm1, %v2959_v20  }
 0x1c1   :  { %v2995_v23 = vsel %vm2563_vm0, %v2993_v27, %v2991_v24  ;;  %v3027_v31 = vld [vmem:[#allocation0 + $0xd00] ss:$8 sm:$0xf]   ;;  %4931 = vst.msk [vmem:[%s7360_s1 + $0x160] sm:$0xff] %vm3142_vm2, %v6130_v36  }
 0x1c2   :  { %v3029_v33 = vld [vmem:[#allocation0 + $0xd00] ss:$8 sm:$0xf0]   ;;  %4905 = vst.msk [vmem:[%s7360_s1 + $0x180] sm:$0xff] %vm2565_vm1, %v2995_v23   ;;  %v7016_v23 = vpop.permute.xlu0 %3579  }
 0x1c3   :  { %v3031_v36 = vsel %vm2563_vm0, %v3029_v33, %v3027_v31  ;;  %v3063_v34 = vld [vmem:[#allocation0 + $0xe00] ss:$8 sm:$0xf]   ;;  %4932 = vst.msk [vmem:[%s7360_s1 + $0x180] sm:$0xff] %vm3142_vm2, %v6161_v53  }
 0x1c4   :  { %v3065_v37 = vld [vmem:[#allocation0 + $0xe00] ss:$8 sm:$0xf0]   ;;  %4909 = vst.msk [vmem:[%s7360_s1 + $0x1a0] sm:$0xff] %vm2565_vm1, %v3031_v36  }
 0x1c5   :  { %v3067_v53 = vsel %vm2563_vm0, %v3065_v37, %v3063_v34  ;;  %v3099_v38 = vld [vmem:[#allocation0 + $0xf00] ss:$8 sm:$0xf]   ;;  %4933 = vst.msk [vmem:[%s7360_s1 + $0x1a0] sm:$0xff] %vm3142_vm2, %v6190_v4  }
 0x1c6   :  { %v3101_v41 = vld [vmem:[#allocation0 + $0xf00] ss:$8 sm:$0xf0]   ;;  %4913 = vst.msk [vmem:[%s7360_s1 + $0x1c0] sm:$0xff] %vm2565_vm1, %v3067_v53  }
 0x1c7   :  { %v3103_v4 = vsel %vm2563_vm0, %v3101_v41, %v3099_v38  ;;  %v2568_v42 = vld [vmem:[#allocation0 + $0x40] ss:$8 sm:$0xf]   ;;  %4934 = vst.msk [vmem:[%s7360_s1 + $0x1c0] sm:$0xff] %vm3142_vm2, %v6208_v14  }
 0x1c8   :  { %v2570_v43 = vld [vmem:[#allocation0 + $0x40] ss:$8 sm:$0xf0]   ;;  %4917 = vst.msk [vmem:[%s7360_s1 + $0x1e0] sm:$0xff] %vm2565_vm1, %v3103_v4   ;;  %v3591_v4 = vpop.permute.xlu1 %3590  }
 0x1c9   :  { %v2572_v14 = vsel %vm2563_vm0, %v2570_v43, %v2568_v42  ;;  %v2604_v45 = vld [vmem:[#allocation0 + $0x140] ss:$8 sm:$0xf]   ;;  %4935 = vst.msk [vmem:[%s7360_s1 + $0x1e0] sm:$0xff] %vm3142_vm2, %v6242_v30  }
 0x1ca   :  { %v2606_v29 = vld [vmem:[#allocation0 + $0x140] ss:$8 sm:$0xf0]   ;;  %4858 = vst.msk [vmem:[%s7360_s1 + $0x8] sm:$0xff] %vm2565_vm1, %v2572_v14  }
 0x1cb   :  { %v2608_v30 = vsel %vm2563_vm0, %v2606_v29, %v2604_v45  ;;  %v2640_v51 = vld [vmem:[#allocation0 + $0x240] ss:$8 sm:$0xf]   ;;  %4936 = vst.msk [vmem:[%s7360_s1 + $0x8] sm:$0xff] %vm3142_vm2, %v6273_v49  }
 0x1cc   :  { %v2642_v52 = vld [vmem:[#allocation0 + $0x240] ss:$8 sm:$0xf0]   ;;  %4862 = vst.msk [vmem:[%s7360_s1 + $0x28] sm:$0xff] %vm2565_vm1, %v2608_v30  }
 0x1cd   :  { %v2644_v49 = vsel %vm2563_vm0, %v2642_v52, %v2640_v51  ;;  %v2676_v55 = vld [vmem:[#allocation0 + $0x340] ss:$8 sm:$0xf]   ;;  %4937 = vst.msk [vmem:[%s7360_s1 + $0x28] sm:$0xff] %vm3142_vm2, %v6302_v1   ;;  %v3602_v51 = vpop.permute.xlu0 %3601  }
 0x1ce   :  { %v2678_v57 = vld [vmem:[#allocation0 + $0x340] ss:$8 sm:$0xf0]   ;;  %4866 = vst.msk [vmem:[%s7360_s1 + $0x48] sm:$0xff] %vm2565_vm1, %v2644_v49  }
 0x1cf   :  { %v2680_v1 = vsel %vm2563_vm0, %v2678_v57, %v2676_v55  ;;  %v2712_v39 = vld [vmem:[#allocation0 + $0x440] ss:$8 sm:$0xf]   ;;  %4938 = vst.msk [vmem:[%s7360_s1 + $0x48] sm:$0xff] %vm3142_vm2, %v6320_v11  }
 0x1d0   :  { %v2714_v59 = vld [vmem:[#allocation0 + $0x440] ss:$8 sm:$0xf0]   ;;  %4870 = vst.msk [vmem:[%s7360_s1 + $0x68] sm:$0xff] %vm2565_vm1, %v2680_v1  }
 0x1d1   :  { %v2716_v11 = vsel %vm2563_vm0, %v2714_v59, %v2712_v39  ;;  %v2748_v63 = vld [vmem:[#allocation0 + $0x540] ss:$8 sm:$0xf]   ;;  %4939 = vst.msk [vmem:[%s7360_s1 + $0x68] sm:$0xff] %vm3142_vm2, %v6354_v28  }
 0x1d2   :  { %v2750_v0 = vld [vmem:[#allocation0 + $0x540] ss:$8 sm:$0xf0]   ;;  %4874 = vst.msk [vmem:[%s7360_s1 + $0x88] sm:$0xff] %vm2565_vm1, %v2716_v11  }
 0x1d3   :  { %v2752_v28 = vsel %vm2563_vm0, %v2750_v0, %v2748_v63  ;;  %v2784_v32 = vld [vmem:[#allocation0 + $0x640] ss:$8 sm:$0xf]   ;;  %4940 = vst.msk [vmem:[%s7360_s1 + $0x88] sm:$0xff] %vm3142_vm2, %v6385_v50   ;;  %v3613_v63 = vpop.permute.xlu1 %3612  }
 0x1d4   :  { %v2786_v5 = vld [vmem:[#allocation0 + $0x640] ss:$8 sm:$0xf0]   ;;  %4878 = vst.msk [vmem:[%s7360_s1 + $0xa8] sm:$0xff] %vm2565_vm1, %v2752_v28  }
 0x1d5   :  { %v2788_v50 = vsel %vm2563_vm0, %v2786_v5, %v2784_v32  ;;  %v2820_v46 = vld [vmem:[#allocation0 + $0x740] ss:$8 sm:$0xf]   ;;  %4941 = vst.msk [vmem:[%s7360_s1 + $0xa8] sm:$0xff] %vm3142_vm2, %v6414_v3  }
 0x1d6   :  { %v2822_v6 = vld [vmem:[#allocation0 + $0x740] ss:$8 sm:$0xf0]   ;;  %4882 = vst.msk [vmem:[%s7360_s1 + $0xc8] sm:$0xff] %vm2565_vm1, %v2788_v50  }
 0x1d7   :  { %v2824_v3 = vsel %vm2563_vm0, %v2822_v6, %v2820_v46  ;;  %v2856_v7 = vld [vmem:[#allocation0 + $0x840] ss:$8 sm:$0xf]   ;;  %4942 = vst.msk [vmem:[%s7360_s1 + $0xc8] sm:$0xff] %vm3142_vm2, %v6432_v16  }
 0x1d8   :  { %v2858_v9 = vld [vmem:[#allocation0 + $0x840] ss:$8 sm:$0xf0]   ;;  %4886 = vst.msk [vmem:[%s7360_s1 + $0xe8] sm:$0xff] %vm2565_vm1, %v2824_v3  }
 0x1d9   :  { %v2860_v16 = vsel %vm2563_vm0, %v2858_v9, %v2856_v7  ;;  %v2892_v17 = vld [vmem:[#allocation0 + $0x940] ss:$8 sm:$0xf]   ;;  %4943 = vst.msk [vmem:[%s7360_s1 + $0xe8] sm:$0xff] %vm3142_vm2, %v6466_v35  }
 0x1da   :  { %v2894_v10 = vld [vmem:[#allocation0 + $0x940] ss:$8 sm:$0xf0]   ;;  %4890 = vst.msk [vmem:[%s7360_s1 + $0x108] sm:$0xff] %vm2565_vm1, %v2860_v16  }
 0x1db   :  { %v2896_v35 = vsel %vm2563_vm0, %v2894_v10, %v2892_v17  ;;  %v2928_v62 = vld [vmem:[#allocation0 + $0xa40] ss:$8 sm:$0xf]   ;;  %4944 = vst.msk [vmem:[%s7360_s1 + $0x108] sm:$0xff] %vm3142_vm2, %v6497_v56   ;;  %v3624_v17 = vpop.permute.xlu0 %3623  }
 0x1dc   :  { %v2930_v18 = vld [vmem:[#allocation0 + $0xa40] ss:$8 sm:$0xf0]   ;;  %4894 = vst.msk [vmem:[%s7360_s1 + $0x128] sm:$0xff] %vm2565_vm1, %v2896_v35  }
 0x1dd   :  { %v2932_v56 = vsel %vm2563_vm0, %v2930_v18, %v2928_v62  ;;  %v2964_v21 = vld [vmem:[#allocation0 + $0xb40] ss:$8 sm:$0xf]   ;;  %4945 = vst.msk [vmem:[%s7360_s1 + $0x128] sm:$0xff] %vm3142_vm2, %v6526_v13  }
 0x1de   :  { %v2966_v12 = vld [vmem:[#allocation0 + $0xb40] ss:$8 sm:$0xf0]   ;;  %4898 = vst.msk [vmem:[%s7360_s1 + $0x148] sm:$0xff] %vm2565_vm1, %v2932_v56  }
 0x1df   :  { %v2968_v13 = vsel %vm2563_vm0, %v2966_v12, %v2964_v21  ;;  %v3000_v22 = vld [vmem:[#allocation0 + $0xc40] ss:$8 sm:$0xf]   ;;  %4946 = vst.msk [vmem:[%s7360_s1 + $0x148] sm:$0xff] %vm3142_vm2, %v6544_v25  }
 0x1e0   :  { %v3002_v20 = vld [vmem:[#allocation0 + $0xc40] ss:$8 sm:$0xf0]   ;;  %4902 = vst.msk [vmem:[%s7360_s1 + $0x168] sm:$0xff] %vm2565_vm1, %v2968_v13  }
 0x1e1   :  { %v3004_v25 = vsel %vm2563_vm0, %v3002_v20, %v3000_v22  ;;  %v3036_v24 = vld [vmem:[#allocation0 + $0xd40] ss:$8 sm:$0xf]   ;;  %4947 = vst.msk [vmem:[%s7360_s1 + $0x168] sm:$0xff] %vm3142_vm2, %v6565_v44  }
 0x1e2   :  { %v3038_v27 = vld [vmem:[#allocation0 + $0xd40] ss:$8 sm:$0xf0]   ;;  %4906 = vst.msk [vmem:[%s7360_s1 + $0x188] sm:$0xff] %vm2565_vm1, %v3004_v25  }
 0x1e3   :  { %v3040_v44 = vsel %vm2563_vm0, %v3038_v27, %v3036_v24  ;;  %v3072_v31 = vld [vmem:[#allocation0 + $0xe40] ss:$8 sm:$0xf]   ;;  %4948 = vst.msk [vmem:[%s7360_s1 + $0x188] sm:$0xff] %vm3142_vm2, %v6611_v2   ;;  %v3635_v24 = vpop.permute.xlu1 %3634  }
 0x1e4   :  { %v3074_v33 = vld [vmem:[#allocation0 + $0xe40] ss:$8 sm:$0xf0]   ;;  %4910 = vst.msk [vmem:[%s7360_s1 + $0x1a8] sm:$0xff] %vm2565_vm1, %v3040_v44  }
 0x1e5   :  { %v3076_v2 = vsel %vm2563_vm0, %v3074_v33, %v3072_v31  ;;  %v3108_v36 = vld [vmem:[#allocation0 + $0xf40] ss:$8 sm:$0xf]   ;;  %4949 = vst.msk [vmem:[%s7360_s1 + $0x1a8] sm:$0xff] %vm3142_vm2, %v6634_v26  }
 0x1e6   :  { %v3110_v34 = vld [vmem:[#allocation0 + $0xf40] ss:$8 sm:$0xf0]   ;;  %4914 = vst.msk [vmem:[%s7360_s1 + $0x1c8] sm:$0xff] %vm2565_vm1, %v3076_v2  }
 0x1e7   :  { %v3112_v26 = vsel %vm2563_vm0, %v3110_v34, %v3108_v36  ;;  %v2577_v37 = vld [vmem:[#allocation0 + $0x80] ss:$8 sm:$0xf]   ;;  %4950 = vst.msk [vmem:[%s7360_s1 + $0x1c8] sm:$0xff] %vm3142_vm2, %v6670_v40  }
 0x1e8   :  { %v2579_v53 = vld [vmem:[#allocation0 + $0x80] ss:$8 sm:$0xf0]   ;;  %4918 = vst.msk [vmem:[%s7360_s1 + $0x1e8] sm:$0xff] %vm2565_vm1, %v3112_v26  }
 0x1e9   :  { %v2581_v40 = vsel %vm2563_vm0, %v2579_v53, %v2577_v37  ;;  %v2613_v38 = vld [vmem:[#allocation0 + $0x180] ss:$8 sm:$0xf]   ;;  %4951 = vst.msk [vmem:[%s7360_s1 + $0x1e8] sm:$0xff] %vm3142_vm2, %v6699_v58   ;;  %v3646_v37 = vpop.permute.xlu0 %3645  }
 0x1ea   :  { %v2615_v41 = vld [vmem:[#allocation0 + $0x180] ss:$8 sm:$0xf0]   ;;  %4859 = vst.msk [vmem:[%s7360_s1 + $0x10] sm:$0xff] %vm2565_vm1, %v2581_v40  }
 0x1eb   :  { %v2617_v58 = vsel %vm2563_vm0, %v2615_v41, %v2613_v38  ;;  %v2649_v42 = vld [vmem:[#allocation0 + $0x280] ss:$8 sm:$0xf]   ;;  %4952 = vst.msk [vmem:[%s7360_s1 + $0x10] sm:$0xff] %vm3142_vm2, %v6728_v19  }
 0x1ec   :  { %v2651_v43 = vld [vmem:[#allocation0 + $0x280] ss:$8 sm:$0xf0]   ;;  %4863 = vst.msk [vmem:[%s7360_s1 + $0x30] sm:$0xff] %vm2565_vm1, %v2617_v58  }
 0x1ed   :  { %v2653_v19 = vsel %vm2563_vm0, %v2651_v43, %v2649_v42  ;;  %v2685_v14 = vld [vmem:[#allocation0 + $0x380] ss:$8 sm:$0xf]   ;;  %4953 = vst.msk [vmem:[%s7360_s1 + $0x30] sm:$0xff] %vm3142_vm2, %v6765_v60  }
 0x1ee   :  { %v2687_v45 = vld [vmem:[#allocation0 + $0x380] ss:$8 sm:$0xf0]   ;;  %4867 = vst.msk [vmem:[%s7360_s1 + $0x50] sm:$0xff] %vm2565_vm1, %v2653_v19  }
 0x1ef   :  { %v2689_v60 = vsel %vm2563_vm0, %v2687_v45, %v2685_v14  ;;  %v2721_v29 = vld [vmem:[#allocation0 + $0x480] ss:$8 sm:$0xf]   ;;  %4954 = vst.msk [vmem:[%s7360_s1 + $0x50] sm:$0xff] %vm3142_vm2, %v6784_v54  }
 0x1f0   :  { %v2723_v30 = vld [vmem:[#allocation0 + $0x480] ss:$8 sm:$0xf0]   ;;  %4871 = vst.msk [vmem:[%s7360_s1 + $0x70] sm:$0xff] %vm2565_vm1, %v2689_v60  }
 0x1f1   :  { %v2725_v54 = vsel %vm2563_vm0, %v2723_v30, %v2721_v29  ;;  %v2757_v52 = vld [vmem:[#allocation0 + $0x580] ss:$8 sm:$0xf]   ;;  %4955 = vst.msk [vmem:[%s7360_s1 + $0x70] sm:$0xff] %vm3142_vm2, %v6808_v8   ;;  %v3657_v29 = vpop.permute.xlu1 %3656  }
 0x1f2   :  { %v2759_v49 = vld [vmem:[#allocation0 + $0x580] ss:$8 sm:$0xf0]   ;;  %4875 = vst.msk [vmem:[%s7360_s1 + $0x90] sm:$0xff] %vm2565_vm1, %v2725_v54  }
 0x1f3   :  { %v2761_v8 = vsel %vm2563_vm0, %v2759_v49, %v2757_v52  ;;  %v2793_v55 = vld [vmem:[#allocation0 + $0x680] ss:$8 sm:$0xf]   ;;  %4956 = vst.msk [vmem:[%s7360_s1 + $0x90] sm:$0xff] %vm3142_vm2, %v6848_v47  }
 0x1f4   :  { %v2795_v57 = vld [vmem:[#allocation0 + $0x680] ss:$8 sm:$0xf0]   ;;  %4879 = vst.msk [vmem:[%s7360_s1 + $0xb0] sm:$0xff] %vm2565_vm1, %v2761_v8  }
 0x1f5   :  { %v2797_v47 = vsel %vm2563_vm0, %v2795_v57, %v2793_v55  ;;  %v2829_v1 = vld [vmem:[#allocation0 + $0x780] ss:$8 sm:$0xf]   ;;  %4957 = vst.msk [vmem:[%s7360_s1 + $0xb0] sm:$0xff] %vm3142_vm2, %v6890_v48  }
 0x1f6   :  { %v2831_v39 = vld [vmem:[#allocation0 + $0x780] ss:$8 sm:$0xf0]   ;;  %4883 = vst.msk [vmem:[%s7360_s1 + $0xd0] sm:$0xff] %vm2565_vm1, %v2797_v47  }
 0x1f7   :  { %v2833_v48 = vsel %vm2563_vm0, %v2831_v39, %v2829_v1  ;;  %v2865_v59 = vld [vmem:[#allocation0 + $0x880] ss:$8 sm:$0xf]   ;;  %4958 = vst.msk [vmem:[%s7360_s1 + $0xd0] sm:$0xff] %vm3142_vm2, %v6922_v61  }
 0x1f8   :  { %v2867_v11 = vld [vmem:[#allocation0 + $0x880] ss:$8 sm:$0xf0]   ;;  %4887 = vst.msk [vmem:[%s7360_s1 + $0xf0] sm:$0xff] %vm2565_vm1, %v2833_v48  }
 0x1f9   :  { %v2869_v61 = vsel %vm2563_vm0, %v2867_v11, %v2865_v59  ;;  %v2901_v0 = vld [vmem:[#allocation0 + $0x980] ss:$8 sm:$0xf]   ;;  %4959 = vst.msk [vmem:[%s7360_s1 + $0xf0] sm:$0xff] %vm3142_vm2, %v6964_v15  }
 0x1fa   :  { %v2903_v28 = vld [vmem:[#allocation0 + $0x980] ss:$8 sm:$0xf0]   ;;  %4891 = vst.msk [vmem:[%s7360_s1 + $0x110] sm:$0xff] %vm2565_vm1, %v2869_v61   ;;  %v3668_v61 = vpop.permute.xlu0 %3667  }
 0x1fb   :  { %v2905_v32 = vsel %vm2563_vm0, %v2903_v28, %v2901_v0  ;;  %v2937_v5 = vld [vmem:[#allocation0 + $0xa80] ss:$8 sm:$0xf]   ;;  %4960 = vst.msk [vmem:[%s7360_s1 + $0x110] sm:$0xff] %vm3142_vm2, %v7016_v23  }
 0x1fc   :  { %v2939_v50 = vld [vmem:[#allocation0 + $0xa80] ss:$8 sm:$0xf0]   ;;  %4895 = vst.msk [vmem:[%s7360_s1 + $0x130] sm:$0xff] %vm2565_vm1, %v2905_v32  }
 0x1fd   :  { %v2941_v46 = vsel %vm2563_vm0, %v2939_v50, %v2937_v5  ;;  %v2973_v6 = vld [vmem:[#allocation0 + $0xb80] ss:$8 sm:$0xf]   ;;  %4961 = vst.msk [vmem:[%s7360_s1 + $0x130] sm:$0xff] %vm3142_vm2, %v3591_v4  }
 0x1fe   :  { %v2975_v3 = vld [vmem:[#allocation0 + $0xb80] ss:$8 sm:$0xf0]   ;;  %4899 = vst.msk [vmem:[%s7360_s1 + $0x150] sm:$0xff] %vm2565_vm1, %v2941_v46  }
 0x1ff   :  { %v2977_v7 = vsel %vm2563_vm0, %v2975_v3, %v2973_v6  ;;  %v3009_v9 = vld [vmem:[#allocation0 + $0xc80] ss:$8 sm:$0xf]   ;;  %4962 = vst.msk [vmem:[%s7360_s1 + $0x150] sm:$0xff] %vm3142_vm2, %v3602_v51  }
 0x200   :  { %v3011_v15 = vld [vmem:[#allocation0 + $0xc80] ss:$8 sm:$0xf0]   ;;  %4903 = vst.msk [vmem:[%s7360_s1 + $0x170] sm:$0xff] %vm2565_vm1, %v2977_v7  }
 0x201   :  { %v3013_v16 = vsel %vm2563_vm0, %v3011_v15, %v3009_v9  ;;  %v3045_v10 = vld [vmem:[#allocation0 + $0xd80] ss:$8 sm:$0xf]   ;;  %4963 = vst.msk [vmem:[%s7360_s1 + $0x170] sm:$0xff] %vm3142_vm2, %v3613_v63   ;;  %v3679_v15 = vpop.permute.xlu1 %3678  }
 0x202   :  { %v3047_v35 = vld [vmem:[#allocation0 + $0xd80] ss:$8 sm:$0xf0]   ;;  %4907 = vst.msk [vmem:[%s7360_s1 + $0x190] sm:$0xff] %vm2565_vm1, %v3013_v16   ;;  %v3690_v16 = vpop.permute.xlu0 %3689  }
 0x203   :  { %v3049_v62 = vsel %vm2563_vm0, %v3047_v35, %v3045_v10  ;;  %v3081_v18 = vld [vmem:[#allocation0 + $0xe80] ss:$8 sm:$0xf]   ;;  %4964 = vst.msk [vmem:[%s7360_s1 + $0x190] sm:$0xff] %vm3142_vm2, %v3624_v17  }
 0x204   :  { %v3083_v56 = vld [vmem:[#allocation0 + $0xe80] ss:$8 sm:$0xf0]   ;;  %4911 = vst.msk [vmem:[%s7360_s1 + $0x1b0] sm:$0xff] %vm2565_vm1, %v3049_v62  }
 0x205   :  { %v3085_v21 = vsel %vm2563_vm0, %v3083_v56, %v3081_v18  ;;  %v3117_v12 = vld [vmem:[#allocation0 + $0xf80] ss:$8 sm:$0xf]   ;;  %4965 = vst.msk [vmem:[%s7360_s1 + $0x1b0] sm:$0xff] %vm3142_vm2, %v3635_v24   ;;  %v3701_v17 = vpop.permute.xlu1 %3700  }
 0x206   :  { %v3119_v13 = vld [vmem:[#allocation0 + $0xf80] ss:$8 sm:$0xf0]   ;;  %4915 = vst.msk [vmem:[%s7360_s1 + $0x1d0] sm:$0xff] %vm2565_vm1, %v3085_v21   ;;  %v3712_v10 = vpop.permute.xlu0 %3711  }
 0x207   :  { %v3121_v22 = vsel %vm2563_vm0, %v3119_v13, %v3117_v12  ;;  %v2586_v20 = vld [vmem:[#allocation0 + $0xc0] ss:$8 sm:$0xf]   ;;  %4966 = vst.msk [vmem:[%s7360_s1 + $0x1d0] sm:$0xff] %vm3142_vm2, %v3646_v37  }
 0x208   :  { %v2588_v25 = vld [vmem:[#allocation0 + $0xc0] ss:$8 sm:$0xf0]   ;;  %4919 = vst.msk [vmem:[%s7360_s1 + $0x1f0] sm:$0xff] %vm2565_vm1, %v3121_v22  }
 0x209   :  { %v2590_v27 = vsel %vm2563_vm0, %v2588_v25, %v2586_v20  ;;  %v2622_v23 = vld [vmem:[#allocation0 + $0x1c0] ss:$8 sm:$0xf]   ;;  %4967 = vst.msk [vmem:[%s7360_s1 + $0x1f0] sm:$0xff] %vm3142_vm2, %v3657_v29   ;;  %v3723_v35 = vpop.permute.xlu1 %3722  }
 0x20a   :  { %v2624_v44 = vld [vmem:[#allocation0 + $0x1c0] ss:$8 sm:$0xf0]   ;;  %4860 = vst.msk [vmem:[%s7360_s1 + $0x18] sm:$0xff] %vm2565_vm1, %v2590_v27   ;;  %v3734_v62 = vpop.permute.xlu0 %3733  }
 0x20b   :  { %v2626_v31 = vsel %vm2563_vm0, %v2624_v44, %v2622_v23  ;;  %v2658_v33 = vld [vmem:[#allocation0 + $0x2c0] ss:$8 sm:$0xf]   ;;  %4968 = vst.msk [vmem:[%s7360_s1 + $0x18] sm:$0xff] %vm3142_vm2, %v3668_v61  }
 0x20c   :  { %v2660_v2 = vld [vmem:[#allocation0 + $0x2c0] ss:$8 sm:$0xf0]   ;;  %4864 = vst.msk [vmem:[%s7360_s1 + $0x38] sm:$0xff] %vm2565_vm1, %v2626_v31  }
 0x20d   :  { %v2662_v36 = vsel %vm2563_vm0, %v2660_v2, %v2658_v33  ;;  %v2694_v34 = vld [vmem:[#allocation0 + $0x3c0] ss:$8 sm:$0xf]   ;;  %4969 = vst.msk [vmem:[%s7360_s1 + $0x38] sm:$0xff] %vm3142_vm2, %v3679_v15   ;;  %v3745_v18 = vpop.permute.xlu1 %3744  }
 0x20e   :  { %v2696_v26 = vld [vmem:[#allocation0 + $0x3c0] ss:$8 sm:$0xf0]   ;;  %4868 = vst.msk [vmem:[%s7360_s1 + $0x58] sm:$0xff] %vm2565_vm1, %v2662_v36   ;;  %v3756_v56 = vpop.permute.xlu0 %3755  }
 0x20f   :  { %v2698_v53 = vsel %vm2563_vm0, %v2696_v26, %v2694_v34  ;;  %v2730_v40 = vld [vmem:[#allocation0 + $0x4c0] ss:$8 sm:$0xf]   ;;  %4970 = vst.msk [vmem:[%s7360_s1 + $0x58] sm:$0xff] %vm3142_vm2, %v3690_v16  }
 0x210   :  { %v2732_v38 = vld [vmem:[#allocation0 + $0x4c0] ss:$8 sm:$0xf0]   ;;  %4872 = vst.msk [vmem:[%s7360_s1 + $0x78] sm:$0xff] %vm2565_vm1, %v2698_v53  }
 0x211   :  { %v2734_v41 = vsel %vm2563_vm0, %v2732_v38, %v2730_v40  ;;  %v2766_v4 = vld [vmem:[#allocation0 + $0x5c0] ss:$8 sm:$0xf]   ;;  %4971 = vst.msk [vmem:[%s7360_s1 + $0x78] sm:$0xff] %vm3142_vm2, %v3701_v17   ;;  %v3767_v21 = vpop.permute.xlu1 %3766  }
 0x212   :  { %v2768_v58 = vld [vmem:[#allocation0 + $0x5c0] ss:$8 sm:$0xf0]   ;;  %4876 = vst.msk [vmem:[%s7360_s1 + $0x98] sm:$0xff] %vm2565_vm1, %v2734_v41   ;;  %v3778_v12 = vpop.permute.xlu0 %3777  }
 0x213   :  { %v2770_v42 = vsel %vm2563_vm0, %v2768_v58, %v2766_v4  ;;  %v2802_v43 = vld [vmem:[#allocation0 + $0x6c0] ss:$8 sm:$0xf]   ;;  %4972 = vst.msk [vmem:[%s7360_s1 + $0x98] sm:$0xff] %vm3142_vm2, %v3712_v10  }
 0x214   :  { %v2804_v19 = vld [vmem:[#allocation0 + $0x6c0] ss:$8 sm:$0xf0]   ;;  %4880 = vst.msk [vmem:[%s7360_s1 + $0xb8] sm:$0xff] %vm2565_vm1, %v2770_v42  }
 0x215   :  { %v2806_v14 = vsel %vm2563_vm0, %v2804_v19, %v2802_v43  ;;  %v2838_v45 = vld [vmem:[#allocation0 + $0x7c0] ss:$8 sm:$0xf]   ;;  %4973 = vst.msk [vmem:[%s7360_s1 + $0xb8] sm:$0xff] %vm3142_vm2, %v3723_v35   ;;  %v3789_v13 = vpop.permute.xlu1 %3788  }
 0x216   :  { %v2840_v60 = vld [vmem:[#allocation0 + $0x7c0] ss:$8 sm:$0xf0]   ;;  %4884 = vst.msk [vmem:[%s7360_s1 + $0xd8] sm:$0xff] %vm2565_vm1, %v2806_v14  }
 0x217   :  { %v2842_v30 = vsel %vm2563_vm0, %v2840_v60, %v2838_v45  ;;  %v2874_v51 = vld [vmem:[#allocation0 + $0x8c0] ss:$8 sm:$0xf]   ;;  %4974 = vst.msk [vmem:[%s7360_s1 + $0xd8] sm:$0xff] %vm3142_vm2, %v3734_v62  }
 0x218   :  { %v2876_v54 = vld [vmem:[#allocation0 + $0x8c0] ss:$8 sm:$0xf0]   ;;  %4888 = vst.msk [vmem:[%s7360_s1 + $0xf8] sm:$0xff] %vm2565_vm1, %v2842_v30   ;;  %v3800_v22 = vpop.permute.xlu0 %3799  }
 0x219   :  { %v2878_v52 = vsel %vm2563_vm0, %v2876_v54, %v2874_v51  ;;  %v2910_v49 = vld [vmem:[#allocation0 + $0x9c0] ss:$8 sm:$0xf]   ;;  %4975 = vst.msk [vmem:[%s7360_s1 + $0xf8] sm:$0xff] %vm3142_vm2, %v3745_v18  }
 0x21a   :  { %v2912_v8 = vld [vmem:[#allocation0 + $0x9c0] ss:$8 sm:$0xf0]   ;;  %4892 = vst.msk [vmem:[%s7360_s1 + $0x118] sm:$0xff] %vm2565_vm1, %v2878_v52  }
 0x21b   :  { %v2914_v55 = vsel %vm2563_vm0, %v2912_v8, %v2910_v49  ;;  %v2946_v57 = vld [vmem:[#allocation0 + $0xac0] ss:$8 sm:$0xf]   ;;  %4976 = vst.msk [vmem:[%s7360_s1 + $0x118] sm:$0xff] %vm3142_vm2, %v3756_v56  }
 0x21c   :  { %v2948_v47 = vld [vmem:[#allocation0 + $0xac0] ss:$8 sm:$0xf0]   ;;  %4896 = vst.msk [vmem:[%s7360_s1 + $0x138] sm:$0xff] %vm2565_vm1, %v2914_v55  }
 0x21d   :  { %v2950_v1 = vsel %vm2563_vm0, %v2948_v47, %v2946_v57  ;;  %v2982_v39 = vld [vmem:[#allocation0 + $0xbc0] ss:$8 sm:$0xf]   ;;  %4977 = vst.msk [vmem:[%s7360_s1 + $0x138] sm:$0xff] %vm3142_vm2, %v3767_v21  }
 0x21e   :  { %v2984_v48 = vld [vmem:[#allocation0 + $0xbc0] ss:$8 sm:$0xf0]   ;;  %4900 = vst.msk [vmem:[%s7360_s1 + $0x158] sm:$0xff] %vm2565_vm1, %v2950_v1  }
 0x21f   :  { %v2986_v59 = vsel %vm2563_vm0, %v2984_v48, %v2982_v39  ;;  %v3018_v11 = vld [vmem:[#allocation0 + $0xcc0] ss:$8 sm:$0xf]   ;;  %4978 = vst.msk [vmem:[%s7360_s1 + $0x158] sm:$0xff] %vm3142_vm2, %v3778_v12  }
 0x220   :  { %v3020_v63 = vld [vmem:[#allocation0 + $0xcc0] ss:$8 sm:$0xf0]   ;;  %4904 = vst.msk [vmem:[%s7360_s1 + $0x178] sm:$0xff] %vm2565_vm1, %v2986_v59  }
 0x221   :  { %v3022_v0 = vsel %vm2563_vm0, %v3020_v63, %v3018_v11  ;;  %v3054_v28 = vld [vmem:[#allocation0 + $0xdc0] ss:$8 sm:$0xf]   ;;  %4979 = vst.msk [vmem:[%s7360_s1 + $0x178] sm:$0xff] %vm3142_vm2, %v3789_v13   ;;  %v3811_v20 = vpop.permute.xlu1 %3810  }
 0x222   :  { %v3056_v32 = vld [vmem:[#allocation0 + $0xdc0] ss:$8 sm:$0xf0]   ;;  %4908 = vst.msk [vmem:[%s7360_s1 + $0x198] sm:$0xff] %vm2565_vm1, %v3022_v0  }
 0x223   :  { %v3058_v5 = vsel %vm2563_vm0, %v3056_v32, %v3054_v28  ;;  %v3090_v50 = vld [vmem:[#allocation0 + $0xec0] ss:$8 sm:$0xf]   ;;  %4980 = vst.msk [vmem:[%s7360_s1 + $0x198] sm:$0xff] %vm3142_vm2, %v3800_v22  }
 0x224   :  { %v3092_v46 = vld [vmem:[#allocation0 + $0xec0] ss:$8 sm:$0xf0]   ;;  %4912 = vst.msk [vmem:[%s7360_s1 + $0x1b8] sm:$0xff] %vm2565_vm1, %v3058_v5  }
 0x225   :  { %v3094_v6 = vsel %vm2563_vm0, %v3092_v46, %v3090_v50  ;;  %v3126_v3 = vld [vmem:[#allocation0 + $0xfc0] ss:$8 sm:$0xf]   ;;  %4981 = vst.msk [vmem:[%s7360_s1 + $0x1b8] sm:$0xff] %vm3142_vm2, %v3811_v20  }
 0x226   :  { %v3128_v7 = vld [vmem:[#allocation0 + $0xfc0] ss:$8 sm:$0xf0]   ;;  %4916 = vst.msk [vmem:[%s7360_s1 + $0x1d8] sm:$0xff] %vm2565_vm1, %v3094_v6  }
 0x227   :  { %v3130_v9 = vsel %vm2563_vm0, %v3128_v7, %v3126_v3  ;;  %v3822_v25 = vpop.permute.xlu0 %3821  }
 0x228   :  { %4920 = vst.msk [vmem:[%s7360_s1 + $0x1f8] sm:$0xff] %vm2565_vm1, %v3130_v9  }
 0x229   :  { %4982 = vst.msk [vmem:[%s7360_s1 + $0x1d8] sm:$0xff] %vm3142_vm2, %v3822_v25  }
 0x231   :  { %v3833_v24 = vpop.permute.xlu1 %3832  }
 0x232   :  { %4983 = vst.msk [vmem:[%s7360_s1 + $0x1f8] sm:$0xff] %vm3142_vm2, %v3833_v24  }

// kernel: traffic_swin_forward.1
= control target key start
LH: loop header
LB: loop body
LE: loop exit
PB: predicated region body
PF: predicated region fallthrough
CT: control target
= control target key end

     0   :  { %vm94_vm0 = vcmask 523264   ;;  %vm226_vm1 = vcmask 261120   ;;  %vm678_vm2 = vcmask 64512   ;;  %s9018_s30 = smov 64   ;;  %s9020_s26 = smov 120   ;;  %s11806_s1 = inlined_call_operand.vmem [shape: f32[64,32], index: 1, kind: input, shape index: {}]   ;;  %s11807_s0 = inlined_call_operand.vmem [shape: f32[64,64], index: 0, kind: input, shape index: {}]   ;;  %s11808_s2 = inlined_call_operand.vmem [shape: f32[1,32], index: 2, kind: input, shape index: {}]   ;;  %s11809_s3 = inlined_call_operand.vmem [shape: f32[1,32], index: 3, kind: input, shape index: {}]   ;;  %s11810_s4 = inlined_call_operand.vmem [shape: f32[1,32], index: 4, kind: input, shape index: {}]   ;;  %s11811_s7 = inlined_call_operand.vmem [shape: f32[2,32,96], index: 7, kind: input, shape index: {}]   ;;  %s11812_s5 = inlined_call_operand.vmem [shape: f32[2,1,32], index: 5, kind: input, shape index: {}]   ;;  %s11813_s6 = inlined_call_operand.vmem [shape: f32[2,1,32], index: 6, kind: input, shape index: {}]   ;;  %s11814_s8 = inlined_call_operand.vmem [shape: f32[2,1,96], index: 8, kind: input, shape index: {}]   ;;  %s11815_s9 = inlined_call_operand.vmem [shape: f32[2,4,64,64], index: 9, kind: input, shape index: {}]   ;;  %s11816_s10 = inlined_call_operand.vmem [shape: f32[2,32,32], index: 10, kind: input, shape index: {}]   ;;  %s11817_s11 = inlined_call_operand.vmem [shape: f32[2,1,32], index: 11, kind: input, shape index: {}]   ;;  %s11818_s14 = inlined_call_operand.vmem [shape: f32[2,32,128], index: 14, kind: input, shape index: {}]   ;;  %s11819_s12 = inlined_call_operand.vmem [shape: f32[2,1,32], index: 12, kind: input, shape index: {}]   ;;  %s11820_s13 = inlined_call_operand.vmem [shape: f32[2,1,32], index: 13, kind: input, shape index: {}]   ;;  %s11821_s16 = inlined_call_operand.vmem [shape: f32[2,128,32], index: 16, kind: input, shape index: {}]   ;;  %s11822_s15 = inlined_call_operand.vmem [shape: f32[2,1,128], index: 15, kind: input, shape index: {}]   ;;  %s11823_s17 = inlined_call_operand.vmem [shape: f32[2,1,32], index: 17, kind: input, shape index: {}]   ;;  %s11824_s20 = inlined_call_operand.vmem [shape: f32[32,64], index: 20, kind: input, shape index: {}]   ;;  %s11825_s18 = inlined_call_operand.vmem [shape: f32[1,32], index: 18, kind: input, shape index: {}]   ;;  %s11826_s19 = inlined_call_operand.vmem [shape: f32[1,32], index: 19, kind: input, shape index: {}]   ;;  %s11827_s21 = inlined_call_operand.vmem [shape: f32[1,64], index: 21, kind: input, shape index: {}]   ;;  %s11828_s22 = inlined_call_operand.vmem [shape: f32[64,64], index: 22, kind: output, shape index: {}]  }
   0x1   :  { %11845 = sst [smem:[#allocation2_spill]] %s11806_s1  ;;  %s11839_s1 = smov 80  }
   0x2   :  { %11846 = sst [smem:[#allocation3_spill]] %s11807_s0  ;;  %s11837_s23 = smov 112  }
   0x3   :  { %11847 = sst [smem:[#allocation4_spill]] %s11808_s2  ;;  %s11835_s0 = smov 72  }
   0x4   :  { %11848 = sst [smem:[#allocation5_spill]] %s11809_s3  ;;  %s9017_s3 = smov 96  }
   0x5   :  { %11849 = sst [smem:[#allocation6_spill]] %s11810_s4  ;;  %s9019_s4 = smov 88  }
   0x6   :  { %11850 = sst [smem:[#allocation7_spill]] %s11811_s7 }
   0x7   :  { %11851 = sst [smem:[#allocation8_spill]] %s11812_s5  ;;  %s11841_s5 = smov 40  }
   0x8   :  { %s11852_s29 = sld [smem:[#allocation2_spill]] }
   0x9   :  { %s11853_s24 = sld [smem:[#allocation3_spill]] }
   0xa   :  { %s11854_s7 = sld [smem:[#allocation4_spill]] }
   0xb   :  { %s11855_s25 = sld [smem:[#allocation5_spill]] }
   0xc   :  { %s11856_s2 = sld [smem:[#allocation6_spill]] }
   0xd   :  { %s11857_s28 = sld [smem:[#allocation7_spill]] }
   0xe   :  { %v86_v0 = vld [vmem:[%s11852_s29 + $0x38] sm:$0xff]  ;;  %v85_v1 = vld [vmem:[%s11852_s29 + $0x30] sm:$0xff]  ;;  %v84_v2 = vld [vmem:[%s11852_s29 + $0x28] sm:$0xff] }
   0xf   :  { %7814 = vmatprep.subr.mxu0 %v86_v0  ;;  %v71_v3 = vld [vmem:[%s11853_s24] sm:$0xff]  ;;  %v82_v5 = vld [vmem:[%s11852_s29 + $0x18] sm:$0xff]  ;;  %v81_v6 = vld [vmem:[%s11852_s29 + $0x10] sm:$0xff] }
  0x10   :  { %7815 = vmatpush3.msra.mxu0 %v86_v0  ;;  %7830 = vmatprep.mubr.msk.f32.mxu0 %vm94_vm0, %v71_v3  ;;  %v83_v4 = vld [vmem:[%s11852_s29 + $0x20] sm:$0xff]  ;;  %v80_v7 = vld [vmem:[%s11852_s29 + $0x8] sm:$0xff]  ;;  %v73_v10 = vld [vmem:[%s11853_s24 + $0x10] sm:$0xff] }
  0x11   :  { %7816 = vmatprep.subr.mxu0 %v85_v1  ;;  %v79_v8 = vld [vmem:[%s11852_s29] sm:$0xff]  ;;  %v72_v9 = vld [vmem:[%s11853_s24 + $0x8] sm:$0xff]  ;;  %v74_v11 = vld [vmem:[%s11853_s24 + $0x18] sm:$0xff]  ;;  %s9021_s29 = smov 56  }
  0x12   :  { %7817 = vmatpush3.msra.mxu0 %v85_v1  ;;  %v75_v12 = vld [vmem:[%s11853_s24 + $0x20] sm:$0xff]  ;;  %v76_v13 = vld [vmem:[%s11853_s24 + $0x28] sm:$0xff]  ;;  %v77_v14 = vld [vmem:[%s11853_s24 + $0x30] sm:$0xff] }
  0x13   :  { %7818 = vmatprep.subr.mxu0 %v84_v2  ;;  %v78_v15 = vld [vmem:[%s11853_s24 + $0x38] sm:$0xff]  ;;  %v6944_v17 = vld [vmem:[%s11854_s7] ss:$0 sm:$0xff]  ;;  %s11833_s7 = smov 104  }
  0x14   :  { %7819 = vmatpush3.msra.mxu0 %v84_v2 }
  0x15   :  { %7820 = vmatprep.subr.mxu0 %v83_v4 }
  0x16   :  { %7821 = vmatpush3.msra.mxu0 %v83_v4 }
  0x17   :  { %7822 = vmatprep.subr.mxu0 %v82_v5 }
  0x18   :  { %7823 = vmatpush3.msra.mxu0 %v82_v5 }
  0x19   :  { %7824 = vmatprep.subr.mxu0 %v81_v6 }
  0x1a   :  { %7825 = vmatpush3.msra.mxu0 %v81_v6 }
  0x1b   :  { %7826 = vmatprep.subr.mxu0 %v80_v7 }
  0x1c   :  { %7827 = vmatpush3.msra.mxu0 %v80_v7 }
  0x1d   :  { %7828 = vmatprep.subr.mxu0 %v79_v8 }
  0x1e   :  { %7829 = vmatpush3.msra.mxu0 %v79_v8 }
  0x1f   :  { %7831 = vmatmul.mubr.msk.f32.vlgmr.msra.gmra.mxu0 %vm94_vm0, %v72_v9 }
  0x20   :  { %7833 = vmatprep.mubr.msk.f32.mxu0 %vm94_vm0, %v73_v10 }
  0x23   :  { %7834 = vmatmul.mubr.msk.f32.gmra.mxu0 %vm94_vm0, %v74_v11 }
  0x24   :  { %7836 = vmatprep.mubr.msk.f32.mxu0 %vm94_vm0, %v75_v12 }
  0x27   :  { %7837 = vmatmul.mubr.msk.f32.gmra.mxu0 %vm94_vm0, %v76_v13 }
  0x28   :  { %7839 = vmatprep.mubr.msk.f32.mxu0 %vm94_vm0, %v77_v14 }
  0x2b   :  { %7840 = vmatmul.mubr.msk.f32.gmra.mxu0 %vm94_vm0, %v78_v15 }
  0xdf   :  { %v7832_v16 = vpop.f32.mrf.mxu0 }
  0xe0   :  { %v191_v21 = vadd.f32 %v7832_v16, %v6944_v17 }
  0xe1   :  { %v185_v18 = vpop.f32.mrf.mxu0 }
  0xe2   :  { %v186_v19 = vadd.f32 %v6944_v17, %v185_v18  ;;  %v230_v28 = vsel %vm226_vm1, %v191_v21, 0.0 }
  0xe3   :  { %v7835_v20 = vpop.f32.mrf.mxu0 }
  0xe4   :  { %v227_v22 = vsel %vm226_vm1, %v186_v19, 0.0  ;;  %v201_v26 = vadd.f32 %v7835_v20, %v6944_v17 }
  0xe5   :  { %v195_v23 = vpop.f32.mrf.mxu0  ;;  %228 = vadd.xlane.f32.xlu0 %v227_v22 }
  0xe6   :  { %v196_v24 = vadd.f32 %v6944_v17, %v195_v23  ;;  %v236_v33 = vsel %vm226_vm1, %v201_v26, 0.0 }
  0xe7   :  { %v7838_v25 = vpop.f32.mrf.mxu0 }
  0xe8   :  { %v233_v27 = vsel %vm226_vm1, %v196_v24, 0.0  ;;  %v211_v32 = vadd.f32 %v7838_v25, %v6944_v17 }
  0xe9   :  { %v205_v29 = vpop.f32.mrf.mxu0  ;;  %234 = vadd.xlane.f32.xlu1 %v233_v27  ;;  %231 = vadd.xlane.f32.xlu0 %v230_v28 }
  0xea   :  { %v206_v30 = vadd.f32 %v6944_v17, %v205_v29  ;;  %v242_v38 = vsel %vm226_vm1, %v211_v32, 0.0 }
  0xeb   :  { %v7841_v31 = vpop.f32.mrf.mxu0 }
  0xec   :  { %v239_v34 = vsel %vm226_vm1, %v206_v30, 0.0  ;;  %v221_v37 = vadd.f32 %v7841_v31, %v6944_v17 }
  0xed   :  { %v215_v35 = vpop.f32.mrf.mxu0  ;;  %237 = vadd.xlane.f32.xlu1 %v236_v33  ;;  %240 = vadd.xlane.f32.xlu0 %v239_v34 }
  0xee   :  { %v216_v36 = vadd.f32 %v6944_v17, %v215_v35  ;;  %v248_v40 = vsel %vm226_vm1, %v221_v37, 0.0 }
  0xf0   :  { %v245_v39 = vsel %vm226_vm1, %v216_v36, 0.0 }
  0xf1   :  { %243 = vadd.xlane.f32.xlu1 %v242_v38  ;;  %246 = vadd.xlane.f32.xlu0 %v245_v39 }
  0xf5   :  { %249 = vadd.xlane.f32.xlu1 %v248_v40 }
 0x16e   :  { %v229_v41 = vpop.xlane.xlu0 %228 }
 0x16f   :  { %v252_v42 = vmul.f32 0.03125, %v229_v41  ;;  %v6953_v41 = vld [vmem:[%s11855_s25] ss:$0 sm:$0xff]  ;;  %s11858_s25 = sld [smem:[#allocation8_spill]] }
 0x171   :  { %v9210_v43 = vsub.f32 %v186_v19, %v252_v42 }
 0x172   :  { %v235_v44 = vpop.xlane.xlu1 %234  ;;  %v232_v45 = vpop.xlane.xlu0 %231 }
 0x173   :  { %v254_v46 = vmul.f32 0.03125, %v235_v44  ;;  %v253_v47 = vmul.f32 0.03125, %v232_v45  ;;  %v268_v48 = vmul.f32 %v9210_v43, %v9210_v43  ;;  %v6954_v45 = vld [vmem:[%s11856_s2] ss:$0 sm:$0xff]  ;;  %s11862_s2 = smov 104  }
 0x175   :  { %v9214_v49 = vsub.f32 %v196_v24, %v254_v46  ;;  %v9216_v50 = vsub.f32 %v191_v21, %v253_v47  ;;  %v276_v51 = vsel %vm226_vm1, %v268_v48, 0.0 }
 0x176   :  { %v238_v52 = vpop.xlane.xlu1 %237  ;;  %277 = vadd.xlane.f32.xlu0 %v276_v51  ;;  %v241_v53 = vpop.xlane.xlu0 %240 }
 0x177   :  { %v255_v54 = vmul.f32 0.03125, %v238_v52  ;;  %v256_v55 = vmul.f32 0.03125, %v241_v53  ;;  %v270_v56 = vmul.f32 %v9214_v49, %v9214_v49  ;;  %v269_v57 = vmul.f32 %v9216_v50, %v9216_v50 }
 0x179   :  { %v9223_v58 = vsub.f32 %v201_v26, %v255_v54  ;;  %v9225_v59 = vsub.f32 %v206_v30, %v256_v55  ;;  %v282_v60 = vsel %vm226_vm1, %v270_v56, 0.0  ;;  %v279_v61 = vsel %vm226_vm1, %v269_v57, 0.0 }
 0x17a   :  { %v244_v62 = vpop.xlane.xlu1 %243  ;;  %283 = vadd.xlane.f32.xlu0 %v282_v60  ;;  %280 = vadd.xlane.f32.xlu1 %v279_v61  ;;  %v247_v63 = vpop.xlane.xlu0 %246 }
 0x17b   :  { %v257_v0 = vmul.f32 0.03125, %v244_v62  ;;  %v258_v1 = vmul.f32 0.03125, %v247_v63  ;;  %v271_v2 = vmul.f32 %v9223_v58, %v9223_v58  ;;  %v272_v3 = vmul.f32 %v9225_v59, %v9225_v59 }
 0x17d   :  { %v9233_v4 = vsub.f32 %v211_v32, %v257_v0  ;;  %v9235_v5 = vsub.f32 %v216_v36, %v258_v1  ;;  %v285_v6 = vsel %vm226_vm1, %v271_v2, 0.0  ;;  %v288_v7 = vsel %vm226_vm1, %v272_v3, 0.0 }
 0x17e   :  { %v250_v8 = vpop.xlane.xlu1 %249  ;;  %286 = vadd.xlane.f32.xlu1 %v285_v6  ;;  %289 = vadd.xlane.f32.xlu0 %v288_v7 }
 0x17f   :  { %v259_v9 = vmul.f32 0.03125, %v250_v8  ;;  %v273_v10 = vmul.f32 %v9233_v4, %v9233_v4  ;;  %v274_v11 = vmul.f32 %v9235_v5, %v9235_v5 }
 0x181   :  { %v9243_v12 = vsub.f32 %v221_v37, %v259_v9  ;;  %v291_v13 = vsel %vm226_vm1, %v273_v10, 0.0  ;;  %v294_v14 = vsel %vm226_vm1, %v274_v11, 0.0 }
 0x182   :  { %292 = vadd.xlane.f32.xlu1 %v291_v13  ;;  %295 = vadd.xlane.f32.xlu0 %v294_v14 }
 0x183   :  { %v275_v15 = vmul.f32 %v9243_v12, %v9243_v12 }
 0x185   :  { %v297_v16 = vsel %vm226_vm1, %v275_v15, 0.0 }
 0x186   :  { %298 = vadd.xlane.f32.xlu1 %v297_v16 }
 0x1ff   :  { %v278_v17 = vpop.xlane.xlu0 %277 }
 0x200   :  { %v300_v18 = vmul.f32 0.03125, %v278_v17 }
 0x202   :  { %v308_v19 = vadd.f32 1e-06, %v300_v18 }
 0x203   :  { %v281_v20 = vpop.xlane.xlu1 %280  ;;  %v284_v21 = vpop.xlane.xlu0 %283 }
 0x204   :  { %8601 = vrsqrt.f32 %v308_v19  ;;  %v301_v22 = vmul.f32 0.03125, %v281_v20  ;;  %v302_v23 = vmul.f32 0.03125, %v284_v21 }
 0x206   :  { %v309_v24 = vadd.f32 1e-06, %v301_v22  ;;  %v310_v25 = vadd.f32 1e-06, %v302_v23 }
 0x207   :  { %v287_v26 = vpop.xlane.xlu1 %286  ;;  %v290_v27 = vpop.xlane.xlu0 %289 }
 0x208   :  { %8603 = vrsqrt.f32 %v309_v24  ;;  %v303_v28 = vmul.f32 0.03125, %v287_v26  ;;  %v304_v29 = vmul.f32 0.03125, %v290_v27 }
 0x209   :  { %8605 = vrsqrt.f32 %v310_v25 }
 0x20a   :  { %v311_v30 = vadd.f32 1e-06, %v303_v28  ;;  %v312_v31 = vadd.f32 1e-06, %v304_v29 }
 0x20b   :  { %v293_v32 = vpop.xlane.xlu1 %292  ;;  %v296_v33 = vpop.xlane.xlu0 %295 }
 0x20c   :  { %8607 = vrsqrt.f32 %v311_v30  ;;  %v305_v34 = vmul.f32 0.03125, %v293_v32  ;;  %v306_v35 = vmul.f32 0.03125, %v296_v33 }
 0x20d   :  { %8609 = vrsqrt.f32 %v312_v31 }
 0x20e   :  { %v313_v36 = vadd.f32 1e-06, %v305_v34  ;;  %v314_v37 = vadd.f32 1e-06, %v306_v35 }
 0x20f   :  { %v299_v38 = vpop.xlane.xlu1 %298 }
 0x210   :  { %8611 = vrsqrt.f32 %v313_v36  ;;  %v307_v39 = vmul.f32 0.03125, %v299_v38 }
 0x211   :  { %v8602_v40 = vpop.eup %8601  ;;  %8613 = vrsqrt.f32 %v314_v37 }
 0x212   :  { %v315_v42 = vadd.f32 1e-06, %v307_v39  ;;  %v324_v44 = vmul.f32 %v8602_v40, %v9210_v43 }
 0x214   :  { %8615 = vrsqrt.f32 %v315_v42  ;;  %v338_v46 = vmul.f32 %v6953_v41, %v324_v44 }
 0x215   :  { %v8604_v47 = vpop.eup %8603 }
 0x216   :  { %v8606_v48 = vpop.eup %8605  ;;  %v9257_v51 = vadd.f32 %v6954_v45, %v338_v46  ;;  %v325_v52 = vmul.f32 %v8604_v47, %v9216_v50 }
 0x217   :  { %v326_v53 = vmul.f32 %v8606_v48, %v9214_v49 }
 0x218   :  { %v362_v54 = vsel %vm226_vm1, %v9257_v51, 0.0  ;;  %v339_v55 = vmul.f32 %v6953_v41, %v325_v52 }
 0x219   :  { %v8608_v56 = vpop.eup %8607  ;;  %363 = vadd.xlane.f32.xlu0 %v362_v54  ;;  %v340_v43 = vmul.f32 %v6953_v41, %v326_v53 }
 0x21a   :  { %v8610_v57 = vpop.eup %8609  ;;  %v9263_v60 = vadd.f32 %v6954_v45, %v339_v55  ;;  %v327_v61 = vmul.f32 %v8608_v56, %v9223_v58 }
 0x21b   :  { %v9266_v62 = vadd.f32 %v6954_v45, %v340_v43  ;;  %v328_v63 = vmul.f32 %v8610_v57, %v9225_v59 }
 0x21c   :  { %v365_v50 = vsel %vm226_vm1, %v9263_v60, 0.0  ;;  %v341_v49 = vmul.f32 %v6953_v41, %v327_v61 }
 0x21d   :  { %v8612_v0 = vpop.eup %8611  ;;  %366 = vadd.xlane.f32.xlu1 %v365_v50  ;;  %v368_v1 = vsel %vm226_vm1, %v9266_v62, 0.0  ;;  %v342_v2 = vmul.f32 %v6953_v41, %v328_v63 }
 0x21e   :  { %v8614_v3 = vpop.eup %8613  ;;  %369 = vadd.xlane.f32.xlu0 %v368_v1  ;;  %v9273_v6 = vadd.f32 %v6954_v45, %v341_v49  ;;  %v329_v58 = vmul.f32 %v8612_v0, %v9233_v4  ;;  %v497_v0 = vld [vmem:[%s11857_s28 + $0x18] sm:$0xff]  ;;  %v496_v1 = vld [vmem:[%s11857_s28 + $0x10] sm:$0xff] }
 0x21f   :  { %v9276_v7 = vadd.f32 %v6954_v45, %v342_v2  ;;  %v330_v59 = vmul.f32 %v8614_v3, %v9235_v5  ;;  %7842 = vmatprep.subr.mxu1 %v497_v0  ;;  %v495_v2 = vld [vmem:[%s11857_s28 + $0x8] sm:$0xff]  ;;  %v494_v3 = vld [vmem:[%s11857_s28] sm:$0xff] }
 0x220   :  { %v371_v8 = vsel %vm226_vm1, %v9273_v6, 0.0  ;;  %v343_v9 = vmul.f32 %v6953_v41, %v329_v58  ;;  %7843 = vmatpush3.msra.mxu1 %v497_v0 }
 0x221   :  { %v8616_v10 = vpop.eup %8615  ;;  %372 = vadd.xlane.f32.xlu1 %v371_v8  ;;  %v374_v11 = vsel %vm226_vm1, %v9276_v7, 0.0  ;;  %v344_v13 = vmul.f32 %v6953_v41, %v330_v59  ;;  %7844 = vmatprep.subr.mxu1 %v496_v1 }
 0x222   :  { %375 = vadd.xlane.f32.xlu0 %v374_v11  ;;  %v9283_v14 = vadd.f32 %v6954_v45, %v343_v9  ;;  %v331_v15 = vmul.f32 %v8616_v10, %v9243_v12  ;;  %7845 = vmatpush3.msra.mxu1 %v496_v1 }
 0x223   :  { %v9286_v4 = vadd.f32 %v6954_v45, %v344_v13  ;;  %7846 = vmatprep.subr.mxu1 %v495_v2 }
 0x224   :  { %v377_v5 = vsel %vm226_vm1, %v9283_v14, 0.0  ;;  %v345_v16 = vmul.f32 %v6953_v41, %v331_v15  ;;  %7847 = vmatpush3.msra.mxu1 %v495_v2 }
 0x225   :  { %378 = vadd.xlane.f32.xlu1 %v377_v5  ;;  %v380_v17 = vsel %vm226_vm1, %v9286_v4, 0.0  ;;  %7848 = vmatprep.subr.mxu1 %v494_v3 }
 0x226   :  { %381 = vadd.xlane.f32.xlu0 %v380_v17  ;;  %v9292_v18 = vadd.f32 %v6954_v45, %v345_v16  ;;  %7849 = vmatpush3.msra.mxu1 %v494_v3 }
 0x228   :  { %v383_v19 = vsel %vm226_vm1, %v9292_v18, 0.0 }
 0x229   :  { %384 = vadd.xlane.f32.xlu1 %v383_v19 }
 0x2a2   :  { %v364_v20 = vpop.xlane.xlu0 %363 }
 0x2a3   :  { %v386_v21 = vmul.f32 0.03125, %v364_v20 }
 0x2a5   :  { %v9297_v12 = vsub.f32 %v9257_v51, %v386_v21 }
 0x2a6   :  { %v367_v22 = vpop.xlane.xlu1 %366 }
 0x2a7   :  { %v387_v23 = vmul.f32 0.03125, %v367_v22  ;;  %v370_v24 = vpop.xlane.xlu0 %369  ;;  %v402_v25 = vmul.f32 %v9297_v12, %v9297_v12 }
 0x2a8   :  { %v388_v26 = vmul.f32 0.03125, %v370_v24 }
 0x2a9   :  { %v9302_v27 = vsub.f32 %v9263_v60, %v387_v23  ;;  %v410_v28 = vsel %vm226_vm1, %v402_v25, 0.0 }
 0x2aa   :  { %v9306_v29 = vsub.f32 %v9266_v62, %v388_v26  ;;  %v373_v30 = vpop.xlane.xlu1 %372  ;;  %411 = vadd.xlane.f32.xlu0 %v410_v28 }
 0x2ab   :  { %v389_v31 = vmul.f32 0.03125, %v373_v30  ;;  %v376_v32 = vpop.xlane.xlu0 %375  ;;  %v403_v33 = vmul.f32 %v9302_v27, %v9302_v27 }
 0x2ac   :  { %v390_v34 = vmul.f32 0.03125, %v376_v32  ;;  %v404_v35 = vmul.f32 %v9306_v29, %v9306_v29 }
 0x2ad   :  { %v9313_v36 = vsub.f32 %v9273_v6, %v389_v31  ;;  %v413_v37 = vsel %vm226_vm1, %v403_v33, 0.0 }
 0x2ae   :  { %v9317_v38 = vsub.f32 %v9276_v7, %v390_v34  ;;  %414 = vadd.xlane.f32.xlu1 %v413_v37  ;;  %v379_v39 = vpop.xlane.xlu1 %378  ;;  %v416_v40 = vsel %vm226_vm1, %v404_v35, 0.0  ;;  %v6955_v34 = vld [vmem:[%s11858_s25] ss:$0 sm:$0xff] }
 0x2af   :  { %v391_v41 = vmul.f32 0.03125, %v379_v39  ;;  %417 = vadd.xlane.f32.xlu0 %v416_v40  ;;  %v382_v42 = vpop.xlane.xlu0 %381  ;;  %v405_v44 = vmul.f32 %v9313_v36, %v9313_v36  ;;  %v6956_v39 = vld [vmem:[%s11813_s6] ss:$0 sm:$0xff] }
 0x2b0   :  { %v392_v45 = vmul.f32 0.03125, %v382_v42  ;;  %v406_v46 = vmul.f32 %v9317_v38, %v9317_v38 }
 0x2b1   :  { %v9325_v47 = vsub.f32 %v9283_v14, %v391_v41  ;;  %v419_v48 = vsel %vm226_vm1, %v405_v44, 0.0 }
 0x2b2   :  { %v9329_v52 = vsub.f32 %v9286_v4, %v392_v45  ;;  %420 = vadd.xlane.f32.xlu1 %v419_v48  ;;  %v385_v53 = vpop.xlane.xlu1 %384  ;;  %v422_v54 = vsel %vm226_vm1, %v406_v46, 0.0 }
 0x2b3   :  { %v393_v55 = vmul.f32 0.03125, %v385_v53  ;;  %423 = vadd.xlane.f32.xlu0 %v422_v54  ;;  %v407_v56 = vmul.f32 %v9325_v47, %v9325_v47 }
 0x2b4   :  { %v408_v43 = vmul.f32 %v9329_v52, %v9329_v52 }
 0x2b5   :  { %v9337_v57 = vsub.f32 %v9292_v18, %v393_v55  ;;  %v425_v61 = vsel %vm226_vm1, %v407_v56, 0.0 }
 0x2b6   :  { %426 = vadd.xlane.f32.xlu1 %v425_v61  ;;  %v428_v63 = vsel %vm226_vm1, %v408_v43, 0.0 }
 0x2b7   :  { %429 = vadd.xlane.f32.xlu0 %v428_v63  ;;  %v409_v50 = vmul.f32 %v9337_v57, %v9337_v57 }
 0x2b9   :  { %v431_v49 = vsel %vm226_vm1, %v409_v50, 0.0 }
 0x2ba   :  { %432 = vadd.xlane.f32.xlu1 %v431_v49 }
 0x333   :  { %v412_v58 = vpop.xlane.xlu0 %411 }
 0x334   :  { %v434_v59 = vmul.f32 0.03125, %v412_v58 }
 0x336   :  { %v442_v8 = vadd.f32 1e-06, %v434_v59 }
 0x337   :  { %v415_v9 = vpop.xlane.xlu1 %414 }
 0x338   :  { %8617 = vrsqrt.f32 %v442_v8  ;;  %v435_v10 = vmul.f32 0.03125, %v415_v9  ;;  %v418_v11 = vpop.xlane.xlu0 %417 }
 0x339   :  { %v436_v13 = vmul.f32 0.03125, %v418_v11 }
 0x33a   :  { %v443_v15 = vadd.f32 1e-06, %v435_v10  ;;  %v6957_v10 = vld [vmem:[%s11814_s8] ss:$0 sm:$0xff] }
 0x33b   :  { %v444_v5 = vadd.f32 1e-06, %v436_v13  ;;  %v421_v16 = vpop.xlane.xlu1 %420 }
 0x33c   :  { %8619 = vrsqrt.f32 %v443_v15  ;;  %v437_v17 = vmul.f32 0.03125, %v421_v16  ;;  %v424_v19 = vpop.xlane.xlu0 %423 }
 0x33d   :  { %8621 = vrsqrt.f32 %v444_v5  ;;  %v438_v20 = vmul.f32 0.03125, %v424_v19 }
 0x33e   :  { %v445_v21 = vadd.f32 1e-06, %v437_v17 }
 0x33f   :  { %v446_v22 = vadd.f32 1e-06, %v438_v20  ;;  %v427_v23 = vpop.xlane.xlu1 %426 }
 0x340   :  { %8623 = vrsqrt.f32 %v445_v21  ;;  %v439_v24 = vmul.f32 0.03125, %v427_v23  ;;  %v430_v25 = vpop.xlane.xlu0 %429 }
 0x341   :  { %8625 = vrsqrt.f32 %v446_v22  ;;  %v440_v26 = vmul.f32 0.03125, %v430_v25 }
 0x342   :  { %v447_v28 = vadd.f32 1e-06, %v439_v24 }
 0x343   :  { %v448_v30 = vadd.f32 1e-06, %v440_v26  ;;  %v433_v31 = vpop.xlane.xlu1 %432 }
 0x344   :  { %8627 = vrsqrt.f32 %v447_v28  ;;  %v441_v32 = vmul.f32 0.03125, %v433_v31 }
 0x345   :  { %v8618_v33 = vpop.eup %8617  ;;  %8629 = vrsqrt.f32 %v448_v30 }
 0x346   :  { %v449_v35 = vadd.f32 1e-06, %v441_v32  ;;  %v458_v37 = vmul.f32 %v8618_v33, %v9297_v12 }
 0x348   :  { %8631 = vrsqrt.f32 %v449_v35  ;;  %v472_v40 = vmul.f32 %v6955_v34, %v458_v37 }
 0x349   :  { %v8620_v41 = vpop.eup %8619 }
 0x34a   :  { %v8622_v42 = vpop.eup %8621  ;;  %v486_v44 = vadd.f32 %v6956_v39, %v472_v40  ;;  %v459_v45 = vmul.f32 %v8620_v41, %v9302_v27 }
 0x34b   :  { %v460_v46 = vmul.f32 %v8622_v42, %v9306_v29 }
 0x34c   :  { %7850 = vmatprep.mubr.msk.f32.mxu1 %vm226_vm1, %v486_v44  ;;  %v473_v48 = vmul.f32 %v6955_v34, %v459_v45 }
 0x34d   :  { %v8624_v53 = vpop.eup %8623  ;;  %v474_v54 = vmul.f32 %v6955_v34, %v460_v46 }
 0x34e   :  { %v8626_v55 = vpop.eup %8625  ;;  %v487_v12 = vadd.f32 %v6956_v39, %v473_v48  ;;  %v461_v56 = vmul.f32 %v8624_v53, %v9313_v36 }
 0x34f   :  { %v488_v43 = vadd.f32 %v6956_v39, %v474_v54  ;;  %v462_v61 = vmul.f32 %v8626_v55, %v9317_v38 }
 0x350   :  { %7851 = vmatmul.mubr.msk.f32.vlgmr.msra.gmra.mxu1 %vm226_vm1, %v487_v12  ;;  %v475_v63 = vmul.f32 %v6955_v34, %v461_v56 }
 0x351   :  { %v8628_v50 = vpop.eup %8627  ;;  %7853 = vmatprep.mubr.msk.f32.mxu1 %vm226_vm1, %v488_v43  ;;  %v476_v27 = vmul.f32 %v6955_v34, %v462_v61 }
 0x352   :  { %v8630_v29 = vpop.eup %8629  ;;  %v489_v49 = vadd.f32 %v6956_v39, %v475_v63  ;;  %v463_v0 = vmul.f32 %v8628_v50, %v9325_v47 }
 0x353   :  { %v490_v1 = vadd.f32 %v6956_v39, %v476_v27  ;;  %v464_v2 = vmul.f32 %v8630_v29, %v9329_v52  ;;  %v647_v27 = vld [vmem:[%s11815_s9 + $0x8] sm:$0xff] }
 0x354   :  { %7854 = vmatmul.mubr.msk.f32.gmra.mxu1 %vm226_vm1, %v489_v49  ;;  %v477_v36 = vmul.f32 %v6955_v34, %v463_v0  ;;  %v646_v49 = vld [vmem:[%s11815_s9] sm:$0xff] }
 0x355   :  { %v8632_v3 = vpop.eup %8631  ;;  %7856 = vmatprep.mubr.msk.f32.mxu1 %vm226_vm1, %v490_v1  ;;  %v478_v38 = vmul.f32 %v6955_v34, %v464_v2  ;;  %v649_v2 = vld [vmem:[%s11815_s9 + $0x18] sm:$0xff] }
 0x356   :  { %v491_v58 = vadd.f32 %v6956_v39, %v477_v36  ;;  %v465_v59 = vmul.f32 %v8632_v3, %v9337_v57 }
 0x357   :  { %v492_v8 = vadd.f32 %v6956_v39, %v478_v38 }
 0x358   :  { %7857 = vmatmul.mubr.msk.f32.gmra.mxu1 %vm226_vm1, %v491_v58  ;;  %v479_v9 = vmul.f32 %v6955_v34, %v465_v59 }
 0x359   :  { %7859 = vmatprep.mubr.msk.f32.mxu1 %vm226_vm1, %v492_v8 }
 0x35a   :  { %v493_v47 = vadd.f32 %v6956_v39, %v479_v9  ;;  %v648_v9 = vld [vmem:[%s11815_s9 + $0x10] sm:$0xff] }
 0x35c   :  { %7860 = vmatmul.mubr.msk.f32.gmra.mxu1 %vm226_vm1, %v493_v47  ;;  %v651_v47 = vld [vmem:[%s11815_s9 + $0x28] sm:$0xff] }
 0x410   :  { %v7852_v52 = vpop.f32.mrf.mxu1 }
 0x411   :  { %v9402_v25 = vadd.f32 %v7852_v52, %v6957_v10 }
 0x412   :  { %v595_v11 = vpop.f32.mrf.mxu1 }
 0x413   :  { %v9381_v13 = vadd.f32 %v6957_v10, %v595_v11  ;;  %v9455_v45 = vmul.f32 0.35355338, %v9402_v25 }
 0x414   :  { %v7855_v15 = vpop.f32.mrf.mxu1 }
 0x415   :  { %v9384_v57 = vmul.f32 0.35355338, %v9381_v13  ;;  %v9394_v23 = vadd.f32 %v7855_v15, %v6957_v10 }
 0x416   :  { %v605_v5 = vpop.f32.mrf.mxu1 }
 0x417   :  { %7878 = vmatprep.mubr.msk.f32.mxu1 %vm678_vm2, %v9384_v57  ;;  %v9412_v28 = vadd.f32 %v6957_v10, %v605_v5  ;;  %v9465_v53 = vmul.f32 0.35355338, %v9394_v23 }
 0x418   :  { %v7858_v16 = vpop.f32.mrf.mxu1 }
 0x419   :  { %v9398_v24 = vadd.f32 %v7858_v16, %v6957_v10  ;;  %v9458_v46 = vmul.f32 0.35355338, %v9412_v28  ;;  %v650_v16 = vld [vmem:[%s11815_s9 + $0x20] sm:$0xff] }
 0x41a   :  { %v615_v17 = vpop.f32.mrf.mxu1 }
 0x41b   :  { %v9406_v26 = vadd.f32 %v6957_v10, %v615_v17  ;;  %v9475_v12 = vmul.f32 0.35355338, %v9398_v24  ;;  %v653_v17 = vld [vmem:[%s11815_s9 + $0x38] sm:$0xff] }
 0x41c   :  { %v7861_v19 = vpop.f32.mrf.mxu1 }
 0x41d   :  { %v9388_v20 = vadd.f32 %v7861_v19, %v6957_v10  ;;  %v9468_v54 = vmul.f32 0.35355338, %v9406_v26 }
 0x41e   :  { %v625_v21 = vpop.f32.mrf.mxu1 }
 0x41f   :  { %v9390_v22 = vadd.f32 %v6957_v10, %v625_v21  ;;  %676 = vrot.lane.b32.xlu0 %v9388_v20, %s9017_s3  ;;  %v9485_v61 = vmul.f32 0.35355338, %v9388_v20 }
 0x421   :  { %674 = vrot.lane.b32.xlu1 %v9390_v22, %s9017_s3  ;;  %v9478_v43 = vmul.f32 0.35355338, %v9390_v22 }
 0x423   :  { %668 = vrot.lane.b32.xlu0 %v9394_v23, %s9017_s3 }
 0x425   :  { %672 = vrot.lane.b32.xlu1 %v9398_v24, %s9017_s3 }
 0x427   :  { %664 = vrot.lane.b32.xlu0 %v9402_v25, %s9017_s3 }
 0x429   :  { %670 = vrot.lane.b32.xlu1 %v9406_v26, %s9017_s3 }
 0x42b   :  { %926 = vrot.lane.b32.xlu0 %v9388_v20, %s9018_s30 }
 0x42d   :  { %666 = vrot.lane.b32.xlu1 %v9412_v28, %s9017_s3 }
 0x42f   :  { %918 = vrot.lane.b32.xlu0 %v9394_v23, %s9018_s30 }
 0x431   :  { %662 = vrot.lane.b32.xlu1 %v9381_v13, %s9017_s3 }
 0x433   :  { %914 = vrot.lane.b32.xlu0 %v9402_v25, %s9018_s30 }
 0x435   :  { %922 = vrot.lane.b32.xlu1 %v9398_v24, %s9018_s30 }
 0x437   :  { %1104 = vrot.lane.b32.xlu0 %v9388_v20, %s9019_s4 }
 0x439   :  { %920 = vrot.lane.b32.xlu1 %v9406_v26, %s9018_s30 }
 0x43d   :  { %916 = vrot.lane.b32.xlu1 %v9412_v28, %s9018_s30 }
 0x441   :  { %912 = vrot.lane.b32.xlu1 %v9381_v13, %s9018_s30 }
 0x445   :  { %924 = vrot.lane.b32.xlu1 %v9390_v22, %s9018_s30 }
 0x449   :  { %1102 = vrot.lane.b32.xlu1 %v9390_v22, %s9019_s4 }
 0x491   :  { %v677_v30 = vpop.permute.xlu0 %676 }
 0x492   :  { %7862 = vmatprep.subr.msk.mxu1 %vm678_vm2, %v677_v30 }
 0x493   :  { %7863 = vmatpush3.xpose.msk.msra.mxu1 %vm678_vm2, %v677_v30  ;;  %v675_v31 = vpop.permute.xlu1 %674 }
 0x494   :  { %7864 = vmatprep.subr.msk.mxu1 %vm678_vm2, %v675_v31 }
 0x495   :  { %v669_v32 = vpop.permute.xlu0 %668 }
 0x497   :  { %7865 = vmatpush3.xpose.msk.msra.mxu1 %vm678_vm2, %v675_v31  ;;  %v673_v33 = vpop.permute.xlu1 %672 }
 0x498   :  { %7866 = vmatprep.subr.msk.mxu1 %vm678_vm2, %v673_v33 }
 0x499   :  { %v665_v34 = vpop.permute.xlu0 %664 }
 0x49b   :  { %7867 = vmatpush3.xpose.msk.msra.mxu1 %vm678_vm2, %v673_v33  ;;  %v671_v35 = vpop.permute.xlu1 %670 }
 0x49c   :  { %7868 = vmatprep.subr.msk.mxu1 %vm678_vm2, %v671_v35 }
 0x49d   :  { %v927_v37 = vpop.permute.xlu0 %926 }
 0x49e   :  { %7890 = vmatprep.subr.mxu0 %v927_v37 }
 0x49f   :  { %7869 = vmatpush3.xpose.msk.msra.mxu1 %vm678_vm2, %v671_v35  ;;  %7891 = vmatpush3.msra.mxu0 %v927_v37  ;;  %v667_v39 = vpop.permute.xlu1 %666 }
 0x4a0   :  { %7870 = vmatprep.subr.msk.mxu1 %vm678_vm2, %v669_v32 }
 0x4a1   :  { %v919_v56 = vpop.permute.xlu0 %918 }
 0x4a3   :  { %7871 = vmatpush3.xpose.msk.msra.mxu1 %vm678_vm2, %v669_v32  ;;  %v663_v40 = vpop.permute.xlu1 %662 }
 0x4a4   :  { %7872 = vmatprep.subr.msk.mxu1 %vm678_vm2, %v667_v39 }
 0x4a5   :  { %v915_v63 = vpop.permute.xlu0 %914 }
 0x4a7   :  { %7873 = vmatpush3.xpose.msk.msra.mxu1 %vm678_vm2, %v667_v39  ;;  %v923_v41 = vpop.permute.xlu1 %922 }
 0x4a8   :  { %7874 = vmatprep.subr.msk.mxu1 %vm678_vm2, %v665_v34 }
 0x4a9   :  { %v9489_v50 = vpop.permute.xlu0 %1104 }
 0x4ab   :  { %7875 = vmatpush3.xpose.msk.msra.mxu1 %vm678_vm2, %v665_v34  ;;  %v921_v42 = vpop.permute.xlu1 %920  ;;  %v652_v34 = vld [vmem:[%s11815_s9 + $0x30] sm:$0xff] }
 0x4ac   :  { %7876 = vmatprep.subr.msk.mxu1 %vm678_vm2, %v663_v40 }
 0x4af   :  { %7877 = vmatpush3.xpose.msk.msra.mxu1 %vm678_vm2, %v663_v40  ;;  %v917_v44 = vpop.permute.xlu1 %916 }
 0x4b2   :  { %7879 = vmatmul.mubr.msk.f32.vlgmr.msra.gmra.mxu1 %vm678_vm2, %v9455_v45 }
 0x4b3   :  { %7881 = vmatprep.mubr.msk.f32.mxu1 %vm678_vm2, %v9458_v46  ;;  %v913_v48 = vpop.permute.xlu1 %912 }
 0x4b6   :  { %7882 = vmatmul.mubr.msk.f32.gmra.mxu1 %vm678_vm2, %v9465_v53 }
 0x4b7   :  { %7884 = vmatprep.mubr.msk.f32.mxu1 %vm678_vm2, %v9468_v54  ;;  %v925_v55 = vpop.permute.xlu1 %924 }
 0x4b8   :  { %7892 = vmatprep.subr.mxu0 %v925_v55 }
 0x4b9   :  { %7893 = vmatpush3.msra.mxu0 %v925_v55 }
 0x4ba   :  { %7885 = vmatmul.mubr.msk.f32.gmra.mxu1 %vm678_vm2, %v9475_v12  ;;  %7894 = vmatprep.subr.mxu0 %v923_v41 }
 0x4bb   :  { %7895 = vmatpush3.msra.mxu0 %v923_v41  ;;  %7887 = vmatprep.mubr.msk.f32.mxu1 %vm678_vm2, %v9478_v43  ;;  %v9529_v41 = vpop.permute.xlu1 %1102 }
 0x4bc   :  { %7896 = vmatprep.subr.mxu0 %v921_v42 }
 0x4bd   :  { %7897 = vmatpush3.msra.mxu0 %v921_v42 }
 0x4be   :  { %7888 = vmatmul.mubr.msk.f32.gmra.mxu1 %vm678_vm2, %v9485_v61  ;;  %7898 = vmatprep.subr.mxu0 %v919_v56 }
 0x4bf   :  { %7899 = vmatpush3.msra.mxu0 %v919_v56 }
 0x4c0   :  { %7900 = vmatprep.subr.mxu0 %v917_v44 }
 0x4c1   :  { %7901 = vmatpush3.msra.mxu0 %v917_v44 }
 0x4c2   :  { %7902 = vmatprep.subr.mxu0 %v915_v63 }
 0x4c3   :  { %7903 = vmatpush3.msra.mxu0 %v915_v63 }
 0x4c4   :  { %7904 = vmatprep.subr.mxu0 %v913_v48 }
 0x4c5   :  { %7905 = vmatpush3.msra.mxu0 %v913_v48 }
 0x4c6   :  { %7918 = vmatprep.subr.msk.mxu0 %vm678_vm2, %v9489_v50 }
 0x572   :  { %v7880_v29 = vpop.f32.mrf.mxu1 }
 0x573   :  { %v791_v0 = vadd.f32 %v7880_v29, %v647_v27 }
 0x574   :  { %v785_v1 = vpop.f32.mrf.mxu1 }
 0x575   :  { %v786_v36 = vadd.f32 %v785_v1, %v646_v49  ;;  %v827_v3 = vsel %vm94_vm0, %v791_v0, -inf }
 0x576   :  { %828 = vmax.xlane.f32.xlu1 %v827_v3  ;;  %v7883_v38 = vpop.f32.mrf.mxu1 }
 0x577   :  { %v801_v58 = vadd.f32 %v7883_v38, %v649_v2  ;;  %v824_v59 = vsel %vm94_vm0, %v786_v36, -inf }
 0x578   :  { %v795_v8 = vpop.f32.mrf.mxu1  ;;  %825 = vmax.xlane.f32.xlu0 %v824_v59 }
 0x579   :  { %v796_v10 = vadd.f32 %v795_v8, %v648_v9  ;;  %v833_v15 = vsel %vm94_vm0, %v801_v58, -inf }
 0x57a   :  { %v7886_v52 = vpop.f32.mrf.mxu1 }
 0x57b   :  { %v811_v11 = vadd.f32 %v7886_v52, %v651_v47  ;;  %v830_v32 = vsel %vm94_vm0, %v796_v10, -inf }
 0x57c   :  { %v805_v5 = vpop.f32.mrf.mxu1  ;;  %834 = vmax.xlane.f32.xlu0 %v833_v15 }
 0x57d   :  { %v839_v19 = vsel %vm94_vm0, %v811_v11, -inf  ;;  %v806_v30 = vadd.f32 %v805_v5, %v650_v16 }
 0x57e   :  { %840 = vmax.xlane.f32.xlu1 %v839_v19  ;;  %v7889_v21 = vpop.f32.mrf.mxu1 }
 0x57f   :  { %v821_v31 = vadd.f32 %v7889_v21, %v653_v17  ;;  %v836_v39 = vsel %vm94_vm0, %v806_v30, -inf }
 0x580   :  { %831 = vmax.xlane.f32.xlu0 %v830_v32  ;;  %v815_v33 = vpop.f32.mrf.mxu1 }
 0x581   :  { %v845_v35 = vsel %vm94_vm0, %v821_v31, -inf  ;;  %v816_v37 = vadd.f32 %v815_v33, %v652_v34 }
 0x582   :  { %846 = vmax.xlane.f32.xlu1 %v845_v35 }
 0x583   :  { %v842_v40 = vsel %vm94_vm0, %v816_v37, -inf }
 0x584   :  { %837 = vmax.xlane.f32.xlu0 %v836_v39 }
 0x588   :  { %843 = vmax.xlane.f32.xlu0 %v842_v40 }
 0x593   :  { %1098 = vrot.lane.b32.xlu1 %v9406_v26, %s9019_s4 }
 0x59e   :  { %1100 = vrot.lane.b32.xlu0 %v9398_v24, %s9019_s4 }
 0x5ff   :  { %v829_v42 = vpop.xlane.xlu1 %828 }
 0x600   :  { %v849_v44 = vsub.f32 %v791_v0, %v829_v42 }
 0x601   :  { %v826_v48 = vpop.xlane.xlu0 %825 }
 0x602   :  { %v858_v55 = vmul.f32 1.442695, %v849_v44  ;;  %v848_v56 = vsub.f32 %v786_v36, %v826_v48 }
 0x604   :  { %8633 = vpow2.f32 %v858_v55  ;;  %v856_v63 = vmul.f32 1.442695, %v848_v56 }
 0x605   :  { %v835_v2 = vpop.xlane.xlu0 %834 }
 0x606   :  { %8635 = vpow2.f32 %v856_v63  ;;  %v851_v3 = vsub.f32 %v801_v58, %v835_v2 }
 0x607   :  { %v841_v36 = vpop.xlane.xlu1 %840 }
 0x608   :  { %v862_v8 = vmul.f32 1.442695, %v851_v3  ;;  %v853_v9 = vsub.f32 %v811_v11, %v841_v36 }
 0x609   :  { %v832_v0 = vpop.xlane.xlu0 %831 }
 0x60a   :  { %v850_v59 = vsub.f32 %v796_v10, %v832_v0  ;;  %8637 = vpow2.f32 %v862_v8  ;;  %v866_v16 = vmul.f32 1.442695, %v853_v9 }
 0x60b   :  { %v847_v47 = vpop.xlane.xlu1 %846 }
 0x60c   :  { %v860_v52 = vmul.f32 1.442695, %v850_v59  ;;  %v855_v17 = vsub.f32 %v821_v31, %v847_v47 }
 0x60d   :  { %v838_v38 = vpop.xlane.xlu0 %837 }
 0x60e   :  { %v852_v15 = vsub.f32 %v806_v30, %v838_v38  ;;  %8639 = vpow2.f32 %v860_v52  ;;  %v870_v32 = vmul.f32 1.442695, %v855_v17 }
 0x60f   :  { %8641 = vpow2.f32 %v866_v16  ;;  %v1099_v48 = vpop.permute.xlu1 %1098 }
 0x610   :  { %v864_v19 = vmul.f32 1.442695, %v852_v15 }
 0x611   :  { %v9531_v27 = vpop.eup %8633  ;;  %v844_v5 = vpop.xlane.xlu0 %843 }
 0x612   :  { %v875_v29 = vsel %vm94_vm0, %v9531_v27, 0.0  ;;  %v854_v21 = vsub.f32 %v816_v37, %v844_v5  ;;  %8643 = vpow2.f32 %v864_v19 }
 0x613   :  { %v9535_v49 = vpop.eup %8635  ;;  %876 = vadd.xlane.f32.xlu1 %v875_v29  ;;  %8645 = vpow2.f32 %v870_v32 }
 0x614   :  { %v872_v1 = vsel %vm94_vm0, %v9535_v49, 0.0  ;;  %v868_v33 = vmul.f32 1.442695, %v854_v21 }
 0x615   :  { %873 = vadd.xlane.f32.xlu0 %v872_v1  ;;  %v1101_v55 = vpop.permute.xlu0 %1100 }
 0x616   :  { %8647 = vpow2.f32 %v868_v33 }
 0x617   :  { %v9543_v58 = vpop.eup %8637 }
 0x618   :  { %v881_v11 = vsel %vm94_vm0, %v9543_v58, 0.0 }
 0x61b   :  { %v9545_v10 = vpop.eup %8639 }
 0x61c   :  { %v9549_v30 = vpop.eup %8641  ;;  %v878_v31 = vsel %vm94_vm0, %v9545_v10, 0.0 }
 0x61d   :  { %v887_v35 = vsel %vm94_vm0, %v9549_v30, 0.0 }
 0x61f   :  { %v9553_v34 = vpop.eup %8643 }
 0x620   :  { %v9557_v37 = vpop.eup %8645  ;;  %v884_v39 = vsel %vm94_vm0, %v9553_v34, 0.0 }
 0x621   :  { %v893_v42 = vsel %vm94_vm0, %v9557_v37, 0.0 }
 0x623   :  { %v9561_v40 = vpop.eup %8647 }
 0x624   :  { %1094 = vrot.lane.b32.xlu1 %v9412_v28, %s9019_s4  ;;  %v890_v44 = vsel %vm94_vm0, %v9561_v40, 0.0 }
 0x62b   :  { %1096 = vrot.lane.b32.xlu0 %v9394_v23, %s9019_s4 }
 0x648   :  { %882 = vadd.xlane.f32.xlu1 %v881_v11 }
 0x64a   :  { %879 = vadd.xlane.f32.xlu0 %v878_v31 }
 0x64c   :  { %888 = vadd.xlane.f32.xlu1 %v887_v35 }
 0x64e   :  { %885 = vadd.xlane.f32.xlu0 %v884_v39 }
 0x650   :  { %894 = vadd.xlane.f32.xlu1 %v893_v42 }
 0x652   :  { %891 = vadd.xlane.f32.xlu0 %v890_v44 }
 0x661   :  { %1090 = vrot.lane.b32.xlu1 %v9381_v13, %s9019_s4 }
 0x665   :  { %1076 = vrot.lane.b32.xlu1 %v9455_v45, %s9020_s26 }
 0x668   :  { %1092 = vrot.lane.b32.xlu0 %v9402_v25, %s9019_s4 }
 0x669   :  { %1080 = vrot.lane.b32.xlu1 %v9465_v53, %s9020_s26 }
 0x66c   :  { %1074 = vrot.lane.b32.xlu0 %v9384_v57, %s9020_s26 }
 0x66d   :  { %1084 = vrot.lane.b32.xlu1 %v9475_v12, %s9020_s26 }
 0x670   :  { %1078 = vrot.lane.b32.xlu0 %v9458_v46, %s9020_s26 }
 0x671   :  { %1088 = vrot.lane.b32.xlu1 %v9485_v61, %s9020_s26 }
 0x674   :  { %1082 = vrot.lane.b32.xlu0 %v9468_v54, %s9020_s26 }
 0x675   :  { %1343 = vrot.lane.b32.xlu1 %v9390_v22, %s9021_s29 }
 0x678   :  { %1086 = vrot.lane.b32.xlu0 %v9478_v43, %s9020_s26 }
 0x67c   :  { %1345 = vrot.lane.b32.xlu0 %v9388_v20, %s9021_s29 }
 0x69c   :  { %v877_v56 = vpop.xlane.xlu1 %876 }
 0x69d   :  { %8649 = vrcp.f32 %v877_v56 }
 0x69e   :  { %v874_v63 = vpop.xlane.xlu0 %873 }
 0x69f   :  { %8651 = vrcp.f32 %v874_v63 }
 0x6aa   :  { %v8650_v29 = vpop.eup %8649 }
 0x6ab   :  { %v905_v0 = vmul.f32 %v8650_v29, %v9531_v27  ;;  %v1097_v27 = vpop.permute.xlu0 %1096 }
 0x6ac   :  { %v8652_v1 = vpop.eup %8651 }
 0x6ad   :  { %v904_v2 = vmul.f32 %v8652_v1, %v9535_v49  ;;  %v1095_v49 = vpop.permute.xlu1 %1094 }
 0x6af   :  { %7906 = vmatprep.mubr.msk.f32.mxu0 %vm94_vm0, %v904_v2 }
 0x6b0   :  { %7907 = vmatmul.mubr.msk.f32.vlgmr.msra.gmra.mxu0 %vm94_vm0, %v905_v0 }
 0x6b1   :  { %7919 = vmatpush3.xpose.msk.msra.mxu0 %vm678_vm2, %v9489_v50 }
 0x6b2   :  { %7920 = vmatprep.subr.msk.mxu0 %vm678_vm2, %v9529_v41 }
 0x6b5   :  { %7921 = vmatpush3.xpose.msk.msra.mxu0 %vm678_vm2, %v9529_v41 }
 0x6b6   :  { %7922 = vmatprep.subr.msk.mxu0 %vm678_vm2, %v1101_v55 }
 0x6b9   :  { %7923 = vmatpush3.xpose.msk.msra.mxu0 %vm678_vm2, %v1101_v55 }
 0x6ba   :  { %7924 = vmatprep.subr.msk.mxu0 %vm678_vm2, %v1099_v48 }
 0x6bd   :  { %7925 = vmatpush3.xpose.msk.msra.mxu0 %vm678_vm2, %v1099_v48  ;;  %v634_v48 = vld [vmem:[%s11816_s10] sm:$0xff] }
 0x6be   :  { %7926 = vmatprep.subr.msk.mxu0 %vm678_vm2, %v1097_v27 }
 0x6c1   :  { %7927 = vmatpush3.xpose.msk.msra.mxu0 %vm678_vm2, %v1097_v27 }
 0x6c2   :  { %7928 = vmatprep.subr.msk.mxu0 %vm678_vm2, %v1095_v49 }
 0x6c5   :  { %7929 = vmatpush3.xpose.msk.msra.mxu0 %vm678_vm2, %v1095_v49  ;;  %v6991_v49 = vld [vmem:[%s11815_s9 + $0x48] sm:$0xff] }
 0x6d1   :  { %v883_v50 = vpop.xlane.xlu1 %882 }
 0x6d2   :  { %8653 = vrcp.f32 %v883_v50 }
 0x6d3   :  { %v880_v41 = vpop.xlane.xlu0 %879 }
 0x6d4   :  { %8655 = vrcp.f32 %v880_v41  ;;  %v6990_v41 = vld [vmem:[%s11815_s9 + $0x40] sm:$0xff] }
 0x6d5   :  { %v889_v36 = vpop.xlane.xlu1 %888 }
 0x6d6   :  { %8657 = vrcp.f32 %v889_v36 }
 0x6d7   :  { %v886_v3 = vpop.xlane.xlu0 %885 }
 0x6d8   :  { %8659 = vrcp.f32 %v886_v3 }
 0x6d9   :  { %v895_v38 = vpop.xlane.xlu1 %894 }
 0x6da   :  { %8661 = vrcp.f32 %v895_v38  ;;  %v6993_v38 = vld [vmem:[%s11815_s9 + $0x58] sm:$0xff] }
 0x6db   :  { %v892_v59 = vpop.xlane.xlu0 %891 }
 0x6dc   :  { %8663 = vrcp.f32 %v892_v59 }
 0x6dd   :  { %v1091_v8 = vpop.permute.xlu1 %1090 }
 0x6df   :  { %v1093_v9 = vpop.permute.xlu0 %1092  ;;  %v8654_v47 = vpop.eup %8653 }
 0x6e0   :  { %7930 = vmatprep.subr.msk.mxu0 %vm678_vm2, %v1093_v9  ;;  %v907_v17 = vmul.f32 %v8654_v47, %v9543_v58 }
 0x6e1   :  { %v8656_v52 = vpop.eup %8655  ;;  %v1077_v15 = vpop.permute.xlu1 %1076  ;;  %7931 = vmatpush3.xpose.msk.msra.mxu0 %vm678_vm2, %v1093_v9 }
 0x6e2   :  { %7932 = vmatprep.subr.msk.mxu0 %vm678_vm2, %v1091_v8  ;;  %v906_v5 = vmul.f32 %v8656_v52, %v9545_v10 }
 0x6e3   :  { %v1075_v16 = vpop.permute.xlu0 %1074  ;;  %v8658_v19 = vpop.eup %8657 }
 0x6e4   :  { %7909 = vmatprep.mubr.msk.f32.mxu0 %vm94_vm0, %v906_v5  ;;  %v909_v31 = vmul.f32 %v8658_v19, %v9549_v30  ;;  %v6992_v5 = vld [vmem:[%s11815_s9 + $0x50] sm:$0xff] }
 0x6e5   :  { %v8660_v21 = vpop.eup %8659  ;;  %v1081_v32 = vpop.permute.xlu1 %1080  ;;  %7910 = vmatmul.mubr.msk.f32.gmra.mxu0 %vm94_vm0, %v907_v17 }
 0x6e6   :  { %7933 = vmatpush3.xpose.msk.msra.mxu0 %vm678_vm2, %v1091_v8  ;;  %v908_v33 = vmul.f32 %v8660_v21, %v9553_v34 }
 0x6e7   :  { %v1079_v11 = vpop.permute.xlu0 %1078  ;;  %v8662_v35 = vpop.eup %8661  ;;  %7988 = vmatprep.subr.mxu0 %v634_v48 }
 0x6e8   :  { %7912 = vmatprep.mubr.msk.f32.mxu0 %vm94_vm0, %v908_v33  ;;  %v911_v44 = vmul.f32 %v8662_v35, %v9557_v37 }
 0x6e9   :  { %v8664_v10 = vpop.eup %8663  ;;  %v1085_v39 = vpop.permute.xlu1 %1084  ;;  %7913 = vmatmul.mubr.msk.f32.gmra.mxu0 %vm94_vm0, %v909_v31  ;;  %v6997_v31 = vld [vmem:[%s11815_s9 + $0x78] sm:$0xff] }
 0x6ea   :  { %v910_v58 = vmul.f32 %v8664_v10, %v9561_v40 }
 0x6eb   :  { %v1083_v42 = vpop.permute.xlu0 %1082 }
 0x6ec   :  { %7915 = vmatprep.mubr.msk.f32.mxu0 %vm94_vm0, %v910_v58 }
 0x6ed   :  { %7916 = vmatmul.mubr.msk.f32.gmra.mxu0 %vm94_vm0, %v911_v44  ;;  %v1089_v34 = vpop.permute.xlu1 %1088 }
 0x6ee   :  { %7934 = vmatprep.mubr.msk.f32.mxu0 %vm678_vm2, %v1075_v16  ;;  %v6995_v16 = vld [vmem:[%s11815_s9 + $0x68] sm:$0xff] }
 0x6ef   :  { %v1087_v30 = vpop.permute.xlu0 %1086 }
 0x6f1   :  { %7935 = vmatmul.mubr.msk.f32.vlgmr.msra.gmra.mxu0 %vm678_vm2, %v1077_v15  ;;  %v1344_v37 = vpop.permute.xlu1 %1343 }
 0x6f2   :  { %7937 = vmatprep.mubr.msk.f32.mxu0 %vm678_vm2, %v1079_v11  ;;  %7989 = vmatpush3.msra.mxu0 %v634_v48  ;;  %v6994_v11 = vld [vmem:[%s11815_s9 + $0x60] sm:$0xff]  ;;  %v6996_v48 = vld [vmem:[%s11815_s9 + $0x70] sm:$0xff] }
 0x6f3   :  { %v1346_v40 = vpop.permute.xlu0 %1345 }
 0x6f4   :  { %7946 = vmatprep.subr.mxu1 %v1346_v40 }
 0x6f5   :  { %7938 = vmatmul.mubr.msk.f32.gmra.mxu0 %vm678_vm2, %v1081_v32  ;;  %7947 = vmatpush3.msra.mxu1 %v1346_v40 }
 0x6f6   :  { %7940 = vmatprep.mubr.msk.f32.mxu0 %vm678_vm2, %v1083_v42  ;;  %7948 = vmatprep.subr.mxu1 %v1344_v37 }
 0x6f7   :  { %7949 = vmatpush3.msra.mxu1 %v1344_v37 }
 0x6f9   :  { %7941 = vmatmul.mubr.msk.f32.gmra.mxu0 %vm678_vm2, %v1085_v39 }
 0x6fa   :  { %7943 = vmatprep.mubr.msk.f32.mxu0 %vm678_vm2, %v1087_v30 }
 0x6fd   :  { %7944 = vmatmul.mubr.msk.f32.gmra.mxu0 %vm678_vm2, %v1089_v34 }
 0x770   :  { %v7908_v55 = vpop.f32.mrf.mxu0 }
 0x772   :  { %v1026_v56 = vpop.f32.mrf.mxu0 }
 0x773   :  { %7990 = vmatprep.mubr.msk.f32.mxu0 %vm678_vm2, %v1026_v56 }
 0x774   :  { %7991 = vmatmul.mubr.msk.f32.vlgmr.msra.gmra.mxu0 %vm678_vm2, %v7908_v55 }
 0x7a5   :  { %v7911_v63 = vpop.f32.mrf.mxu0 }
 0x7a7   :  { %v1036_v29 = vpop.f32.mrf.mxu0 }
 0x7a8   :  { %7993 = vmatprep.mubr.msk.f32.mxu0 %vm678_vm2, %v1036_v29 }
 0x7a9   :  { %v7914_v1 = vpop.f32.mrf.mxu0  ;;  %7994 = vmatmul.mubr.msk.f32.gmra.mxu0 %vm678_vm2, %v7911_v63 }
 0x7ab   :  { %v1046_v2 = vpop.f32.mrf.mxu0 }
 0x7ac   :  { %7996 = vmatprep.mubr.msk.f32.mxu0 %vm678_vm2, %v1046_v2 }
 0x7ad   :  { %v7917_v0 = vpop.f32.mrf.mxu0  ;;  %7997 = vmatmul.mubr.msk.f32.gmra.mxu0 %vm678_vm2, %v7914_v1 }
 0x7af   :  { %v1056_v27 = vpop.f32.mrf.mxu0 }
 0x7b0   :  { %7999 = vmatprep.mubr.msk.f32.mxu0 %vm678_vm2, %v1056_v27 }
 0x7b1   :  { %v7936_v50 = vpop.f32.mrf.mxu0  ;;  %8000 = vmatmul.mubr.msk.f32.gmra.mxu0 %vm678_vm2, %v7917_v0 }
 0x7b2   :  { %v1210_v36 = vadd.f32 %v7936_v50, %v6991_v49 }
 0x7b3   :  { %v1204_v3 = vpop.f32.mrf.mxu0 }
 0x7b4   :  { %v1205_v59 = vadd.f32 %v6990_v41, %v1204_v3  ;;  %v1246_v8 = vsel %vm94_vm0, %v1210_v36, -inf }
 0x7b5   :  { %1247 = vmax.xlane.f32.xlu1 %v1246_v8  ;;  %v7939_v9 = vpop.f32.mrf.mxu0 }
 0x7b6   :  { %v1220_v47 = vadd.f32 %v7939_v9, %v6993_v38  ;;  %v1243_v52 = vsel %vm94_vm0, %v1205_v59, -inf }
 0x7b7   :  { %1244 = vmax.xlane.f32.xlu0 %v1243_v52  ;;  %v1214_v15 = vpop.f32.mrf.mxu0 }
 0x7b8   :  { %v9661_v19 = vadd.f32 %v6992_v5, %v1214_v15  ;;  %v1252_v32 = vsel %vm94_vm0, %v1220_v47, -inf }
 0x7b9   :  { %v7942_v17 = vpop.f32.mrf.mxu0 }
 0x7ba   :  { %v9663_v21 = vadd.f32 %v7942_v17, %v6995_v16  ;;  %v1249_v42 = vsel %vm94_vm0, %v9661_v19, -inf }
 0x7bb   :  { %1253 = vmax.xlane.f32.xlu0 %v1252_v32  ;;  %v1224_v33 = vpop.f32.mrf.mxu0 }
 0x7bc   :  { %v1258_v35 = vsel %vm94_vm0, %v9663_v21, -inf  ;;  %v1225_v39 = vadd.f32 %v6994_v11, %v1224_v33 }
 0x7bd   :  { %1259 = vmax.xlane.f32.xlu1 %v1258_v35  ;;  %v7945_v10 = vpop.f32.mrf.mxu0 }
 0x7be   :  { %v1240_v58 = vadd.f32 %v7945_v10, %v6997_v31  ;;  %v1255_v34 = vsel %vm94_vm0, %v1225_v39, -inf }
 0x7bf   :  { %1250 = vmax.xlane.f32.xlu0 %v1249_v42  ;;  %v1234_v30 = vpop.f32.mrf.mxu0 }
 0x7c0   :  { %v1264_v44 = vsel %vm94_vm0, %v1240_v58, -inf  ;;  %v1235_v40 = vadd.f32 %v6996_v48, %v1234_v30 }
 0x7c1   :  { %1265 = vmax.xlane.f32.xlu1 %v1264_v44 }
 0x7c2   :  { %v1261_v37 = vsel %vm94_vm0, %v1235_v40, -inf }
 0x7c3   :  { %1256 = vmax.xlane.f32.xlu0 %v1255_v34 }
 0x7d2   :  { %1341 = vrot.lane.b32.xlu1 %v9398_v24, %s9021_s29 }
 0x7d9   :  { %1339 = vrot.lane.b32.xlu0 %v9406_v26, %s9021_s29 }
 0x7dd   :  { %1337 = vrot.lane.b32.xlu0 %v9394_v23, %s9021_s29 }
 0x7fc   :  { %1262 = vmax.xlane.f32.xlu0 %v1261_v37 }
 0x83e   :  { %v1248_v55 = vpop.xlane.xlu1 %1247 }
 0x83f   :  { %v1268_v56 = vsub.f32 %v1210_v36, %v1248_v55 }
 0x840   :  { %v1245_v63 = vpop.xlane.xlu0 %1244 }
 0x841   :  { %v1277_v29 = vmul.f32 1.442695, %v1268_v56  ;;  %v1267_v1 = vsub.f32 %v1205_v59, %v1245_v63 }
 0x843   :  { %8665 = vpow2.f32 %v1277_v29  ;;  %v1275_v2 = vmul.f32 1.442695, %v1267_v1 }
 0x844   :  { %v1254_v0 = vpop.xlane.xlu0 %1253 }
 0x845   :  { %8667 = vpow2.f32 %v1275_v2  ;;  %v1270_v27 = vsub.f32 %v1220_v47, %v1254_v0 }
 0x846   :  { %v1260_v49 = vpop.xlane.xlu1 %1259 }
 0x847   :  { %v1281_v50 = vmul.f32 1.442695, %v1270_v27  ;;  %v1272_v11 = vsub.f32 %v9663_v21, %v1260_v49 }
 0x848   :  { %v1251_v41 = vpop.xlane.xlu0 %1250 }
 0x849   :  { %8669 = vpow2.f32 %v1281_v50  ;;  %v1269_v17 = vsub.f32 %v9661_v19, %v1251_v41  ;;  %v1285_v35 = vmul.f32 1.442695, %v1272_v11 }
 0x84a   :  { %v1266_v3 = vpop.xlane.xlu1 %1265 }
 0x84b   :  { %v1279_v32 = vmul.f32 1.442695, %v1269_v17  ;;  %v1274_v10 = vsub.f32 %v1240_v58, %v1266_v3 }
 0x84c   :  { %v1257_v38 = vpop.xlane.xlu0 %1256 }
 0x84d   :  { %v1271_v33 = vsub.f32 %v1225_v39, %v1257_v38  ;;  %8671 = vpow2.f32 %v1279_v32  ;;  %v1289_v42 = vmul.f32 1.442695, %v1274_v10 }
 0x84e   :  { %v1342_v8 = vpop.permute.xlu1 %1341 }
 0x84f   :  { %7950 = vmatprep.subr.mxu1 %v1342_v8  ;;  %v1283_v31 = vmul.f32 1.442695, %v1271_v33 }
 0x850   :  { %v9688_v9 = vpop.eup %8665  ;;  %7951 = vmatpush3.msra.mxu1 %v1342_v8  ;;  %v1340_v36 = vpop.permute.xlu0 %1339 }
 0x851   :  { %7952 = vmatprep.subr.mxu1 %v1340_v36  ;;  %v1294_v59 = vsel %vm94_vm0, %v9688_v9, 0.0  ;;  %8673 = vpow2.f32 %v1283_v31 }
 0x852   :  { %v9692_v52 = vpop.eup %8667  ;;  %1295 = vadd.xlane.f32.xlu1 %v1294_v59  ;;  %7953 = vmatpush3.msra.mxu1 %v1340_v36  ;;  %8675 = vpow2.f32 %v1285_v35 }
 0x853   :  { %v1291_v47 = vsel %vm94_vm0, %v9692_v52, 0.0  ;;  %8677 = vpow2.f32 %v1289_v42 }
 0x854   :  { %1292 = vadd.xlane.f32.xlu0 %v1291_v47  ;;  %v1338_v15 = vpop.permute.xlu0 %1337 }
 0x855   :  { %7954 = vmatprep.subr.mxu1 %v1338_v15 }
 0x856   :  { %v9696_v5 = vpop.eup %8669  ;;  %7955 = vmatpush3.msra.mxu1 %v1338_v15 }
 0x857   :  { %v1300_v16 = vsel %vm94_vm0, %v9696_v5, 0.0 }
 0x858   :  { %1301 = vadd.xlane.f32.xlu0 %v1300_v16 }
 0x85a   :  { %v9706_v44 = vpop.eup %8671 }
 0x85b   :  { %v1297_v19 = vsel %vm94_vm0, %v9706_v44, 0.0 }
 0x85e   :  { %v9710_v48 = vpop.eup %8673 }
 0x85f   :  { %v1303_v21 = vsel %vm94_vm0, %v9710_v48, 0.0  ;;  %v9714_v58 = vpop.eup %8675 }
 0x860   :  { %v1306_v37 = vsel %vm94_vm0, %v9714_v58, 0.0  ;;  %v9718_v55 = vpop.eup %8677 }
 0x863   :  { %1335 = vrot.lane.b32.xlu1 %v9412_v28, %s9021_s29 }
 0x86e   :  { %1333 = vrot.lane.b32.xlu0 %v9402_v25, %s9021_s29 }
 0x885   :  { %v1263_v34 = vpop.xlane.xlu0 %1262 }
 0x886   :  { %v1273_v30 = vsub.f32 %v1235_v40, %v1263_v34  ;;  %v1312_v40 = vsel %vm94_vm0, %v9718_v55, 0.0 }
 0x887   :  { %1298 = vadd.xlane.f32.xlu1 %v1297_v19 }
 0x888   :  { %v1287_v39 = vmul.f32 1.442695, %v1273_v30 }
 0x88a   :  { %8679 = vpow2.f32 %v1287_v39 }
 0x88b   :  { %1304 = vadd.xlane.f32.xlu1 %v1303_v21 }
 0x88f   :  { %1307 = vadd.xlane.f32.xlu1 %v1306_v37 }
 0x893   :  { %1313 = vadd.xlane.f32.xlu1 %v1312_v40 }
 0x897   :  { %v9722_v56 = vpop.eup %8679 }
 0x898   :  { %v1309_v63 = vsel %vm94_vm0, %v9722_v56, 0.0 }
 0x899   :  { %1310 = vadd.xlane.f32.xlu0 %v1309_v63 }
 0x8a4   :  { %1781 = vrot.lane.b32.xlu1 %v9388_v20, %s11839_s1 }
 0x8a8   :  { %1779 = vrot.lane.b32.xlu1 %v9390_v22, %s11839_s1 }
 0x8ac   :  { %1775 = vrot.lane.b32.xlu1 %v9406_v26, %s11839_s1 }
 0x8af   :  { %1331 = vrot.lane.b32.xlu0 %v9381_v13, %s9021_s29 }
 0x8b0   :  { %1771 = vrot.lane.b32.xlu1 %v9412_v28, %s11839_s1 }
 0x8b3   :  { %1777 = vrot.lane.b32.xlu0 %v9398_v24, %s11839_s1 }
 0x8b4   :  { %1767 = vrot.lane.b32.xlu1 %v9381_v13, %s11839_s1 }
 0x8b7   :  { %1773 = vrot.lane.b32.xlu0 %v9394_v23, %s11839_s1 }
 0x8b8   :  { %1753 = vrot.lane.b32.xlu1 %v9455_v45, %s11837_s23 }
 0x8bb   :  { %1769 = vrot.lane.b32.xlu0 %v9402_v25, %s11839_s1  ;;  %s11843_s1 = smov 48  }
 0x8bc   :  { %1757 = vrot.lane.b32.xlu1 %v9465_v53, %s11837_s23 }
 0x8bf   :  { %1751 = vrot.lane.b32.xlu0 %v9384_v57, %s11837_s23 }
 0x8c0   :  { %1761 = vrot.lane.b32.xlu1 %v9475_v12, %s11837_s23 }
 0x8c3   :  { %1755 = vrot.lane.b32.xlu0 %v9458_v46, %s11837_s23 }
 0x8c4   :  { %1765 = vrot.lane.b32.xlu1 %v9485_v61, %s11837_s23 }
 0x8c7   :  { %1759 = vrot.lane.b32.xlu0 %v9468_v54, %s11837_s23 }
 0x8c8   :  { %2335 = vrot.lane.b32.xlu1 %v9390_v22, %s11835_s0 }
 0x8cb   :  { %1763 = vrot.lane.b32.xlu0 %v9478_v43, %s11837_s23  ;;  %s11863_s23 = smov 48  }
 0x8cc   :  { %2331 = vrot.lane.b32.xlu1 %v9406_v26, %s11835_s0 }
 0x8cf   :  { %2337 = vrot.lane.b32.xlu0 %v9388_v20, %s11835_s0 }
 0x8d0   :  { %2327 = vrot.lane.b32.xlu1 %v9412_v28, %s11835_s0 }
 0x8d3   :  { %2333 = vrot.lane.b32.xlu0 %v9398_v24, %s11835_s0 }
 0x8d4   :  { %2323 = vrot.lane.b32.xlu1 %v9381_v13, %s11835_s0 }
 0x8d7   :  { %2329 = vrot.lane.b32.xlu0 %v9394_v23, %s11835_s0 }
 0x8d8   :  { %2309 = vrot.lane.b32.xlu1 %v9455_v45, %s11833_s7 }
 0x8db   :  { %v1296_v29 = vpop.xlane.xlu1 %1295  ;;  %2325 = vrot.lane.b32.xlu0 %v9402_v25, %s11835_s0 }
 0x8dc   :  { %2313 = vrot.lane.b32.xlu1 %v9465_v53, %s11833_s7 }
 0x8dd   :  { %v1293_v1 = vpop.xlane.xlu0 %1292 }
 0x8de   :  { %8681 = vrcp.f32 %v1293_v1 }
 0x8df   :  { %v1336_v2 = vpop.permute.xlu1 %1335  ;;  %2307 = vrot.lane.b32.xlu0 %v9384_v57, %s11833_s7  ;;  %8683 = vrcp.f32 %v1296_v29 }
 0x8e0   :  { %2317 = vrot.lane.b32.xlu1 %v9475_v12, %s11833_s7  ;;  %7956 = vmatprep.subr.mxu1 %v1336_v2 }
 0x8e1   :  { %7957 = vmatpush3.msra.mxu1 %v1336_v2  ;;  %v1302_v0 = vpop.xlane.xlu0 %1301 }
 0x8e3   :  { %2311 = vrot.lane.b32.xlu0 %v9458_v46, %s11833_s7 }
 0x8e4   :  { %2321 = vrot.lane.b32.xlu1 %v9485_v61, %s11833_s7 }
 0x8e5   :  { %v1334_v45 = vpop.permute.xlu0 %1333 }
 0x8e6   :  { %7958 = vmatprep.subr.mxu1 %v1334_v45 }
 0x8e7   :  { %2315 = vrot.lane.b32.xlu0 %v9468_v54, %s11833_s7  ;;  %7959 = vmatpush3.msra.mxu1 %v1334_v45 }
 0x8eb   :  { %v8682_v53 = vpop.eup %8681  ;;  %2319 = vrot.lane.b32.xlu0 %v9478_v43, %s11833_s7  ;;  %v635_v43 = vld [vmem:[%s11816_s10 + $0x8] sm:$0xff]  ;;  %s11860_s7 = smov 112  }
 0x8ec   :  { %v1323_v57 = vmul.f32 %v8682_v53, %v9692_v52  ;;  %v8684_v49 = vpop.eup %8683 }
 0x8ed   :  { %v1324_v3 = vmul.f32 %v8684_v49, %v9688_v9 }
 0x8ee   :  { %7962 = vmatprep.mubr.msk.f32.mxu1 %vm94_vm0, %v1323_v57 }
 0x910   :  { %v1299_v12 = vpop.xlane.xlu1 %1298 }
 0x911   :  { %8685 = vrcp.f32 %v1299_v12 }
 0x912   :  { %8687 = vrcp.f32 %v1302_v0 }
 0x914   :  { %v1305_v27 = vpop.xlane.xlu1 %1304 }
 0x915   :  { %8689 = vrcp.f32 %v1305_v27 }
 0x918   :  { %v1308_v46 = vpop.xlane.xlu1 %1307 }
 0x919   :  { %8691 = vrcp.f32 %v1308_v46 }
 0x91c   :  { %v1314_v61 = vpop.xlane.xlu1 %1313 }
 0x91d   :  { %8693 = vrcp.f32 %v1314_v61 }
 0x91e   :  { %v8686_v50 = vpop.eup %8685 }
 0x91f   :  { %v8688_v38 = vpop.eup %8687  ;;  %v1325_v8 = vmul.f32 %v8686_v50, %v9706_v44 }
 0x920   :  { %v1782_v59 = vpop.permute.xlu1 %1781  ;;  %v1326_v52 = vmul.f32 %v8688_v38, %v9696_v5 }
 0x922   :  { %v1311_v54 = vpop.xlane.xlu0 %1310  ;;  %v8690_v36 = vpop.eup %8689 }
 0x923   :  { %8695 = vrcp.f32 %v1311_v54  ;;  %v1327_v9 = vmul.f32 %v8690_v36, %v9710_v48 }
 0x924   :  { %v1780_v31 = vpop.permute.xlu1 %1779 }
 0x926   :  { %v1332_v41 = vpop.permute.xlu0 %1331  ;;  %v8692_v47 = vpop.eup %8691 }
 0x927   :  { %7960 = vmatprep.subr.mxu1 %v1332_v41  ;;  %v1328_v16 = vmul.f32 %v8692_v47, %v9714_v58 }
 0x928   :  { %7961 = vmatpush3.msra.mxu1 %v1332_v41  ;;  %v1776_v10 = vpop.permute.xlu1 %1775 }
 0x929   :  { %7963 = vmatmul.mubr.msk.f32.vlgmr.msra.gmra.mxu1 %vm94_vm0, %v1324_v3  ;;  %7974 = vmatprep.subr.mxu1 %v635_v43 }
 0x92a   :  { %7965 = vmatprep.mubr.msk.f32.mxu1 %vm94_vm0, %v1325_v8  ;;  %7975 = vmatpush3.msra.mxu1 %v635_v43  ;;  %v8694_v15 = vpop.eup %8693  ;;  %v1778_v5 = vpop.permute.xlu0 %1777 }
 0x92b   :  { %8002 = vmatprep.subr.msk.mxu1 %vm678_vm2, %v1782_v59  ;;  %v1330_v33 = vmul.f32 %v8694_v15, %v9718_v55 }
 0x92c   :  { %v1772_v34 = vpop.permute.xlu1 %1771 }
 0x92d   :  { %7966 = vmatmul.mubr.msk.f32.gmra.mxu1 %vm94_vm0, %v1326_v52 }
 0x92e   :  { %7968 = vmatprep.mubr.msk.f32.mxu1 %vm94_vm0, %v1327_v9  ;;  %v1774_v11 = vpop.permute.xlu0 %1773 }
 0x930   :  { %v8696_v17 = vpop.eup %8695  ;;  %v1768_v21 = vpop.permute.xlu1 %1767 }
 0x931   :  { %7969 = vmatmul.mubr.msk.f32.gmra.mxu1 %vm94_vm0, %v1328_v16  ;;  %v1329_v32 = vmul.f32 %v8696_v17, %v9722_v56 }
 0x932   :  { %v1770_v35 = vpop.permute.xlu0 %1769 }
 0x933   :  { %7971 = vmatprep.mubr.msk.f32.mxu1 %vm94_vm0, %v1329_v32 }
 0x934   :  { %v1754_v56 = vpop.permute.xlu1 %1753 }
 0x935   :  { %7972 = vmatmul.mubr.msk.f32.gmra.mxu1 %vm94_vm0, %v1330_v33  ;;  %v7039_v33 = vld [vmem:[%s11815_s9 + $0x88] sm:$0xff] }
 0x936   :  { %v1752_v42 = vpop.permute.xlu0 %1751 }
 0x938   :  { %v1758_v1 = vpop.permute.xlu1 %1757 }
 0x93a   :  { %v1756_v48 = vpop.permute.xlu0 %1755 }
 0x93c   :  { %v1762_v0 = vpop.permute.xlu1 %1761 }
 0x93e   :  { %v1760_v55 = vpop.permute.xlu0 %1759 }
 0x940   :  { %v1766_v53 = vpop.permute.xlu1 %1765 }
 0x942   :  { %v1764_v29 = vpop.permute.xlu0 %1763 }
 0x944   :  { %v2336_v12 = vpop.permute.xlu1 %2335 }
 0x946   :  { %v2338_v2 = vpop.permute.xlu0 %2337 }
 0x948   :  { %v2332_v46 = vpop.permute.xlu1 %2331 }
 0x94a   :  { %v2334_v45 = vpop.permute.xlu0 %2333 }
 0x94c   :  { %v2328_v54 = vpop.permute.xlu1 %2327 }
 0x94e   :  { %v2330_v57 = vpop.permute.xlu0 %2329 }
 0x950   :  { %v2324_v49 = vpop.permute.xlu1 %2323 }
 0x952   :  { %v2326_v27 = vpop.permute.xlu0 %2325 }
 0x954   :  { %v2310_v50 = vpop.permute.xlu1 %2309 }
 0x956   :  { %v2308_v61 = vpop.permute.xlu0 %2307 }
 0x958   :  { %v2314_v43 = vpop.permute.xlu1 %2313 }
 0x95a   :  { %v2312_v41 = vpop.permute.xlu0 %2311 }
 0x95c   :  { %v2318_v38 = vpop.permute.xlu1 %2317 }
 0x95e   :  { %v2316_v3 = vpop.permute.xlu0 %2315 }
 0x960   :  { %v2322_v36 = vpop.permute.xlu1 %2321 }
 0x962   :  { %v2320_v8 = vpop.permute.xlu0 %2319 }
 0x9e9   :  { %v7964_v44 = vpop.f32.mrf.mxu1 }
 0x9eb   :  { %v1445_v30 = vpop.f32.mrf.mxu1 }
 0x9ec   :  { %7976 = vmatprep.mubr.msk.f32.mxu1 %vm678_vm2, %v1445_v30 }
 0x9ed   :  { %v7967_v19 = vpop.f32.mrf.mxu1  ;;  %7977 = vmatmul.mubr.msk.f32.vlgmr.msra.gmra.mxu1 %vm678_vm2, %v7964_v44 }
 0x9ee   :  { %8003 = vmatpush3.xpose.msk.msra.mxu1 %vm678_vm2, %v1782_v59 }
 0x9ef   :  { %8004 = vmatprep.subr.msk.mxu1 %vm678_vm2, %v1780_v31  ;;  %v1455_v39 = vpop.f32.mrf.mxu1 }
 0x9f0   :  { %7979 = vmatprep.mubr.msk.f32.mxu1 %vm678_vm2, %v1455_v39  ;;  %v7040_v39 = vld [vmem:[%s11815_s9 + $0x90] sm:$0xff] }
 0x9f1   :  { %v7970_v58 = vpop.f32.mrf.mxu1  ;;  %7980 = vmatmul.mubr.msk.f32.gmra.mxu1 %vm678_vm2, %v7967_v19 }
 0x9f2   :  { %8005 = vmatpush3.xpose.msk.msra.mxu1 %vm678_vm2, %v1780_v31 }
 0x9f3   :  { %8006 = vmatprep.subr.msk.mxu1 %vm678_vm2, %v1778_v5  ;;  %v1465_v37 = vpop.f32.mrf.mxu1 }
 0x9f4   :  { %7982 = vmatprep.mubr.msk.f32.mxu1 %vm678_vm2, %v1465_v37 }
 0x9f5   :  { %v7973_v40 = vpop.f32.mrf.mxu1  ;;  %7983 = vmatmul.mubr.msk.f32.gmra.mxu1 %vm678_vm2, %v7970_v58 }
 0x9f6   :  { %8007 = vmatpush3.xpose.msk.msra.mxu1 %vm678_vm2, %v1778_v5 }
 0x9f7   :  { %8008 = vmatprep.subr.msk.mxu1 %vm678_vm2, %v1776_v10  ;;  %v1475_v63 = vpop.f32.mrf.mxu1 }
 0x9f8   :  { %7985 = vmatprep.mubr.msk.f32.mxu1 %vm678_vm2, %v1475_v63  ;;  %v7042_v63 = vld [vmem:[%s11815_s9 + $0xa0] sm:$0xff] }
 0x9f9   :  { %7986 = vmatmul.mubr.msk.f32.gmra.mxu1 %vm678_vm2, %v7973_v40 }
 0x9fa   :  { %8009 = vmatpush3.xpose.msk.msra.mxu1 %vm678_vm2, %v1776_v10  ;;  %8018 = vmatprep.mubr.msk.f32.mxu1 %vm678_vm2, %v1752_v42  ;;  %v7041_v10 = vld [vmem:[%s11815_s9 + $0x98] sm:$0xff] }
 0x9fb   :  { %8010 = vmatprep.subr.msk.mxu1 %vm678_vm2, %v1774_v11 }
 0x9fe   :  { %8011 = vmatpush3.xpose.msk.msra.mxu1 %vm678_vm2, %v1774_v11  ;;  %v7038_v11 = vld [vmem:[%s11815_s9 + $0x80] sm:$0xff] }
 0x9ff   :  { %8012 = vmatprep.subr.msk.mxu1 %vm678_vm2, %v1772_v34 }
 0xa02   :  { %8013 = vmatpush3.xpose.msk.msra.mxu1 %vm678_vm2, %v1772_v34 }
 0xa03   :  { %8014 = vmatprep.subr.msk.mxu1 %vm678_vm2, %v1770_v35 }
 0xa06   :  { %8015 = vmatpush3.xpose.msk.msra.mxu1 %vm678_vm2, %v1770_v35 }
 0xa07   :  { %8016 = vmatprep.subr.msk.mxu1 %vm678_vm2, %v1768_v21 }
 0xa0a   :  { %8017 = vmatpush3.xpose.msk.msra.mxu1 %vm678_vm2, %v1768_v21  ;;  %v7043_v21 = vld [vmem:[%s11815_s9 + $0xa8] sm:$0xff] }
 0xa0b   :  { %8072 = vmatprep.subr.msk.mxu1 %vm678_vm2, %v2338_v2 }
 0xa0d   :  { %8019 = vmatmul.mubr.msk.f32.vlgmr.msra.gmra.mxu1 %vm678_vm2, %v1754_v56 }
 0xa0e   :  { %8021 = vmatprep.mubr.msk.f32.mxu1 %vm678_vm2, %v1756_v48  ;;  %8073 = vmatpush3.xpose.msk.msra.mxu1 %vm678_vm2, %v2338_v2 }
 0xa0f   :  { %8074 = vmatprep.subr.msk.mxu1 %vm678_vm2, %v2336_v12 }
 0xa11   :  { %8022 = vmatmul.mubr.msk.f32.gmra.mxu1 %vm678_vm2, %v1758_v1 }
 0xa12   :  { %8024 = vmatprep.mubr.msk.f32.mxu1 %vm678_vm2, %v1760_v55  ;;  %8075 = vmatpush3.xpose.msk.msra.mxu1 %vm678_vm2, %v2336_v12  ;;  %v7044_v12 = vld [vmem:[%s11815_s9 + $0xb0] sm:$0xff] }
 0xa13   :  { %8076 = vmatprep.subr.msk.mxu1 %vm678_vm2, %v2334_v45 }
 0xa15   :  { %8025 = vmatmul.mubr.msk.f32.gmra.mxu1 %vm678_vm2, %v1762_v0 }
 0xa16   :  { %8027 = vmatprep.mubr.msk.f32.mxu1 %vm678_vm2, %v1764_v29  ;;  %8077 = vmatpush3.xpose.msk.msra.mxu1 %vm678_vm2, %v2334_v45  ;;  %v7045_v29 = vld [vmem:[%s11815_s9 + $0xb8] sm:$0xff] }
 0xa17   :  { %8078 = vmatprep.subr.msk.mxu1 %vm678_vm2, %v2332_v46 }
 0xa19   :  { %8028 = vmatmul.mubr.msk.f32.gmra.mxu1 %vm678_vm2, %v1766_v53 }
 0xa1a   :  { %8079 = vmatpush3.xpose.msk.msra.mxu1 %vm678_vm2, %v2332_v46  ;;  %8088 = vmatprep.mubr.msk.f32.mxu1 %vm678_vm2, %v2308_v61 }
 0xa1b   :  { %8080 = vmatprep.subr.msk.mxu1 %vm678_vm2, %v2330_v57 }
 0xa1e   :  { %8081 = vmatpush3.xpose.msk.msra.mxu1 %vm678_vm2, %v2330_v57 }
 0xa1f   :  { %8082 = vmatprep.subr.msk.mxu1 %vm678_vm2, %v2328_v54 }
 0xa22   :  { %8083 = vmatpush3.xpose.msk.msra.mxu1 %vm678_vm2, %v2328_v54 }
 0xa23   :  { %8084 = vmatprep.subr.msk.mxu1 %vm678_vm2, %v2326_v27 }
 0xa26   :  { %8085 = vmatpush3.xpose.msk.msra.mxu1 %vm678_vm2, %v2326_v27 }
 0xa27   :  { %8086 = vmatprep.subr.msk.mxu1 %vm678_vm2, %v2324_v49 }
 0xa2a   :  { %8087 = vmatpush3.xpose.msk.msra.mxu1 %vm678_vm2, %v2324_v49 }
 0xa2d   :  { %8089 = vmatmul.mubr.msk.f32.vlgmr.msra.gmra.mxu1 %vm678_vm2, %v2310_v50 }
 0xa2e   :  { %8091 = vmatprep.mubr.msk.f32.mxu1 %vm678_vm2, %v2312_v41 }
 0xa31   :  { %8092 = vmatmul.mubr.msk.f32.gmra.mxu1 %vm678_vm2, %v2314_v43 }
 0xa32   :  { %8094 = vmatprep.mubr.msk.f32.mxu1 %vm678_vm2, %v2316_v3 }
 0xa35   :  { %8095 = vmatmul.mubr.msk.f32.gmra.mxu1 %vm678_vm2, %v2318_v38 }
 0xa36   :  { %8097 = vmatprep.mubr.msk.f32.mxu1 %vm678_vm2, %v2320_v8 }
 0xa39   :  { %8098 = vmatmul.mubr.msk.f32.gmra.mxu1 %vm678_vm2, %v2322_v36 }
 0xaad   :  { %v9867_v59 = vpop.f32.mrf.mxu1 }
 0xaaf   :  { %v9869_v52 = vpop.f32.mrf.mxu1 }
 0xab1   :  { %v9871_v47 = vpop.f32.mrf.mxu1 }
 0xab3   :  { %v9873_v9 = vpop.f32.mrf.mxu1 }
 0xab5   :  { %v9875_v15 = vpop.f32.mrf.mxu1 }
 0xab7   :  { %v9877_v16 = vpop.f32.mrf.mxu1 }
 0xab9   :  { %v9879_v17 = vpop.f32.mrf.mxu1 }
 0xabb   :  { %v9881_v32 = vpop.f32.mrf.mxu1 }
 0xacd   :  { %v8020_v5 = vpop.f32.mrf.mxu1 }
 0xace   :  { %v1887_v31 = vadd.f32 %v8020_v5, %v7039_v33 }
 0xacf   :  { %v1881_v35 = vpop.f32.mrf.mxu1 }
 0xad0   :  { %v1882_v42 = vadd.f32 %v7038_v11, %v1881_v35  ;;  %v1923_v44 = vsel %vm94_vm0, %v1887_v31, -inf }
 0xad1   :  { %1924 = vmax.xlane.f32.xlu1 %v1923_v44  ;;  %v8023_v34 = vpop.f32.mrf.mxu1 }
 0xad2   :  { %v1897_v30 = vadd.f32 %v8023_v34, %v7041_v10  ;;  %v1920_v19 = vsel %vm94_vm0, %v1882_v42, -inf }
 0xad3   :  { %1921 = vmax.xlane.f32.xlu0 %v1920_v19  ;;  %v1891_v48 = vpop.f32.mrf.mxu1 }
 0xad4   :  { %v1892_v37 = vadd.f32 %v7040_v39, %v1891_v48  ;;  %v1929_v40 = vsel %vm94_vm0, %v1897_v30, -inf }
 0xad5   :  { %v8026_v58 = vpop.f32.mrf.mxu1 }
 0xad6   :  { %v1907_v55 = vadd.f32 %v8026_v58, %v7043_v21  ;;  %v1926_v53 = vsel %vm94_vm0, %v1892_v37, -inf }
 0xad7   :  { %1930 = vmax.xlane.f32.xlu0 %v1929_v40  ;;  %v1901_v56 = vpop.f32.mrf.mxu1 }
 0xad8   :  { %v1935_v1 = vsel %vm94_vm0, %v1907_v55, -inf  ;;  %v1902_v0 = vadd.f32 %v7042_v63, %v1901_v56 }
 0xad9   :  { %1936 = vmax.xlane.f32.xlu1 %v1935_v1  ;;  %v8029_v2 = vpop.f32.mrf.mxu1 }
 0xada   :  { %v1917_v45 = vadd.f32 %v8029_v2, %v7045_v29  ;;  %v1932_v61 = vsel %vm94_vm0, %v1902_v0, -inf }
 0xadb   :  { %1927 = vmax.xlane.f32.xlu0 %v1926_v53  ;;  %v1911_v57 = vpop.f32.mrf.mxu1 }
 0xadc   :  { %v1941_v27 = vsel %vm94_vm0, %v1917_v45, -inf  ;;  %v1912_v46 = vadd.f32 %v7044_v12, %v1911_v57 }
 0xadd   :  { %1942 = vmax.xlane.f32.xlu1 %v1941_v27 }
 0xade   :  { %v1938_v54 = vsel %vm94_vm0, %v1912_v46, -inf }
 0xadf   :  { %1933 = vmax.xlane.f32.xlu0 %v1932_v61 }
 0xae3   :  { %1939 = vmax.xlane.f32.xlu0 %v1938_v54 }
 0xaee   :  { %2020 = vrot.lane.b32.xlu1 %v9390_v22, %s11843_s1 }
 0xaf2   :  { %2018 = vrot.lane.b32.xlu1 %v9398_v24, %s11843_s1 }
 0xaf6   :  { %2016 = vrot.lane.b32.xlu1 %v9406_v26, %s11843_s1 }
 0xaf9   :  { %2022 = vrot.lane.b32.xlu0 %v9388_v20, %s11843_s1 }
 0xafa   :  { %2012 = vrot.lane.b32.xlu1 %v9412_v28, %s11843_s1 }
 0xafd   :  { %2014 = vrot.lane.b32.xlu0 %v9394_v23, %s11843_s1 }
 0xb5a   :  { %v1925_v49 = vpop.xlane.xlu1 %1924 }
 0xb5b   :  { %v1945_v50 = vsub.f32 %v1887_v31, %v1925_v49 }
 0xb5c   :  { %v1922_v41 = vpop.xlane.xlu0 %1921 }
 0xb5d   :  { %v1954_v43 = vmul.f32 1.442695, %v1945_v50  ;;  %v1944_v3 = vsub.f32 %v1882_v42, %v1922_v41 }
 0xb5f   :  { %8697 = vpow2.f32 %v1954_v43  ;;  %v1952_v38 = vmul.f32 1.442695, %v1944_v3 }
 0xb60   :  { %v1931_v8 = vpop.xlane.xlu0 %1930 }
 0xb61   :  { %8699 = vpow2.f32 %v1952_v38  ;;  %v1947_v36 = vsub.f32 %v1897_v30, %v1931_v8  ;;  %v8090_v8 = vpop.f32.mrf.mxu1 }
 0xb62   :  { %v1937_v33 = vpop.xlane.xlu1 %1936 }
 0xb63   :  { %v1958_v5 = vmul.f32 1.442695, %v1947_v36  ;;  %v1949_v11 = vsub.f32 %v1907_v55, %v1937_v33  ;;  %v2437_v36 = vpop.f32.mrf.mxu1 }
 0xb64   :  { %v1928_v35 = vpop.xlane.xlu0 %1927 }
 0xb65   :  { %8701 = vpow2.f32 %v1958_v5  ;;  %v1962_v10 = vmul.f32 1.442695, %v1949_v11  ;;  %v1946_v44 = vsub.f32 %v1892_v37, %v1928_v35  ;;  %v8093_v33 = vpop.f32.mrf.mxu1  ;;  %v7079_v11 = vld [vmem:[%s11815_s9 + $0xc8] sm:$0xff] }
 0xb66   :  { %v1943_v34 = vpop.xlane.xlu1 %1942 }
 0xb67   :  { %8703 = vpow2.f32 %v1962_v10  ;;  %v1956_v19 = vmul.f32 1.442695, %v1946_v44  ;;  %v1951_v48 = vsub.f32 %v1917_v45, %v1943_v34  ;;  %v2447_v5 = vpop.f32.mrf.mxu1  ;;  %v9966_v10 = vadd.f32 %v8090_v8, %v7079_v11  ;;  %v7083_v44 = vld [vmem:[%s11815_s9 + $0xe8] sm:$0xff] }
 0xb68   :  { %v1934_v31 = vpop.xlane.xlu0 %1933 }
 0xb69   :  { %8705 = vpow2.f32 %v1956_v19  ;;  %v1966_v39 = vmul.f32 1.442695, %v1951_v48  ;;  %v1948_v42 = vsub.f32 %v1902_v0, %v1934_v31  ;;  %v8096_v35 = vpop.f32.mrf.mxu1  ;;  %v7078_v19 = vld [vmem:[%s11815_s9 + $0xc0] sm:$0xff]  ;;  %v2479_v31 = vsel %vm94_vm0, %v9966_v10, -inf }
 0xb6a   :  { %v2021_v21 = vpop.permute.xlu1 %2020  ;;  %v9974_v48 = vadd.f32 %v8096_v35, %v7083_v44 }
 0xb6b   :  { %8707 = vpow2.f32 %v1966_v39  ;;  %v1960_v58 = vmul.f32 1.442695, %v1948_v42  ;;  %v2457_v34 = vpop.f32.mrf.mxu1  ;;  %v9978_v39 = vadd.f32 %v7078_v19, %v2437_v36  ;;  %v7085_v42 = vld [vmem:[%s11815_s9 + $0xf8] sm:$0xff]  ;;  %v636_v19 = vld [vmem:[%s11816_s10 + $0x10] sm:$0xff] }
 0xb6c   :  { %v9927_v40 = vpop.eup %8697  ;;  %v1940_v30 = vpop.xlane.xlu0 %1939 }
 0xb6d   :  { %8709 = vpow2.f32 %v1960_v58  ;;  %v1950_v55 = vsub.f32 %v1912_v46, %v1940_v30  ;;  %v1971_v56 = vsel %vm94_vm0, %v9927_v40, 0.0  ;;  %v7080_v58 = vld [vmem:[%s11815_s9 + $0xd0] sm:$0xff] }
 0xb6e   :  { %v9931_v37 = vpop.eup %8699  ;;  %1972 = vadd.xlane.f32.xlu1 %v1971_v56  ;;  %v2019_v29 = vpop.permute.xlu1 %2018  ;;  %v9990_v56 = vadd.f32 %v7080_v58, %v2447_v5 }
 0xb6f   :  { %v1964_v63 = vmul.f32 1.442695, %v1950_v55  ;;  %v1968_v1 = vsel %vm94_vm0, %v9931_v37, 0.0  ;;  %v2491_v55 = vsel %vm94_vm0, %v9974_v48, -inf }
 0xb70   :  { %1969 = vadd.xlane.f32.xlu0 %v1968_v1  ;;  %v2023_v2 = vpop.permute.xlu0 %2022 }
 0xb71   :  { %8711 = vpow2.f32 %v1964_v63  ;;  %8030 = vmatprep.subr.mxu0 %v2023_v2  ;;  %v2476_v63 = vsel %vm94_vm0, %v9978_v39, -inf }
 0xb72   :  { %v9935_v0 = vpop.eup %8701  ;;  %8031 = vmatpush3.msra.mxu0 %v2023_v2  ;;  %v2017_v57 = vpop.permute.xlu1 %2016 }
 0xb73   :  { %8032 = vmatprep.subr.mxu0 %v2021_v21  ;;  %v1977_v45 = vsel %vm94_vm0, %v9935_v0, 0.0 }
 0xb74   :  { %v9939_v53 = vpop.eup %8703  ;;  %1978 = vadd.xlane.f32.xlu1 %v1977_v45  ;;  %8033 = vmatpush3.msra.mxu0 %v2021_v21  ;;  %v2015_v54 = vpop.permute.xlu0 %2014  ;;  %v2482_v45 = vsel %vm94_vm0, %v9990_v56, -inf }
 0xb75   :  { %8034 = vmatprep.subr.mxu0 %v2019_v29  ;;  %v1983_v27 = vsel %vm94_vm0, %v9939_v53, 0.0  ;;  %v8099_v21 = vpop.f32.mrf.mxu1 }
 0xb76   :  { %v9941_v12 = vpop.eup %8705  ;;  %8035 = vmatpush3.msra.mxu0 %v2019_v29  ;;  %v2013_v50 = vpop.permute.xlu1 %2012  ;;  %v9986_v30 = vadd.f32 %v8099_v21, %v7085_v42  ;;  %v7081_v29 = vld [vmem:[%s11815_s9 + $0xd8] sm:$0xff] }
 0xb77   :  { %8036 = vmatprep.subr.mxu0 %v2017_v57  ;;  %v1974_v46 = vsel %vm94_vm0, %v9941_v12, 0.0  ;;  %v9999_v2 = vadd.f32 %v8093_v33, %v7081_v29 }
 0xb78   :  { %v9947_v61 = vpop.eup %8707  ;;  %1984 = vadd.xlane.f32.xlu1 %v1983_v27  ;;  %1975 = vadd.xlane.f32.xlu0 %v1974_v46  ;;  %v2497_v1 = vsel %vm94_vm0, %v9986_v30, -inf }
 0xb79   :  { %8037 = vmatpush3.msra.mxu0 %v2017_v57  ;;  %v1989_v41 = vsel %vm94_vm0, %v9947_v61, 0.0  ;;  %v7082_v57 = vld [vmem:[%s11815_s9 + $0xe0] sm:$0xff]  ;;  %v2485_v46 = vsel %vm94_vm0, %v9999_v2, -inf }
 0xb7a   :  { %v9949_v49 = vpop.eup %8709  ;;  %8038 = vmatprep.subr.mxu0 %v2015_v54  ;;  %v10006_v27 = vadd.f32 %v7082_v57, %v2457_v34 }
 0xb7b   :  { %8039 = vmatpush3.msra.mxu0 %v2015_v54  ;;  %v1980_v43 = vsel %vm94_vm0, %v9949_v49, 0.0  ;;  %v2467_v54 = vpop.f32.mrf.mxu1 }
 0xb7c   :  { %8040 = vmatprep.subr.mxu0 %v2013_v50  ;;  %1990 = vadd.xlane.f32.xlu1 %v1989_v41 }
 0xb7d   :  { %1981 = vadd.xlane.f32.xlu0 %v1980_v43  ;;  %8041 = vmatpush3.msra.mxu0 %v2013_v50  ;;  %v7084_v50 = vld [vmem:[%s11815_s9 + $0xf0] sm:$0xff]  ;;  %v2488_v43 = vsel %vm94_vm0, %v10006_v27, -inf }
 0xb7e   :  { %v9955_v3 = vpop.eup %8711  ;;  %v10013_v41 = vadd.f32 %v7084_v50, %v2467_v54 }
 0xb7f   :  { %v1986_v38 = vsel %vm94_vm0, %v9955_v3, 0.0 }
 0xb81   :  { %1987 = vadd.xlane.f32.xlu0 %v1986_v38  ;;  %v2494_v38 = vsel %vm94_vm0, %v10013_v41, -inf }
 0xb8d   :  { %2008 = vrot.lane.b32.xlu1 %v9381_v13, %s11843_s1 }
 0xb97   :  { %2010 = vrot.lane.b32.xlu0 %v9402_v25, %s11843_s1 }
 0xbb1   :  { %2480 = vmax.xlane.f32.xlu1 %v2479_v31 }
 0xbb5   :  { %2492 = vmax.xlane.f32.xlu1 %v2491_v55 }
 0xbb6   :  { %2477 = vmax.xlane.f32.xlu0 %v2476_v63 }
 0xbb9   :  { %2498 = vmax.xlane.f32.xlu1 %v2497_v1 }
 0xbba   :  { %2483 = vmax.xlane.f32.xlu0 %v2482_v45 }
 0xbbe   :  { %2486 = vmax.xlane.f32.xlu0 %v2485_v46 }
 0xbc2   :  { %2489 = vmax.xlane.f32.xlu0 %v2488_v43 }
 0xbc6   :  { %2495 = vmax.xlane.f32.xlu0 %v2494_v38 }
 0xbca   :  { %2576 = vrot.lane.b32.xlu1 %v9390_v22, %s11841_s5 }
 0xbce   :  { %2574 = vrot.lane.b32.xlu1 %v9398_v24, %s11841_s5 }
 0xbd2   :  { %2572 = vrot.lane.b32.xlu1 %v9406_v26, %s11841_s5 }
 0xbd6   :  { %2568 = vrot.lane.b32.xlu1 %v9412_v28, %s11841_s5 }
 0xbdc   :  { %2578 = vrot.lane.b32.xlu0 %v9388_v20, %s11841_s5 }
 0xbe0   :  { %2570 = vrot.lane.b32.xlu0 %v9394_v23, %s11841_s5 }
 0xbf7   :  { %v1973_v36 = vpop.xlane.xlu1 %1972 }
 0xbf9   :  { %v1970_v8 = vpop.xlane.xlu0 %1969 }
 0xbfa   :  { %8713 = vrcp.f32 %v1970_v8 }
 0xbfb   :  { %8715 = vrcp.f32 %v1973_v36 }
 0xbfd   :  { %v1979_v33 = vpop.xlane.xlu1 %1978 }
 0xc01   :  { %v1976_v22 = vpop.xlane.xlu0 %1975  ;;  %v1985_v24 = vpop.xlane.xlu1 %1984 }
 0xc02   :  { %8717 = vrcp.f32 %v1976_v22 }
 0xc03   :  { %8719 = vrcp.f32 %v1979_v33 }
 0xc05   :  { %v1991_v11 = vpop.xlane.xlu1 %1990 }
 0xc06   :  { %v1982_v5 = vpop.xlane.xlu0 %1981 }
 0xc07   :  { %v8714_v26 = vpop.eup %8713  ;;  %8721 = vrcp.f32 %v1982_v5 }
 0xc08   :  { %v2000_v28 = vmul.f32 %v8714_v26, %v9931_v37  ;;  %8723 = vrcp.f32 %v1985_v24  ;;  %v8716_v23 = vpop.eup %8715 }
 0xc09   :  { %v2009_v34 = vpop.permute.xlu1 %2008  ;;  %v2001_v31 = vmul.f32 %v8716_v23, %v9927_v40 }
 0xc0a   :  { %v1988_v20 = vpop.xlane.xlu0 %1987  ;;  %8046 = vmatprep.mubr.msk.f32.mxu0 %vm94_vm0, %v2000_v28 }
 0xc0b   :  { %8725 = vrcp.f32 %v1988_v20 }
 0xc0c   :  { %8727 = vrcp.f32 %v1991_v11 }
 0xc0e   :  { %v2011_v35 = vpop.permute.xlu0 %2010 }
 0xc0f   :  { %8042 = vmatprep.subr.mxu0 %v2011_v35  ;;  %v8718_v44 = vpop.eup %8717 }
 0xc10   :  { %8043 = vmatpush3.msra.mxu0 %v2011_v35  ;;  %v2002_v37 = vmul.f32 %v8718_v44, %v9941_v12  ;;  %v8720_v42 = vpop.eup %8719 }
 0xc11   :  { %8044 = vmatprep.subr.mxu0 %v2009_v34  ;;  %v2003_v58 = vmul.f32 %v8720_v42, %v9935_v0 }
 0xc12   :  { %8045 = vmatpush3.msra.mxu0 %v2009_v34 }
 0xc13   :  { %8047 = vmatmul.mubr.msk.f32.vlgmr.msra.gmra.mxu0 %vm94_vm0, %v2001_v31  ;;  %8058 = vmatprep.subr.mxu0 %v636_v19 }
 0xc14   :  { %v8722_v21 = vpop.eup %8721  ;;  %8049 = vmatprep.mubr.msk.f32.mxu0 %vm94_vm0, %v2002_v37  ;;  %8059 = vmatpush3.msra.mxu0 %v636_v19 }
 0xc15   :  { %v2004_v55 = vmul.f32 %v8722_v21, %v9949_v49  ;;  %v8724_v63 = vpop.eup %8723 }
 0xc16   :  { %v2005_v12 = vmul.f32 %v8724_v63, %v9939_v53 }
 0xc17   :  { %8050 = vmatmul.mubr.msk.f32.gmra.mxu0 %vm94_vm0, %v2003_v58 }
 0xc18   :  { %v8726_v40 = vpop.eup %8725  ;;  %8052 = vmatprep.mubr.msk.f32.mxu0 %vm94_vm0, %v2004_v55 }
 0xc19   :  { %v2006_v29 = vmul.f32 %v8726_v40, %v9955_v3  ;;  %v8728_v1 = vpop.eup %8727  ;;  %v10094_v40 = vpop.f32.mrf.mxu0 }
 0xc1a   :  { %v2007_v45 = vmul.f32 %v8728_v1, %v9947_v61 }
 0xc1b   :  { %8053 = vmatmul.mubr.msk.f32.gmra.mxu0 %vm94_vm0, %v2005_v12  ;;  %v10096_v12 = vpop.f32.mrf.mxu0 }
 0xc1c   :  { %8055 = vmatprep.mubr.msk.f32.mxu0 %vm94_vm0, %v2006_v29 }
 0xc1d   :  { %v10098_v29 = vpop.f32.mrf.mxu0 }
 0xc1f   :  { %8056 = vmatmul.mubr.msk.f32.gmra.mxu0 %vm94_vm0, %v2007_v45  ;;  %v10100_v1 = vpop.f32.mrf.mxu0 }
 0xc21   :  { %v10102_v45 = vpop.f32.mrf.mxu0 }
 0xc3a   :  { %v2481_v0 = vpop.xlane.xlu1 %2480 }
 0xc3b   :  { %v2501_v49 = vsub.f32 %v9966_v10, %v2481_v0  ;;  %v10104_v0 = vpop.f32.mrf.mxu0 }
 0xc3d   :  { %v2510_v57 = vmul.f32 1.442695, %v2501_v49 }
 0xc3e   :  { %v2493_v53 = vpop.xlane.xlu1 %2492 }
 0xc3f   :  { %8729 = vpow2.f32 %v2510_v57  ;;  %v2478_v46 = vpop.xlane.xlu0 %2477  ;;  %v2505_v38 = vsub.f32 %v9974_v48, %v2493_v53  ;;  %v10106_v57 = vpop.f32.mrf.mxu0 }
 0xc40   :  { %v2500_v54 = vsub.f32 %v9978_v39, %v2478_v46 }
 0xc41   :  { %v2518_v10 = vmul.f32 1.442695, %v2505_v38 }
 0xc42   :  { %v2508_v50 = vmul.f32 1.442695, %v2500_v54  ;;  %v2499_v61 = vpop.xlane.xlu1 %2498 }
 0xc43   :  { %v2484_v3 = vpop.xlane.xlu0 %2483  ;;  %v2507_v22 = vsub.f32 %v9986_v30, %v2499_v61 }
 0xc44   :  { %8731 = vpow2.f32 %v2508_v50  ;;  %v2502_v43 = vsub.f32 %v9990_v56, %v2484_v3 }
 0xc45   :  { %v2522_v48 = vmul.f32 1.442695, %v2507_v22 }
 0xc46   :  { %v2512_v8 = vmul.f32 1.442695, %v2502_v43  ;;  %v2577_v49 = vpop.permute.xlu1 %2576 }
 0xc47   :  { %v2487_v36 = vpop.xlane.xlu0 %2486 }
 0xc48   :  { %8733 = vpow2.f32 %v2512_v8  ;;  %v2503_v33 = vsub.f32 %v9999_v2, %v2487_v36 }
 0xc4a   :  { %v2514_v24 = vmul.f32 1.442695, %v2503_v33  ;;  %v2575_v46 = vpop.permute.xlu1 %2574 }
 0xc4b   :  { %v2490_v5 = vpop.xlane.xlu0 %2489 }
 0xc4c   :  { %v10056_v39 = vpop.eup %8729  ;;  %8735 = vpow2.f32 %v2514_v24  ;;  %v2504_v26 = vsub.f32 %v10006_v27, %v2490_v5 }
 0xc4d   :  { %v2527_v56 = vsel %vm94_vm0, %v10056_v39, 0.0  ;;  %8737 = vpow2.f32 %v2518_v10 }
 0xc4e   :  { %v2516_v28 = vmul.f32 1.442695, %v2504_v26  ;;  %2528 = vadd.xlane.f32.xlu1 %v2527_v56  ;;  %v2573_v53 = vpop.permute.xlu1 %2572 }
 0xc4f   :  { %v2496_v11 = vpop.xlane.xlu0 %2495 }
 0xc50   :  { %8739 = vpow2.f32 %v2516_v28  ;;  %v2506_v2 = vsub.f32 %v10013_v41, %v2496_v11 }
 0xc51   :  { %v10062_v20 = vpop.eup %8731  ;;  %8741 = vpow2.f32 %v2522_v48 }
 0xc52   :  { %v2520_v30 = vmul.f32 1.442695, %v2506_v2  ;;  %v2524_v23 = vsel %vm94_vm0, %v10062_v20, 0.0  ;;  %v2569_v8 = vpop.permute.xlu1 %2568 }
 0xc53   :  { %2525 = vadd.xlane.f32.xlu0 %v2524_v23  ;;  %v2579_v27 = vpop.permute.xlu0 %2578 }
 0xc54   :  { %8743 = vpow2.f32 %v2520_v30  ;;  %8100 = vmatprep.subr.mxu0 %v2579_v27 }
 0xc55   :  { %v10066_v35 = vpop.eup %8733 }
 0xc56   :  { %v2530_v44 = vsel %vm94_vm0, %v10066_v35, 0.0 }
 0xc57   :  { %2531 = vadd.xlane.f32.xlu0 %v2530_v44  ;;  %v2571_v3 = vpop.permute.xlu0 %2570 }
 0xc59   :  { %v10070_v34 = vpop.eup %8735 }
 0xc5a   :  { %v2533_v41 = vsel %vm94_vm0, %v10070_v34, 0.0  ;;  %v10074_v19 = vpop.eup %8737 }
 0xc5b   :  { %2534 = vadd.xlane.f32.xlu1 %v2533_v41  ;;  %v2539_v37 = vsel %vm94_vm0, %v10074_v19, 0.0 }
 0xc5d   :  { %v10076_v31 = vpop.eup %8739 }
 0xc5e   :  { %v2536_v42 = vsel %vm94_vm0, %v10076_v31, 0.0  ;;  %v10082_v21 = vpop.eup %8741 }
 0xc5f   :  { %2540 = vadd.xlane.f32.xlu1 %v2539_v37  ;;  %2537 = vadd.xlane.f32.xlu0 %v2536_v42  ;;  %v2545_v55 = vsel %vm94_vm0, %v10082_v21, 0.0 }
 0xc61   :  { %v10084_v58 = vpop.eup %8743 }
 0xc62   :  { %v2542_v63 = vsel %vm94_vm0, %v10084_v58, 0.0 }
 0xc63   :  { %2546 = vadd.xlane.f32.xlu1 %v2545_v55  ;;  %2543 = vadd.xlane.f32.xlu0 %v2542_v63 }
 0xc74   :  { %2564 = vrot.lane.b32.xlu1 %v9381_v13, %s11841_s5  ;;  %v10108_v13 = vpop.f32.mrf.mxu0 }
 0xc79   :  { %2566 = vrot.lane.b32.xlu0 %v9402_v25, %s11841_s5 }
 0xcd3   :  { %v8048_v54 = vpop.f32.mrf.mxu0 }
 0xcd5   :  { %v2122_v25 = vpop.f32.mrf.mxu0 }
 0xcd6   :  { %8060 = vmatprep.mubr.msk.f32.mxu0 %vm678_vm2, %v2122_v25 }
 0xcd7   :  { %v8051_v50 = vpop.f32.mrf.mxu0  ;;  %8061 = vmatmul.mubr.msk.f32.vlgmr.msra.gmra.mxu0 %vm678_vm2, %v8048_v54  ;;  %v2529_v10 = vpop.xlane.xlu1 %2528 }
 0xcd8   :  { %8101 = vmatpush3.msra.mxu0 %v2579_v27 }
 0xcd9   :  { %8102 = vmatprep.subr.mxu0 %v2577_v49  ;;  %v2132_v43 = vpop.f32.mrf.mxu0 }
 0xcda   :  { %8103 = vmatpush3.msra.mxu0 %v2577_v49  ;;  %8063 = vmatprep.mubr.msk.f32.mxu0 %vm678_vm2, %v2132_v43 }
 0xcdb   :  { %8104 = vmatprep.subr.mxu0 %v2575_v46  ;;  %v8054_v38 = vpop.f32.mrf.mxu0  ;;  %8064 = vmatmul.mubr.msk.f32.gmra.mxu0 %vm678_vm2, %v8051_v50 }
 0xcdc   :  { %8105 = vmatpush3.msra.mxu0 %v2575_v46  ;;  %v2526_v61 = vpop.xlane.xlu0 %2525 }
 0xcdd   :  { %8106 = vmatprep.subr.mxu0 %v2573_v53  ;;  %8745 = vrcp.f32 %v2526_v61  ;;  %v2142_v36 = vpop.f32.mrf.mxu0 }
 0xcde   :  { %8107 = vmatpush3.msra.mxu0 %v2573_v53  ;;  %8066 = vmatprep.mubr.msk.f32.mxu0 %vm678_vm2, %v2142_v36  ;;  %8747 = vrcp.f32 %v2529_v10  ;;  %v1729_v36 = vadd.f32 %v10102_v45, %v9875_v15 }
 0xcdf   :  { %8108 = vmatprep.subr.mxu0 %v2571_v3  ;;  %v8057_v33 = vpop.f32.mrf.mxu0  ;;  %8067 = vmatmul.mubr.msk.f32.gmra.mxu0 %vm678_vm2, %v8054_v38  ;;  %v1714_v38 = vadd.f32 %v10100_v1, %v9873_v9  ;;  %v1734_v9 = vadd.f32 %v10108_v13, %v9881_v32 }
 0xce0   :  { %8109 = vmatpush3.msra.mxu0 %v2571_v3  ;;  %v2532_v22 = vpop.xlane.xlu0 %2531 }
 0xce1   :  { %8110 = vmatprep.subr.mxu0 %v2569_v8  ;;  %v2152_v24 = vpop.f32.mrf.mxu0  ;;  %8749 = vrcp.f32 %v2532_v22 }
 0xce2   :  { %8111 = vmatpush3.msra.mxu0 %v2569_v8  ;;  %8069 = vmatprep.mubr.msk.f32.mxu0 %vm678_vm2, %v2152_v24 }
 0xce3   :  { %8070 = vmatmul.mubr.msk.f32.gmra.mxu0 %vm678_vm2, %v8057_v33 }
 0xce4   :  { %v2535_v5 = vpop.xlane.xlu1 %2534 }
 0xce5   :  { %8751 = vrcp.f32 %v2535_v5 }
 0xce8   :  { %v2541_v26 = vpop.xlane.xlu1 %2540  ;;  %v2538_v56 = vpop.xlane.xlu0 %2537 }
 0xce9   :  { %8753 = vrcp.f32 %v2538_v56  ;;  %v7118_v56 = vld [vmem:[%s11817_s11] ss:$0 sm:$0xff] }
 0xcea   :  { %v8746_v48 = vpop.eup %8745  ;;  %8755 = vrcp.f32 %v2541_v26 }
 0xceb   :  { %v2556_v28 = vmul.f32 %v8746_v48, %v10062_v20  ;;  %v8748_v30 = vpop.eup %8747 }
 0xcec   :  { %v2547_v11 = vpop.xlane.xlu1 %2546  ;;  %v2544_v2 = vpop.xlane.xlu0 %2543  ;;  %v2557_v41 = vmul.f32 %v8748_v30, %v10056_v39 }
 0xced   :  { %8116 = vmatprep.mubr.msk.f32.mxu0 %vm94_vm0, %v2556_v28  ;;  %8757 = vrcp.f32 %v2544_v2 }
 0xcee   :  { %8759 = vrcp.f32 %v2547_v11  ;;  %v8750_v27 = vpop.eup %8749 }
 0xcef   :  { %v2558_v42 = vmul.f32 %v8750_v27, %v10066_v35 }
 0xcf0   :  { %v2567_v23 = vpop.permute.xlu0 %2566  ;;  %v2565_v44 = vpop.permute.xlu1 %2564 }
 0xcf1   :  { %8112 = vmatprep.subr.mxu0 %v2567_v23 }
 0xcf2   :  { %8113 = vmatpush3.msra.mxu0 %v2567_v23  ;;  %v8752_v37 = vpop.eup %8751 }
 0xcf3   :  { %8114 = vmatprep.subr.mxu0 %v2565_v44  ;;  %v2559_v55 = vmul.f32 %v8752_v37, %v10070_v34  ;;  %v637_v34 = vld [vmem:[%s11816_s10 + $0x18] sm:$0xff] }
 0xcf4   :  { %8115 = vmatpush3.msra.mxu0 %v2565_v44 }
 0xcf5   :  { %8117 = vmatmul.mubr.msk.f32.vlgmr.msra.gmra.mxu0 %vm94_vm0, %v2557_v41  ;;  %8128 = vmatprep.subr.mxu0 %v637_v34 }
 0xcf6   :  { %8119 = vmatprep.mubr.msk.f32.mxu0 %vm94_vm0, %v2558_v42  ;;  %v8754_v20 = vpop.eup %8753  ;;  %8129 = vmatpush3.msra.mxu0 %v637_v34 }
 0xcf7   :  { %v8756_v63 = vpop.eup %8755  ;;  %v2560_v49 = vmul.f32 %v8754_v20, %v10076_v31 }
 0xcf8   :  { %v2561_v46 = vmul.f32 %v8756_v63, %v10074_v19  ;;  %v1709_v19 = vadd.f32 %v10094_v40, %v9867_v59 }
 0xcf9   :  { %8120 = vmatmul.mubr.msk.f32.gmra.mxu0 %vm94_vm0, %v2559_v55 }
 0xcfa   :  { %8122 = vmatprep.mubr.msk.f32.mxu0 %vm94_vm0, %v2560_v49  ;;  %v8758_v39 = vpop.eup %8757 }
 0xcfb   :  { %v8760_v54 = vpop.eup %8759  ;;  %v2562_v35 = vmul.f32 %v8758_v39, %v10084_v58  ;;  %v1704_v58 = vadd.f32 %v10096_v12, %v9869_v52  ;;  %v1724_v52 = vadd.f32 %v10104_v0, %v9877_v16 }
 0xcfc   :  { %v2563_v25 = vmul.f32 %v8760_v54, %v10082_v21  ;;  %v1719_v21 = vadd.f32 %v10098_v29, %v9871_v47  ;;  %v1739_v47 = vadd.f32 %v10106_v57, %v9879_v17 }
 0xcfd   :  { %8123 = vmatmul.mubr.msk.f32.gmra.mxu0 %vm94_vm0, %v2561_v46 }
 0xcfe   :  { %8125 = vmatprep.mubr.msk.f32.mxu0 %vm94_vm0, %v2562_v35 }
 0xd01   :  { %8126 = vmatmul.mubr.msk.f32.gmra.mxu0 %vm94_vm0, %v2563_v25 }
 0xd97   :  { %v8062_v31 = vpop.f32.mrf.mxu0 }
 0xd98   :  { %v2291_v53 = vadd.f32 %v8062_v31, %v1709_v19 }
 0xd99   :  { %v2251_v50 = vpop.f32.mrf.mxu0 }
 0xd9a   :  { %v2290_v3 = vadd.f32 %v2251_v50, %v1704_v58 }
 0xd9b   :  { %v8065_v43 = vpop.f32.mrf.mxu0 }
 0xd9c   :  { %v2293_v8 = vadd.f32 %v8065_v43, %v1719_v21 }
 0xd9d   :  { %v2261_v61 = vpop.f32.mrf.mxu0 }
 0xd9e   :  { %v2292_v59 = vadd.f32 %v2261_v61, %v1714_v38 }
 0xd9f   :  { %v8068_v40 = vpop.f32.mrf.mxu0 }
 0xda0   :  { %v2295_v12 = vadd.f32 %v8068_v40, %v1729_v36 }
 0xda1   :  { %v2271_v33 = vpop.f32.mrf.mxu0 }
 0xda2   :  { %v2294_v29 = vadd.f32 %v2271_v33, %v1724_v52 }
 0xda3   :  { %v8071_v10 = vpop.f32.mrf.mxu0 }
 0xda4   :  { %v2297_v1 = vadd.f32 %v8071_v10, %v1739_v47 }
 0xda5   :  { %v2281_v22 = vpop.f32.mrf.mxu0 }
 0xda6   :  { %v2296_v24 = vadd.f32 %v2281_v22, %v1734_v9 }
 0xdb5   :  { %v8118_v5 = vpop.f32.mrf.mxu0 }
 0xdb7   :  { %v2678_v15 = vpop.f32.mrf.mxu0 }
 0xdb8   :  { %8130 = vmatprep.mubr.msk.f32.mxu0 %vm678_vm2, %v2678_v15 }
 0xdb9   :  { %v8121_v45 = vpop.f32.mrf.mxu0  ;;  %8131 = vmatmul.mubr.msk.f32.vlgmr.msra.gmra.mxu0 %vm678_vm2, %v8118_v5 }
 0xdbb   :  { %v2688_v16 = vpop.f32.mrf.mxu0 }
 0xdbc   :  { %8133 = vmatprep.mubr.msk.f32.mxu0 %vm678_vm2, %v2688_v16 }
 0xdbd   :  { %v8124_v0 = vpop.f32.mrf.mxu0  ;;  %8134 = vmatmul.mubr.msk.f32.gmra.mxu0 %vm678_vm2, %v8121_v45 }
 0xdbf   :  { %v2698_v17 = vpop.f32.mrf.mxu0 }
 0xdc0   :  { %8136 = vmatprep.mubr.msk.f32.mxu0 %vm678_vm2, %v2698_v17 }
 0xdc1   :  { %v8127_v32 = vpop.f32.mrf.mxu0  ;;  %8137 = vmatmul.mubr.msk.f32.gmra.mxu0 %vm678_vm2, %v8124_v0 }
 0xdc3   :  { %v2708_v57 = vpop.f32.mrf.mxu0 }
 0xdc4   :  { %8139 = vmatprep.mubr.msk.f32.mxu0 %vm678_vm2, %v2708_v57 }
 0xdc5   :  { %8140 = vmatmul.mubr.msk.f32.gmra.mxu0 %vm678_vm2, %v8127_v32 }
 0xe79   :  { %v8132_v13 = vpop.f32.mrf.mxu0 }
 0xe7a   :  { %v2847_v26 = vadd.f32 %v8132_v13, %v2291_v53 }
 0xe7b   :  { %v2807_v48 = vpop.f32.mrf.mxu0 }
 0xe7c   :  { %v2855_v28 = vadd.f32 %v2847_v26, %v9263_v60  ;;  %v2846_v11 = vadd.f32 %v2807_v48, %v2290_v3 }
 0xe7d   :  { %v8135_v2 = vpop.f32.mrf.mxu0 }
 0xe7e   :  { %v10165_v30 = vadd.f32 %v7118_v56, %v2855_v28  ;;  %v2854_v23 = vadd.f32 %v2846_v11, %v9257_v51  ;;  %v2849_v27 = vadd.f32 %v8135_v2, %v2293_v8 }
 0xe7f   :  { %v2817_v44 = vpop.f32.mrf.mxu0 }
 0xe80   :  { %v10168_v41 = vadd.f32 %v7118_v56, %v2854_v23  ;;  %v2857_v37 = vadd.f32 %v2849_v27, %v9273_v6  ;;  %v2848_v42 = vadd.f32 %v2817_v44, %v2292_v59  ;;  %v2882_v20 = vsel %vm226_vm1, %v10165_v30, 0.0 }
 0xe81   :  { %2883 = vadd.xlane.f32.xlu1 %v2882_v20  ;;  %v8138_v55 = vpop.f32.mrf.mxu0 }
 0xe82   :  { %v10173_v63 = vadd.f32 %v7118_v56, %v2857_v37  ;;  %v2856_v60 = vadd.f32 %v2848_v42, %v9266_v62  ;;  %v2851_v49 = vadd.f32 %v8138_v55, %v2295_v12  ;;  %v2879_v51 = vsel %vm226_vm1, %v10168_v41, 0.0 }
 0xe83   :  { %2880 = vadd.xlane.f32.xlu0 %v2879_v51  ;;  %v2827_v39 = vpop.f32.mrf.mxu0 }
 0xe84   :  { %v2859_v46 = vadd.f32 %v2851_v49, %v9283_v14  ;;  %v2850_v54 = vadd.f32 %v2827_v39, %v2294_v29  ;;  %v10179_v6 = vadd.f32 %v7118_v56, %v2856_v60  ;;  %v2888_v62 = vsel %vm226_vm1, %v10173_v63, 0.0  ;;  %v3014_v39 = vld [vmem:[%s11818_s14 + $0x18] sm:$0xff] }
 0xe85   :  { %v8141_v35 = vpop.f32.mrf.mxu0  ;;  %8142 = vmatprep.subr.mxu1 %v3014_v39 }
 0xe86   :  { %v10181_v25 = vadd.f32 %v7118_v56, %v2859_v46  ;;  %v2858_v34 = vadd.f32 %v2850_v54, %v9276_v7  ;;  %v2853_v19 = vadd.f32 %v8141_v35, %v2297_v1  ;;  %v2885_v7 = vsel %vm226_vm1, %v10179_v6, 0.0  ;;  %8143 = vmatpush3.msra.mxu1 %v3014_v39  ;;  %v3013_v46 = vld [vmem:[%s11818_s14 + $0x10] sm:$0xff]  ;;  %v3012_v54 = vld [vmem:[%s11818_s14 + $0x8] sm:$0xff]  ;;  %v3011_v35 = vld [vmem:[%s11818_s14] sm:$0xff] }
 0xe87   :  { %2889 = vadd.xlane.f32.xlu0 %v2888_v62  ;;  %v2837_v31 = vpop.f32.mrf.mxu0  ;;  %8144 = vmatprep.subr.mxu1 %v3013_v46 }
 0xe88   :  { %v2861_v58 = vadd.f32 %v2853_v19, %v9292_v18  ;;  %v2852_v53 = vadd.f32 %v2837_v31, %v2296_v24  ;;  %v2894_v14 = vsel %vm226_vm1, %v10181_v25, 0.0  ;;  %v10189_v50 = vadd.f32 %v7118_v56, %v2858_v34  ;;  %8145 = vmatpush3.msra.mxu1 %v3013_v46 }
 0xe89   :  { %2895 = vadd.xlane.f32.xlu1 %v2894_v14  ;;  %8146 = vmatprep.subr.mxu1 %v3012_v54 }
 0xe8a   :  { %v10191_v21 = vadd.f32 %v7118_v56, %v2861_v58  ;;  %v2860_v3 = vadd.f32 %v2852_v53, %v9286_v4  ;;  %v2891_v38 = vsel %vm226_vm1, %v10189_v50, 0.0  ;;  %8147 = vmatpush3.msra.mxu1 %v3012_v54 }
 0xe8b   :  { %2886 = vadd.xlane.f32.xlu0 %v2885_v7  ;;  %8148 = vmatprep.subr.mxu1 %v3011_v35 }
 0xe8c   :  { %v2900_v43 = vsel %vm226_vm1, %v10191_v21, 0.0  ;;  %v10198_v18 = vadd.f32 %v7118_v56, %v2860_v3  ;;  %8149 = vmatpush3.msra.mxu1 %v3011_v35 }
 0xe8d   :  { %2901 = vadd.xlane.f32.xlu1 %v2900_v43 }
 0xe8e   :  { %v2897_v8 = vsel %vm226_vm1, %v10198_v18, 0.0 }
 0xe8f   :  { %2892 = vadd.xlane.f32.xlu0 %v2891_v38 }
 0xe93   :  { %2898 = vadd.xlane.f32.xlu0 %v2897_v8 }
 0xf0a   :  { %v2884_v61 = vpop.xlane.xlu1 %2883 }
 0xf0b   :  { %v2904_v4 = vmul.f32 0.03125, %v2884_v61 }
 0xf0c   :  { %v2881_v36 = vpop.xlane.xlu0 %2880 }
 0xf0d   :  { %v10205_v59 = vsub.f32 %v10165_v30, %v2904_v4  ;;  %v2903_v40 = vmul.f32 0.03125, %v2881_v36 }
 0xf0f   :  { %v10208_v52 = vsub.f32 %v10168_v41, %v2903_v40  ;;  %v2920_v12 = vmul.f32 %v10205_v59, %v10205_v59 }
 0xf10   :  { %v2890_v33 = vpop.xlane.xlu0 %2889 }
 0xf11   :  { %v2906_v47 = vmul.f32 0.03125, %v2890_v33  ;;  %v2930_v29 = vsel %vm226_vm1, %v2920_v12, 0.0  ;;  %v2919_v10 = vmul.f32 %v10208_v52, %v10208_v52 }
 0xf12   :  { %v2896_v9 = vpop.xlane.xlu1 %2895  ;;  %2931 = vadd.xlane.f32.xlu1 %v2930_v29 }
 0xf13   :  { %v10216_v1 = vsub.f32 %v10173_v63, %v2906_v47  ;;  %v2908_v22 = vmul.f32 0.03125, %v2896_v9  ;;  %v2927_v24 = vsel %vm226_vm1, %v2919_v10, 0.0 }
 0xf14   :  { %v2887_v5 = vpop.xlane.xlu0 %2886  ;;  %2928 = vadd.xlane.f32.xlu0 %v2927_v24  ;;  %v7119_v24 = vld [vmem:[%s11819_s12] ss:$0 sm:$0xff] }
 0xf15   :  { %v10220_v15 = vsub.f32 %v10181_v25, %v2908_v22  ;;  %v2905_v45 = vmul.f32 0.03125, %v2887_v5  ;;  %v2922_v16 = vmul.f32 %v10216_v1, %v10216_v1 }
 0xf16   :  { %v2902_v0 = vpop.xlane.xlu1 %2901 }
 0xf17   :  { %v10225_v17 = vsub.f32 %v10179_v6, %v2905_v45  ;;  %v2910_v32 = vmul.f32 0.03125, %v2902_v0  ;;  %v2936_v57 = vsel %vm226_vm1, %v2922_v16, 0.0  ;;  %v2924_v13 = vmul.f32 %v10220_v15, %v10220_v15 }
 0xf18   :  { %v2893_v26 = vpop.xlane.xlu0 %2892  ;;  %2937 = vadd.xlane.f32.xlu1 %v2936_v57 }
 0xf19   :  { %v10231_v56 = vsub.f32 %v10191_v21, %v2910_v32  ;;  %v2907_v48 = vmul.f32 0.03125, %v2893_v26  ;;  %v2921_v28 = vmul.f32 %v10225_v17, %v10225_v17  ;;  %v2942_v2 = vsel %vm226_vm1, %v2924_v13, 0.0  ;;  %v7120_v13 = vld [vmem:[%s11820_s13] ss:$0 sm:$0xff] }
 0xf1b   :  { %v10236_v11 = vsub.f32 %v10189_v50, %v2907_v48  ;;  %v2933_v23 = vsel %vm226_vm1, %v2921_v28, 0.0  ;;  %v2926_v27 = vmul.f32 %v10231_v56, %v10231_v56 }
 0xf1c   :  { %2943 = vadd.xlane.f32.xlu1 %v2942_v2  ;;  %2934 = vadd.xlane.f32.xlu0 %v2933_v23  ;;  %v2899_v44 = vpop.xlane.xlu0 %2898 }
 0xf1d   :  { %v2909_v37 = vmul.f32 0.03125, %v2899_v44  ;;  %v2923_v42 = vmul.f32 %v10236_v11, %v10236_v11  ;;  %v2948_v55 = vsel %vm226_vm1, %v2926_v27, 0.0 }
 0xf1f   :  { %v10245_v20 = vsub.f32 %v10198_v18, %v2909_v37  ;;  %v2939_v60 = vsel %vm226_vm1, %v2923_v42, 0.0 }
 0xf20   :  { %2949 = vadd.xlane.f32.xlu1 %v2948_v55  ;;  %2940 = vadd.xlane.f32.xlu0 %v2939_v60 }
 0xf21   :  { %v2925_v49 = vmul.f32 %v10245_v20, %v10245_v20 }
 0xf23   :  { %v2945_v51 = vsel %vm226_vm1, %v2925_v49, 0.0 }
 0xf24   :  { %2946 = vadd.xlane.f32.xlu0 %v2945_v51 }
 0xf9b   :  { %v2932_v34 = vpop.xlane.xlu1 %2931 }
 0xf9c   :  { %v2952_v19 = vmul.f32 0.03125, %v2932_v34 }
 0xf9d   :  { %v2929_v62 = vpop.xlane.xlu0 %2928 }
 0xf9e   :  { %v2960_v31 = vadd.f32 1e-06, %v2952_v19  ;;  %v2951_v58 = vmul.f32 0.03125, %v2929_v62 }
 0xfa0   :  { %8761 = vrsqrt.f32 %v2960_v31  ;;  %v2959_v53 = vadd.f32 1e-06, %v2951_v58  ;;  %v3382_v31 = vld [vmem:[%s11821_s16 + $0x78] sm:$0xff]  ;;  %v3380_v58 = vld [vmem:[%s11821_s16 + $0x68] sm:$0xff] }
 0xfa1   :  { %v2938_v14 = vpop.xlane.xlu1 %2937  ;;  %8162 = vmatprep.subr.mxu0 %v3382_v31 }
 0xfa2   :  { %8763 = vrsqrt.f32 %v2959_v53  ;;  %v2954_v3 = vmul.f32 0.03125, %v2938_v14  ;;  %8163 = vmatpush3.msra.mxu0 %v3382_v31  ;;  %v3379_v53 = vld [vmem:[%s11821_s16 + $0x60] sm:$0xff]  ;;  %v3378_v14 = vld [vmem:[%s11821_s16 + $0x58] sm:$0xff] }
 0xfa4   :  { %v2962_v7 = vadd.f32 1e-06, %v2954_v3  ;;  %v3377_v3 = vld [vmem:[%s11821_s16 + $0x50] sm:$0xff] }
 0xfa5   :  { %v2944_v43 = vpop.xlane.xlu1 %2943  ;;  %v2935_v38 = vpop.xlane.xlu0 %2934 }
 0xfa6   :  { %8765 = vrsqrt.f32 %v2962_v7  ;;  %v2956_v8 = vmul.f32 0.03125, %v2944_v43  ;;  %v2953_v61 = vmul.f32 0.03125, %v2935_v38  ;;  %v3376_v7 = vld [vmem:[%s11821_s16 + $0x48] sm:$0xff]  ;;  %v3375_v43 = vld [vmem:[%s11821_s16 + $0x40] sm:$0xff]  ;;  %v3374_v38 = vld [vmem:[%s11821_s16 + $0x38] sm:$0xff] }
 0xfa8   :  { %v2964_v4 = vadd.f32 1e-06, %v2956_v8  ;;  %v2961_v36 = vadd.f32 1e-06, %v2953_v61  ;;  %v3373_v8 = vld [vmem:[%s11821_s16 + $0x30] sm:$0xff]  ;;  %v3372_v61 = vld [vmem:[%s11821_s16 + $0x28] sm:$0xff] }
 0xfa9   :  { %v2950_v40 = vpop.xlane.xlu1 %2949  ;;  %v2941_v12 = vpop.xlane.xlu0 %2940 }
 0xfaa   :  { %8767 = vrsqrt.f32 %v2964_v4  ;;  %v2958_v33 = vmul.f32 0.03125, %v2950_v40  ;;  %v2955_v47 = vmul.f32 0.03125, %v2941_v12  ;;  %v3371_v4 = vld [vmem:[%s11821_s16 + $0x20] sm:$0xff]  ;;  %v3369_v40 = vld [vmem:[%s11821_s16 + $0x10] sm:$0xff]  ;;  %v3368_v12 = vld [vmem:[%s11821_s16 + $0x8] sm:$0xff] }
 0xfab   :  { %8769 = vrsqrt.f32 %v2961_v36  ;;  %v3370_v36 = vld [vmem:[%s11821_s16 + $0x18] sm:$0xff] }
 0xfac   :  { %v2966_v29 = vadd.f32 1e-06, %v2958_v33  ;;  %v2963_v10 = vadd.f32 1e-06, %v2955_v47  ;;  %v3367_v33 = vld [vmem:[%s11821_s16] sm:$0xff] }
 0xfad   :  { %v8762_v9 = vpop.eup %8761  ;;  %v2947_v22 = vpop.xlane.xlu0 %2946  ;;  %v7121_v47 = vld [vmem:[%s11822_s15] ss:$0 sm:$0xff] }
 0xfae   :  { %v2976_v5 = vmul.f32 %v8762_v9, %v10205_v59  ;;  %8771 = vrsqrt.f32 %v2966_v29  ;;  %v2957_v45 = vmul.f32 0.03125, %v2947_v22 }
 0xfaf   :  { %v8764_v16 = vpop.eup %8763  ;;  %8773 = vrsqrt.f32 %v2963_v10 }
 0xfb0   :  { %v2965_v0 = vadd.f32 1e-06, %v2957_v45  ;;  %v2975_v32 = vmul.f32 %v8764_v16, %v10208_v52  ;;  %v2990_v57 = vmul.f32 %v7119_v24, %v2976_v5 }
 0xfb2   :  { %8775 = vrsqrt.f32 %v2965_v0  ;;  %v2989_v26 = vmul.f32 %v7119_v24, %v2975_v32  ;;  %v3004_v2 = vadd.f32 %v7120_v13, %v2990_v57 }
 0xfb3   :  { %v8766_v48 = vpop.eup %8765 }
 0xfb4   :  { %v3003_v28 = vadd.f32 %v7120_v13, %v2989_v26  ;;  %v2978_v59 = vmul.f32 %v8766_v48, %v10216_v1 }
 0xfb6   :  { %8150 = vmatprep.mubr.msk.f32.mxu1 %vm226_vm1, %v3003_v28  ;;  %v2992_v44 = vmul.f32 %v7119_v24, %v2978_v59 }
 0xfb7   :  { %v8768_v23 = vpop.eup %8767  ;;  %8151 = vmatmul.mubr.msk.f32.vlgmr.msra.gmra.mxu1 %vm226_vm1, %v3004_v2 }
 0xfb8   :  { %v8770_v27 = vpop.eup %8769  ;;  %v2980_v37 = vmul.f32 %v8768_v23, %v10220_v15  ;;  %v3006_v39 = vadd.f32 %v7120_v13, %v2992_v44 }
 0xfb9   :  { %v2977_v52 = vmul.f32 %v8770_v27, %v10225_v17 }
 0xfba   :  { %v2994_v46 = vmul.f32 %v7119_v24, %v2980_v37 }
 0xfbb   :  { %v8772_v42 = vpop.eup %8771  ;;  %v2991_v55 = vmul.f32 %v7119_v24, %v2977_v52 }
 0xfbc   :  { %v8774_v60 = vpop.eup %8773  ;;  %v2982_v54 = vmul.f32 %v8772_v42, %v10231_v56  ;;  %v3008_v15 = vadd.f32 %v7120_v13, %v2994_v46 }
 0xfbd   :  { %v3005_v49 = vadd.f32 %v7120_v13, %v2991_v55  ;;  %v2979_v51 = vmul.f32 %v8774_v60, %v10236_v11 }
 0xfbe   :  { %v2996_v62 = vmul.f32 %v7119_v24, %v2982_v54 }
 0xfbf   :  { %v8776_v1 = vpop.eup %8775  ;;  %8153 = vmatprep.mubr.msk.f32.mxu1 %vm226_vm1, %v3005_v49  ;;  %v2993_v35 = vmul.f32 %v7119_v24, %v2979_v51 }
 0xfc0   :  { %8154 = vmatmul.mubr.msk.f32.gmra.mxu1 %vm226_vm1, %v3006_v39  ;;  %v2981_v17 = vmul.f32 %v8776_v1, %v10245_v20  ;;  %v3010_v56 = vadd.f32 %v7120_v13, %v2996_v62  ;;  %v3381_v20 = vld [vmem:[%s11821_s16 + $0x70] sm:$0xff] }
 0xfc1   :  { %v3007_v34 = vadd.f32 %v7120_v13, %v2993_v35  ;;  %8164 = vmatprep.subr.mxu0 %v3381_v20 }
 0xfc2   :  { %v2995_v19 = vmul.f32 %v7119_v24, %v2981_v17  ;;  %8165 = vmatpush3.msra.mxu0 %v3381_v20 }
 0xfc3   :  { %8156 = vmatprep.mubr.msk.f32.mxu1 %vm226_vm1, %v3007_v34  ;;  %8166 = vmatprep.subr.mxu0 %v3380_v58 }
 0xfc4   :  { %8157 = vmatmul.mubr.msk.f32.gmra.mxu1 %vm226_vm1, %v3008_v15  ;;  %v3009_v11 = vadd.f32 %v7120_v13, %v2995_v19  ;;  %8167 = vmatpush3.msra.mxu0 %v3380_v58 }
 0xfc5   :  { %8168 = vmatprep.subr.mxu0 %v3379_v53 }
 0xfc6   :  { %8159 = vmatprep.mubr.msk.f32.mxu1 %vm226_vm1, %v3009_v11  ;;  %8169 = vmatpush3.msra.mxu0 %v3379_v53 }
 0xfc7   :  { %8170 = vmatprep.subr.mxu0 %v3378_v14 }
 0xfc8   :  { %8160 = vmatmul.mubr.msk.f32.gmra.mxu1 %vm226_vm1, %v3010_v56  ;;  %8171 = vmatpush3.msra.mxu0 %v3378_v14 }
 0xfc9   :  { %8172 = vmatprep.subr.mxu0 %v3377_v3 }
 0xfca   :  { %8173 = vmatpush3.msra.mxu0 %v3377_v3 }
 0xfcb   :  { %8174 = vmatprep.subr.mxu0 %v3376_v7 }
 0xfcc   :  { %8175 = vmatpush3.msra.mxu0 %v3376_v7 }
 0xfcd   :  { %8176 = vmatprep.subr.mxu0 %v3375_v43 }
 0xfce   :  { %8177 = vmatpush3.msra.mxu0 %v3375_v43 }
 0xfcf   :  { %8178 = vmatprep.subr.mxu0 %v3374_v38 }
 0xfd0   :  { %8179 = vmatpush3.msra.mxu0 %v3374_v38 }
 0xfd1   :  { %8180 = vmatprep.subr.mxu0 %v3373_v8 }
 0xfd2   :  { %8181 = vmatpush3.msra.mxu0 %v3373_v8 }
 0xfd3   :  { %8182 = vmatprep.subr.mxu0 %v3372_v61 }
 0xfd4   :  { %8183 = vmatpush3.msra.mxu0 %v3372_v61 }
 0xfd5   :  { %8184 = vmatprep.subr.mxu0 %v3371_v4 }
 0xfd6   :  { %8185 = vmatpush3.msra.mxu0 %v3371_v4 }
 0xfd7   :  { %8186 = vmatprep.subr.mxu0 %v3370_v36 }
 0xfd8   :  { %8187 = vmatpush3.msra.mxu0 %v3370_v36 }
 0xfd9   :  { %8188 = vmatprep.subr.mxu0 %v3369_v40 }
 0xfda   :  { %8189 = vmatpush3.msra.mxu0 %v3369_v40 }
 0xfdb   :  { %8190 = vmatprep.subr.mxu0 %v3368_v12 }
 0xfdc   :  { %8191 = vmatpush3.msra.mxu0 %v3368_v12 }
 0xfdd   :  { %8192 = vmatprep.subr.mxu0 %v3367_v33 }
 0xfde   :  { %8193 = vmatpush3.msra.mxu0 %v3367_v33 }
0x1077   :  { %v8152_v29 = vpop.f32.mrf.mxu1 }
0x1078   :  { %v10337_v10 = vadd.f32 %v8152_v29, %v7121_v47 }
0x1079   :  { %v3112_v9 = vpop.f32.mrf.mxu1 }
0x107a   :  { %v10340_v22 = vmul.f32 0.70710677, %v10337_v10  ;;  %v10342_v24 = vadd.f32 %v7121_v47, %v3112_v9 }
0x107c   :  { %v3168_v5 = vand.u32 2147483647, %v10340_v22  ;;  %v10346_v45 = vmul.f32 0.70710677, %v10342_v24  ;;  %vm3328_vm3 = vcmp.lt.f32.partialorder %v10340_v22, 0.0 }
0x107e   :  { %v3176_v16 = vmul.f32 0.3275911, %v3168_v5  ;;  %v3167_v0 = vand.u32 2147483647, %v10346_v45  ;;  %v3280_v60 = vsub.f32 0.0, %v3168_v5  ;;  %vm3327_vm4 = vcmp.lt.f32.partialorder %v10346_v45, 0.0 }
0x1080   :  { %v3184_v32 = vadd.f32 1.0, %v3176_v16  ;;  %v3175_v57 = vmul.f32 0.3275911, %v3167_v0  ;;  %v8155_v13 = vpop.f32.mrf.mxu1  ;;  %v3279_v1 = vsub.f32 0.0, %v3167_v0  ;;  %v3288_v15 = vmul.f32 %v3280_v60, %v3168_v5 }
0x1081   :  { %v10349_v26 = vadd.f32 %v8155_v13, %v7121_v47 }
0x1082   :  { %8777 = vrcp.f32 %v3184_v32  ;;  %v3183_v48 = vadd.f32 1.0, %v3175_v57  ;;  %v3122_v28 = vpop.f32.mrf.mxu1  ;;  %v3287_v20 = vmul.f32 %v3279_v1, %v3167_v0  ;;  %v3297_v43 = vmul.f32 1.442695, %v3288_v15 }
0x1083   :  { %v10352_v2 = vmul.f32 0.70710677, %v10349_v26  ;;  %v10354_v59 = vadd.f32 %v7121_v47, %v3122_v28 }
0x1084   :  { %v8158_v23 = vpop.f32.mrf.mxu1  ;;  %8779 = vrcp.f32 %v3183_v48  ;;  %v3295_v40 = vmul.f32 1.442695, %v3287_v20 }
0x1085   :  { %v3170_v27 = vand.u32 2147483647, %v10352_v2  ;;  %v10358_v52 = vmul.f32 0.70710677, %v10354_v59  ;;  %v10360_v44 = vadd.f32 %v8158_v23, %v7121_v47  ;;  %vm3330_vm5 = vcmp.lt.f32.partialorder %v10352_v2, 0.0 }
0x1086   :  { %v3132_v37 = vpop.f32.mrf.mxu1 }
0x1087   :  { %v3178_v42 = vmul.f32 0.3275911, %v3170_v27  ;;  %v10362_v55 = vadd.f32 %v7121_v47, %v3132_v37  ;;  %v3169_v49 = vand.u32 2147483647, %v10358_v52  ;;  %v10366_v51 = vmul.f32 0.70710677, %v10360_v44 }
0x1088   :  { %v8161_v54 = vpop.f32.mrf.mxu1  ;;  %v3282_v8 = vsub.f32 0.0, %v3170_v27  ;;  %vm3329_vm6 = vcmp.lt.f32.partialorder %v10358_v52, 0.0 }
0x1089   :  { %v3186_v39 = vadd.f32 1.0, %v3178_v42  ;;  %v10369_v46 = vmul.f32 0.70710677, %v10362_v55  ;;  %v3177_v35 = vmul.f32 0.3275911, %v3169_v49  ;;  %v10373_v56 = vadd.f32 %v8161_v54, %v7121_v47 }
0x108a   :  { %v3172_v17 = vand.u32 2147483647, %v10366_v51  ;;  %v3142_v31 = vpop.f32.mrf.mxu1  ;;  %v3281_v33 = vsub.f32 0.0, %v3169_v49  ;;  %v3290_v16 = vmul.f32 %v3282_v8, %v3170_v27  ;;  %vm3332_vm7 = vcmp.lt.f32.partialorder %v10366_v51, 0.0 }
0x108b   :  { %8781 = vrcp.f32 %v3186_v39  ;;  %v3171_v34 = vand.u32 2147483647, %v10369_v46  ;;  %v3185_v19 = vadd.f32 1.0, %v3177_v35  ;;  %v10378_v3 = vmul.f32 0.70710677, %v10373_v56 }
0x108c   :  { %v3180_v62 = vmul.f32 0.3275911, %v3172_v17  ;;  %v10381_v38 = vadd.f32 %v7121_v47, %v3142_v31  ;;  %v3284_v13 = vsub.f32 0.0, %v3172_v17  ;;  %v3289_v28 = vmul.f32 %v3281_v33, %v3169_v49 }
0x108d   :  { %v3179_v11 = vmul.f32 0.3275911, %v3171_v34  ;;  %8783 = vrcp.f32 %v3185_v19  ;;  %v3174_v61 = vand.u32 2147483647, %v10378_v3  ;;  %v3283_v60 = vsub.f32 0.0, %v3171_v34 }
0x108e   :  { %v3188_v58 = vadd.f32 1.0, %v3180_v62  ;;  %v10387_v12 = vmul.f32 0.70710677, %v10381_v38  ;;  %v3301_v54 = vmul.f32 1.442695, %v3290_v16  ;;  %v3292_v15 = vmul.f32 %v3284_v13, %v3172_v17 }
0x108f   :  { %v10375_v53 = vpop.eup %8777  ;;  %v3187_v14 = vadd.f32 1.0, %v3179_v11  ;;  %v3182_v29 = vmul.f32 0.3275911, %v3174_v61  ;;  %v3286_v19 = vsub.f32 0.0, %v3174_v61  ;;  %v3299_v49 = vmul.f32 1.442695, %v3289_v28 }
0x1090   :  { %v3208_v7 = vmul.f32 1.0614054, %v10375_v53  ;;  %8785 = vrcp.f32 %v3188_v58  ;;  %v3173_v47 = vand.u32 2147483647, %v10387_v12  ;;  %v3291_v58 = vmul.f32 %v3283_v60, %v3171_v34 }
0x1091   :  { %v10384_v4 = vpop.eup %8779  ;;  %8787 = vrcp.f32 %v3187_v14  ;;  %v3190_v0 = vadd.f32 1.0, %v3182_v29  ;;  %v3305_v33 = vmul.f32 1.442695, %v3292_v15  ;;  %v3294_v29 = vmul.f32 %v3286_v19, %v3174_v61 }
0x1092   :  { %v3216_v36 = vadd.f32 -1.4531521, %v3208_v7  ;;  %v3207_v9 = vmul.f32 1.0614054, %v10384_v4  ;;  %8789 = vpow2.f32 %v3297_v43  ;;  %v3181_v48 = vmul.f32 0.3275911, %v3173_v47 }
0x1093   :  { %8791 = vpow2.f32 %v3295_v40  ;;  %v3285_v14 = vsub.f32 0.0, %v3173_v47  ;;  %v10403_v43 = vmul.f32 0.5, %v10342_v24  ;;  %vm3331_vm8 = vcmp.lt.f32.partialorder %v10369_v46, 0.0 }
0x1094   :  { %v3224_v5 = vmul.f32 %v10375_v53, %v3216_v36  ;;  %v3215_v32 = vadd.f32 -1.4531521, %v3207_v9  ;;  %8793 = vrcp.f32 %v3190_v0  ;;  %v3189_v39 = vadd.f32 1.0, %v3181_v48 }
0x1095   :  { %v3156_v51 = vmul.f32 0.5, %v10360_v44  ;;  %vm3334_vm9 = vcmp.lt.f32.partialorder %v10378_v3, 0.0  ;;  %vm3333_vm10 = vcmp.lt.f32.partialorder %v10387_v12, 0.0  ;;  %v3158_v44 = vmul.f32 0.5, %v10373_v56  ;;  %v7130_v3 = vld [vmem:[%s11823_s17] ss:$0 sm:$0xff] }
0x1096   :  { %v3232_v57 = vadd.f32 1.4214138, %v3224_v5  ;;  %v3223_v23 = vmul.f32 %v10384_v4, %v3215_v32  ;;  %8795 = vrcp.f32 %v3189_v39  ;;  %v3303_v32 = vmul.f32 1.442695, %v3291_v58 }
0x1097   :  { %8797 = vpow2.f32 %v3301_v54  ;;  %v3309_v39 = vmul.f32 1.442695, %v3294_v29 }
0x1098   :  { %v10393_v37 = vpop.eup %8781  ;;  %v3240_v42 = vmul.f32 %v10375_v53, %v3232_v57  ;;  %v3231_v1 = vadd.f32 1.4214138, %v3223_v23  ;;  %8799 = vpow2.f32 %v3299_v49  ;;  %v3293_v57 = vmul.f32 %v3285_v14, %v3173_v47 }
0x1099   :  { %v3210_v27 = vmul.f32 1.0614054, %v10393_v37  ;;  %8801 = vpow2.f32 %v3305_v33 }
0x109a   :  { %v3248_v35 = vadd.f32 -0.28449672, %v3240_v42  ;;  %v10397_v62 = vpop.eup %8783  ;;  %v3239_v11 = vmul.f32 %v10384_v4, %v3231_v1  ;;  %8803 = vpow2.f32 %v3303_v32  ;;  %v3307_v49 = vmul.f32 1.442695, %v3293_v57 }
0x109b   :  { %v3218_v31 = vadd.f32 -1.4531521, %v3210_v27  ;;  %v3209_v7 = vmul.f32 1.0614054, %v10397_v62  ;;  %8805 = vpow2.f32 %v3309_v39 }
0x109c   :  { %v3256_v20 = vmul.f32 %v10375_v53, %v3248_v35  ;;  %v3247_v8 = vadd.f32 -0.28449672, %v3239_v11  ;;  %8807 = vpow2.f32 %v3307_v49 }
0x109d   :  { %v3226_v17 = vmul.f32 %v10393_v37, %v3218_v31  ;;  %v10406_v36 = vpop.eup %8785  ;;  %v3217_v9 = vadd.f32 -1.4531521, %v3209_v7 }
0x109e   :  { %v3264_v40 = vadd.f32 0.2548296, %v3256_v20  ;;  %v3255_v34 = vmul.f32 %v10384_v4, %v3247_v8  ;;  %v3212_v16 = vmul.f32 1.0614054, %v10406_v36  ;;  %v10411_v24 = vpop.eup %8787 }
0x109f   :  { %v3234_v5 = vadd.f32 1.4214138, %v3226_v17  ;;  %v3225_v13 = vmul.f32 %v10397_v62, %v3217_v9  ;;  %v8790_v48 = vpop.eup %8789  ;;  %v3211_v23 = vmul.f32 1.0614054, %v10411_v24 }
0x10a0   :  { %v3272_v0 = vmul.f32 %v10375_v53, %v3264_v40  ;;  %v3263_v28 = vadd.f32 0.2548296, %v3255_v34  ;;  %v3220_v42 = vadd.f32 -1.4531521, %v3212_v16  ;;  %v8792_v1 = vpop.eup %8791 }
0x10a1   :  { %v3242_v61 = vmul.f32 %v10393_v37, %v3234_v5  ;;  %v3233_v54 = vadd.f32 1.4214138, %v3225_v13  ;;  %v3219_v47 = vadd.f32 -1.4531521, %v3211_v23  ;;  %v10420_v15 = vpop.eup %8793 }
0x10a2   :  { %v3312_v60 = vmul.f32 %v8790_v48, %v3272_v0  ;;  %v3271_v53 = vmul.f32 %v10384_v4, %v3263_v28  ;;  %v3228_v35 = vmul.f32 %v10406_v36, %v3220_v42  ;;  %v3214_v8 = vmul.f32 1.0614054, %v10420_v15 }
0x10a3   :  { %v3250_v27 = vadd.f32 -0.28449672, %v3242_v61  ;;  %v3241_v11 = vmul.f32 %v10397_v62, %v3233_v54  ;;  %v3227_v58 = vmul.f32 %v10411_v24, %v3219_v47  ;;  %v10426_v17 = vpop.eup %8795 }
0x10a4   :  { %v3320_v19 = vsub.f32 1.0, %v3312_v60  ;;  %v3311_v31 = vmul.f32 %v8792_v1, %v3271_v53  ;;  %v3236_v14 = vadd.f32 1.4214138, %v3228_v35  ;;  %v3213_v16 = vmul.f32 1.0614054, %v10426_v17  ;;  %v8798_v48 = vpop.eup %8797 }
0x10a5   :  { %v3258_v20 = vmul.f32 %v10393_v37, %v3250_v27  ;;  %v3249_v4 = vadd.f32 -0.28449672, %v3241_v11  ;;  %v3235_v29 = vadd.f32 1.4214138, %v3227_v58  ;;  %v3222_v0 = vadd.f32 -1.4531521, %v3214_v8  ;;  %v8800_v1 = vpop.eup %8799 }
0x10a6   :  { %v3336_v7 = vsub.f32 0.0, %v3320_v19  ;;  %v3319_v40 = vsub.f32 1.0, %v3311_v31  ;;  %v3244_v9 = vmul.f32 %v10406_v36, %v3236_v14  ;;  %v3221_v23 = vadd.f32 -1.4531521, %v3213_v16  ;;  %v8802_v14 = vpop.eup %8801 }
0x10a7   :  { %v3266_v33 = vadd.f32 0.2548296, %v3258_v20  ;;  %v3257_v5 = vmul.f32 %v10397_v62, %v3249_v4  ;;  %v3243_v13 = vmul.f32 %v10411_v24, %v3235_v29  ;;  %v3230_v42 = vmul.f32 %v10420_v15, %v3222_v0  ;;  %v8804_v29 = vpop.eup %8803 }
0x10a8   :  { %v3344_v34 = vsel %vm3328_vm3, %v3336_v7, %v3320_v19  ;;  %v3335_v32 = vsub.f32 0.0, %v3319_v40  ;;  %v3252_v61 = vadd.f32 -0.28449672, %v3244_v9  ;;  %v3229_v47 = vmul.f32 %v10426_v17, %v3221_v23 }
0x10a9   :  { %v3274_v57 = vmul.f32 %v10393_v37, %v3266_v33  ;;  %v3265_v28 = vadd.f32 0.2548296, %v3257_v5  ;;  %v3352_v60 = vadd.f32 1.0, %v3344_v34  ;;  %v3251_v54 = vadd.f32 -0.28449672, %v3243_v13 }
0x10aa   :  { %v3343_v22 = vsel %vm3327_vm4, %v3335_v32, %v3319_v40  ;;  %v3260_v37 = vmul.f32 %v10406_v36, %v3252_v61  ;;  %v3152_v35 = vmul.f32 0.5, %v10337_v10  ;;  %v3238_v11 = vadd.f32 1.4214138, %v3230_v42  ;;  %v8806_v32 = vpop.eup %8805 }
0x10ab   :  { %v3314_v39 = vmul.f32 %v8798_v48, %v3274_v57  ;;  %v3351_v53 = vadd.f32 1.0, %v3343_v22  ;;  %v3273_v27 = vmul.f32 %v10397_v62, %v3265_v28  ;;  %v3259_v49 = vmul.f32 %v10411_v24, %v3251_v54 }
0x10ac   :  { %v3268_v20 = vadd.f32 0.2548296, %v3260_v37  ;;  %v3237_v58 = vadd.f32 1.4214138, %v3229_v47  ;;  %v3360_v7 = vmul.f32 %v3352_v60, %v3152_v35  ;;  %v3246_v62 = vmul.f32 %v10420_v15, %v3238_v11  ;;  %v8808_v60 = vpop.eup %8807 }
0x10ad   :  { %v3322_v19 = vsub.f32 1.0, %v3314_v39  ;;  %v3359_v31 = vmul.f32 %v3351_v53, %v10403_v43  ;;  %v3313_v45 = vmul.f32 %v8800_v1, %v3273_v27  ;;  %v3267_v8 = vadd.f32 0.2548296, %v3259_v49 }
0x10ae   :  { %v3276_v10 = vmul.f32 %v10406_v36, %v3268_v20  ;;  %v3245_v33 = vmul.f32 %v10426_v17, %v3237_v58  ;;  %v3254_v34 = vadd.f32 -0.28449672, %v3246_v62  ;;  %v3153_v61 = vmul.f32 0.5, %v10354_v59 }
0x10af   :  { %v3338_v4 = vsub.f32 0.0, %v3322_v19  ;;  %8194 = vmatprep.mubr.f32.mxu0 %v3359_v31  ;;  %v3321_v40 = vsub.f32 1.0, %v3313_v45  ;;  %v3275_v9 = vmul.f32 %v10411_v24, %v3267_v8  ;;  %v3154_v22 = vmul.f32 0.5, %v10349_v26 }
0x10b0   :  { %8195 = vmatmul.mubr.f32.vlgmr.msra.gmra.mxu0 %v3360_v7  ;;  %v3316_v16 = vmul.f32 %v8802_v14, %v3276_v10  ;;  %v3253_v0 = vadd.f32 -0.28449672, %v3245_v33  ;;  %v3262_v2 = vmul.f32 %v10420_v15, %v3254_v34  ;;  %v3155_v26 = vmul.f32 0.5, %v10362_v55 }
0x10b1   :  { %v3346_v43 = vsel %vm3330_vm5, %v3338_v4, %v3322_v19  ;;  %v3337_v5 = vsub.f32 0.0, %v3321_v40  ;;  %v3315_v57 = vmul.f32 %v8804_v29, %v3275_v9  ;;  %v3157_v7 = vmul.f32 0.5, %v10381_v38 }
0x10b2   :  { %v3354_v48 = vadd.f32 1.0, %v3346_v43  ;;  %v3324_v36 = vsub.f32 1.0, %v3316_v16  ;;  %v3261_v28 = vmul.f32 %v10426_v17, %v3253_v0  ;;  %v3270_v24 = vadd.f32 0.2548296, %v3262_v2 }
0x10b3   :  { %v3345_v13 = vsel %vm3329_vm6, %v3337_v5, %v3321_v40  ;;  %v3323_v42 = vsub.f32 1.0, %v3315_v57 }
0x10b4   :  { %v3353_v23 = vadd.f32 1.0, %v3345_v13  ;;  %v3340_v39 = vsub.f32 0.0, %v3324_v36  ;;  %v3269_v54 = vadd.f32 0.2548296, %v3261_v28  ;;  %v3278_v53 = vmul.f32 %v10420_v15, %v3270_v24 }
0x10b5   :  { %v3339_v1 = vsub.f32 0.0, %v3323_v42  ;;  %v3362_v27 = vmul.f32 %v3354_v48, %v3154_v22 }
0x10b6   :  { %v3361_v52 = vmul.f32 %v3353_v23, %v3153_v61  ;;  %v3348_v37 = vsel %vm3332_vm7, %v3340_v39, %v3324_v36  ;;  %v3277_v59 = vmul.f32 %v10426_v17, %v3269_v54  ;;  %v3318_v19 = vmul.f32 %v8806_v32, %v3278_v53 }
0x10b7   :  { %v3347_v47 = vsel %vm3331_vm8, %v3339_v1, %v3323_v42  ;;  %v3356_v35 = vadd.f32 1.0, %v3348_v37 }
0x10b8   :  { %8197 = vmatprep.mubr.f32.mxu0 %v3361_v52  ;;  %v3355_v49 = vadd.f32 1.0, %v3347_v47  ;;  %v3317_v11 = vmul.f32 %v8808_v60, %v3277_v59  ;;  %v3326_v31 = vsub.f32 1.0, %v3318_v19 }
0x10b9   :  { %8198 = vmatmul.mubr.f32.gmra.mxu0 %v3362_v27  ;;  %v3364_v20 = vmul.f32 %v3356_v35, %v3156_v51 }
0x10ba   :  { %v3363_v45 = vmul.f32 %v3355_v49, %v3155_v26  ;;  %v3325_v15 = vsub.f32 1.0, %v3317_v11  ;;  %v3342_v46 = vsub.f32 0.0, %v3326_v31 }
0x10bc   :  { %8200 = vmatprep.mubr.f32.mxu0 %v3363_v45  ;;  %v3341_v17 = vsub.f32 0.0, %v3325_v15  ;;  %v3350_v58 = vsel %vm3334_vm9, %v3342_v46, %v3326_v31 }
0x10bd   :  { %8201 = vmatmul.mubr.f32.gmra.mxu0 %v3364_v20  ;;  %v3358_v55 = vadd.f32 1.0, %v3350_v58 }
0x10be   :  { %v3349_v14 = vsel %vm3333_vm10, %v3341_v17, %v3325_v15 }
0x10bf   :  { %v3357_v4 = vadd.f32 1.0, %v3349_v14  ;;  %v3366_v62 = vmul.f32 %v3358_v55, %v3158_v44 }
0x10c1   :  { %v3365_v8 = vmul.f32 %v3357_v4, %v3157_v7 }
0x10c3   :  { %8203 = vmatprep.mubr.f32.mxu0 %v3365_v8 }
0x10c4   :  { %8204 = vmatmul.mubr.f32.gmra.mxu0 %v3366_v62 }
0x1170   :  { %v8196_v40 = vpop.f32.mrf.mxu0 }
0x1171   :  { %v3462_v10 = vadd.f32 %v8196_v40, %v7130_v3 }
0x1172   :  { %v3456_v12 = vpop.f32.mrf.mxu0 }
0x1173   :  { %v10468_v33 = vadd.f32 %v3462_v10, %v10165_v30  ;;  %v3457_v29 = vadd.f32 %v7130_v3, %v3456_v12 }
0x1175   :  { %v10471_v38 = vadd.f32 %v3457_v29, %v10168_v41  ;;  %v3510_v56 = vsel %vm226_vm1, %v10468_v33, 0.0 }
0x1176   :  { %3511 = vadd.xlane.f32.xlu1 %v3510_v56 }
0x1177   :  { %v3507_v43 = vsel %vm226_vm1, %v10471_v38, 0.0 }
0x1178   :  { %3508 = vadd.xlane.f32.xlu0 %v3507_v43 }
0x1179   :  { %v8199_v9 = vpop.f32.mrf.mxu0 }
0x117a   :  { %v3472_v34 = vadd.f32 %v8199_v9, %v7130_v3 }
0x117b   :  { %v3466_v5 = vpop.f32.mrf.mxu0 }
0x117c   :  { %v10478_v16 = vadd.f32 %v3472_v34, %v10173_v63  ;;  %v3467_v30 = vadd.f32 %v7130_v3, %v3466_v5  ;;  %v7138_v5 = vld [vmem:[%s11857_s28 + $0x38] sm:$0xff] }
0x117d   :  { %v8202_v41 = vpop.f32.mrf.mxu0  ;;  %8206 = vmatprep.subr.mxu1 %v7138_v5 }
0x117e   :  { %v10481_v0 = vadd.f32 %v3467_v30, %v10179_v6  ;;  %v3516_v32 = vsel %vm226_vm1, %v10478_v16, 0.0  ;;  %v3482_v57 = vadd.f32 %v8202_v41, %v7130_v3  ;;  %8207 = vmatpush3.msra.mxu1 %v7138_v5  ;;  %v7137_v30 = vld [vmem:[%s11857_s28 + $0x30] sm:$0xff]  ;;  %v7136_v41 = vld [vmem:[%s11857_s28 + $0x28] sm:$0xff] }
0x117f   :  { %3517 = vadd.xlane.f32.xlu1 %v3516_v32  ;;  %v3476_v2 = vpop.f32.mrf.mxu0  ;;  %8208 = vmatprep.subr.mxu1 %v7137_v30  ;;  %v7135_v32 = vld [vmem:[%s11857_s28 + $0x20] sm:$0xff] }
0x1180   :  { %v3513_v13 = vsel %vm226_vm1, %v10481_v0, 0.0  ;;  %v10488_v48 = vadd.f32 %v3482_v57, %v10181_v25  ;;  %v3477_v36 = vadd.f32 %v7130_v3, %v3476_v2  ;;  %8209 = vmatpush3.msra.mxu1 %v7137_v30 }
0x1181   :  { %3514 = vadd.xlane.f32.xlu0 %v3513_v13  ;;  %8210 = vmatprep.subr.mxu1 %v7136_v41 }
0x1182   :  { %v10491_v63 = vadd.f32 %v3477_v36, %v10189_v50  ;;  %v3522_v6 = vsel %vm226_vm1, %v10488_v48, 0.0  ;;  %8211 = vmatpush3.msra.mxu1 %v7136_v41 }
0x1183   :  { %3523 = vadd.xlane.f32.xlu1 %v3522_v6  ;;  %8212 = vmatprep.subr.mxu1 %v7135_v32 }
0x1184   :  { %v8205_v28 = vpop.f32.mrf.mxu0  ;;  %v3519_v61 = vsel %vm226_vm1, %v10491_v63, 0.0  ;;  %8213 = vmatpush3.msra.mxu1 %v7135_v32 }
0x1185   :  { %v3492_v23 = vadd.f32 %v8205_v28, %v7130_v3  ;;  %3520 = vadd.xlane.f32.xlu0 %v3519_v61 }
0x1186   :  { %v3486_v42 = vpop.f32.mrf.mxu0 }
0x1187   :  { %v10498_v24 = vadd.f32 %v3492_v23, %v10191_v21  ;;  %v3487_v25 = vadd.f32 %v7130_v3, %v3486_v42 }
0x1189   :  { %v10501_v60 = vadd.f32 %v3487_v25, %v10198_v18  ;;  %v3528_v50 = vsel %vm226_vm1, %v10498_v24, 0.0 }
0x118a   :  { %3529 = vadd.xlane.f32.xlu1 %v3528_v50 }
0x118b   :  { %v3525_v22 = vsel %vm226_vm1, %v10501_v60, 0.0 }
0x118c   :  { %3526 = vadd.xlane.f32.xlu0 %v3525_v22 }
0x11ff   :  { %v3512_v39 = vpop.xlane.xlu1 %3511 }
0x1200   :  { %v3532_v54 = vmul.f32 0.03125, %v3512_v39 }
0x1201   :  { %v3509_v52 = vpop.xlane.xlu0 %3508 }
0x1202   :  { %v10508_v1 = vsub.f32 %v10468_v33, %v3532_v54  ;;  %v3531_v21 = vmul.f32 0.03125, %v3509_v52 }
0x1204   :  { %v10511_v53 = vsub.f32 %v10471_v38, %v3531_v21  ;;  %v3548_v18 = vmul.f32 %v10508_v1, %v10508_v1 }
0x1206   :  { %v3558_v27 = vsel %vm226_vm1, %v3548_v18, 0.0  ;;  %v3547_v37 = vmul.f32 %v10511_v53, %v10511_v53 }
0x1207   :  { %3559 = vadd.xlane.f32.xlu1 %v3558_v27 }
0x1208   :  { %v3518_v59 = vpop.xlane.xlu1 %3517  ;;  %v3555_v47 = vsel %vm226_vm1, %v3547_v37, 0.0  ;;  %v7133_v37 = vld [vmem:[%s11858_s25 + $0x1] ss:$0 sm:$0xff] }
0x1209   :  { %v3534_v35 = vmul.f32 0.03125, %v3518_v59  ;;  %3556 = vadd.xlane.f32.xlu0 %v3555_v47 }
0x120a   :  { %v3515_v19 = vpop.xlane.xlu0 %3514 }
0x120b   :  { %v10520_v26 = vsub.f32 %v10478_v16, %v3534_v35  ;;  %v3533_v49 = vmul.f32 0.03125, %v3515_v19  ;;  %v7134_v19 = vld [vmem:[%s11813_s6 + $0x1] ss:$0 sm:$0xff] }
0x120c   :  { %v3524_v51 = vpop.xlane.xlu1 %3523 }
0x120d   :  { %v10523_v11 = vsub.f32 %v10481_v0, %v3533_v49  ;;  %v3550_v31 = vmul.f32 %v10520_v26, %v10520_v26  ;;  %v3536_v45 = vmul.f32 0.03125, %v3524_v51 }
0x120e   :  { %v3521_v15 = vpop.xlane.xlu0 %3520 }
0x120f   :  { %v3564_v20 = vsel %vm226_vm1, %v3550_v31, 0.0  ;;  %v3549_v46 = vmul.f32 %v10523_v11, %v10523_v11  ;;  %v10531_v17 = vsub.f32 %v10488_v48, %v3536_v45  ;;  %v3535_v58 = vmul.f32 0.03125, %v3521_v15 }
0x1210   :  { %3565 = vadd.xlane.f32.xlu1 %v3564_v20 }
0x1211   :  { %v3561_v14 = vsel %vm226_vm1, %v3549_v46, 0.0  ;;  %v10535_v55 = vsub.f32 %v10491_v63, %v3535_v58  ;;  %v3552_v7 = vmul.f32 %v10531_v17, %v10531_v17 }
0x1212   :  { %3562 = vadd.xlane.f32.xlu0 %v3561_v14 }
0x1213   :  { %v3530_v4 = vpop.xlane.xlu1 %3529  ;;  %v3570_v44 = vsel %vm226_vm1, %v3552_v7, 0.0  ;;  %v3551_v8 = vmul.f32 %v10535_v55, %v10535_v55 }
0x1214   :  { %v3538_v62 = vmul.f32 0.03125, %v3530_v4  ;;  %3571 = vadd.xlane.f32.xlu1 %v3570_v44 }
0x1215   :  { %v3527_v3 = vpop.xlane.xlu0 %3526  ;;  %v3567_v40 = vsel %vm226_vm1, %v3551_v8, 0.0 }
0x1216   :  { %v10544_v10 = vsub.f32 %v10498_v24, %v3538_v62  ;;  %v3537_v12 = vmul.f32 0.03125, %v3527_v3  ;;  %3568 = vadd.xlane.f32.xlu0 %v3567_v40 }
0x1218   :  { %v10547_v29 = vsub.f32 %v10501_v60, %v3537_v12  ;;  %v3554_v56 = vmul.f32 %v10544_v10, %v10544_v10 }
0x121a   :  { %v3576_v43 = vsel %vm226_vm1, %v3554_v56, 0.0  ;;  %v3553_v9 = vmul.f32 %v10547_v29, %v10547_v29 }
0x121b   :  { %3577 = vadd.xlane.f32.xlu1 %v3576_v43 }
0x121c   :  { %v3573_v34 = vsel %vm226_vm1, %v3553_v9, 0.0 }
0x121d   :  { %3574 = vadd.xlane.f32.xlu0 %v3573_v34 }
0x1290   :  { %v3560_v57 = vpop.xlane.xlu1 %3559 }
0x1291   :  { %v3580_v2 = vmul.f32 0.03125, %v3560_v57 }
0x1292   :  { %v3557_v13 = vpop.xlane.xlu0 %3556 }
0x1293   :  { %v3588_v36 = vadd.f32 1e-06, %v3580_v2  ;;  %v3579_v6 = vmul.f32 0.03125, %v3557_v13 }
0x1295   :  { %8809 = vrsqrt.f32 %v3588_v36  ;;  %v3587_v28 = vadd.f32 1e-06, %v3579_v6 }
0x1297   :  { %8811 = vrsqrt.f32 %v3587_v28 }
0x1299   :  { %v3566_v61 = vpop.xlane.xlu1 %3565 }
0x129a   :  { %v3582_v23 = vmul.f32 0.03125, %v3566_v61 }
0x129b   :  { %v3563_v42 = vpop.xlane.xlu0 %3562 }
0x129c   :  { %v3590_v25 = vadd.f32 1e-06, %v3582_v23  ;;  %v3581_v50 = vmul.f32 0.03125, %v3563_v42 }
0x129d   :  { %v3572_v39 = vpop.xlane.xlu1 %3571 }
0x129e   :  { %8813 = vrsqrt.f32 %v3590_v25  ;;  %v3589_v22 = vadd.f32 1e-06, %v3581_v50  ;;  %v3584_v54 = vmul.f32 0.03125, %v3572_v39 }
0x129f   :  { %v3569_v52 = vpop.xlane.xlu0 %3568 }
0x12a0   :  { %8815 = vrsqrt.f32 %v3589_v22  ;;  %v3592_v21 = vadd.f32 1e-06, %v3584_v54  ;;  %v3583_v18 = vmul.f32 0.03125, %v3569_v52 }
0x12a2   :  { %v8810_v27 = vpop.eup %8809  ;;  %8817 = vrsqrt.f32 %v3592_v21  ;;  %v3591_v47 = vadd.f32 1e-06, %v3583_v18 }
0x12a3   :  { %v3604_v59 = vmul.f32 %v8810_v27, %v10508_v1 }
0x12a4   :  { %v8812_v35 = vpop.eup %8811  ;;  %8819 = vrsqrt.f32 %v3591_v47  ;;  %v3578_v51 = vpop.xlane.xlu1 %3577 }
0x12a5   :  { %v3618_v49 = vmul.f32 %v7133_v37, %v3604_v59  ;;  %v3603_v31 = vmul.f32 %v8812_v35, %v10511_v53  ;;  %v3586_v45 = vmul.f32 0.03125, %v3578_v51 }
0x12a6   :  { %v3575_v15 = vpop.xlane.xlu0 %3574 }
0x12a7   :  { %v3617_v20 = vmul.f32 %v7133_v37, %v3603_v31  ;;  %v3632_v46 = vadd.f32 %v7134_v19, %v3618_v49  ;;  %v3594_v58 = vadd.f32 1e-06, %v3586_v45  ;;  %v3585_v14 = vmul.f32 0.03125, %v3575_v15 }
0x12a9   :  { %v3631_v7 = vadd.f32 %v7134_v19, %v3617_v20  ;;  %8821 = vrsqrt.f32 %v3594_v58  ;;  %v3593_v1 = vadd.f32 1e-06, %v3585_v14 }
0x12ab   :  { %v8814_v4 = vpop.eup %8813  ;;  %8214 = vmatprep.mubr.msk.f32.mxu1 %vm226_vm1, %v3631_v7  ;;  %8823 = vrsqrt.f32 %v3593_v1 }
0x12ac   :  { %8215 = vmatmul.mubr.msk.f32.vlgmr.msra.gmra.mxu1 %vm226_vm1, %v3632_v46  ;;  %v3606_v44 = vmul.f32 %v8814_v4, %v10520_v26 }
0x12ad   :  { %v8816_v8 = vpop.eup %8815 }
0x12ae   :  { %v3605_v53 = vmul.f32 %v8816_v8, %v10523_v11  ;;  %v3620_v62 = vmul.f32 %v7133_v37, %v3606_v44 }
0x12af   :  { %v8818_v3 = vpop.eup %8817 }
0x12b0   :  { %v3619_v40 = vmul.f32 %v7133_v37, %v3605_v53  ;;  %v3634_v12 = vadd.f32 %v7134_v19, %v3620_v62  ;;  %v3608_v56 = vmul.f32 %v8818_v3, %v10531_v17 }
0x12b1   :  { %v8820_v43 = vpop.eup %8819 }
0x12b2   :  { %v3633_v9 = vadd.f32 %v7134_v19, %v3619_v40  ;;  %v3607_v34 = vmul.f32 %v8820_v43, %v10535_v55  ;;  %v3622_v5 = vmul.f32 %v7133_v37, %v3608_v56 }
0x12b4   :  { %8217 = vmatprep.mubr.msk.f32.mxu1 %vm226_vm1, %v3633_v9  ;;  %v3621_v30 = vmul.f32 %v7133_v37, %v3607_v34  ;;  %v3636_v26 = vadd.f32 %v7134_v19, %v3622_v5  ;;  %v7154_v9 = vld [vmem:[%s11815_s9 + $0x108] sm:$0xff]  ;;  %v7153_v5 = vld [vmem:[%s11815_s9 + $0x100] sm:$0xff] }
0x12b5   :  { %8218 = vmatmul.mubr.msk.f32.gmra.mxu1 %vm226_vm1, %v3634_v12 }
0x12b6   :  { %v8822_v41 = vpop.eup %8821  ;;  %v3635_v32 = vadd.f32 %v7134_v19, %v3621_v30 }
0x12b7   :  { %v3610_v11 = vmul.f32 %v8822_v41, %v10544_v10  ;;  %v7140_v10 = vld [vmem:[%s11814_s8 + $0x1] ss:$0 sm:$0xff]  ;;  %v7156_v41 = vld [vmem:[%s11815_s9 + $0x118] sm:$0xff] }
0x12b8   :  { %v8824_v57 = vpop.eup %8823  ;;  %8220 = vmatprep.mubr.msk.f32.mxu1 %vm226_vm1, %v3635_v32 }
0x12b9   :  { %8221 = vmatmul.mubr.msk.f32.gmra.mxu1 %vm226_vm1, %v3636_v26  ;;  %v3609_v17 = vmul.f32 %v8824_v57, %v10547_v29  ;;  %v3624_v2 = vmul.f32 %v7133_v37, %v3610_v11 }
0x12bb   :  { %v3623_v55 = vmul.f32 %v7133_v37, %v3609_v17  ;;  %v3638_v13 = vadd.f32 %v7134_v19, %v3624_v2 }
0x12bd   :  { %v3637_v36 = vadd.f32 %v7134_v19, %v3623_v55 }
0x12bf   :  { %8223 = vmatprep.mubr.msk.f32.mxu1 %vm226_vm1, %v3637_v36  ;;  %v7158_v36 = vld [vmem:[%s11815_s9 + $0x128] sm:$0xff] }
0x12c0   :  { %8224 = vmatmul.mubr.msk.f32.gmra.mxu1 %vm226_vm1, %v3638_v13  ;;  %v7155_v13 = vld [vmem:[%s11815_s9 + $0x110] sm:$0xff] }
0x136c   :  { %v8216_v6 = vpop.f32.mrf.mxu1 }
0x136d   :  { %v10613_v27 = vadd.f32 %v8216_v6, %v7140_v10 }
0x136e   :  { %v3742_v28 = vpop.f32.mrf.mxu1 }
0x136f   :  { %v10592_v61 = vadd.f32 %v7140_v10, %v3742_v28  ;;  %v10666_v7 = vmul.f32 0.35355338, %v10613_v27 }
0x1371   :  { %v10595_v23 = vmul.f32 0.35355338, %v10592_v61 }
0x1373   :  { %8242 = vmatprep.mubr.msk.f32.mxu1 %vm678_vm2, %v10595_v23 }
0x1375   :  { %v8219_v29 = vpop.f32.mrf.mxu1 }
0x1376   :  { %v10605_v21 = vadd.f32 %v8219_v29, %v7140_v10 }
0x1377   :  { %v3752_v42 = vpop.f32.mrf.mxu1 }
0x1378   :  { %v10623_v59 = vadd.f32 %v7140_v10, %v3752_v42  ;;  %v10676_v44 = vmul.f32 0.35355338, %v10605_v21 }
0x1379   :  { %v8222_v25 = vpop.f32.mrf.mxu1 }
0x137a   :  { %v10609_v18 = vadd.f32 %v8222_v25, %v7140_v10  ;;  %v10669_v1 = vmul.f32 0.35355338, %v10623_v59  ;;  %v7157_v25 = vld [vmem:[%s11815_s9 + $0x120] sm:$0xff] }
0x137b   :  { %v3762_v50 = vpop.f32.mrf.mxu1 }
0x137c   :  { %v10617_v37 = vadd.f32 %v7140_v10, %v3762_v50  ;;  %v10686_v62 = vmul.f32 0.35355338, %v10609_v18  ;;  %v7160_v50 = vld [vmem:[%s11815_s9 + $0x138] sm:$0xff] }
0x137e   :  { %v10679_v8 = vmul.f32 0.35355338, %v10617_v37 }
0x1380   :  { %v8225_v22 = vpop.f32.mrf.mxu1 }
0x1381   :  { %v10599_v39 = vadd.f32 %v8225_v22, %v7140_v10 }
0x1382   :  { %v3772_v54 = vpop.f32.mrf.mxu1 }
0x1383   :  { %v10601_v52 = vadd.f32 %v7140_v10, %v3772_v54  ;;  %3825 = vrot.lane.b32.xlu0 %v10599_v39, %s9017_s3  ;;  %v10696_v12 = vmul.f32 0.35355338, %v10599_v39 }
0x1385   :  { %3823 = vrot.lane.b32.xlu1 %v10601_v52, %s9017_s3  ;;  %v10689_v40 = vmul.f32 0.35355338, %v10601_v52 }
0x1387   :  { %3817 = vrot.lane.b32.xlu0 %v10605_v21, %s9017_s3 }
0x1389   :  { %3821 = vrot.lane.b32.xlu1 %v10609_v18, %s9017_s3 }
0x138b   :  { %3813 = vrot.lane.b32.xlu0 %v10613_v27, %s9017_s3 }
0x138d   :  { %3819 = vrot.lane.b32.xlu1 %v10617_v37, %s9017_s3 }
0x138f   :  { %4074 = vrot.lane.b32.xlu0 %v10599_v39, %s9018_s30 }
0x1391   :  { %3815 = vrot.lane.b32.xlu1 %v10623_v59, %s9017_s3 }
0x1393   :  { %4066 = vrot.lane.b32.xlu0 %v10605_v21, %s9018_s30 }
0x1395   :  { %3811 = vrot.lane.b32.xlu1 %v10592_v61, %s9017_s3 }
0x1397   :  { %4062 = vrot.lane.b32.xlu0 %v10613_v27, %s9018_s30 }
0x1399   :  { %4070 = vrot.lane.b32.xlu1 %v10609_v18, %s9018_s30 }
0x139b   :  { %4252 = vrot.lane.b32.xlu0 %v10599_v39, %s9019_s4 }
0x139d   :  { %4068 = vrot.lane.b32.xlu1 %v10617_v37, %s9018_s30 }
0x13a1   :  { %4064 = vrot.lane.b32.xlu1 %v10623_v59, %s9018_s30 }
0x13a5   :  { %4060 = vrot.lane.b32.xlu1 %v10592_v61, %s9018_s30 }
0x13a9   :  { %4072 = vrot.lane.b32.xlu1 %v10601_v52, %s9018_s30  ;;  %s11859_s30 = smov 80  }
0x13ad   :  { %4250 = vrot.lane.b32.xlu1 %v10601_v52, %s9019_s4 }
0x13f5   :  { %v3826_v47 = vpop.permute.xlu0 %3825 }
0x13f6   :  { %8226 = vmatprep.subr.msk.mxu1 %vm678_vm2, %v3826_v47 }
0x13f7   :  { %8227 = vmatpush3.xpose.msk.msra.mxu1 %vm678_vm2, %v3826_v47  ;;  %v3824_v35 = vpop.permute.xlu1 %3823 }
0x13f8   :  { %8228 = vmatprep.subr.msk.mxu1 %vm678_vm2, %v3824_v35 }
0x13f9   :  { %v3818_v19 = vpop.permute.xlu0 %3817 }
0x13fb   :  { %8229 = vmatpush3.xpose.msk.msra.mxu1 %vm678_vm2, %v3824_v35  ;;  %v3822_v49 = vpop.permute.xlu1 %3821 }
0x13fc   :  { %8230 = vmatprep.subr.msk.mxu1 %vm678_vm2, %v3822_v49 }
0x13fd   :  { %v3814_v51 = vpop.permute.xlu0 %3813 }
0x13ff   :  { %8231 = vmatpush3.xpose.msk.msra.mxu1 %vm678_vm2, %v3822_v49  ;;  %v3820_v31 = vpop.permute.xlu1 %3819 }
0x1400   :  { %8232 = vmatprep.subr.msk.mxu1 %vm678_vm2, %v3820_v31 }
0x1401   :  { %v4075_v45 = vpop.permute.xlu0 %4074 }
0x1402   :  { %8254 = vmatprep.subr.mxu0 %v4075_v45 }
0x1403   :  { %8233 = vmatpush3.xpose.msk.msra.mxu1 %vm678_vm2, %v3820_v31  ;;  %8255 = vmatpush3.msra.mxu0 %v4075_v45  ;;  %v3816_v15 = vpop.permute.xlu1 %3815 }
0x1404   :  { %8234 = vmatprep.subr.msk.mxu1 %vm678_vm2, %v3818_v19 }
0x1405   :  { %v4067_v3 = vpop.permute.xlu0 %4066 }
0x1407   :  { %8235 = vmatpush3.xpose.msk.msra.mxu1 %vm678_vm2, %v3818_v19  ;;  %v3812_v20 = vpop.permute.xlu1 %3811 }
0x1408   :  { %8236 = vmatprep.subr.msk.mxu1 %vm678_vm2, %v3816_v15 }
0x1409   :  { %v4063_v56 = vpop.permute.xlu0 %4062 }
0x140b   :  { %8237 = vmatpush3.xpose.msk.msra.mxu1 %vm678_vm2, %v3816_v15  ;;  %v4071_v46 = vpop.permute.xlu1 %4070 }
0x140c   :  { %8238 = vmatprep.subr.msk.mxu1 %vm678_vm2, %v3814_v51 }
0x140d   :  { %v10700_v43 = vpop.permute.xlu0 %4252 }
0x140f   :  { %8239 = vmatpush3.xpose.msk.msra.mxu1 %vm678_vm2, %v3814_v51  ;;  %v4069_v58 = vpop.permute.xlu1 %4068  ;;  %v7159_v51 = vld [vmem:[%s11815_s9 + $0x130] sm:$0xff] }
0x1410   :  { %8240 = vmatprep.subr.msk.mxu1 %vm678_vm2, %v3812_v20 }
0x1413   :  { %8241 = vmatpush3.xpose.msk.msra.mxu1 %vm678_vm2, %v3812_v20  ;;  %v4065_v14 = vpop.permute.xlu1 %4064 }
0x1416   :  { %8243 = vmatmul.mubr.msk.f32.vlgmr.msra.gmra.mxu1 %vm678_vm2, %v10666_v7 }
0x1417   :  { %8245 = vmatprep.mubr.msk.f32.mxu1 %vm678_vm2, %v10669_v1  ;;  %v4061_v4 = vpop.permute.xlu1 %4060 }
0x141a   :  { %8246 = vmatmul.mubr.msk.f32.gmra.mxu1 %vm678_vm2, %v10676_v44 }
0x141b   :  { %8248 = vmatprep.mubr.msk.f32.mxu1 %vm678_vm2, %v10679_v8  ;;  %v4073_v53 = vpop.permute.xlu1 %4072 }
0x141c   :  { %8256 = vmatprep.subr.mxu0 %v4073_v53 }
0x141d   :  { %8257 = vmatpush3.msra.mxu0 %v4073_v53 }
0x141e   :  { %8249 = vmatmul.mubr.msk.f32.gmra.mxu1 %vm678_vm2, %v10686_v62  ;;  %8258 = vmatprep.subr.mxu0 %v4071_v46 }
0x141f   :  { %8259 = vmatpush3.msra.mxu0 %v4071_v46  ;;  %8251 = vmatprep.mubr.msk.f32.mxu1 %vm678_vm2, %v10689_v40  ;;  %v10740_v46 = vpop.permute.xlu1 %4250 }
0x1420   :  { %8260 = vmatprep.subr.mxu0 %v4069_v58 }
0x1421   :  { %8261 = vmatpush3.msra.mxu0 %v4069_v58 }
0x1422   :  { %8252 = vmatmul.mubr.msk.f32.gmra.mxu1 %vm678_vm2, %v10696_v12  ;;  %8262 = vmatprep.subr.mxu0 %v4067_v3 }
0x1423   :  { %8263 = vmatpush3.msra.mxu0 %v4067_v3 }
0x1424   :  { %8264 = vmatprep.subr.mxu0 %v4065_v14 }
0x1425   :  { %8265 = vmatpush3.msra.mxu0 %v4065_v14 }
0x1426   :  { %8266 = vmatprep.subr.mxu0 %v4063_v56 }
0x1427   :  { %8267 = vmatpush3.msra.mxu0 %v4063_v56 }
0x1428   :  { %8268 = vmatprep.subr.mxu0 %v4061_v4 }
0x1429   :  { %8269 = vmatpush3.msra.mxu0 %v4061_v4 }
0x142a   :  { %8282 = vmatprep.subr.msk.mxu0 %vm678_vm2, %v10700_v43 }
0x14d6   :  { %v8244_v34 = vpop.f32.mrf.mxu1 }
0x14d7   :  { %v3939_v30 = vadd.f32 %v8244_v34, %v7154_v9 }
0x14d8   :  { %v3933_v26 = vpop.f32.mrf.mxu1 }
0x14d9   :  { %v3934_v32 = vadd.f32 %v7153_v5, %v3933_v26  ;;  %v3975_v11 = vsel %vm94_vm0, %v3939_v30, -inf }
0x14da   :  { %3976 = vmax.xlane.f32.xlu1 %v3975_v11  ;;  %v8247_v57 = vpop.f32.mrf.mxu1 }
0x14db   :  { %v3949_v17 = vadd.f32 %v8247_v57, %v7156_v41  ;;  %v3972_v2 = vsel %vm94_vm0, %v3934_v32, -inf }
0x14dc   :  { %v3943_v55 = vpop.f32.mrf.mxu1  ;;  %3973 = vmax.xlane.f32.xlu0 %v3972_v2 }
0x14dd   :  { %v3944_v10 = vadd.f32 %v7155_v13, %v3943_v55  ;;  %v3981_v29 = vsel %vm94_vm0, %v3949_v17, -inf }
0x14de   :  { %v8250_v6 = vpop.f32.mrf.mxu1 }
0x14df   :  { %v3959_v28 = vadd.f32 %v8250_v6, %v7158_v36  ;;  %v3978_v19 = vsel %vm94_vm0, %v3944_v10, -inf }
0x14e0   :  { %v3953_v42 = vpop.f32.mrf.mxu1  ;;  %3982 = vmax.xlane.f32.xlu0 %v3981_v29 }
0x14e1   :  { %v3987_v22 = vsel %vm94_vm0, %v3959_v28, -inf  ;;  %v3954_v47 = vadd.f32 %v7157_v25, %v3953_v42 }
0x14e2   :  { %3988 = vmax.xlane.f32.xlu1 %v3987_v22  ;;  %v8253_v54 = vpop.f32.mrf.mxu1 }
0x14e3   :  { %v3969_v35 = vadd.f32 %v8253_v54, %v7160_v50  ;;  %v3984_v15 = vsel %vm94_vm0, %v3954_v47, -inf }
0x14e4   :  { %3979 = vmax.xlane.f32.xlu0 %v3978_v19  ;;  %v3963_v49 = vpop.f32.mrf.mxu1 }
0x14e5   :  { %v3993_v31 = vsel %vm94_vm0, %v3969_v35, -inf  ;;  %v3964_v45 = vadd.f32 %v7159_v51, %v3963_v49 }
0x14e6   :  { %3994 = vmax.xlane.f32.xlu1 %v3993_v31 }
0x14e7   :  { %v3990_v20 = vsel %vm94_vm0, %v3964_v45, -inf }
0x14e8   :  { %3985 = vmax.xlane.f32.xlu0 %v3984_v15 }
0x14ec   :  { %3991 = vmax.xlane.f32.xlu0 %v3990_v20 }
0x14f7   :  { %4246 = vrot.lane.b32.xlu1 %v10617_v37, %s9019_s4 }
0x1502   :  { %4248 = vrot.lane.b32.xlu0 %v10609_v18, %s9019_s4 }
0x1563   :  { %v3977_v58 = vpop.xlane.xlu1 %3976 }
0x1564   :  { %v3997_v14 = vsub.f32 %v3939_v30, %v3977_v58 }
0x1565   :  { %v3974_v4 = vpop.xlane.xlu0 %3973 }
0x1566   :  { %v4006_v53 = vmul.f32 1.442695, %v3997_v14  ;;  %v3996_v3 = vsub.f32 %v3934_v32, %v3974_v4 }
0x1568   :  { %8825 = vpow2.f32 %v4006_v53  ;;  %v4004_v56 = vmul.f32 1.442695, %v3996_v3 }
0x1569   :  { %v3983_v41 = vpop.xlane.xlu0 %3982 }
0x156a   :  { %8827 = vpow2.f32 %v4004_v56  ;;  %v3999_v11 = vsub.f32 %v3949_v17, %v3983_v41 }
0x156b   :  { %v3989_v32 = vpop.xlane.xlu1 %3988 }
0x156c   :  { %v4010_v55 = vmul.f32 1.442695, %v3999_v11  ;;  %v4001_v13 = vsub.f32 %v3959_v28, %v3989_v32 }
0x156d   :  { %v3980_v30 = vpop.xlane.xlu0 %3979 }
0x156e   :  { %v3998_v2 = vsub.f32 %v3944_v10, %v3980_v30  ;;  %8829 = vpow2.f32 %v4010_v55  ;;  %v4014_v25 = vmul.f32 1.442695, %v4001_v13 }
0x156f   :  { %v3995_v36 = vpop.xlane.xlu1 %3994 }
0x1570   :  { %v4008_v6 = vmul.f32 1.442695, %v3998_v2  ;;  %v4003_v50 = vsub.f32 %v3969_v35, %v3995_v36 }
0x1571   :  { %v3986_v57 = vpop.xlane.xlu0 %3985 }
0x1572   :  { %v4000_v29 = vsub.f32 %v3954_v47, %v3986_v57  ;;  %8831 = vpow2.f32 %v4008_v6  ;;  %v4018_v19 = vmul.f32 1.442695, %v4003_v50 }
0x1573   :  { %8833 = vpow2.f32 %v4014_v25  ;;  %v4247_v4 = vpop.permute.xlu1 %4246 }
0x1574   :  { %v4012_v22 = vmul.f32 1.442695, %v4000_v29 }
0x1575   :  { %v10742_v9 = vpop.eup %8825  ;;  %v3992_v42 = vpop.xlane.xlu0 %3991 }
0x1576   :  { %v4023_v34 = vsel %vm94_vm0, %v10742_v9, 0.0  ;;  %v4002_v54 = vsub.f32 %v3964_v45, %v3992_v42  ;;  %8835 = vpow2.f32 %v4012_v22 }
0x1577   :  { %v10746_v5 = vpop.eup %8827  ;;  %4024 = vadd.xlane.f32.xlu1 %v4023_v34  ;;  %8837 = vpow2.f32 %v4018_v19 }
0x1578   :  { %v4020_v26 = vsel %vm94_vm0, %v10746_v5, 0.0  ;;  %v4016_v49 = vmul.f32 1.442695, %v4002_v54 }
0x1579   :  { %4021 = vadd.xlane.f32.xlu0 %v4020_v26  ;;  %v4249_v53 = vpop.permute.xlu0 %4248 }
0x157a   :  { %8839 = vpow2.f32 %v4016_v49 }
0x157b   :  { %v10754_v17 = vpop.eup %8829 }
0x157c   :  { %v4029_v28 = vsel %vm94_vm0, %v10754_v17, 0.0 }
0x157f   :  { %v10756_v10 = vpop.eup %8831 }
0x1580   :  { %v10760_v47 = vpop.eup %8833  ;;  %v4026_v35 = vsel %vm94_vm0, %v10756_v10, 0.0 }
0x1581   :  { %v4035_v31 = vsel %vm94_vm0, %v10760_v47, 0.0 }
0x1583   :  { %v10764_v51 = vpop.eup %8835 }
0x1584   :  { %v10768_v45 = vpop.eup %8837  ;;  %v4032_v15 = vsel %vm94_vm0, %v10764_v51, 0.0 }
0x1585   :  { %v4041_v58 = vsel %vm94_vm0, %v10768_v45, 0.0 }
0x1587   :  { %v10772_v20 = vpop.eup %8839 }
0x1588   :  { %4242 = vrot.lane.b32.xlu1 %v10623_v59, %s9019_s4  ;;  %v4038_v14 = vsel %vm94_vm0, %v10772_v20, 0.0 }
0x158f   :  { %4244 = vrot.lane.b32.xlu0 %v10605_v21, %s9019_s4 }
0x15ac   :  { %4030 = vadd.xlane.f32.xlu1 %v4029_v28 }
0x15ae   :  { %4027 = vadd.xlane.f32.xlu0 %v4026_v35 }
0x15b0   :  { %4036 = vadd.xlane.f32.xlu1 %v4035_v31 }
0x15b2   :  { %4033 = vadd.xlane.f32.xlu0 %v4032_v15 }
0x15b4   :  { %4042 = vadd.xlane.f32.xlu1 %v4041_v58 }
0x15b6   :  { %4039 = vadd.xlane.f32.xlu0 %v4038_v14 }
0x15c5   :  { %4238 = vrot.lane.b32.xlu1 %v10592_v61, %s9019_s4 }
0x15c9   :  { %4224 = vrot.lane.b32.xlu1 %v10666_v7, %s9020_s26 }
0x15cc   :  { %4240 = vrot.lane.b32.xlu0 %v10613_v27, %s9019_s4 }
0x15cd   :  { %4228 = vrot.lane.b32.xlu1 %v10676_v44, %s9020_s26 }
0x15d0   :  { %4222 = vrot.lane.b32.xlu0 %v10595_v23, %s9020_s26 }
0x15d1   :  { %4232 = vrot.lane.b32.xlu1 %v10686_v62, %s9020_s26 }
0x15d4   :  { %4226 = vrot.lane.b32.xlu0 %v10669_v1, %s9020_s26 }
0x15d5   :  { %4236 = vrot.lane.b32.xlu1 %v10696_v12, %s9020_s26 }
0x15d8   :  { %4230 = vrot.lane.b32.xlu0 %v10679_v8, %s9020_s26 }
0x15d9   :  { %4491 = vrot.lane.b32.xlu1 %v10601_v52, %s9021_s29 }
0x15dc   :  { %4234 = vrot.lane.b32.xlu0 %v10689_v40, %s9020_s26 }
0x15e0   :  { %4493 = vrot.lane.b32.xlu0 %v10599_v39, %s9021_s29 }
0x1600   :  { %v4025_v3 = vpop.xlane.xlu1 %4024 }
0x1601   :  { %8841 = vrcp.f32 %v4025_v3 }
0x1602   :  { %v4022_v56 = vpop.xlane.xlu0 %4021 }
0x1603   :  { %8843 = vrcp.f32 %v4022_v56 }
0x160e   :  { %v8842_v34 = vpop.eup %8841 }
0x160f   :  { %v4053_v30 = vmul.f32 %v8842_v34, %v10742_v9  ;;  %v4245_v9 = vpop.permute.xlu0 %4244 }
0x1610   :  { %v8844_v26 = vpop.eup %8843 }
0x1611   :  { %v4052_v41 = vmul.f32 %v8844_v26, %v10746_v5  ;;  %v4243_v5 = vpop.permute.xlu1 %4242 }
0x1613   :  { %8270 = vmatprep.mubr.msk.f32.mxu0 %vm94_vm0, %v4052_v41 }
0x1614   :  { %8271 = vmatmul.mubr.msk.f32.vlgmr.msra.gmra.mxu0 %vm94_vm0, %v4053_v30 }
0x1615   :  { %8283 = vmatpush3.xpose.msk.msra.mxu0 %vm678_vm2, %v10700_v43 }
0x1616   :  { %8284 = vmatprep.subr.msk.mxu0 %vm678_vm2, %v10740_v46 }
0x1619   :  { %8285 = vmatpush3.xpose.msk.msra.mxu0 %vm678_vm2, %v10740_v46 }
0x161a   :  { %8286 = vmatprep.subr.msk.mxu0 %vm678_vm2, %v4249_v53 }
0x161d   :  { %8287 = vmatpush3.xpose.msk.msra.mxu0 %vm678_vm2, %v4249_v53 }
0x161e   :  { %8288 = vmatprep.subr.msk.mxu0 %vm678_vm2, %v4247_v4 }
0x1621   :  { %8289 = vmatpush3.xpose.msk.msra.mxu0 %vm678_vm2, %v4247_v4  ;;  %v7149_v4 = vld [vmem:[%s11816_s10 + $0x20] sm:$0xff] }
0x1622   :  { %8290 = vmatprep.subr.msk.mxu0 %vm678_vm2, %v4245_v9 }
0x1625   :  { %8291 = vmatpush3.xpose.msk.msra.mxu0 %vm678_vm2, %v4245_v9 }
0x1626   :  { %8292 = vmatprep.subr.msk.mxu0 %vm678_vm2, %v4243_v5 }
0x1629   :  { %8293 = vmatpush3.xpose.msk.msra.mxu0 %vm678_vm2, %v4243_v5  ;;  %v7186_v5 = vld [vmem:[%s11815_s9 + $0x148] sm:$0xff] }
0x1635   :  { %v4031_v43 = vpop.xlane.xlu1 %4030 }
0x1636   :  { %8845 = vrcp.f32 %v4031_v43 }
0x1637   :  { %v4028_v46 = vpop.xlane.xlu0 %4027 }
0x1638   :  { %8847 = vrcp.f32 %v4028_v46  ;;  %v7185_v46 = vld [vmem:[%s11815_s9 + $0x140] sm:$0xff] }
0x1639   :  { %v4037_v32 = vpop.xlane.xlu1 %4036 }
0x163a   :  { %8849 = vrcp.f32 %v4037_v32 }
0x163b   :  { %v4034_v11 = vpop.xlane.xlu0 %4033 }
0x163c   :  { %8851 = vrcp.f32 %v4034_v11 }
0x163d   :  { %v4043_v57 = vpop.xlane.xlu1 %4042 }
0x163e   :  { %8853 = vrcp.f32 %v4043_v57  ;;  %v7188_v57 = vld [vmem:[%s11815_s9 + $0x158] sm:$0xff] }
0x163f   :  { %v4040_v2 = vpop.xlane.xlu0 %4039 }
0x1640   :  { %8855 = vrcp.f32 %v4040_v2 }
0x1641   :  { %v4239_v55 = vpop.permute.xlu1 %4238 }
0x1643   :  { %v4241_v13 = vpop.permute.xlu0 %4240  ;;  %v8846_v36 = vpop.eup %8845 }
0x1644   :  { %8294 = vmatprep.subr.msk.mxu0 %vm678_vm2, %v4241_v13  ;;  %v4055_v50 = vmul.f32 %v8846_v36, %v10754_v17 }
0x1645   :  { %v8848_v6 = vpop.eup %8847  ;;  %v4225_v29 = vpop.permute.xlu1 %4224  ;;  %8295 = vmatpush3.xpose.msk.msra.mxu0 %vm678_vm2, %v4241_v13 }
0x1646   :  { %8296 = vmatprep.subr.msk.mxu0 %vm678_vm2, %v4239_v55  ;;  %v4054_v42 = vmul.f32 %v8848_v6, %v10756_v10 }
0x1647   :  { %v4223_v25 = vpop.permute.xlu0 %4222  ;;  %v8850_v22 = vpop.eup %8849 }
0x1648   :  { %8273 = vmatprep.mubr.msk.f32.mxu0 %vm94_vm0, %v4054_v42  ;;  %v4057_v35 = vmul.f32 %v8850_v22, %v10760_v47  ;;  %v7187_v42 = vld [vmem:[%s11815_s9 + $0x150] sm:$0xff] }
0x1649   :  { %v8852_v54 = vpop.eup %8851  ;;  %v4229_v19 = vpop.permute.xlu1 %4228  ;;  %8274 = vmatmul.mubr.msk.f32.gmra.mxu0 %vm94_vm0, %v4055_v50 }
0x164a   :  { %8297 = vmatpush3.xpose.msk.msra.mxu0 %vm678_vm2, %v4239_v55  ;;  %v4056_v49 = vmul.f32 %v8852_v54, %v10764_v51 }
0x164b   :  { %v4227_v28 = vpop.permute.xlu0 %4226  ;;  %v8854_v31 = vpop.eup %8853  ;;  %8352 = vmatprep.subr.mxu0 %v7149_v4 }
0x164c   :  { %8276 = vmatprep.mubr.msk.f32.mxu0 %vm94_vm0, %v4056_v49  ;;  %v4059_v14 = vmul.f32 %v8854_v31, %v10768_v45 }
0x164d   :  { %v8856_v10 = vpop.eup %8855  ;;  %v4233_v15 = vpop.permute.xlu1 %4232  ;;  %8277 = vmatmul.mubr.msk.f32.gmra.mxu0 %vm94_vm0, %v4057_v35  ;;  %v7192_v35 = vld [vmem:[%s11815_s9 + $0x178] sm:$0xff] }
0x164e   :  { %v4058_v17 = vmul.f32 %v8856_v10, %v10772_v20 }
0x164f   :  { %v4231_v58 = vpop.permute.xlu0 %4230 }
0x1650   :  { %8279 = vmatprep.mubr.msk.f32.mxu0 %vm94_vm0, %v4058_v17 }
0x1651   :  { %8280 = vmatmul.mubr.msk.f32.gmra.mxu0 %vm94_vm0, %v4059_v14  ;;  %v4237_v51 = vpop.permute.xlu1 %4236 }
0x1652   :  { %8298 = vmatprep.mubr.msk.f32.mxu0 %vm678_vm2, %v4223_v25  ;;  %v7190_v25 = vld [vmem:[%s11815_s9 + $0x168] sm:$0xff] }
0x1653   :  { %v4235_v47 = vpop.permute.xlu0 %4234 }
0x1655   :  { %8299 = vmatmul.mubr.msk.f32.vlgmr.msra.gmra.mxu0 %vm678_vm2, %v4225_v29  ;;  %v4492_v45 = vpop.permute.xlu1 %4491 }
0x1656   :  { %8301 = vmatprep.mubr.msk.f32.mxu0 %vm678_vm2, %v4227_v28  ;;  %8353 = vmatpush3.msra.mxu0 %v7149_v4  ;;  %v7189_v28 = vld [vmem:[%s11815_s9 + $0x160] sm:$0xff]  ;;  %v7191_v4 = vld [vmem:[%s11815_s9 + $0x170] sm:$0xff] }
0x1657   :  { %v4494_v20 = vpop.permute.xlu0 %4493 }
0x1658   :  { %8310 = vmatprep.subr.mxu1 %v4494_v20 }
0x1659   :  { %8302 = vmatmul.mubr.msk.f32.gmra.mxu0 %vm678_vm2, %v4229_v19  ;;  %8311 = vmatpush3.msra.mxu1 %v4494_v20 }
0x165a   :  { %8304 = vmatprep.mubr.msk.f32.mxu0 %vm678_vm2, %v4231_v58  ;;  %8312 = vmatprep.subr.mxu1 %v4492_v45 }
0x165b   :  { %8313 = vmatpush3.msra.mxu1 %v4492_v45 }
0x165d   :  { %8305 = vmatmul.mubr.msk.f32.gmra.mxu0 %vm678_vm2, %v4233_v15 }
0x165e   :  { %8307 = vmatprep.mubr.msk.f32.mxu0 %vm678_vm2, %v4235_v47 }
0x1661   :  { %8308 = vmatmul.mubr.msk.f32.gmra.mxu0 %vm678_vm2, %v4237_v51 }
0x16d4   :  { %v8272_v53 = vpop.f32.mrf.mxu0 }
0x16d6   :  { %v4174_v3 = vpop.f32.mrf.mxu0 }
0x16d7   :  { %8354 = vmatprep.mubr.msk.f32.mxu0 %vm678_vm2, %v4174_v3 }
0x16d8   :  { %8355 = vmatmul.mubr.msk.f32.vlgmr.msra.gmra.mxu0 %vm678_vm2, %v8272_v53 }
0x1709   :  { %v8275_v56 = vpop.f32.mrf.mxu0 }
0x170b   :  { %v4184_v34 = vpop.f32.mrf.mxu0 }
0x170c   :  { %8357 = vmatprep.mubr.msk.f32.mxu0 %vm678_vm2, %v4184_v34 }
0x170d   :  { %v8278_v26 = vpop.f32.mrf.mxu0  ;;  %8358 = vmatmul.mubr.msk.f32.gmra.mxu0 %vm678_vm2, %v8275_v56 }
0x170f   :  { %v4194_v41 = vpop.f32.mrf.mxu0 }
0x1710   :  { %8360 = vmatprep.mubr.msk.f32.mxu0 %vm678_vm2, %v4194_v41 }
0x1711   :  { %v8281_v30 = vpop.f32.mrf.mxu0  ;;  %8361 = vmatmul.mubr.msk.f32.gmra.mxu0 %vm678_vm2, %v8278_v26 }
0x1713   :  { %v4204_v9 = vpop.f32.mrf.mxu0 }
0x1714   :  { %8363 = vmatprep.mubr.msk.f32.mxu0 %vm678_vm2, %v4204_v9 }
0x1715   :  { %v8300_v43 = vpop.f32.mrf.mxu0  ;;  %8364 = vmatmul.mubr.msk.f32.gmra.mxu0 %vm678_vm2, %v8281_v30 }
0x1716   :  { %v4358_v32 = vadd.f32 %v8300_v43, %v7186_v5 }
0x1717   :  { %v4352_v11 = vpop.f32.mrf.mxu0 }
0x1718   :  { %v4353_v2 = vadd.f32 %v7185_v46, %v4352_v11  ;;  %v4394_v55 = vsel %vm94_vm0, %v4358_v32, -inf }
0x1719   :  { %4395 = vmax.xlane.f32.xlu1 %v4394_v55  ;;  %v8303_v13 = vpop.f32.mrf.mxu0 }
0x171a   :  { %v4368_v36 = vadd.f32 %v8303_v13, %v7188_v57  ;;  %v4391_v6 = vsel %vm94_vm0, %v4353_v2, -inf }
0x171b   :  { %4392 = vmax.xlane.f32.xlu0 %v4391_v6  ;;  %v4362_v29 = vpop.f32.mrf.mxu0 }
0x171c   :  { %v10872_v22 = vadd.f32 %v7187_v42, %v4362_v29  ;;  %v4400_v19 = vsel %vm94_vm0, %v4368_v36, -inf }
0x171d   :  { %v8306_v50 = vpop.f32.mrf.mxu0 }
0x171e   :  { %v10874_v54 = vadd.f32 %v8306_v50, %v7190_v25  ;;  %v4397_v58 = vsel %vm94_vm0, %v10872_v22, -inf }
0x171f   :  { %4401 = vmax.xlane.f32.xlu0 %v4400_v19  ;;  %v4372_v49 = vpop.f32.mrf.mxu0 }
0x1720   :  { %v4406_v31 = vsel %vm94_vm0, %v10874_v54, -inf  ;;  %v4373_v15 = vadd.f32 %v7189_v28, %v4372_v49 }
0x1721   :  { %4407 = vmax.xlane.f32.xlu1 %v4406_v31  ;;  %v8309_v10 = vpop.f32.mrf.mxu0 }
0x1722   :  { %v4388_v17 = vadd.f32 %v8309_v10, %v7192_v35  ;;  %v4403_v51 = vsel %vm94_vm0, %v4373_v15, -inf }
0x1723   :  { %4398 = vmax.xlane.f32.xlu0 %v4397_v58  ;;  %v4382_v47 = vpop.f32.mrf.mxu0 }
0x1724   :  { %v4412_v14 = vsel %vm94_vm0, %v4388_v17, -inf  ;;  %v4383_v20 = vadd.f32 %v7191_v4, %v4382_v47 }
0x1725   :  { %4413 = vmax.xlane.f32.xlu1 %v4412_v14 }
0x1726   :  { %v4409_v45 = vsel %vm94_vm0, %v4383_v20, -inf }
0x1727   :  { %4404 = vmax.xlane.f32.xlu0 %v4403_v51 }
0x1736   :  { %4489 = vrot.lane.b32.xlu1 %v10609_v18, %s9021_s29 }
0x173d   :  { %4487 = vrot.lane.b32.xlu0 %v10617_v37, %s9021_s29 }
0x1741   :  { %4485 = vrot.lane.b32.xlu0 %v10605_v21, %s9021_s29 }
0x1760   :  { %4410 = vmax.xlane.f32.xlu0 %v4409_v45 }
0x17a2   :  { %v4396_v53 = vpop.xlane.xlu1 %4395 }
0x17a3   :  { %v4416_v3 = vsub.f32 %v4358_v32, %v4396_v53 }
0x17a4   :  { %v4393_v56 = vpop.xlane.xlu0 %4392 }
0x17a5   :  { %v4425_v34 = vmul.f32 1.442695, %v4416_v3  ;;  %v4415_v26 = vsub.f32 %v4353_v2, %v4393_v56 }
0x17a7   :  { %8857 = vpow2.f32 %v4425_v34  ;;  %v4423_v41 = vmul.f32 1.442695, %v4415_v26 }
0x17a8   :  { %v4402_v30 = vpop.xlane.xlu0 %4401 }
0x17a9   :  { %8859 = vpow2.f32 %v4423_v41  ;;  %v4418_v9 = vsub.f32 %v4368_v36, %v4402_v30 }
0x17aa   :  { %v4408_v5 = vpop.xlane.xlu1 %4407 }
0x17ab   :  { %v4429_v43 = vmul.f32 1.442695, %v4418_v9  ;;  %v4420_v28 = vsub.f32 %v10874_v54, %v4408_v5 }
0x17ac   :  { %v4399_v46 = vpop.xlane.xlu0 %4398 }
0x17ad   :  { %8861 = vpow2.f32 %v4429_v43  ;;  %v4417_v50 = vsub.f32 %v10872_v22, %v4399_v46  ;;  %v4433_v31 = vmul.f32 1.442695, %v4420_v28 }
0x17ae   :  { %v4414_v11 = vpop.xlane.xlu1 %4413 }
0x17af   :  { %v4427_v19 = vmul.f32 1.442695, %v4417_v50  ;;  %v4422_v10 = vsub.f32 %v4388_v17, %v4414_v11 }
0x17b0   :  { %v4405_v57 = vpop.xlane.xlu0 %4404 }
0x17b1   :  { %v4419_v49 = vsub.f32 %v4373_v15, %v4405_v57  ;;  %8863 = vpow2.f32 %v4427_v19  ;;  %v4437_v58 = vmul.f32 1.442695, %v4422_v10 }
0x17b2   :  { %v4490_v55 = vpop.permute.xlu1 %4489 }
0x17b3   :  { %8314 = vmatprep.subr.mxu1 %v4490_v55  ;;  %v4431_v35 = vmul.f32 1.442695, %v4419_v49 }
0x17b4   :  { %v10899_v13 = vpop.eup %8857  ;;  %8315 = vmatpush3.msra.mxu1 %v4490_v55  ;;  %v4488_v32 = vpop.permute.xlu0 %4487 }
0x17b5   :  { %8316 = vmatprep.subr.mxu1 %v4488_v32  ;;  %v4442_v2 = vsel %vm94_vm0, %v10899_v13, 0.0  ;;  %8865 = vpow2.f32 %v4431_v35 }
0x17b6   :  { %v10903_v6 = vpop.eup %8859  ;;  %4443 = vadd.xlane.f32.xlu1 %v4442_v2  ;;  %8317 = vmatpush3.msra.mxu1 %v4488_v32  ;;  %8867 = vpow2.f32 %v4433_v31 }
0x17b7   :  { %v4439_v36 = vsel %vm94_vm0, %v10903_v6, 0.0  ;;  %8869 = vpow2.f32 %v4437_v58 }
0x17b8   :  { %4440 = vadd.xlane.f32.xlu0 %v4439_v36  ;;  %v4486_v29 = vpop.permute.xlu0 %4485 }
0x17b9   :  { %8318 = vmatprep.subr.mxu1 %v4486_v29 }
0x17ba   :  { %v10907_v42 = vpop.eup %8861  ;;  %8319 = vmatpush3.msra.mxu1 %v4486_v29 }
0x17bb   :  { %v4448_v25 = vsel %vm94_vm0, %v10907_v42, 0.0 }
0x17bc   :  { %4449 = vadd.xlane.f32.xlu0 %v4448_v25 }
0x17be   :  { %v10917_v14 = vpop.eup %8863 }
0x17bf   :  { %v4445_v22 = vsel %vm94_vm0, %v10917_v14, 0.0 }
0x17c2   :  { %v10921_v4 = vpop.eup %8865 }
0x17c3   :  { %v4451_v54 = vsel %vm94_vm0, %v10921_v4, 0.0  ;;  %v10925_v17 = vpop.eup %8867 }
0x17c4   :  { %v4454_v45 = vsel %vm94_vm0, %v10925_v17, 0.0  ;;  %v10929_v53 = vpop.eup %8869 }
0x17c7   :  { %4483 = vrot.lane.b32.xlu1 %v10623_v59, %s9021_s29 }
0x17d2   :  { %4481 = vrot.lane.b32.xlu0 %v10613_v27, %s9021_s29 }
0x17e9   :  { %v4411_v51 = vpop.xlane.xlu0 %4410 }
0x17ea   :  { %v4421_v47 = vsub.f32 %v4383_v20, %v4411_v51  ;;  %v4460_v20 = vsel %vm94_vm0, %v10929_v53, 0.0 }
0x17eb   :  { %4446 = vadd.xlane.f32.xlu1 %v4445_v22 }
0x17ec   :  { %v4435_v15 = vmul.f32 1.442695, %v4421_v47 }
0x17ee   :  { %8871 = vpow2.f32 %v4435_v15 }
0x17ef   :  { %4452 = vadd.xlane.f32.xlu1 %v4451_v54 }
0x17f3   :  { %4455 = vadd.xlane.f32.xlu1 %v4454_v45 }
0x17f7   :  { %4461 = vadd.xlane.f32.xlu1 %v4460_v20 }
0x17fb   :  { %v10933_v3 = vpop.eup %8871 }
0x17fc   :  { %v4457_v56 = vsel %vm94_vm0, %v10933_v3, 0.0 }
0x17fd   :  { %4458 = vadd.xlane.f32.xlu0 %v4457_v56 }
0x1808   :  { %4929 = vrot.lane.b32.xlu1 %v10599_v39, %s11859_s30 }
0x180c   :  { %4927 = vrot.lane.b32.xlu1 %v10601_v52, %s11859_s30 }
0x1810   :  { %4923 = vrot.lane.b32.xlu1 %v10617_v37, %s11859_s30 }
0x1813   :  { %4479 = vrot.lane.b32.xlu0 %v10592_v61, %s9021_s29  ;;  %s11861_s29 = smov 72  }
0x1814   :  { %4919 = vrot.lane.b32.xlu1 %v10623_v59, %s11859_s30 }
0x1817   :  { %4925 = vrot.lane.b32.xlu0 %v10609_v18, %s11859_s30 }
0x1818   :  { %4915 = vrot.lane.b32.xlu1 %v10592_v61, %s11859_s30 }
0x181b   :  { %4921 = vrot.lane.b32.xlu0 %v10605_v21, %s11859_s30 }
0x181c   :  { %4901 = vrot.lane.b32.xlu1 %v10666_v7, %s11860_s7 }
0x181f   :  { %4917 = vrot.lane.b32.xlu0 %v10613_v27, %s11859_s30 }
0x1820   :  { %4905 = vrot.lane.b32.xlu1 %v10676_v44, %s11860_s7 }
0x1823   :  { %4899 = vrot.lane.b32.xlu0 %v10595_v23, %s11860_s7 }
0x1824   :  { %4909 = vrot.lane.b32.xlu1 %v10686_v62, %s11860_s7 }
0x1827   :  { %4903 = vrot.lane.b32.xlu0 %v10669_v1, %s11860_s7 }
0x1828   :  { %4913 = vrot.lane.b32.xlu1 %v10696_v12, %s11860_s7 }
0x182b   :  { %4907 = vrot.lane.b32.xlu0 %v10679_v8, %s11860_s7 }
0x182c   :  { %5483 = vrot.lane.b32.xlu1 %v10601_v52, %s11861_s29 }
0x182f   :  { %4911 = vrot.lane.b32.xlu0 %v10689_v40, %s11860_s7 }
0x1830   :  { %5479 = vrot.lane.b32.xlu1 %v10617_v37, %s11861_s29 }
0x1833   :  { %5485 = vrot.lane.b32.xlu0 %v10599_v39, %s11861_s29 }
0x1834   :  { %5475 = vrot.lane.b32.xlu1 %v10623_v59, %s11861_s29 }
0x1837   :  { %5481 = vrot.lane.b32.xlu0 %v10609_v18, %s11861_s29 }
0x1838   :  { %5471 = vrot.lane.b32.xlu1 %v10592_v61, %s11861_s29 }
0x183b   :  { %5477 = vrot.lane.b32.xlu0 %v10605_v21, %s11861_s29 }
0x183c   :  { %5457 = vrot.lane.b32.xlu1 %v10666_v7, %s11862_s2 }
0x183f   :  { %v4444_v34 = vpop.xlane.xlu1 %4443  ;;  %5473 = vrot.lane.b32.xlu0 %v10613_v27, %s11861_s29 }
0x1840   :  { %5461 = vrot.lane.b32.xlu1 %v10676_v44, %s11862_s2 }
0x1841   :  { %v4441_v26 = vpop.xlane.xlu0 %4440 }
0x1842   :  { %8873 = vrcp.f32 %v4441_v26 }
0x1843   :  { %v4484_v41 = vpop.permute.xlu1 %4483  ;;  %5455 = vrot.lane.b32.xlu0 %v10595_v23, %s11862_s2  ;;  %8875 = vrcp.f32 %v4444_v34 }
0x1844   :  { %5465 = vrot.lane.b32.xlu1 %v10686_v62, %s11862_s2  ;;  %8320 = vmatprep.subr.mxu1 %v4484_v41 }
0x1845   :  { %8321 = vmatpush3.msra.mxu1 %v4484_v41  ;;  %v4450_v30 = vpop.xlane.xlu0 %4449 }
0x1847   :  { %5459 = vrot.lane.b32.xlu0 %v10669_v1, %s11862_s2 }
0x1848   :  { %5469 = vrot.lane.b32.xlu1 %v10696_v12, %s11862_s2 }
0x1849   :  { %v4482_v7 = vpop.permute.xlu0 %4481 }
0x184a   :  { %8322 = vmatprep.subr.mxu1 %v4482_v7 }
0x184b   :  { %5463 = vrot.lane.b32.xlu0 %v10679_v8, %s11862_s2  ;;  %8323 = vmatpush3.msra.mxu1 %v4482_v7 }
0x184f   :  { %v8874_v44 = vpop.eup %8873  ;;  %5467 = vrot.lane.b32.xlu0 %v10689_v40, %s11862_s2  ;;  %v7150_v40 = vld [vmem:[%s11816_s10 + $0x28] sm:$0xff] }
0x1850   :  { %v4471_v23 = vmul.f32 %v8874_v44, %v10903_v6  ;;  %v8876_v5 = vpop.eup %8875 }
0x1851   :  { %v4472_v11 = vmul.f32 %v8876_v5, %v10899_v13 }
0x1852   :  { %8326 = vmatprep.mubr.msk.f32.mxu1 %vm94_vm0, %v4471_v23 }
0x1874   :  { %v4447_v62 = vpop.xlane.xlu1 %4446 }
0x1875   :  { %8877 = vrcp.f32 %v4447_v62 }
0x1876   :  { %8879 = vrcp.f32 %v4450_v30 }
0x1878   :  { %v4453_v9 = vpop.xlane.xlu1 %4452 }
0x1879   :  { %8881 = vrcp.f32 %v4453_v9 }
0x187c   :  { %v4456_v1 = vpop.xlane.xlu1 %4455 }
0x187d   :  { %8883 = vrcp.f32 %v4456_v1 }
0x1880   :  { %v4462_v12 = vpop.xlane.xlu1 %4461 }
0x1881   :  { %8885 = vrcp.f32 %v4462_v12 }
0x1882   :  { %v8878_v43 = vpop.eup %8877 }
0x1883   :  { %v8880_v57 = vpop.eup %8879  ;;  %v4473_v55 = vmul.f32 %v8878_v43, %v10917_v14 }
0x1884   :  { %v4930_v2 = vpop.permute.xlu1 %4929  ;;  %v4474_v6 = vmul.f32 %v8880_v57, %v10907_v42 }
0x1886   :  { %v4459_v8 = vpop.xlane.xlu0 %4458  ;;  %v8882_v32 = vpop.eup %8881 }
0x1887   :  { %8887 = vrcp.f32 %v4459_v8  ;;  %v4475_v13 = vmul.f32 %v8882_v32, %v10921_v4 }
0x1888   :  { %v4928_v35 = vpop.permute.xlu1 %4927 }
0x188a   :  { %v4480_v46 = vpop.permute.xlu0 %4479  ;;  %v8884_v36 = vpop.eup %8883 }
0x188b   :  { %8324 = vmatprep.subr.mxu1 %v4480_v46  ;;  %v4476_v25 = vmul.f32 %v8884_v36, %v10925_v17 }
0x188c   :  { %8325 = vmatpush3.msra.mxu1 %v4480_v46  ;;  %v4924_v10 = vpop.permute.xlu1 %4923 }
0x188d   :  { %8327 = vmatmul.mubr.msk.f32.vlgmr.msra.gmra.mxu1 %vm94_vm0, %v4472_v11  ;;  %8338 = vmatprep.subr.mxu1 %v7150_v40 }
0x188e   :  { %8329 = vmatprep.mubr.msk.f32.mxu1 %vm94_vm0, %v4473_v55  ;;  %8339 = vmatpush3.msra.mxu1 %v7150_v40  ;;  %v8886_v29 = vpop.eup %8885  ;;  %v4926_v42 = vpop.permute.xlu0 %4925 }
0x188f   :  { %8366 = vmatprep.subr.msk.mxu1 %vm678_vm2, %v4930_v2  ;;  %v4478_v49 = vmul.f32 %v8886_v29, %v10929_v53 }
0x1890   :  { %v4920_v51 = vpop.permute.xlu1 %4919 }
0x1891   :  { %8330 = vmatmul.mubr.msk.f32.gmra.mxu1 %vm94_vm0, %v4474_v6 }
0x1892   :  { %8332 = vmatprep.mubr.msk.f32.mxu1 %vm94_vm0, %v4475_v13  ;;  %v4922_v28 = vpop.permute.xlu0 %4921 }
0x1894   :  { %v8888_v50 = vpop.eup %8887  ;;  %v4916_v54 = vpop.permute.xlu1 %4915 }
0x1895   :  { %8333 = vmatmul.mubr.msk.f32.gmra.mxu1 %vm94_vm0, %v4476_v25  ;;  %v4477_v19 = vmul.f32 %v8888_v50, %v10933_v3 }
0x1896   :  { %v4918_v31 = vpop.permute.xlu0 %4917 }
0x1897   :  { %8335 = vmatprep.mubr.msk.f32.mxu1 %vm94_vm0, %v4477_v19 }
0x1898   :  { %v4902_v3 = vpop.permute.xlu1 %4901 }
0x1899   :  { %8336 = vmatmul.mubr.msk.f32.gmra.mxu1 %vm94_vm0, %v4478_v49  ;;  %v7234_v49 = vld [vmem:[%s11815_s9 + $0x188] sm:$0xff] }
0x189a   :  { %v4900_v58 = vpop.permute.xlu0 %4899 }
0x189c   :  { %v4906_v26 = vpop.permute.xlu1 %4905 }
0x189e   :  { %v4904_v4 = vpop.permute.xlu0 %4903 }
0x18a0   :  { %v4910_v30 = vpop.permute.xlu1 %4909 }
0x18a2   :  { %v4908_v53 = vpop.permute.xlu0 %4907 }
0x18a4   :  { %v4914_v44 = vpop.permute.xlu1 %4913 }
0x18a6   :  { %v4912_v34 = vpop.permute.xlu0 %4911 }
0x18a8   :  { %v5484_v62 = vpop.permute.xlu1 %5483 }
0x18aa   :  { %v5486_v41 = vpop.permute.xlu0 %5485 }
0x18ac   :  { %v5480_v1 = vpop.permute.xlu1 %5479 }
0x18ae   :  { %v5482_v7 = vpop.permute.xlu0 %5481 }
0x18b0   :  { %v5476_v8 = vpop.permute.xlu1 %5475 }
0x18b2   :  { %v5478_v23 = vpop.permute.xlu0 %5477 }
0x18b4   :  { %v5472_v5 = vpop.permute.xlu1 %5471 }
0x18b6   :  { %v5474_v9 = vpop.permute.xlu0 %5473 }
0x18b8   :  { %v5458_v43 = vpop.permute.xlu1 %5457 }
0x18ba   :  { %v5456_v12 = vpop.permute.xlu0 %5455 }
0x18bc   :  { %v5462_v40 = vpop.permute.xlu1 %5461 }
0x18be   :  { %v5460_v46 = vpop.permute.xlu0 %5459 }
0x18c0   :  { %v5466_v57 = vpop.permute.xlu1 %5465 }
0x18c2   :  { %v5464_v11 = vpop.permute.xlu0 %5463 }
0x18c4   :  { %v5470_v32 = vpop.permute.xlu1 %5469 }
0x18c6   :  { %v5468_v55 = vpop.permute.xlu0 %5467 }
0x194d   :  { %v8328_v14 = vpop.f32.mrf.mxu1 }
0x194f   :  { %v4593_v47 = vpop.f32.mrf.mxu1 }
0x1950   :  { %8340 = vmatprep.mubr.msk.f32.mxu1 %vm678_vm2, %v4593_v47 }
0x1951   :  { %v8331_v22 = vpop.f32.mrf.mxu1  ;;  %8341 = vmatmul.mubr.msk.f32.vlgmr.msra.gmra.mxu1 %vm678_vm2, %v8328_v14 }
0x1952   :  { %8367 = vmatpush3.xpose.msk.msra.mxu1 %vm678_vm2, %v4930_v2 }
0x1953   :  { %8368 = vmatprep.subr.msk.mxu1 %vm678_vm2, %v4928_v35  ;;  %v4603_v15 = vpop.f32.mrf.mxu1 }
0x1954   :  { %8343 = vmatprep.mubr.msk.f32.mxu1 %vm678_vm2, %v4603_v15  ;;  %v7235_v15 = vld [vmem:[%s11815_s9 + $0x190] sm:$0xff] }
0x1955   :  { %v8334_v17 = vpop.f32.mrf.mxu1  ;;  %8344 = vmatmul.mubr.msk.f32.gmra.mxu1 %vm678_vm2, %v8331_v22 }
0x1956   :  { %8369 = vmatpush3.xpose.msk.msra.mxu1 %vm678_vm2, %v4928_v35 }
0x1957   :  { %8370 = vmatprep.subr.msk.mxu1 %vm678_vm2, %v4926_v42  ;;  %v4613_v45 = vpop.f32.mrf.mxu1 }
0x1958   :  { %8346 = vmatprep.mubr.msk.f32.mxu1 %vm678_vm2, %v4613_v45 }
0x1959   :  { %v8337_v20 = vpop.f32.mrf.mxu1  ;;  %8347 = vmatmul.mubr.msk.f32.gmra.mxu1 %vm678_vm2, %v8334_v17 }
0x195a   :  { %8371 = vmatpush3.xpose.msk.msra.mxu1 %vm678_vm2, %v4926_v42 }
0x195b   :  { %8372 = vmatprep.subr.msk.mxu1 %vm678_vm2, %v4924_v10  ;;  %v4623_v56 = vpop.f32.mrf.mxu1 }
0x195c   :  { %8349 = vmatprep.mubr.msk.f32.mxu1 %vm678_vm2, %v4623_v56  ;;  %v7237_v56 = vld [vmem:[%s11815_s9 + $0x1a0] sm:$0xff] }
0x195d   :  { %8350 = vmatmul.mubr.msk.f32.gmra.mxu1 %vm678_vm2, %v8337_v20 }
0x195e   :  { %8373 = vmatpush3.xpose.msk.msra.mxu1 %vm678_vm2, %v4924_v10  ;;  %8382 = vmatprep.mubr.msk.f32.mxu1 %vm678_vm2, %v4900_v58  ;;  %v7236_v10 = vld [vmem:[%s11815_s9 + $0x198] sm:$0xff] }
0x195f   :  { %8374 = vmatprep.subr.msk.mxu1 %vm678_vm2, %v4922_v28 }
0x1962   :  { %8375 = vmatpush3.xpose.msk.msra.mxu1 %vm678_vm2, %v4922_v28  ;;  %v7233_v28 = vld [vmem:[%s11815_s9 + $0x180] sm:$0xff] }
0x1963   :  { %8376 = vmatprep.subr.msk.mxu1 %vm678_vm2, %v4920_v51 }
0x1966   :  { %8377 = vmatpush3.xpose.msk.msra.mxu1 %vm678_vm2, %v4920_v51 }
0x1967   :  { %8378 = vmatprep.subr.msk.mxu1 %vm678_vm2, %v4918_v31 }
0x196a   :  { %8379 = vmatpush3.xpose.msk.msra.mxu1 %vm678_vm2, %v4918_v31 }
0x196b   :  { %8380 = vmatprep.subr.msk.mxu1 %vm678_vm2, %v4916_v54 }
0x196e   :  { %8381 = vmatpush3.xpose.msk.msra.mxu1 %vm678_vm2, %v4916_v54  ;;  %v7238_v54 = vld [vmem:[%s11815_s9 + $0x1a8] sm:$0xff] }
0x196f   :  { %8436 = vmatprep.subr.msk.mxu1 %vm678_vm2, %v5486_v41 }
0x1971   :  { %8383 = vmatmul.mubr.msk.f32.vlgmr.msra.gmra.mxu1 %vm678_vm2, %v4902_v3 }
0x1972   :  { %8385 = vmatprep.mubr.msk.f32.mxu1 %vm678_vm2, %v4904_v4  ;;  %8437 = vmatpush3.xpose.msk.msra.mxu1 %vm678_vm2, %v5486_v41 }
0x1973   :  { %8438 = vmatprep.subr.msk.mxu1 %vm678_vm2, %v5484_v62 }
0x1975   :  { %8386 = vmatmul.mubr.msk.f32.gmra.mxu1 %vm678_vm2, %v4906_v26 }
0x1976   :  { %8388 = vmatprep.mubr.msk.f32.mxu1 %vm678_vm2, %v4908_v53  ;;  %8439 = vmatpush3.xpose.msk.msra.mxu1 %vm678_vm2, %v5484_v62  ;;  %v7239_v62 = vld [vmem:[%s11815_s9 + $0x1b0] sm:$0xff] }
0x1977   :  { %8440 = vmatprep.subr.msk.mxu1 %vm678_vm2, %v5482_v7 }
0x1979   :  { %8389 = vmatmul.mubr.msk.f32.gmra.mxu1 %vm678_vm2, %v4910_v30 }
0x197a   :  { %8391 = vmatprep.mubr.msk.f32.mxu1 %vm678_vm2, %v4912_v34  ;;  %8441 = vmatpush3.xpose.msk.msra.mxu1 %vm678_vm2, %v5482_v7  ;;  %v7240_v34 = vld [vmem:[%s11815_s9 + $0x1b8] sm:$0xff] }
0x197b   :  { %8442 = vmatprep.subr.msk.mxu1 %vm678_vm2, %v5480_v1 }
0x197d   :  { %8392 = vmatmul.mubr.msk.f32.gmra.mxu1 %vm678_vm2, %v4914_v44 }
0x197e   :  { %8443 = vmatpush3.xpose.msk.msra.mxu1 %vm678_vm2, %v5480_v1  ;;  %8452 = vmatprep.mubr.msk.f32.mxu1 %vm678_vm2, %v5456_v12 }
0x197f   :  { %8444 = vmatprep.subr.msk.mxu1 %vm678_vm2, %v5478_v23 }
0x1982   :  { %8445 = vmatpush3.xpose.msk.msra.mxu1 %vm678_vm2, %v5478_v23 }
0x1983   :  { %8446 = vmatprep.subr.msk.mxu1 %vm678_vm2, %v5476_v8 }
0x1986   :  { %8447 = vmatpush3.xpose.msk.msra.mxu1 %vm678_vm2, %v5476_v8 }
0x1987   :  { %8448 = vmatprep.subr.msk.mxu1 %vm678_vm2, %v5474_v9 }
0x198a   :  { %8449 = vmatpush3.xpose.msk.msra.mxu1 %vm678_vm2, %v5474_v9 }
0x198b   :  { %8450 = vmatprep.subr.msk.mxu1 %vm678_vm2, %v5472_v5 }
0x198e   :  { %8451 = vmatpush3.xpose.msk.msra.mxu1 %vm678_vm2, %v5472_v5 }
0x1991   :  { %8453 = vmatmul.mubr.msk.f32.vlgmr.msra.gmra.mxu1 %vm678_vm2, %v5458_v43 }
0x1992   :  { %8455 = vmatprep.mubr.msk.f32.mxu1 %vm678_vm2, %v5460_v46 }
0x1995   :  { %8456 = vmatmul.mubr.msk.f32.gmra.mxu1 %vm678_vm2, %v5462_v40 }
0x1996   :  { %8458 = vmatprep.mubr.msk.f32.mxu1 %vm678_vm2, %v5464_v11 }
0x1999   :  { %8459 = vmatmul.mubr.msk.f32.gmra.mxu1 %vm678_vm2, %v5466_v57 }
0x199a   :  { %8461 = vmatprep.mubr.msk.f32.mxu1 %vm678_vm2, %v5468_v55 }
0x199d   :  { %8462 = vmatmul.mubr.msk.f32.gmra.mxu1 %vm678_vm2, %v5470_v32 }
0x1a11   :  { %v11078_v2 = vpop.f32.mrf.mxu1 }
0x1a13   :  { %v11080_v6 = vpop.f32.mrf.mxu1 }
0x1a15   :  { %v11082_v36 = vpop.f32.mrf.mxu1 }
0x1a17   :  { %v11084_v13 = vpop.f32.mrf.mxu1 }
0x1a19   :  { %v11086_v29 = vpop.f32.mrf.mxu1 }
0x1a1b   :  { %v11088_v25 = vpop.f32.mrf.mxu1 }
0x1a1d   :  { %v11090_v50 = vpop.f32.mrf.mxu1 }
0x1a1f   :  { %v11092_v19 = vpop.f32.mrf.mxu1 }
0x1a31   :  { %v8384_v42 = vpop.f32.mrf.mxu1 }
0x1a32   :  { %v5035_v35 = vadd.f32 %v8384_v42, %v7234_v49 }
0x1a33   :  { %v5029_v31 = vpop.f32.mrf.mxu1 }
0x1a34   :  { %v5030_v58 = vadd.f32 %v7233_v28, %v5029_v31  ;;  %v5071_v14 = vsel %vm94_vm0, %v5035_v35, -inf }
0x1a35   :  { %5072 = vmax.xlane.f32.xlu1 %v5071_v14  ;;  %v8387_v51 = vpop.f32.mrf.mxu1 }
0x1a36   :  { %v5045_v47 = vadd.f32 %v8387_v51, %v7236_v10  ;;  %v5068_v22 = vsel %vm94_vm0, %v5030_v58, -inf }
0x1a37   :  { %5069 = vmax.xlane.f32.xlu0 %v5068_v22  ;;  %v5039_v4 = vpop.f32.mrf.mxu1 }
0x1a38   :  { %v5040_v45 = vadd.f32 %v7235_v15, %v5039_v4  ;;  %v5077_v20 = vsel %vm94_vm0, %v5045_v47, -inf }
0x1a39   :  { %v8390_v17 = vpop.f32.mrf.mxu1 }
0x1a3a   :  { %v5055_v53 = vadd.f32 %v8390_v17, %v7238_v54  ;;  %v5074_v44 = vsel %vm94_vm0, %v5040_v45, -inf }
0x1a3b   :  { %5078 = vmax.xlane.f32.xlu0 %v5077_v20  ;;  %v5049_v3 = vpop.f32.mrf.mxu1 }
0x1a3c   :  { %v5083_v26 = vsel %vm94_vm0, %v5055_v53, -inf  ;;  %v5050_v30 = vadd.f32 %v7237_v56, %v5049_v3 }
0x1a3d   :  { %5084 = vmax.xlane.f32.xlu1 %v5083_v26  ;;  %v8393_v41 = vpop.f32.mrf.mxu1 }
0x1a3e   :  { %v5065_v7 = vadd.f32 %v8393_v41, %v7240_v34  ;;  %v5080_v12 = vsel %vm94_vm0, %v5050_v30, -inf }
0x1a3f   :  { %5075 = vmax.xlane.f32.xlu0 %v5074_v44  ;;  %v5059_v23 = vpop.f32.mrf.mxu1 }
0x1a40   :  { %v5089_v9 = vsel %vm94_vm0, %v5065_v7, -inf  ;;  %v5060_v1 = vadd.f32 %v7239_v62, %v5059_v23 }
0x1a41   :  { %5090 = vmax.xlane.f32.xlu1 %v5089_v9 }
0x1a42   :  { %v5086_v8 = vsel %vm94_vm0, %v5060_v1, -inf }
0x1a43   :  { %5081 = vmax.xlane.f32.xlu0 %v5080_v12 }
0x1a47   :  { %5087 = vmax.xlane.f32.xlu0 %v5086_v8 }
0x1a52   :  { %5168 = vrot.lane.b32.xlu1 %v10601_v52, %s11863_s23 }
0x1a56   :  { %5166 = vrot.lane.b32.xlu1 %v10609_v18, %s11863_s23 }
0x1a5a   :  { %5164 = vrot.lane.b32.xlu1 %v10617_v37, %s11863_s23 }
0x1a5d   :  { %5170 = vrot.lane.b32.xlu0 %v10599_v39, %s11863_s23 }
0x1a5e   :  { %5160 = vrot.lane.b32.xlu1 %v10623_v59, %s11863_s23 }
0x1a61   :  { %5162 = vrot.lane.b32.xlu0 %v10605_v21, %s11863_s23 }
0x1abe   :  { %v5073_v5 = vpop.xlane.xlu1 %5072 }
0x1abf   :  { %v5093_v43 = vsub.f32 %v5035_v35, %v5073_v5 }
0x1ac0   :  { %v5070_v46 = vpop.xlane.xlu0 %5069 }
0x1ac1   :  { %v5102_v40 = vmul.f32 1.442695, %v5093_v43  ;;  %v5092_v11 = vsub.f32 %v5030_v58, %v5070_v46 }
0x1ac3   :  { %8889 = vpow2.f32 %v5102_v40  ;;  %v5100_v57 = vmul.f32 1.442695, %v5092_v11 }
0x1ac4   :  { %v5079_v55 = vpop.xlane.xlu0 %5078 }
0x1ac5   :  { %8891 = vpow2.f32 %v5100_v57  ;;  %v5095_v32 = vsub.f32 %v5045_v47, %v5079_v55  ;;  %v8454_v55 = vpop.f32.mrf.mxu1 }
0x1ac6   :  { %v5085_v49 = vpop.xlane.xlu1 %5084 }
0x1ac7   :  { %v5106_v42 = vmul.f32 1.442695, %v5095_v32  ;;  %v5097_v28 = vsub.f32 %v5055_v53, %v5085_v49  ;;  %v5585_v32 = vpop.f32.mrf.mxu1 }
0x1ac8   :  { %v5076_v31 = vpop.xlane.xlu0 %5075 }
0x1ac9   :  { %8893 = vpow2.f32 %v5106_v42  ;;  %v5110_v10 = vmul.f32 1.442695, %v5097_v28  ;;  %v5094_v14 = vsub.f32 %v5040_v45, %v5076_v31  ;;  %v8457_v49 = vpop.f32.mrf.mxu1  ;;  %v7274_v28 = vld [vmem:[%s11815_s9 + $0x1c8] sm:$0xff] }
0x1aca   :  { %v5091_v51 = vpop.xlane.xlu1 %5090 }
0x1acb   :  { %8895 = vpow2.f32 %v5110_v10  ;;  %v5104_v22 = vmul.f32 1.442695, %v5094_v14  ;;  %v5099_v4 = vsub.f32 %v5065_v7, %v5091_v51  ;;  %v5595_v42 = vpop.f32.mrf.mxu1  ;;  %v11177_v10 = vadd.f32 %v8454_v55, %v7274_v28  ;;  %v7278_v14 = vld [vmem:[%s11815_s9 + $0x1e8] sm:$0xff] }
0x1acc   :  { %v5082_v35 = vpop.xlane.xlu0 %5081 }
0x1acd   :  { %8897 = vpow2.f32 %v5104_v22  ;;  %v5114_v15 = vmul.f32 1.442695, %v5099_v4  ;;  %v5096_v58 = vsub.f32 %v5050_v30, %v5082_v35  ;;  %v8460_v31 = vpop.f32.mrf.mxu1  ;;  %v7273_v22 = vld [vmem:[%s11815_s9 + $0x1c0] sm:$0xff]  ;;  %v5627_v35 = vsel %vm94_vm0, %v11177_v10, -inf }
0x1ace   :  { %v5169_v54 = vpop.permute.xlu1 %5168  ;;  %v11185_v4 = vadd.f32 %v8460_v31, %v7278_v14 }
0x1acf   :  { %8899 = vpow2.f32 %v5114_v15  ;;  %v5108_v17 = vmul.f32 1.442695, %v5096_v58  ;;  %v5605_v51 = vpop.f32.mrf.mxu1  ;;  %v11189_v15 = vadd.f32 %v7273_v22, %v5585_v32  ;;  %v7280_v58 = vld [vmem:[%s11815_s9 + $0x1f8] sm:$0xff]  ;;  %v7151_v22 = vld [vmem:[%s11816_s10 + $0x30] sm:$0xff] }
0x1ad0   :  { %v11138_v20 = vpop.eup %8889  ;;  %v5088_v47 = vpop.xlane.xlu0 %5087 }
0x1ad1   :  { %8901 = vpow2.f32 %v5108_v17  ;;  %v5098_v53 = vsub.f32 %v5060_v1, %v5088_v47  ;;  %v5119_v3 = vsel %vm94_vm0, %v11138_v20, 0.0  ;;  %v7275_v17 = vld [vmem:[%s11815_s9 + $0x1d0] sm:$0xff] }
0x1ad2   :  { %v11142_v45 = vpop.eup %8891  ;;  %5120 = vadd.xlane.f32.xlu1 %v5119_v3  ;;  %v5167_v34 = vpop.permute.xlu1 %5166  ;;  %v11201_v3 = vadd.f32 %v7275_v17, %v5595_v42 }
0x1ad3   :  { %v5112_v56 = vmul.f32 1.442695, %v5098_v53  ;;  %v5116_v26 = vsel %vm94_vm0, %v11142_v45, 0.0  ;;  %v5639_v53 = vsel %vm94_vm0, %v11185_v4, -inf }
0x1ad4   :  { %5117 = vadd.xlane.f32.xlu0 %v5116_v26  ;;  %v5171_v41 = vpop.permute.xlu0 %5170 }
0x1ad5   :  { %8903 = vpow2.f32 %v5112_v56  ;;  %8394 = vmatprep.subr.mxu0 %v5171_v41  ;;  %v5624_v56 = vsel %vm94_vm0, %v11189_v15, -inf }
0x1ad6   :  { %v11146_v30 = vpop.eup %8893  ;;  %8395 = vmatpush3.msra.mxu0 %v5171_v41  ;;  %v5165_v23 = vpop.permute.xlu1 %5164 }
0x1ad7   :  { %8396 = vmatprep.subr.mxu0 %v5169_v54  ;;  %v5125_v7 = vsel %vm94_vm0, %v11146_v30, 0.0 }
0x1ad8   :  { %v11150_v44 = vpop.eup %8895  ;;  %5126 = vadd.xlane.f32.xlu1 %v5125_v7  ;;  %8397 = vmatpush3.msra.mxu0 %v5169_v54  ;;  %v5163_v8 = vpop.permute.xlu0 %5162  ;;  %v5630_v7 = vsel %vm94_vm0, %v11201_v3, -inf }
0x1ad9   :  { %8398 = vmatprep.subr.mxu0 %v5167_v34  ;;  %v5131_v9 = vsel %vm94_vm0, %v11150_v44, 0.0  ;;  %v8463_v54 = vpop.f32.mrf.mxu1 }
0x1ada   :  { %v11152_v62 = vpop.eup %8897  ;;  %8399 = vmatpush3.msra.mxu0 %v5167_v34  ;;  %v5161_v43 = vpop.permute.xlu1 %5160  ;;  %v11197_v47 = vadd.f32 %v8463_v54, %v7280_v58  ;;  %v7276_v34 = vld [vmem:[%s11815_s9 + $0x1d8] sm:$0xff] }
0x1adb   :  { %8400 = vmatprep.subr.mxu0 %v5165_v23  ;;  %v5122_v1 = vsel %vm94_vm0, %v11152_v62, 0.0  ;;  %v11210_v41 = vadd.f32 %v8457_v49, %v7276_v34 }
0x1adc   :  { %v11158_v12 = vpop.eup %8899  ;;  %5132 = vadd.xlane.f32.xlu1 %v5131_v9  ;;  %5123 = vadd.xlane.f32.xlu0 %v5122_v1  ;;  %v5645_v26 = vsel %vm94_vm0, %v11197_v47, -inf }
0x1add   :  { %8401 = vmatpush3.msra.mxu0 %v5165_v23  ;;  %v5137_v46 = vsel %vm94_vm0, %v11158_v12, 0.0  ;;  %v7277_v23 = vld [vmem:[%s11815_s9 + $0x1e0] sm:$0xff]  ;;  %v5633_v1 = vsel %vm94_vm0, %v11210_v41, -inf }
0x1ade   :  { %v11160_v5 = vpop.eup %8901  ;;  %8402 = vmatprep.subr.mxu0 %v5163_v8  ;;  %v11217_v9 = vadd.f32 %v7277_v23, %v5605_v51 }
0x1adf   :  { %8403 = vmatpush3.msra.mxu0 %v5163_v8  ;;  %v5128_v40 = vsel %vm94_vm0, %v11160_v5, 0.0  ;;  %v5615_v8 = vpop.f32.mrf.mxu1 }
0x1ae0   :  { %8404 = vmatprep.subr.mxu0 %v5161_v43  ;;  %5138 = vadd.xlane.f32.xlu1 %v5137_v46 }
0x1ae1   :  { %5129 = vadd.xlane.f32.xlu0 %v5128_v40  ;;  %8405 = vmatpush3.msra.mxu0 %v5161_v43  ;;  %v7279_v43 = vld [vmem:[%s11815_s9 + $0x1f0] sm:$0xff]  ;;  %v5636_v40 = vsel %vm94_vm0, %v11217_v9, -inf }
0x1ae2   :  { %v11166_v11 = vpop.eup %8903  ;;  %v11224_v46 = vadd.f32 %v7279_v43, %v5615_v8 }
0x1ae3   :  { %v5134_v57 = vsel %vm94_vm0, %v11166_v11, 0.0 }
0x1ae5   :  { %5135 = vadd.xlane.f32.xlu0 %v5134_v57  ;;  %v5642_v57 = vsel %vm94_vm0, %v11224_v46, -inf }
0x1af1   :  { %5156 = vrot.lane.b32.xlu1 %v10592_v61, %s11863_s23 }
0x1afb   :  { %5158 = vrot.lane.b32.xlu0 %v10613_v27, %s11863_s23  ;;  %s11864_s23 = smov 40  }
0x1b15   :  { %5628 = vmax.xlane.f32.xlu1 %v5627_v35 }
0x1b19   :  { %5640 = vmax.xlane.f32.xlu1 %v5639_v53 }
0x1b1a   :  { %5625 = vmax.xlane.f32.xlu0 %v5624_v56 }
0x1b1d   :  { %5646 = vmax.xlane.f32.xlu1 %v5645_v26 }
0x1b1e   :  { %5631 = vmax.xlane.f32.xlu0 %v5630_v7 }
0x1b22   :  { %5634 = vmax.xlane.f32.xlu0 %v5633_v1 }
0x1b26   :  { %5637 = vmax.xlane.f32.xlu0 %v5636_v40 }
0x1b2a   :  { %5643 = vmax.xlane.f32.xlu0 %v5642_v57 }
0x1b2e   :  { %5724 = vrot.lane.b32.xlu1 %v10601_v52, %s11864_s23 }
0x1b32   :  { %5722 = vrot.lane.b32.xlu1 %v10609_v18, %s11864_s23 }
0x1b36   :  { %5720 = vrot.lane.b32.xlu1 %v10617_v37, %s11864_s23 }
0x1b3a   :  { %5716 = vrot.lane.b32.xlu1 %v10623_v59, %s11864_s23 }
0x1b40   :  { %5726 = vrot.lane.b32.xlu0 %v10599_v39, %s11864_s23 }
0x1b44   :  { %5718 = vrot.lane.b32.xlu0 %v10605_v21, %s11864_s23 }
0x1b5b   :  { %v5121_v32 = vpop.xlane.xlu1 %5120 }
0x1b5d   :  { %v5118_v55 = vpop.xlane.xlu0 %5117 }
0x1b5e   :  { %8905 = vrcp.f32 %v5118_v55 }
0x1b5f   :  { %8907 = vrcp.f32 %v5121_v32 }
0x1b61   :  { %v5127_v49 = vpop.xlane.xlu1 %5126 }
0x1b65   :  { %v5124_v52 = vpop.xlane.xlu0 %5123  ;;  %v5133_v18 = vpop.xlane.xlu1 %5132 }
0x1b66   :  { %8909 = vrcp.f32 %v5124_v52 }
0x1b67   :  { %8911 = vrcp.f32 %v5127_v49 }
0x1b69   :  { %v5139_v28 = vpop.xlane.xlu1 %5138 }
0x1b6a   :  { %v5130_v42 = vpop.xlane.xlu0 %5129 }
0x1b6b   :  { %v8906_v37 = vpop.eup %8905  ;;  %8913 = vrcp.f32 %v5130_v42 }
0x1b6c   :  { %v5148_v59 = vmul.f32 %v8906_v37, %v11142_v45  ;;  %8915 = vrcp.f32 %v5133_v18  ;;  %v8908_v21 = vpop.eup %8907 }
0x1b6d   :  { %v5157_v51 = vpop.permute.xlu1 %5156  ;;  %v5149_v35 = vmul.f32 %v8908_v21, %v11138_v20 }
0x1b6e   :  { %v5136_v39 = vpop.xlane.xlu0 %5135  ;;  %8410 = vmatprep.mubr.msk.f32.mxu0 %vm94_vm0, %v5148_v59 }
0x1b6f   :  { %8917 = vrcp.f32 %v5136_v39 }
0x1b70   :  { %8919 = vrcp.f32 %v5139_v28 }
0x1b72   :  { %v5159_v31 = vpop.permute.xlu0 %5158 }
0x1b73   :  { %8406 = vmatprep.subr.mxu0 %v5159_v31  ;;  %v8910_v14 = vpop.eup %8909 }
0x1b74   :  { %8407 = vmatpush3.msra.mxu0 %v5159_v31  ;;  %v5150_v45 = vmul.f32 %v8910_v14, %v11152_v62  ;;  %v8912_v58 = vpop.eup %8911 }
0x1b75   :  { %8408 = vmatprep.subr.mxu0 %v5157_v51  ;;  %v5151_v17 = vmul.f32 %v8912_v58, %v11146_v30 }
0x1b76   :  { %8409 = vmatpush3.msra.mxu0 %v5157_v51 }
0x1b77   :  { %8411 = vmatmul.mubr.msk.f32.vlgmr.msra.gmra.mxu0 %vm94_vm0, %v5149_v35  ;;  %8422 = vmatprep.subr.mxu0 %v7151_v22 }
0x1b78   :  { %v8914_v54 = vpop.eup %8913  ;;  %8413 = vmatprep.mubr.msk.f32.mxu0 %vm94_vm0, %v5150_v45  ;;  %8423 = vmatpush3.msra.mxu0 %v7151_v22 }
0x1b79   :  { %v5152_v53 = vmul.f32 %v8914_v54, %v11160_v5  ;;  %v8916_v56 = vpop.eup %8915 }
0x1b7a   :  { %v5153_v62 = vmul.f32 %v8916_v56, %v11150_v44 }
0x1b7b   :  { %8414 = vmatmul.mubr.msk.f32.gmra.mxu0 %vm94_vm0, %v5151_v17 }
0x1b7c   :  { %v8918_v20 = vpop.eup %8917  ;;  %8416 = vmatprep.mubr.msk.f32.mxu0 %vm94_vm0, %v5152_v53 }
0x1b7d   :  { %v5154_v34 = vmul.f32 %v8918_v20, %v11166_v11  ;;  %v8920_v26 = vpop.eup %8919  ;;  %v11305_v20 = vpop.f32.mrf.mxu0 }
0x1b7e   :  { %v5155_v7 = vmul.f32 %v8920_v26, %v11158_v12 }
0x1b7f   :  { %8417 = vmatmul.mubr.msk.f32.gmra.mxu0 %vm94_vm0, %v5153_v62  ;;  %v11307_v62 = vpop.f32.mrf.mxu0 }
0x1b80   :  { %8419 = vmatprep.mubr.msk.f32.mxu0 %vm94_vm0, %v5154_v34 }
0x1b81   :  { %v11309_v34 = vpop.f32.mrf.mxu0 }
0x1b83   :  { %8420 = vmatmul.mubr.msk.f32.gmra.mxu0 %vm94_vm0, %v5155_v7  ;;  %v11311_v26 = vpop.f32.mrf.mxu0 }
0x1b85   :  { %v11313_v7 = vpop.f32.mrf.mxu0 }
0x1b9e   :  { %v5629_v30 = vpop.xlane.xlu1 %5628 }
0x1b9f   :  { %v5649_v5 = vsub.f32 %v11177_v10, %v5629_v30  ;;  %v11315_v30 = vpop.f32.mrf.mxu0 }
0x1ba1   :  { %v5658_v23 = vmul.f32 1.442695, %v5649_v5 }
0x1ba2   :  { %v5641_v44 = vpop.xlane.xlu1 %5640 }
0x1ba3   :  { %8921 = vpow2.f32 %v5658_v23  ;;  %v5626_v1 = vpop.xlane.xlu0 %5625  ;;  %v5653_v57 = vsub.f32 %v11185_v4, %v5641_v44  ;;  %v11317_v23 = vpop.f32.mrf.mxu0 }
0x1ba4   :  { %v5648_v8 = vsub.f32 %v11189_v15, %v5626_v1 }
0x1ba5   :  { %v5666_v10 = vmul.f32 1.442695, %v5653_v57 }
0x1ba6   :  { %v5656_v43 = vmul.f32 1.442695, %v5648_v8  ;;  %v5647_v12 = vpop.xlane.xlu1 %5646 }
0x1ba7   :  { %v5632_v11 = vpop.xlane.xlu0 %5631  ;;  %v5655_v52 = vsub.f32 %v11197_v47, %v5647_v12 }
0x1ba8   :  { %8923 = vpow2.f32 %v5656_v43  ;;  %v5650_v40 = vsub.f32 %v11201_v3, %v5632_v11 }
0x1ba9   :  { %v5670_v4 = vmul.f32 1.442695, %v5655_v52 }
0x1baa   :  { %v5660_v55 = vmul.f32 1.442695, %v5650_v40  ;;  %v5725_v5 = vpop.permute.xlu1 %5724 }
0x1bab   :  { %v5635_v32 = vpop.xlane.xlu0 %5634 }
0x1bac   :  { %8925 = vpow2.f32 %v5660_v55  ;;  %v5651_v49 = vsub.f32 %v11210_v41, %v5635_v32 }
0x1bae   :  { %v5662_v18 = vmul.f32 1.442695, %v5651_v49  ;;  %v5723_v1 = vpop.permute.xlu1 %5722 }
0x1baf   :  { %v5638_v42 = vpop.xlane.xlu0 %5637 }
0x1bb0   :  { %v11267_v15 = vpop.eup %8921  ;;  %8927 = vpow2.f32 %v5662_v18  ;;  %v5652_v37 = vsub.f32 %v11217_v9, %v5638_v42 }
0x1bb1   :  { %v5675_v3 = vsel %vm94_vm0, %v11267_v15, 0.0  ;;  %8929 = vpow2.f32 %v5666_v10 }
0x1bb2   :  { %v5664_v59 = vmul.f32 1.442695, %v5652_v37  ;;  %5676 = vadd.xlane.f32.xlu1 %v5675_v3  ;;  %v5721_v44 = vpop.permute.xlu1 %5720 }
0x1bb3   :  { %v5644_v28 = vpop.xlane.xlu0 %5643 }
0x1bb4   :  { %8931 = vpow2.f32 %v5664_v59  ;;  %v5654_v41 = vsub.f32 %v11224_v46, %v5644_v28 }
0x1bb5   :  { %v11273_v39 = vpop.eup %8923  ;;  %8933 = vpow2.f32 %v5670_v4 }
0x1bb6   :  { %v5668_v47 = vmul.f32 1.442695, %v5654_v41  ;;  %v5672_v21 = vsel %vm94_vm0, %v11273_v39, 0.0  ;;  %v5717_v55 = vpop.permute.xlu1 %5716 }
0x1bb7   :  { %5673 = vadd.xlane.f32.xlu0 %v5672_v21  ;;  %v5727_v9 = vpop.permute.xlu0 %5726 }
0x1bb8   :  { %8935 = vpow2.f32 %v5668_v47  ;;  %8464 = vmatprep.subr.mxu0 %v5727_v9 }
0x1bb9   :  { %v11277_v31 = vpop.eup %8925 }
0x1bba   :  { %v5678_v14 = vsel %vm94_vm0, %v11277_v31, 0.0 }
0x1bbb   :  { %5679 = vadd.xlane.f32.xlu0 %v5678_v14  ;;  %v5719_v11 = vpop.permute.xlu0 %5718 }
0x1bbd   :  { %v11281_v51 = vpop.eup %8927 }
0x1bbe   :  { %v5681_v46 = vsel %vm94_vm0, %v11281_v51, 0.0  ;;  %v11285_v22 = vpop.eup %8929 }
0x1bbf   :  { %5682 = vadd.xlane.f32.xlu1 %v5681_v46  ;;  %v5687_v45 = vsel %vm94_vm0, %v11285_v22, 0.0 }
0x1bc1   :  { %v11287_v35 = vpop.eup %8931 }
0x1bc2   :  { %v5684_v58 = vsel %vm94_vm0, %v11287_v35, 0.0  ;;  %v11293_v54 = vpop.eup %8933 }
0x1bc3   :  { %5688 = vadd.xlane.f32.xlu1 %v5687_v45  ;;  %5685 = vadd.xlane.f32.xlu0 %v5684_v58  ;;  %v5693_v53 = vsel %vm94_vm0, %v11293_v54, 0.0 }
0x1bc5   :  { %v11295_v17 = vpop.eup %8935 }
0x1bc6   :  { %v5690_v56 = vsel %vm94_vm0, %v11295_v17, 0.0 }
0x1bc7   :  { %5694 = vadd.xlane.f32.xlu1 %v5693_v53  ;;  %5691 = vadd.xlane.f32.xlu0 %v5690_v56 }
0x1bd8   :  { %5712 = vrot.lane.b32.xlu1 %v10592_v61, %s11864_s23  ;;  %v11319_v61 = vpop.f32.mrf.mxu0 }
0x1bdd   :  { %5714 = vrot.lane.b32.xlu0 %v10613_v27, %s11864_s23 }
0x1c37   :  { %v8412_v8 = vpop.f32.mrf.mxu0 }
0x1c39   :  { %v5270_v27 = vpop.f32.mrf.mxu0 }
0x1c3a   :  { %8424 = vmatprep.mubr.msk.f32.mxu0 %vm678_vm2, %v5270_v27 }
0x1c3b   :  { %v8415_v43 = vpop.f32.mrf.mxu0  ;;  %8425 = vmatmul.mubr.msk.f32.vlgmr.msra.gmra.mxu0 %vm678_vm2, %v8412_v8  ;;  %v5677_v10 = vpop.xlane.xlu1 %5676 }
0x1c3c   :  { %8465 = vmatpush3.msra.mxu0 %v5727_v9 }
0x1c3d   :  { %8466 = vmatprep.subr.mxu0 %v5725_v5  ;;  %v5280_v40 = vpop.f32.mrf.mxu0 }
0x1c3e   :  { %8467 = vmatpush3.msra.mxu0 %v5725_v5  ;;  %8427 = vmatprep.mubr.msk.f32.mxu0 %vm678_vm2, %v5280_v40 }
0x1c3f   :  { %8468 = vmatprep.subr.mxu0 %v5723_v1  ;;  %v8418_v57 = vpop.f32.mrf.mxu0  ;;  %8428 = vmatmul.mubr.msk.f32.gmra.mxu0 %vm678_vm2, %v8415_v43 }
0x1c40   :  { %8469 = vmatpush3.msra.mxu0 %v5723_v1  ;;  %v5674_v12 = vpop.xlane.xlu0 %5673 }
0x1c41   :  { %8470 = vmatprep.subr.mxu0 %v5721_v44  ;;  %8937 = vrcp.f32 %v5674_v12  ;;  %v5290_v32 = vpop.f32.mrf.mxu0 }
0x1c42   :  { %8471 = vmatpush3.msra.mxu0 %v5721_v44  ;;  %8430 = vmatprep.mubr.msk.f32.mxu0 %vm678_vm2, %v5290_v32  ;;  %8939 = vrcp.f32 %v5677_v10  ;;  %v4877_v32 = vadd.f32 %v11313_v7, %v11086_v29 }
0x1c43   :  { %8472 = vmatprep.subr.mxu0 %v5719_v11  ;;  %v8421_v49 = vpop.f32.mrf.mxu0  ;;  %8431 = vmatmul.mubr.msk.f32.gmra.mxu0 %vm678_vm2, %v8418_v57  ;;  %v4862_v57 = vadd.f32 %v11311_v26, %v11084_v13  ;;  %v4882_v13 = vadd.f32 %v11319_v61, %v11092_v19 }
0x1c44   :  { %8473 = vmatpush3.msra.mxu0 %v5719_v11  ;;  %v5680_v52 = vpop.xlane.xlu0 %5679 }
0x1c45   :  { %8474 = vmatprep.subr.mxu0 %v5717_v55  ;;  %v5300_v18 = vpop.f32.mrf.mxu0  ;;  %8941 = vrcp.f32 %v5680_v52 }
0x1c46   :  { %8475 = vmatpush3.msra.mxu0 %v5717_v55  ;;  %8433 = vmatprep.mubr.msk.f32.mxu0 %vm678_vm2, %v5300_v18 }
0x1c47   :  { %8434 = vmatmul.mubr.msk.f32.gmra.mxu0 %vm678_vm2, %v8421_v49 }
0x1c48   :  { %v5683_v42 = vpop.xlane.xlu1 %5682 }
0x1c49   :  { %8943 = vrcp.f32 %v5683_v42 }
0x1c4c   :  { %v5689_v37 = vpop.xlane.xlu1 %5688  ;;  %v5686_v3 = vpop.xlane.xlu0 %5685 }
0x1c4d   :  { %8945 = vrcp.f32 %v5686_v3  ;;  %v7314_v3 = vld [vmem:[%s11817_s11 + $0x1] ss:$0 sm:$0xff] }
0x1c4e   :  { %v8938_v4 = vpop.eup %8937  ;;  %8947 = vrcp.f32 %v5689_v37 }
0x1c4f   :  { %v5704_v59 = vmul.f32 %v8938_v4, %v11273_v39  ;;  %v8940_v47 = vpop.eup %8939 }
0x1c50   :  { %v5695_v28 = vpop.xlane.xlu1 %5694  ;;  %v5692_v41 = vpop.xlane.xlu0 %5691  ;;  %v5705_v46 = vmul.f32 %v8940_v47, %v11267_v15 }
0x1c51   :  { %8480 = vmatprep.mubr.msk.f32.mxu0 %vm94_vm0, %v5704_v59  ;;  %8949 = vrcp.f32 %v5692_v41 }
0x1c52   :  { %8951 = vrcp.f32 %v5695_v28  ;;  %v8942_v9 = vpop.eup %8941 }
0x1c53   :  { %v5706_v58 = vmul.f32 %v8942_v9, %v11277_v31 }
0x1c54   :  { %v5715_v21 = vpop.permute.xlu0 %5714  ;;  %v5713_v14 = vpop.permute.xlu1 %5712 }
0x1c55   :  { %8476 = vmatprep.subr.mxu0 %v5715_v21 }
0x1c56   :  { %8477 = vmatpush3.msra.mxu0 %v5715_v21  ;;  %v8944_v45 = vpop.eup %8943 }
0x1c57   :  { %8478 = vmatprep.subr.mxu0 %v5713_v14  ;;  %v5707_v53 = vmul.f32 %v8944_v45, %v11281_v51  ;;  %v7152_v51 = vld [vmem:[%s11816_s10 + $0x38] sm:$0xff] }
0x1c58   :  { %8479 = vmatpush3.msra.mxu0 %v5713_v14 }
0x1c59   :  { %8481 = vmatmul.mubr.msk.f32.vlgmr.msra.gmra.mxu0 %vm94_vm0, %v5705_v46  ;;  %8492 = vmatprep.subr.mxu0 %v7152_v51 }
0x1c5a   :  { %8483 = vmatprep.mubr.msk.f32.mxu0 %vm94_vm0, %v5706_v58  ;;  %v8946_v39 = vpop.eup %8945  ;;  %8493 = vmatpush3.msra.mxu0 %v7152_v51 }
0x1c5b   :  { %v8948_v56 = vpop.eup %8947  ;;  %v5708_v5 = vmul.f32 %v8946_v39, %v11287_v35 }
0x1c5c   :  { %v5709_v1 = vmul.f32 %v8948_v56, %v11285_v22  ;;  %v4857_v22 = vadd.f32 %v11305_v20, %v11078_v2 }
0x1c5d   :  { %8484 = vmatmul.mubr.msk.f32.gmra.mxu0 %vm94_vm0, %v5707_v53 }
0x1c5e   :  { %8486 = vmatprep.mubr.msk.f32.mxu0 %vm94_vm0, %v5708_v5  ;;  %v8950_v15 = vpop.eup %8949 }
0x1c5f   :  { %v8952_v8 = vpop.eup %8951  ;;  %v5710_v31 = vmul.f32 %v8950_v15, %v11295_v17  ;;  %v4852_v17 = vadd.f32 %v11307_v62, %v11080_v6  ;;  %v4872_v6 = vadd.f32 %v11315_v30, %v11088_v25 }
0x1c60   :  { %v5711_v27 = vmul.f32 %v8952_v8, %v11293_v54  ;;  %v4867_v54 = vadd.f32 %v11309_v34, %v11082_v36  ;;  %v4887_v36 = vadd.f32 %v11317_v23, %v11090_v50 }
0x1c61   :  { %8487 = vmatmul.mubr.msk.f32.gmra.mxu0 %vm94_vm0, %v5709_v1 }
0x1c62   :  { %8489 = vmatprep.mubr.msk.f32.mxu0 %vm94_vm0, %v5710_v31 }
0x1c65   :  { %8490 = vmatmul.mubr.msk.f32.gmra.mxu0 %vm94_vm0, %v5711_v27 }
0x1cfb   :  { %v8426_v35 = vpop.f32.mrf.mxu0 }
0x1cfc   :  { %v5439_v44 = vadd.f32 %v8426_v35, %v4857_v22 }
0x1cfd   :  { %v5399_v43 = vpop.f32.mrf.mxu0 }
0x1cfe   :  { %v5438_v11 = vadd.f32 %v5399_v43, %v4852_v17 }
0x1cff   :  { %v8429_v40 = vpop.f32.mrf.mxu0 }
0x1d00   :  { %v5441_v55 = vadd.f32 %v8429_v40, %v4867_v54 }
0x1d01   :  { %v5409_v12 = vpop.f32.mrf.mxu0 }
0x1d02   :  { %v5440_v2 = vadd.f32 %v5409_v12, %v4862_v57 }
0x1d03   :  { %v8432_v20 = vpop.f32.mrf.mxu0 }
0x1d04   :  { %v5443_v62 = vadd.f32 %v8432_v20, %v4877_v32 }
0x1d05   :  { %v5419_v49 = vpop.f32.mrf.mxu0 }
0x1d06   :  { %v5442_v34 = vadd.f32 %v5419_v49, %v4872_v6 }
0x1d07   :  { %v8435_v10 = vpop.f32.mrf.mxu0 }
0x1d08   :  { %v5445_v26 = vadd.f32 %v8435_v10, %v4887_v36 }
0x1d09   :  { %v5429_v52 = vpop.f32.mrf.mxu0 }
0x1d0a   :  { %v5444_v18 = vadd.f32 %v5429_v52, %v4882_v13 }
0x1d19   :  { %v8482_v42 = vpop.f32.mrf.mxu0 }
0x1d1b   :  { %v5826_v29 = vpop.f32.mrf.mxu0 }
0x1d1c   :  { %8494 = vmatprep.mubr.msk.f32.mxu0 %vm678_vm2, %v5826_v29 }
0x1d1d   :  { %v8485_v7 = vpop.f32.mrf.mxu0  ;;  %8495 = vmatmul.mubr.msk.f32.vlgmr.msra.gmra.mxu0 %vm678_vm2, %v8482_v42 }
0x1d1f   :  { %v5836_v25 = vpop.f32.mrf.mxu0 }
0x1d20   :  { %8497 = vmatprep.mubr.msk.f32.mxu0 %vm678_vm2, %v5836_v25 }
0x1d21   :  { %v8488_v30 = vpop.f32.mrf.mxu0  ;;  %8498 = vmatmul.mubr.msk.f32.gmra.mxu0 %vm678_vm2, %v8485_v7 }
0x1d23   :  { %v5846_v50 = vpop.f32.mrf.mxu0 }
0x1d24   :  { %8500 = vmatprep.mubr.msk.f32.mxu0 %vm678_vm2, %v5846_v50 }
0x1d25   :  { %v8491_v19 = vpop.f32.mrf.mxu0  ;;  %8501 = vmatmul.mubr.msk.f32.gmra.mxu0 %vm678_vm2, %v8488_v30 }
0x1d27   :  { %v5856_v23 = vpop.f32.mrf.mxu0 }
0x1d28   :  { %8503 = vmatprep.mubr.msk.f32.mxu0 %vm678_vm2, %v5856_v23 }
0x1d29   :  { %8504 = vmatmul.mubr.msk.f32.gmra.mxu0 %vm678_vm2, %v8491_v19 }
0x1ddd   :  { %v8496_v61 = vpop.f32.mrf.mxu0 }
0x1dde   :  { %v5995_v37 = vadd.f32 %v8496_v61, %v5439_v44 }
0x1ddf   :  { %v5955_v4 = vpop.f32.mrf.mxu0 }
0x1de0   :  { %v6003_v59 = vadd.f32 %v5995_v37, %v10468_v33  ;;  %v5994_v28 = vadd.f32 %v5955_v4, %v5438_v11 }
0x1de1   :  { %v8499_v41 = vpop.f32.mrf.mxu0 }
0x1de2   :  { %v11376_v47 = vadd.f32 %v7314_v3, %v6003_v59  ;;  %v6002_v21 = vadd.f32 %v5994_v28, %v10471_v38  ;;  %v5997_v9 = vadd.f32 %v8499_v41, %v5441_v55 }
0x1de3   :  { %v5965_v14 = vpop.f32.mrf.mxu0 }
0x1de4   :  { %v11379_v46 = vadd.f32 %v7314_v3, %v6002_v21  ;;  %v6005_v45 = vadd.f32 %v5997_v9, %v10478_v16  ;;  %v5996_v58 = vadd.f32 %v5965_v14, %v5440_v2  ;;  %v6033_v39 = vsel %vm226_vm1, %v11376_v47, 0.0 }
0x1de5   :  { %6034 = vadd.xlane.f32.xlu1 %v6033_v39  ;;  %v8502_v53 = vpop.f32.mrf.mxu0 }
0x1de6   :  { %v11384_v56 = vadd.f32 %v7314_v3, %v6005_v45  ;;  %v6004_v33 = vadd.f32 %v5996_v58, %v10481_v0  ;;  %v5999_v5 = vadd.f32 %v8502_v53, %v5443_v62  ;;  %v6030_v38 = vsel %vm226_vm1, %v11379_v46, 0.0 }
0x1de7   :  { %6031 = vadd.xlane.f32.xlu0 %v6030_v38  ;;  %v5975_v15 = vpop.f32.mrf.mxu0 }
0x1de8   :  { %v6007_v1 = vadd.f32 %v5999_v5, %v10488_v48  ;;  %v5998_v8 = vadd.f32 %v5975_v15, %v5442_v34  ;;  %v11390_v16 = vadd.f32 %v7314_v3, %v6004_v33  ;;  %v6039_v0 = vsel %vm226_vm1, %v11384_v56, 0.0  ;;  %v7322_v15 = vld [vmem:[%s11818_s14 + $0x38] sm:$0xff] }
0x1de9   :  { %v8505_v31 = vpop.f32.mrf.mxu0  ;;  %8506 = vmatprep.subr.mxu1 %v7322_v15 }
0x1dea   :  { %v11392_v27 = vadd.f32 %v7314_v3, %v6007_v1  ;;  %v6006_v51 = vadd.f32 %v5998_v8, %v10491_v63  ;;  %v6001_v22 = vadd.f32 %v8505_v31, %v5445_v26  ;;  %v6036_v63 = vsel %vm226_vm1, %v11390_v16, 0.0  ;;  %8507 = vmatpush3.msra.mxu1 %v7322_v15  ;;  %v7321_v1 = vld [vmem:[%s11818_s14 + $0x30] sm:$0xff]  ;;  %v7320_v8 = vld [vmem:[%s11818_s14 + $0x28] sm:$0xff]  ;;  %v7319_v31 = vld [vmem:[%s11818_s14 + $0x20] sm:$0xff] }
0x1deb   :  { %6040 = vadd.xlane.f32.xlu0 %v6039_v0  ;;  %v5985_v35 = vpop.f32.mrf.mxu0  ;;  %8508 = vmatprep.subr.mxu1 %v7321_v1 }
0x1dec   :  { %v6009_v17 = vadd.f32 %v6001_v22, %v10498_v24  ;;  %v6000_v44 = vadd.f32 %v5985_v35, %v5444_v18  ;;  %v6045_v48 = vsel %vm226_vm1, %v11392_v27, 0.0  ;;  %v11400_v43 = vadd.f32 %v7314_v3, %v6006_v51  ;;  %8509 = vmatpush3.msra.mxu1 %v7321_v1 }
0x1ded   :  { %6046 = vadd.xlane.f32.xlu1 %v6045_v48  ;;  %8510 = vmatprep.subr.mxu1 %v7320_v8 }
0x1dee   :  { %v11402_v54 = vadd.f32 %v7314_v3, %v6009_v17  ;;  %v6008_v11 = vadd.f32 %v6000_v44, %v10501_v60  ;;  %v6042_v57 = vsel %vm226_vm1, %v11400_v43, 0.0  ;;  %8511 = vmatpush3.msra.mxu1 %v7320_v8 }
0x1def   :  { %6037 = vadd.xlane.f32.xlu0 %v6036_v63  ;;  %8512 = vmatprep.subr.mxu1 %v7319_v31 }
0x1df0   :  { %v6051_v40 = vsel %vm226_vm1, %v11402_v54, 0.0  ;;  %v11409_v24 = vadd.f32 %v7314_v3, %v6008_v11  ;;  %8513 = vmatpush3.msra.mxu1 %v7319_v31 }
0x1df1   :  { %6052 = vadd.xlane.f32.xlu1 %v6051_v40 }
0x1df2   :  { %v6048_v55 = vsel %vm226_vm1, %v11409_v24, 0.0 }
0x1df3   :  { %6043 = vadd.xlane.f32.xlu0 %v6042_v57 }
0x1df7   :  { %6049 = vadd.xlane.f32.xlu0 %v6048_v55 }
0x1e6e   :  { %v6035_v12 = vpop.xlane.xlu1 %6034 }
0x1e6f   :  { %v6055_v60 = vmul.f32 0.03125, %v6035_v12 }
0x1e70   :  { %v6032_v32 = vpop.xlane.xlu0 %6031 }
0x1e71   :  { %v11416_v2 = vsub.f32 %v11376_v47, %v6055_v60  ;;  %v6054_v20 = vmul.f32 0.03125, %v6032_v32 }
0x1e73   :  { %v11419_v6 = vsub.f32 %v11379_v46, %v6054_v20  ;;  %v6071_v62 = vmul.f32 %v11416_v2, %v11416_v2 }
0x1e74   :  { %v6041_v49 = vpop.xlane.xlu0 %6040 }
0x1e75   :  { %v6057_v36 = vmul.f32 0.03125, %v6041_v49  ;;  %v6081_v34 = vsel %vm226_vm1, %v6071_v62, 0.0  ;;  %v6070_v10 = vmul.f32 %v11419_v6, %v11419_v6 }
0x1e76   :  { %v6047_v13 = vpop.xlane.xlu1 %6046  ;;  %6082 = vadd.xlane.f32.xlu1 %v6081_v34 }
0x1e77   :  { %v11427_v26 = vsub.f32 %v11384_v56, %v6057_v36  ;;  %v6059_v52 = vmul.f32 0.03125, %v6047_v13  ;;  %v6078_v18 = vsel %vm226_vm1, %v6070_v10, 0.0 }
0x1e78   :  { %v6038_v42 = vpop.xlane.xlu0 %6037  ;;  %6079 = vadd.xlane.f32.xlu0 %v6078_v18  ;;  %v7317_v18 = vld [vmem:[%s11819_s12 + $0x1] ss:$0 sm:$0xff] }
0x1e79   :  { %v11431_v29 = vsub.f32 %v11392_v27, %v6059_v52  ;;  %v6056_v7 = vmul.f32 0.03125, %v6038_v42  ;;  %v6073_v25 = vmul.f32 %v11427_v26, %v11427_v26 }
0x1e7a   :  { %v6053_v30 = vpop.xlane.xlu1 %6052 }
0x1e7b   :  { %v11436_v50 = vsub.f32 %v11390_v16, %v6056_v7  ;;  %v6061_v19 = vmul.f32 0.03125, %v6053_v30  ;;  %v6087_v23 = vsel %vm226_vm1, %v6073_v25, 0.0  ;;  %v6075_v61 = vmul.f32 %v11431_v29, %v11431_v29 }
0x1e7c   :  { %v6044_v37 = vpop.xlane.xlu0 %6043  ;;  %6088 = vadd.xlane.f32.xlu1 %v6087_v23 }
0x1e7d   :  { %v11442_v3 = vsub.f32 %v11402_v54, %v6061_v19  ;;  %v6058_v4 = vmul.f32 0.03125, %v6044_v37  ;;  %v6072_v59 = vmul.f32 %v11436_v50, %v11436_v50  ;;  %v6093_v41 = vsel %vm226_vm1, %v6075_v61, 0.0  ;;  %v7318_v61 = vld [vmem:[%s11820_s13 + $0x1] ss:$0 sm:$0xff] }
0x1e7f   :  { %v11447_v28 = vsub.f32 %v11400_v43, %v6058_v4  ;;  %v6084_v21 = vsel %vm226_vm1, %v6072_v59, 0.0  ;;  %v6077_v9 = vmul.f32 %v11442_v3, %v11442_v3 }
0x1e80   :  { %6094 = vadd.xlane.f32.xlu1 %v6093_v41  ;;  %6085 = vadd.xlane.f32.xlu0 %v6084_v21  ;;  %v6050_v14 = vpop.xlane.xlu0 %6049 }
0x1e81   :  { %v6060_v45 = vmul.f32 0.03125, %v6050_v14  ;;  %v6074_v58 = vmul.f32 %v11447_v28, %v11447_v28  ;;  %v6099_v53 = vsel %vm226_vm1, %v6077_v9, 0.0 }
0x1e83   :  { %v11456_v39 = vsub.f32 %v11409_v24, %v6060_v45  ;;  %v6090_v33 = vsel %vm226_vm1, %v6074_v58, 0.0 }
0x1e84   :  { %6100 = vadd.xlane.f32.xlu1 %v6099_v53  ;;  %6091 = vadd.xlane.f32.xlu0 %v6090_v33 }
0x1e85   :  { %v6076_v5 = vmul.f32 %v11456_v39, %v11456_v39 }
0x1e87   :  { %v6096_v38 = vsel %vm226_vm1, %v6076_v5, 0.0 }
0x1e88   :  { %6097 = vadd.xlane.f32.xlu0 %v6096_v38 }
0x1eff   :  { %v6083_v51 = vpop.xlane.xlu1 %6082 }
0x1f00   :  { %v6103_v22 = vmul.f32 0.03125, %v6083_v51 }
0x1f01   :  { %v6080_v0 = vpop.xlane.xlu0 %6079 }
0x1f02   :  { %v6111_v35 = vadd.f32 1e-06, %v6103_v22  ;;  %v6102_v17 = vmul.f32 0.03125, %v6080_v0 }
0x1f04   :  { %8953 = vrsqrt.f32 %v6111_v35  ;;  %v6110_v44 = vadd.f32 1e-06, %v6102_v17  ;;  %v7348_v35 = vld [vmem:[%s11821_s16 + $0xf8] sm:$0xff]  ;;  %v7346_v17 = vld [vmem:[%s11821_s16 + $0xe8] sm:$0xff] }
0x1f05   :  { %v6089_v48 = vpop.xlane.xlu1 %6088  ;;  %8526 = vmatprep.subr.mxu0 %v7348_v35 }
0x1f06   :  { %8955 = vrsqrt.f32 %v6110_v44  ;;  %v6105_v11 = vmul.f32 0.03125, %v6089_v48  ;;  %8527 = vmatpush3.msra.mxu0 %v7348_v35  ;;  %v7345_v44 = vld [vmem:[%s11821_s16 + $0xe0] sm:$0xff]  ;;  %v7344_v48 = vld [vmem:[%s11821_s16 + $0xd8] sm:$0xff] }
0x1f08   :  { %v6113_v63 = vadd.f32 1e-06, %v6105_v11  ;;  %v7343_v11 = vld [vmem:[%s11821_s16 + $0xd0] sm:$0xff] }
0x1f09   :  { %v6095_v40 = vpop.xlane.xlu1 %6094  ;;  %v6086_v57 = vpop.xlane.xlu0 %6085 }
0x1f0a   :  { %8957 = vrsqrt.f32 %v6113_v63  ;;  %v6107_v55 = vmul.f32 0.03125, %v6095_v40  ;;  %v6104_v12 = vmul.f32 0.03125, %v6086_v57  ;;  %v7342_v63 = vld [vmem:[%s11821_s16 + $0xc8] sm:$0xff]  ;;  %v7341_v40 = vld [vmem:[%s11821_s16 + $0xc0] sm:$0xff]  ;;  %v7340_v57 = vld [vmem:[%s11821_s16 + $0xb8] sm:$0xff] }
0x1f0c   :  { %v6115_v60 = vadd.f32 1e-06, %v6107_v55  ;;  %v6112_v32 = vadd.f32 1e-06, %v6104_v12  ;;  %v7339_v55 = vld [vmem:[%s11821_s16 + $0xb0] sm:$0xff]  ;;  %v7338_v12 = vld [vmem:[%s11821_s16 + $0xa8] sm:$0xff] }
0x1f0d   :  { %v6101_v20 = vpop.xlane.xlu1 %6100  ;;  %v6092_v62 = vpop.xlane.xlu0 %6091 }
0x1f0e   :  { %8959 = vrsqrt.f32 %v6115_v60  ;;  %v6109_v49 = vmul.f32 0.03125, %v6101_v20  ;;  %v6106_v36 = vmul.f32 0.03125, %v6092_v62  ;;  %v7337_v60 = vld [vmem:[%s11821_s16 + $0xa0] sm:$0xff]  ;;  %v7335_v20 = vld [vmem:[%s11821_s16 + $0x90] sm:$0xff]  ;;  %v7334_v62 = vld [vmem:[%s11821_s16 + $0x88] sm:$0xff] }
0x1f0f   :  { %8961 = vrsqrt.f32 %v6112_v32  ;;  %v7336_v32 = vld [vmem:[%s11821_s16 + $0x98] sm:$0xff] }
0x1f10   :  { %v6117_v34 = vadd.f32 1e-06, %v6109_v49  ;;  %v6114_v10 = vadd.f32 1e-06, %v6106_v36  ;;  %v7333_v49 = vld [vmem:[%s11821_s16 + $0x80] sm:$0xff] }
0x1f11   :  { %v8954_v13 = vpop.eup %8953  ;;  %v6098_v52 = vpop.xlane.xlu0 %6097  ;;  %v7324_v36 = vld [vmem:[%s11822_s15 + $0x1] ss:$0 sm:$0xff] }
0x1f12   :  { %v6127_v42 = vmul.f32 %v8954_v13, %v11416_v2  ;;  %8963 = vrsqrt.f32 %v6117_v34  ;;  %v6108_v7 = vmul.f32 0.03125, %v6098_v52 }
0x1f13   :  { %v8956_v25 = vpop.eup %8955  ;;  %8965 = vrsqrt.f32 %v6114_v10 }
0x1f14   :  { %v6116_v30 = vadd.f32 1e-06, %v6108_v7  ;;  %v6126_v19 = vmul.f32 %v8956_v25, %v11419_v6  ;;  %v6141_v23 = vmul.f32 %v7317_v18, %v6127_v42 }
0x1f16   :  { %8967 = vrsqrt.f32 %v6116_v30  ;;  %v6140_v37 = vmul.f32 %v7317_v18, %v6126_v19  ;;  %v6155_v41 = vadd.f32 %v7318_v61, %v6141_v23 }
0x1f17   :  { %v8958_v4 = vpop.eup %8957 }
0x1f18   :  { %v6154_v59 = vadd.f32 %v7318_v61, %v6140_v37  ;;  %v6129_v2 = vmul.f32 %v8958_v4, %v11427_v26 }
0x1f1a   :  { %8514 = vmatprep.mubr.msk.f32.mxu1 %vm226_vm1, %v6154_v59  ;;  %v6143_v14 = vmul.f32 %v7317_v18, %v6129_v2 }
0x1f1b   :  { %v8960_v21 = vpop.eup %8959  ;;  %8515 = vmatmul.mubr.msk.f32.vlgmr.msra.gmra.mxu1 %vm226_vm1, %v6155_v41 }
0x1f1c   :  { %v8962_v9 = vpop.eup %8961  ;;  %v6131_v45 = vmul.f32 %v8960_v21, %v11431_v29  ;;  %v6157_v15 = vadd.f32 %v7318_v61, %v6143_v14 }
0x1f1d   :  { %v6128_v6 = vmul.f32 %v8962_v9, %v11436_v50 }
0x1f1e   :  { %v6145_v1 = vmul.f32 %v7317_v18, %v6131_v45 }
0x1f1f   :  { %v8964_v58 = vpop.eup %8963  ;;  %v6142_v53 = vmul.f32 %v7317_v18, %v6128_v6 }
0x1f20   :  { %v8966_v33 = vpop.eup %8965  ;;  %v6133_v8 = vmul.f32 %v8964_v58, %v11442_v3  ;;  %v6159_v29 = vadd.f32 %v7318_v61, %v6145_v1 }
0x1f21   :  { %v6156_v5 = vadd.f32 %v7318_v61, %v6142_v53  ;;  %v6130_v38 = vmul.f32 %v8966_v33, %v11447_v28 }
0x1f22   :  { %v6147_v0 = vmul.f32 %v7317_v18, %v6133_v8 }
0x1f23   :  { %v8968_v26 = vpop.eup %8967  ;;  %8517 = vmatprep.mubr.msk.f32.mxu1 %vm226_vm1, %v6156_v5  ;;  %v6144_v31 = vmul.f32 %v7317_v18, %v6130_v38 }
0x1f24   :  { %8518 = vmatmul.mubr.msk.f32.gmra.mxu1 %vm226_vm1, %v6157_v15  ;;  %v6132_v50 = vmul.f32 %v8968_v26, %v11456_v39  ;;  %v6161_v3 = vadd.f32 %v7318_v61, %v6147_v0  ;;  %v7347_v39 = vld [vmem:[%s11821_s16 + $0xf0] sm:$0xff] }
0x1f25   :  { %v6158_v51 = vadd.f32 %v7318_v61, %v6144_v31  ;;  %8528 = vmatprep.subr.mxu0 %v7347_v39 }
0x1f26   :  { %v6146_v22 = vmul.f32 %v7317_v18, %v6132_v50  ;;  %8529 = vmatpush3.msra.mxu0 %v7347_v39 }
0x1f27   :  { %8520 = vmatprep.mubr.msk.f32.mxu1 %vm226_vm1, %v6158_v51  ;;  %8530 = vmatprep.subr.mxu0 %v7346_v17 }
0x1f28   :  { %8521 = vmatmul.mubr.msk.f32.gmra.mxu1 %vm226_vm1, %v6159_v29  ;;  %v6160_v28 = vadd.f32 %v7318_v61, %v6146_v22  ;;  %8531 = vmatpush3.msra.mxu0 %v7346_v17 }
0x1f29   :  { %8532 = vmatprep.subr.mxu0 %v7345_v44 }
0x1f2a   :  { %8523 = vmatprep.mubr.msk.f32.mxu1 %vm226_vm1, %v6160_v28  ;;  %8533 = vmatpush3.msra.mxu0 %v7345_v44 }
0x1f2b   :  { %8534 = vmatprep.subr.mxu0 %v7344_v48 }
0x1f2c   :  { %8524 = vmatmul.mubr.msk.f32.gmra.mxu1 %vm226_vm1, %v6161_v3  ;;  %8535 = vmatpush3.msra.mxu0 %v7344_v48 }
0x1f2d   :  { %8536 = vmatprep.subr.mxu0 %v7343_v11 }
0x1f2e   :  { %8537 = vmatpush3.msra.mxu0 %v7343_v11 }
0x1f2f   :  { %8538 = vmatprep.subr.mxu0 %v7342_v63 }
0x1f30   :  { %8539 = vmatpush3.msra.mxu0 %v7342_v63 }
0x1f31   :  { %8540 = vmatprep.subr.mxu0 %v7341_v40 }
0x1f32   :  { %8541 = vmatpush3.msra.mxu0 %v7341_v40 }
0x1f33   :  { %8542 = vmatprep.subr.mxu0 %v7340_v57 }
0x1f34   :  { %8543 = vmatpush3.msra.mxu0 %v7340_v57 }
0x1f35   :  { %8544 = vmatprep.subr.mxu0 %v7339_v55 }
0x1f36   :  { %8545 = vmatpush3.msra.mxu0 %v7339_v55 }
0x1f37   :  { %8546 = vmatprep.subr.mxu0 %v7338_v12 }
0x1f38   :  { %8547 = vmatpush3.msra.mxu0 %v7338_v12 }
0x1f39   :  { %8548 = vmatprep.subr.mxu0 %v7337_v60 }
0x1f3a   :  { %8549 = vmatpush3.msra.mxu0 %v7337_v60 }
0x1f3b   :  { %8550 = vmatprep.subr.mxu0 %v7336_v32 }
0x1f3c   :  { %8551 = vmatpush3.msra.mxu0 %v7336_v32 }
0x1f3d   :  { %8552 = vmatprep.subr.mxu0 %v7335_v20 }
0x1f3e   :  { %8553 = vmatpush3.msra.mxu0 %v7335_v20 }
0x1f3f   :  { %8554 = vmatprep.subr.mxu0 %v7334_v62 }
0x1f40   :  { %8555 = vmatpush3.msra.mxu0 %v7334_v62 }
0x1f41   :  { %8556 = vmatprep.subr.mxu0 %v7333_v49 }
0x1f42   :  { %8557 = vmatpush3.msra.mxu0 %v7333_v49 }
0x1fdb   :  { %v8516_v34 = vpop.f32.mrf.mxu1 }
0x1fdc   :  { %v11548_v10 = vadd.f32 %v8516_v34, %v7324_v36 }
0x1fdd   :  { %v6265_v13 = vpop.f32.mrf.mxu1 }
0x1fde   :  { %v11551_v52 = vmul.f32 0.70710677, %v11548_v10  ;;  %v11553_v18 = vadd.f32 %v7324_v36, %v6265_v13 }
0x1fe0   :  { %v6321_v42 = vand.u32 2147483647, %v11551_v52  ;;  %v11557_v7 = vmul.f32 0.70710677, %v11553_v18  ;;  %vm6481_vm11 = vcmp.lt.f32.partialorder %v11551_v52, 0.0 }
0x1fe2   :  { %v6329_v25 = vmul.f32 0.3275911, %v6321_v42  ;;  %v6320_v30 = vand.u32 2147483647, %v11557_v7  ;;  %v6433_v33 = vsub.f32 0.0, %v6321_v42  ;;  %vm6480_vm12 = vcmp.lt.f32.partialorder %v11557_v7, 0.0 }
0x1fe4   :  { %v6337_v19 = vadd.f32 1.0, %v6329_v25  ;;  %v6328_v23 = vmul.f32 0.3275911, %v6320_v30  ;;  %v8519_v61 = vpop.f32.mrf.mxu1  ;;  %v6432_v26 = vsub.f32 0.0, %v6320_v30  ;;  %v6441_v29 = vmul.f32 %v6433_v33, %v6321_v42 }
0x1fe5   :  { %v11560_v37 = vadd.f32 %v8519_v61, %v7324_v36 }
0x1fe6   :  { %8969 = vrcp.f32 %v6337_v19  ;;  %v6336_v4 = vadd.f32 1.0, %v6328_v23  ;;  %v6275_v59 = vpop.f32.mrf.mxu1  ;;  %v6440_v39 = vmul.f32 %v6432_v26, %v6320_v30  ;;  %v6450_v40 = vmul.f32 1.442695, %v6441_v29 }
0x1fe7   :  { %v11563_v41 = vmul.f32 0.70710677, %v11560_v37  ;;  %v11565_v2 = vadd.f32 %v7324_v36, %v6275_v59 }
0x1fe8   :  { %v8522_v21 = vpop.f32.mrf.mxu1  ;;  %8971 = vrcp.f32 %v6336_v4  ;;  %v6448_v20 = vmul.f32 1.442695, %v6440_v39 }
0x1fe9   :  { %v6323_v9 = vand.u32 2147483647, %v11563_v41  ;;  %v11569_v6 = vmul.f32 0.70710677, %v11565_v2  ;;  %v11571_v14 = vadd.f32 %v8522_v21, %v7324_v36  ;;  %vm6483_vm13 = vcmp.lt.f32.partialorder %v11563_v41, 0.0 }
0x1fea   :  { %v6285_v45 = vpop.f32.mrf.mxu1 }
0x1feb   :  { %v6331_v58 = vmul.f32 0.3275911, %v6323_v9  ;;  %v11573_v53 = vadd.f32 %v7324_v36, %v6285_v45  ;;  %v6322_v5 = vand.u32 2147483647, %v11569_v6  ;;  %v11577_v38 = vmul.f32 0.70710677, %v11571_v14 }
0x1fec   :  { %v8525_v8 = vpop.f32.mrf.mxu1  ;;  %v6435_v55 = vsub.f32 0.0, %v6323_v9  ;;  %vm6482_vm14 = vcmp.lt.f32.partialorder %v11569_v6, 0.0 }
0x1fed   :  { %v6339_v15 = vadd.f32 1.0, %v6331_v58  ;;  %v11580_v1 = vmul.f32 0.70710677, %v11573_v53  ;;  %v6330_v31 = vmul.f32 0.3275911, %v6322_v5  ;;  %v11584_v3 = vadd.f32 %v8525_v8, %v7324_v36 }
0x1fee   :  { %v6325_v50 = vand.u32 2147483647, %v11577_v38  ;;  %v6295_v35 = vpop.f32.mrf.mxu1  ;;  %v6434_v49 = vsub.f32 0.0, %v6322_v5  ;;  %v6443_v25 = vmul.f32 %v6435_v55, %v6323_v9  ;;  %v11617_v55 = vmul.f32 0.5, %v11553_v18 }
0x1fef   :  { %8973 = vrcp.f32 %v6339_v15  ;;  %v6324_v51 = vand.u32 2147483647, %v11580_v1  ;;  %v6338_v22 = vadd.f32 1.0, %v6330_v31  ;;  %v11589_v11 = vmul.f32 0.70710677, %v11584_v3 }
0x1ff0   :  { %v6333_v0 = vmul.f32 0.3275911, %v6325_v50  ;;  %v11592_v57 = vadd.f32 %v7324_v36, %v6295_v35  ;;  %v6437_v61 = vsub.f32 0.0, %v6325_v50  ;;  %v6442_v59 = vmul.f32 %v6434_v49, %v6322_v5 }
0x1ff1   :  { %v6332_v28 = vmul.f32 0.3275911, %v6324_v51  ;;  %8975 = vrcp.f32 %v6338_v22  ;;  %v6327_v12 = vand.u32 2147483647, %v11589_v11  ;;  %v6436_v33 = vsub.f32 0.0, %v6324_v51 }
0x1ff2   :  { %v6341_v17 = vadd.f32 1.0, %v6333_v0  ;;  %v11598_v62 = vmul.f32 0.70710677, %v11592_v57  ;;  %v6454_v26 = vmul.f32 1.442695, %v6443_v25  ;;  %v6445_v29 = vmul.f32 %v6437_v61, %v6325_v50 }
0x1ff3   :  { %v11586_v44 = vpop.eup %8969  ;;  %v6340_v48 = vadd.f32 1.0, %v6332_v28  ;;  %v6335_v34 = vmul.f32 0.3275911, %v6327_v12  ;;  %v6439_v22 = vsub.f32 0.0, %v6327_v12  ;;  %v11611_v5 = vmul.f32 0.5, %v11548_v10 }
0x1ff4   :  { %v6361_v63 = vmul.f32 1.0614054, %v11586_v44  ;;  %8977 = vrcp.f32 %v6341_v17  ;;  %v6326_v36 = vand.u32 2147483647, %v11598_v62  ;;  %v6452_v35 = vmul.f32 1.442695, %v6442_v59 }
0x1ff5   :  { %v11595_v60 = vpop.eup %8971  ;;  %8979 = vrcp.f32 %v6340_v48  ;;  %v6343_v30 = vadd.f32 1.0, %v6335_v34  ;;  %v6444_v48 = vmul.f32 %v6436_v33, %v6324_v51  ;;  %v6458_v49 = vmul.f32 1.442695, %v6445_v29 }
0x1ff6   :  { %v6369_v32 = vadd.f32 -1.4531521, %v6361_v63  ;;  %v6360_v13 = vmul.f32 1.0614054, %v11595_v60  ;;  %8981 = vpow2.f32 %v6450_v40  ;;  %v6334_v4 = vmul.f32 0.3275911, %v6326_v36 }
0x1ff7   :  { %8983 = vpow2.f32 %v6448_v20  ;;  %v6438_v63 = vsub.f32 0.0, %v6326_v36  ;;  %v6447_v34 = vmul.f32 %v6439_v22, %v6327_v12  ;;  %vm6485_vm15 = vcmp.lt.f32.partialorder %v11577_v38, 0.0 }
0x1ff8   :  { %v6377_v42 = vmul.f32 %v11586_v44, %v6369_v32  ;;  %v6368_v19 = vadd.f32 -1.4531521, %v6360_v13  ;;  %8985 = vrcp.f32 %v6343_v30  ;;  %v6342_v15 = vadd.f32 1.0, %v6334_v4 }
0x1ff9   :  { %vm6484_vm2 = vcmp.lt.f32.partialorder %v11580_v1, 0.0  ;;  %vm6487_vm3 = vcmp.lt.f32.partialorder %v11589_v11, 0.0  ;;  %vm6486_vm4 = vcmp.lt.f32.partialorder %v11598_v62, 0.0  ;;  %v7350_v11 = vld [vmem:[%s11823_s17 + $0x1] ss:$0 sm:$0xff] }
0x1ffa   :  { %v6385_v23 = vadd.f32 1.4214138, %v6377_v42  ;;  %v6376_v21 = vmul.f32 %v11595_v60, %v6368_v19  ;;  %8987 = vrcp.f32 %v6342_v15  ;;  %v6456_v19 = vmul.f32 1.442695, %v6444_v48 }
0x1ffb   :  { %8989 = vpow2.f32 %v6454_v26  ;;  %v6462_v15 = vmul.f32 1.442695, %v6447_v34 }
0x1ffc   :  { %v11604_v45 = vpop.eup %8973  ;;  %v6393_v58 = vmul.f32 %v11586_v44, %v6385_v23  ;;  %v6384_v9 = vadd.f32 1.4214138, %v6376_v21  ;;  %8991 = vpow2.f32 %v6452_v35  ;;  %v6446_v23 = vmul.f32 %v6438_v63, %v6326_v36 }
0x1ffd   :  { %v6363_v8 = vmul.f32 1.0614054, %v11604_v45  ;;  %8993 = vpow2.f32 %v6458_v49 }
0x1ffe   :  { %v6401_v31 = vadd.f32 -0.28449672, %v6393_v58  ;;  %v11608_v0 = vpop.eup %8975  ;;  %v6392_v39 = vmul.f32 %v11595_v60, %v6384_v9  ;;  %8995 = vpow2.f32 %v6456_v19 }
0x1fff   :  { %v6371_v28 = vadd.f32 -1.4531521, %v6363_v8  ;;  %v6362_v40 = vmul.f32 1.0614054, %v11608_v0  ;;  %8997 = vpow2.f32 %v6462_v15 }
0x2000   :  { %v6409_v17 = vmul.f32 %v11586_v44, %v6401_v31  ;;  %v6400_v32 = vadd.f32 -0.28449672, %v6392_v39 }
0x2001   :  { %v6379_v50 = vmul.f32 %v11604_v45, %v6371_v28  ;;  %v11620_v20 = vpop.eup %8977  ;;  %v6370_v13 = vadd.f32 -1.4531521, %v6362_v40  ;;  %v6460_v28 = vmul.f32 1.442695, %v6446_v23 }
0x2002   :  { %v6417_v10 = vadd.f32 0.2548296, %v6409_v17  ;;  %v6365_v51 = vmul.f32 1.0614054, %v11620_v20  ;;  %v6408_v25 = vmul.f32 %v11595_v60, %v6400_v32  ;;  %v11625_v18 = vpop.eup %8979 }
0x2003   :  { %v6387_v42 = vadd.f32 1.4214138, %v6379_v50  ;;  %v6378_v61 = vmul.f32 %v11608_v0, %v6370_v13  ;;  %v8982_v4 = vpop.eup %8981  ;;  %v6364_v58 = vmul.f32 1.0614054, %v11625_v18  ;;  %8999 = vpow2.f32 %v6460_v28 }
0x2004   :  { %v6425_v30 = vmul.f32 %v11586_v44, %v6417_v10  ;;  %v6373_v59 = vadd.f32 -1.4531521, %v6365_v51  ;;  %v6416_v21 = vadd.f32 0.2548296, %v6408_v25  ;;  %v8984_v26 = vpop.eup %8983 }
0x2005   :  { %v6395_v12 = vmul.f32 %v11604_v45, %v6387_v42  ;;  %v6386_v8 = vadd.f32 1.4214138, %v6378_v61  ;;  %v6372_v31 = vadd.f32 -1.4531521, %v6364_v58  ;;  %v11634_v29 = vpop.eup %8985 }
0x2006   :  { %v6465_v33 = vmul.f32 %v8982_v4, %v6425_v30  ;;  %v6381_v44 = vmul.f32 %v11620_v20, %v6373_v59  ;;  %v6424_v36 = vmul.f32 %v11595_v60, %v6416_v21  ;;  %v6367_v48 = vmul.f32 1.0614054, %v11634_v29 }
0x2007   :  { %v6403_v9 = vadd.f32 -0.28449672, %v6395_v12  ;;  %v6394_v35 = vmul.f32 %v11608_v0, %v6386_v8  ;;  %v6380_v32 = vmul.f32 %v11625_v18, %v6372_v31  ;;  %v11640_v60 = vpop.eup %8987 }
0x2008   :  { %v6473_v22 = vsub.f32 1.0, %v6465_v33  ;;  %v6389_v17 = vadd.f32 1.4214138, %v6381_v44  ;;  %v6464_v63 = vmul.f32 %v8984_v26, %v6424_v36  ;;  %v6375_v34 = vadd.f32 -1.4531521, %v6367_v48  ;;  %v8990_v4 = vpop.eup %8989 }
0x2009   :  { %v6411_v39 = vmul.f32 %v11604_v45, %v6403_v9  ;;  %v6402_v50 = vadd.f32 -0.28449672, %v6394_v35  ;;  %v6388_v25 = vadd.f32 1.4214138, %v6380_v32  ;;  %v6366_v30 = vmul.f32 1.0614054, %v11640_v60  ;;  %v8992_v26 = vpop.eup %8991 }
0x200a   :  { %v6489_v40 = vsub.f32 0.0, %v6473_v22  ;;  %v6397_v49 = vmul.f32 %v11620_v20, %v6389_v17  ;;  %v6472_v13 = vsub.f32 1.0, %v6464_v63  ;;  %v6383_v61 = vmul.f32 %v11634_v29, %v6375_v34  ;;  %v8994_v63 = vpop.eup %8993 }
0x200b   :  { %v6419_v10 = vadd.f32 0.2548296, %v6411_v39  ;;  %v6410_v51 = vmul.f32 %v11608_v0, %v6402_v50  ;;  %v6396_v21 = vmul.f32 %v11625_v18, %v6388_v25  ;;  %v6374_v58 = vadd.f32 -1.4531521, %v6366_v30 }
0x200c   :  { %v6497_v42 = vsel %vm6481_vm11, %v6489_v40, %v6473_v22  ;;  %v6405_v23 = vadd.f32 -0.28449672, %v6397_v49  ;;  %v6488_v12 = vsub.f32 0.0, %v6472_v13  ;;  %v6391_v8 = vadd.f32 1.4214138, %v6383_v61 }
0x200d   :  { %v6427_v19 = vmul.f32 %v11604_v45, %v6419_v10  ;;  %v6418_v59 = vadd.f32 0.2548296, %v6410_v51  ;;  %v6505_v33 = vadd.f32 1.0, %v6497_v42  ;;  %v6404_v44 = vadd.f32 -0.28449672, %v6396_v21 }
0x200e   :  { %v6413_v15 = vmul.f32 %v11620_v20, %v6405_v23  ;;  %v6496_v9 = vsel %vm6480_vm12, %v6488_v12, %v6472_v13  ;;  %v6382_v36 = vmul.f32 %v11640_v60, %v6374_v58  ;;  %v6399_v28 = vmul.f32 %v11634_v29, %v6391_v8  ;;  %v8996_v13 = vpop.eup %8995 }
0x200f   :  { %v6467_v52 = vmul.f32 %v8990_v4, %v6427_v19  ;;  %v6426_v45 = vmul.f32 %v11608_v0, %v6418_v59  ;;  %v6504_v35 = vadd.f32 1.0, %v6496_v9  ;;  %v6412_v17 = vmul.f32 %v11625_v18, %v6404_v44  ;;  %v8998_v19 = vpop.eup %8997 }
0x2010   :  { %v6421_v22 = vadd.f32 0.2548296, %v6413_v15  ;;  %v6390_v48 = vadd.f32 1.4214138, %v6382_v36  ;;  %v6407_v50 = vadd.f32 -0.28449672, %v6399_v28  ;;  %v6513_v32 = vmul.f32 %v6505_v33, %v11611_v5 }
0x2011   :  { %v6475_v31 = vsub.f32 1.0, %v6467_v52  ;;  %v6466_v39 = vmul.f32 %v8992_v26, %v6426_v45  ;;  %v6512_v0 = vmul.f32 %v6504_v35, %v11617_v55  ;;  %v6420_v49 = vadd.f32 0.2548296, %v6412_v17  ;;  %v9000_v52 = vpop.eup %8999 }
0x2012   :  { %v6429_v7 = vmul.f32 %v11620_v20, %v6421_v22  ;;  %v6398_v34 = vmul.f32 %v11640_v60, %v6390_v48  ;;  %v6415_v51 = vmul.f32 %v11634_v29, %v6407_v50  ;;  %v6306_v59 = vmul.f32 0.5, %v11565_v2 }
0x2013   :  { %v6491_v40 = vsub.f32 0.0, %v6475_v31  ;;  %v6474_v10 = vsub.f32 1.0, %v6466_v39  ;;  %8558 = vmatprep.mubr.f32.mxu0 %v6512_v0  ;;  %v6428_v30 = vmul.f32 %v11625_v18, %v6420_v49  ;;  %v6307_v18 = vmul.f32 0.5, %v11560_v37 }
0x2014   :  { %v6469_v41 = vmul.f32 %v8994_v63, %v6429_v7  ;;  %8559 = vmatmul.mubr.f32.vlgmr.msra.gmra.mxu0 %v6513_v32  ;;  %v6406_v20 = vadd.f32 -0.28449672, %v6398_v34  ;;  %v6423_v5 = vadd.f32 0.2548296, %v6415_v51  ;;  %v6308_v37 = vmul.f32 0.5, %v11573_v53 }
0x2015   :  { %v6499_v42 = vsel %vm6483_vm13, %v6491_v40, %v6475_v31  ;;  %v6490_v25 = vsub.f32 0.0, %v6474_v10  ;;  %v6468_v4 = vmul.f32 %v8996_v13, %v6428_v30  ;;  %v6309_v35 = vmul.f32 0.5, %v11571_v14 }
0x2016   :  { %v6477_v55 = vsub.f32 1.0, %v6469_v41  ;;  %v6507_v23 = vadd.f32 1.0, %v6499_v42  ;;  %v6414_v12 = vmul.f32 %v11640_v60, %v6406_v20  ;;  %v6431_v58 = vmul.f32 %v11634_v29, %v6423_v5 }
0x2017   :  { %v6498_v61 = vsel %vm6482_vm14, %v6490_v25, %v6474_v10  ;;  %v6476_v15 = vsub.f32 1.0, %v6468_v4  ;;  %v6310_v7 = vmul.f32 0.5, %v11592_v57  ;;  %v6311_v50 = vmul.f32 0.5, %v11584_v3 }
0x2018   :  { %v6493_v21 = vsub.f32 0.0, %v6477_v55  ;;  %v6506_v33 = vadd.f32 1.0, %v6498_v61  ;;  %v6422_v6 = vadd.f32 0.2548296, %v6414_v12  ;;  %v6471_v26 = vmul.f32 %v8998_v19, %v6431_v58 }
0x2019   :  { %v6515_v45 = vmul.f32 %v6507_v23, %v6307_v18  ;;  %v6492_v44 = vsub.f32 0.0, %v6476_v15 }
0x201a   :  { %v6501_v8 = vsel %vm6485_vm15, %v6493_v21, %v6477_v55  ;;  %v6514_v9 = vmul.f32 %v6506_v33, %v6306_v59  ;;  %v6430_v36 = vmul.f32 %v11640_v60, %v6422_v6  ;;  %v6479_v2 = vsub.f32 1.0, %v6471_v26 }
0x201b   :  { %v6509_v29 = vadd.f32 1.0, %v6501_v8  ;;  %v6500_v31 = vsel %vm6484_vm2, %v6492_v44, %v6476_v15 }
0x201c   :  { %8561 = vmatprep.mubr.f32.mxu0 %v6514_v9  ;;  %v6470_v22 = vmul.f32 %v9000_v52, %v6430_v36  ;;  %v6495_v38 = vsub.f32 0.0, %v6479_v2  ;;  %v6508_v28 = vadd.f32 1.0, %v6500_v31 }
0x201d   :  { %8562 = vmatmul.mubr.f32.gmra.mxu0 %v6515_v45  ;;  %v6517_v60 = vmul.f32 %v6509_v29, %v6309_v35 }
0x201e   :  { %v6478_v39 = vsub.f32 1.0, %v6470_v22  ;;  %v6503_v17 = vsel %vm6487_vm3, %v6495_v38, %v6479_v2  ;;  %v6516_v48 = vmul.f32 %v6508_v28, %v6308_v37 }
0x201f   :  { %v6511_v1 = vadd.f32 1.0, %v6503_v17 }
0x2020   :  { %v6494_v63 = vsub.f32 0.0, %v6478_v39  ;;  %8564 = vmatprep.mubr.f32.mxu0 %v6516_v48 }
0x2021   :  { %8565 = vmatmul.mubr.f32.gmra.mxu0 %v6517_v60  ;;  %v6519_v14 = vmul.f32 %v6511_v1, %v6311_v50 }
0x2022   :  { %v6502_v40 = vsel %vm6486_vm4, %v6494_v63, %v6478_v39 }
0x2023   :  { %v6510_v53 = vadd.f32 1.0, %v6502_v40 }
0x2025   :  { %v6518_v0 = vmul.f32 %v6510_v53, %v6310_v7 }
0x2027   :  { %8567 = vmatprep.mubr.f32.mxu0 %v6518_v0 }
0x2028   :  { %8568 = vmatmul.mubr.f32.gmra.mxu0 %v6519_v14 }
0x20d4   :  { %v8560_v32 = vpop.f32.mrf.mxu0 }
0x20d5   :  { %v6617_v10 = vadd.f32 %v8560_v32, %v7350_v11 }
0x20d6   :  { %v6611_v62 = vpop.f32.mrf.mxu0 }
0x20d7   :  { %v6651_v49 = vadd.f32 %v6617_v10, %v11376_v47  ;;  %v6612_v34 = vadd.f32 %v7350_v11, %v6611_v62 }
0x20d9   :  { %v6650_v13 = vadd.f32 %v6612_v34, %v11379_v46  ;;  %v6663_v57 = vsel %vm226_vm1, %v6651_v49, 0.0 }
0x20da   :  { %6664 = vadd.xlane.f32.xlu1 %v6663_v57 }
0x20db   :  { %v6660_v3 = vsel %vm226_vm1, %v6650_v13, 0.0 }
0x20dc   :  { %6661 = vadd.xlane.f32.xlu0 %v6660_v3 }
0x20dd   :  { %v8563_v42 = vpop.f32.mrf.mxu0 }
0x20de   :  { %v6627_v41 = vadd.f32 %v8563_v42, %v7350_v11  ;;  %v6795_v42 = vld [vmem:[%s11824_s20 + $0x18] sm:$0xff] }
0x20df   :  { %v6621_v51 = vpop.f32.mrf.mxu0  ;;  %8570 = vmatprep.subr.mxu1 %v6795_v42 }
0x20e0   :  { %v6653_v25 = vadd.f32 %v6627_v41, %v11384_v56  ;;  %v6622_v30 = vadd.f32 %v7350_v11, %v6621_v51  ;;  %8571 = vmatpush3.msra.mxu1 %v6795_v42  ;;  %v6794_v41 = vld [vmem:[%s11824_s20 + $0x10] sm:$0xff]  ;;  %v6793_v51 = vld [vmem:[%s11824_s20 + $0x8] sm:$0xff] }
0x20e1   :  { %v8566_v47 = vpop.f32.mrf.mxu0  ;;  %8572 = vmatprep.subr.mxu1 %v6794_v41 }
0x20e2   :  { %v6652_v20 = vadd.f32 %v6622_v30, %v11390_v16  ;;  %v6669_v19 = vsel %vm226_vm1, %v6653_v25, 0.0  ;;  %v6637_v55 = vadd.f32 %v8566_v47, %v7350_v11  ;;  %8573 = vmatpush3.msra.mxu1 %v6794_v41 }
0x20e3   :  { %6670 = vadd.xlane.f32.xlu1 %v6669_v19  ;;  %v6631_v5 = vpop.f32.mrf.mxu0  ;;  %8574 = vmatprep.subr.mxu1 %v6793_v51 }
0x20e4   :  { %v6666_v46 = vsel %vm226_vm1, %v6652_v20, 0.0  ;;  %v6655_v23 = vadd.f32 %v6637_v55, %v11392_v27  ;;  %v6632_v61 = vadd.f32 %v7350_v11, %v6631_v5  ;;  %8575 = vmatpush3.msra.mxu1 %v6793_v51 }
0x20e5   :  { %6667 = vadd.xlane.f32.xlu0 %v6666_v46 }
0x20e6   :  { %v6654_v4 = vadd.f32 %v6632_v61, %v11400_v43  ;;  %v6675_v12 = vsel %vm226_vm1, %v6655_v23, 0.0 }
0x20e7   :  { %6676 = vadd.xlane.f32.xlu1 %v6675_v12 }
0x20e8   :  { %v8569_v56 = vpop.f32.mrf.mxu0  ;;  %v6672_v16 = vsel %vm226_vm1, %v6654_v4, 0.0 }
0x20e9   :  { %v6647_v59 = vadd.f32 %v8569_v56, %v7350_v11  ;;  %6673 = vadd.xlane.f32.xlu0 %v6672_v16 }
0x20ea   :  { %v6641_v21 = vpop.f32.mrf.mxu0 }
0x20eb   :  { %v6657_v58 = vadd.f32 %v6647_v59, %v11402_v54  ;;  %v6642_v33 = vadd.f32 %v7350_v11, %v6641_v21 }
0x20ed   :  { %v6656_v52 = vadd.f32 %v6642_v33, %v11409_v24  ;;  %v6681_v18 = vsel %vm226_vm1, %v6657_v58, 0.0 }
0x20ee   :  { %6682 = vadd.xlane.f32.xlu1 %v6681_v18  ;;  %v7351_v18 = vld [vmem:[%s11825_s18] ss:$0 sm:$0xff] }
0x20ef   :  { %v6678_v27 = vsel %vm226_vm1, %v6656_v52, 0.0 }
0x20f0   :  { %6679 = vadd.xlane.f32.xlu0 %v6678_v27 }
0x2163   :  { %v6665_v43 = vpop.xlane.xlu1 %6664 }
0x2164   :  { %v6685_v15 = vmul.f32 0.03125, %v6665_v43 }
0x2165   :  { %v6662_v6 = vpop.xlane.xlu0 %6661 }
0x2166   :  { %v11697_v8 = vsub.f32 %v6651_v49, %v6685_v15  ;;  %v6684_v26 = vmul.f32 0.03125, %v6662_v6 }
0x2168   :  { %v11699_v9 = vsub.f32 %v6650_v13, %v6684_v26  ;;  %v6701_v54 = vmul.f32 %v11697_v8, %v11697_v8 }
0x216a   :  { %v6711_v45 = vsel %vm226_vm1, %v6701_v54, 0.0  ;;  %v6700_v24 = vmul.f32 %v11699_v9, %v11699_v9 }
0x216b   :  { %6712 = vadd.xlane.f32.xlu1 %v6711_v45 }
0x216c   :  { %v6671_v44 = vpop.xlane.xlu1 %6670  ;;  %v6708_v2 = vsel %vm226_vm1, %v6700_v24, 0.0 }
0x216d   :  { %v6687_v36 = vmul.f32 0.03125, %v6671_v44  ;;  %6709 = vadd.xlane.f32.xlu0 %v6708_v2  ;;  %v7352_v44 = vld [vmem:[%s11826_s19] ss:$0 sm:$0xff] }
0x216e   :  { %v6668_v29 = vpop.xlane.xlu0 %6667 }
0x216f   :  { %v11707_v31 = vsub.f32 %v6653_v25, %v6687_v36  ;;  %v6686_v22 = vmul.f32 0.03125, %v6668_v29  ;;  %v6792_v25 = vld [vmem:[%s11824_s20] sm:$0xff] }
0x2170   :  { %v6677_v28 = vpop.xlane.xlu1 %6676  ;;  %8576 = vmatprep.subr.mxu1 %v6792_v25 }
0x2171   :  { %v11709_v37 = vsub.f32 %v6652_v20, %v6686_v22  ;;  %v6703_v38 = vmul.f32 %v11707_v31, %v11707_v31  ;;  %v6689_v35 = vmul.f32 0.03125, %v6677_v28  ;;  %8577 = vmatpush3.msra.mxu1 %v6792_v25 }
0x2172   :  { %v6674_v48 = vpop.xlane.xlu0 %6673 }
0x2173   :  { %v6717_v39 = vsel %vm226_vm1, %v6703_v38, 0.0  ;;  %v6702_v17 = vmul.f32 %v11709_v37, %v11709_v37  ;;  %v11716_v60 = vsub.f32 %v6655_v23, %v6689_v35  ;;  %v6688_v63 = vmul.f32 0.03125, %v6674_v48 }
0x2174   :  { %6718 = vadd.xlane.f32.xlu1 %v6717_v39 }
0x2175   :  { %v6714_v1 = vsel %vm226_vm1, %v6702_v17, 0.0  ;;  %v11719_v40 = vsub.f32 %v6654_v4, %v6688_v63  ;;  %v6705_v7 = vmul.f32 %v11716_v60, %v11716_v60 }
0x2176   :  { %6715 = vadd.xlane.f32.xlu0 %v6714_v1 }
0x2177   :  { %v6683_v53 = vpop.xlane.xlu1 %6682  ;;  %v6723_v0 = vsel %vm226_vm1, %v6705_v7, 0.0  ;;  %v6704_v14 = vmul.f32 %v11719_v40, %v11719_v40 }
0x2178   :  { %v6691_v50 = vmul.f32 0.03125, %v6683_v53  ;;  %6724 = vadd.xlane.f32.xlu1 %v6723_v0 }
0x2179   :  { %v6680_v11 = vpop.xlane.xlu0 %6679  ;;  %v6720_v62 = vsel %vm226_vm1, %v6704_v14, 0.0 }
0x217a   :  { %v11726_v32 = vsub.f32 %v6657_v58, %v6691_v50  ;;  %v6690_v10 = vmul.f32 0.03125, %v6680_v11  ;;  %6721 = vadd.xlane.f32.xlu0 %v6720_v62 }
0x217c   :  { %v11729_v49 = vsub.f32 %v6656_v52, %v6690_v10  ;;  %v6707_v34 = vmul.f32 %v11726_v32, %v11726_v32 }
0x217e   :  { %v6729_v13 = vsel %vm226_vm1, %v6707_v34, 0.0  ;;  %v6706_v57 = vmul.f32 %v11729_v49, %v11729_v49 }
0x217f   :  { %6730 = vadd.xlane.f32.xlu1 %v6729_v13 }
0x2180   :  { %v6726_v3 = vsel %vm226_vm1, %v6706_v57, 0.0 }
0x2181   :  { %6727 = vadd.xlane.f32.xlu0 %v6726_v3 }
0x21f4   :  { %v6713_v30 = vpop.xlane.xlu1 %6712 }
0x21f5   :  { %v6733_v20 = vmul.f32 0.03125, %v6713_v30 }
0x21f6   :  { %v6710_v19 = vpop.xlane.xlu0 %6709 }
0x21f7   :  { %v6741_v47 = vadd.f32 1e-06, %v6733_v20  ;;  %v6732_v55 = vmul.f32 0.03125, %v6710_v19 }
0x21f9   :  { %9001 = vrsqrt.f32 %v6741_v47  ;;  %v6740_v46 = vadd.f32 1e-06, %v6732_v55 }
0x21fb   :  { %9003 = vrsqrt.f32 %v6740_v46 }
0x21fd   :  { %v6719_v5 = vpop.xlane.xlu1 %6718 }
0x21fe   :  { %v6735_v23 = vmul.f32 0.03125, %v6719_v5 }
0x21ff   :  { %v6716_v61 = vpop.xlane.xlu0 %6715 }
0x2200   :  { %v6743_v4 = vadd.f32 1e-06, %v6735_v23  ;;  %v6734_v12 = vmul.f32 0.03125, %v6716_v61 }
0x2201   :  { %v6725_v59 = vpop.xlane.xlu1 %6724 }
0x2202   :  { %9005 = vrsqrt.f32 %v6743_v4  ;;  %v6742_v56 = vadd.f32 1e-06, %v6734_v12  ;;  %v6737_v16 = vmul.f32 0.03125, %v6725_v59 }
0x2203   :  { %v6722_v21 = vpop.xlane.xlu0 %6721 }
0x2204   :  { %9007 = vrsqrt.f32 %v6742_v56  ;;  %v6745_v58 = vadd.f32 1e-06, %v6737_v16  ;;  %v6736_v33 = vmul.f32 0.03125, %v6722_v21 }
0x2206   :  { %v9002_v52 = vpop.eup %9001  ;;  %9009 = vrsqrt.f32 %v6745_v58  ;;  %v6744_v43 = vadd.f32 1e-06, %v6736_v33 }
0x2207   :  { %v6757_v27 = vmul.f32 %v9002_v52, %v11697_v8 }
0x2208   :  { %v9004_v15 = vpop.eup %9003  ;;  %v6731_v6 = vpop.xlane.xlu1 %6730  ;;  %9011 = vrsqrt.f32 %v6744_v43 }
0x2209   :  { %v6739_v26 = vmul.f32 0.03125, %v6731_v6  ;;  %v6756_v54 = vmul.f32 %v9004_v15, %v11699_v9  ;;  %v6771_v45 = vmul.f32 %v7351_v18, %v6757_v27 }
0x220a   :  { %v6728_v24 = vpop.xlane.xlu0 %6727 }
0x220b   :  { %v6747_v36 = vadd.f32 1e-06, %v6739_v26  ;;  %v6738_v2 = vmul.f32 0.03125, %v6728_v24  ;;  %v6770_v29 = vmul.f32 %v7351_v18, %v6756_v54  ;;  %v6785_v28 = vadd.f32 %v7352_v44, %v6771_v45 }
0x220d   :  { %9013 = vrsqrt.f32 %v6747_v36  ;;  %v6746_v22 = vadd.f32 1e-06, %v6738_v2  ;;  %v6784_v8 = vadd.f32 %v7352_v44, %v6770_v29 }
0x220f   :  { %v9006_v38 = vpop.eup %9005  ;;  %9015 = vrsqrt.f32 %v6746_v22  ;;  %8578 = vmatprep.mubr.msk.f32.mxu1 %vm226_vm1, %v6784_v8 }
0x2210   :  { %v6759_v35 = vmul.f32 %v9006_v38, %v11707_v31  ;;  %8579 = vmatmul.mubr.msk.f32.vlgmr.msra.gmra.mxu1 %vm226_vm1, %v6785_v28 }
0x2211   :  { %v9008_v9 = vpop.eup %9007 }
0x2212   :  { %v6758_v39 = vmul.f32 %v9008_v9, %v11709_v37  ;;  %v6773_v17 = vmul.f32 %v7351_v18, %v6759_v35 }
0x2213   :  { %v9010_v63 = vpop.eup %9009 }
0x2214   :  { %v6772_v48 = vmul.f32 %v7351_v18, %v6758_v39  ;;  %v6761_v1 = vmul.f32 %v9010_v63, %v11716_v60  ;;  %v6787_v50 = vadd.f32 %v7352_v44, %v6773_v17 }
0x2215   :  { %v9012_v53 = vpop.eup %9011 }
0x2216   :  { %v6786_v7 = vadd.f32 %v7352_v44, %v6772_v48  ;;  %v6760_v31 = vmul.f32 %v9012_v53, %v11719_v40  ;;  %v6775_v0 = vmul.f32 %v7351_v18, %v6761_v1 }
0x2218   :  { %8581 = vmatprep.mubr.msk.f32.mxu1 %vm226_vm1, %v6786_v7  ;;  %v6774_v14 = vmul.f32 %v7351_v18, %v6760_v31  ;;  %v6789_v34 = vadd.f32 %v7352_v44, %v6775_v0 }
0x2219   :  { %8582 = vmatmul.mubr.msk.f32.gmra.mxu1 %vm226_vm1, %v6787_v50 }
0x221a   :  { %v9014_v11 = vpop.eup %9013  ;;  %v6788_v37 = vadd.f32 %v7352_v44, %v6774_v14 }
0x221b   :  { %v6763_v10 = vmul.f32 %v9014_v11, %v11726_v32  ;;  %v7353_v32 = vld [vmem:[%s11827_s21] ss:$0 sm:$0xff] }
0x221c   :  { %v9016_v62 = vpop.eup %9015  ;;  %8584 = vmatprep.mubr.msk.f32.mxu1 %vm226_vm1, %v6788_v37 }
0x221d   :  { %v6762_v60 = vmul.f32 %v9016_v62, %v11729_v49  ;;  %8585 = vmatmul.mubr.msk.f32.gmra.mxu1 %vm226_vm1, %v6789_v34  ;;  %v6777_v13 = vmul.f32 %v7351_v18, %v6763_v10 }
0x221f   :  { %v6776_v57 = vmul.f32 %v7351_v18, %v6762_v60  ;;  %v6791_v40 = vadd.f32 %v7352_v44, %v6777_v13 }
0x2221   :  { %v6790_v3 = vadd.f32 %v7352_v44, %v6776_v57 }
0x2223   :  { %8587 = vmatprep.mubr.msk.f32.mxu1 %vm226_vm1, %v6790_v3 }
0x2224   :  { %8588 = vmatmul.mubr.msk.f32.gmra.mxu1 %vm226_vm1, %v6791_v40 }
0x22d0   :  { %v8580_v42 = vpop.f32.mrf.mxu1 }
0x22d1   :  { %v6899_v41 = vadd.f32 %v8580_v42, %v7353_v32 }
0x22d2   :  { %v6893_v51 = vpop.f32.mrf.mxu1 }
0x22d3   :  { %6933 = vst.msk [vmem:[%s11828_s22 + $0x8] sm:$0xff] %vm94_vm0, %v6899_v41  ;;  %v6894_v49 = vadd.f32 %v7353_v32, %v6893_v51 }
0x22d5   :  { %6932 = vst.msk [vmem:[%s11828_s22] sm:$0xff] %vm94_vm0, %v6894_v49 }
0x22d9   :  { %v8583_v25 = vpop.f32.mrf.mxu1 }
0x22da   :  { %v6909_v30 = vadd.f32 %v8583_v25, %v7353_v32 }
0x22db   :  { %v6903_v20 = vpop.f32.mrf.mxu1 }
0x22dc   :  { %6935 = vst.msk [vmem:[%s11828_s22 + $0x18] sm:$0xff] %vm94_vm0, %v6909_v30  ;;  %v6904_v19 = vadd.f32 %v7353_v32, %v6903_v20 }
0x22dd   :  { %v8586_v47 = vpop.f32.mrf.mxu1 }
0x22de   :  { %6934 = vst.msk [vmem:[%s11828_s22 + $0x10] sm:$0xff] %vm94_vm0, %v6904_v19  ;;  %v6919_v55 = vadd.f32 %v8586_v47, %v7353_v32 }
0x22df   :  { %v6913_v46 = vpop.f32.mrf.mxu1 }
0x22e0   :  { %6937 = vst.msk [vmem:[%s11828_s22 + $0x28] sm:$0xff] %vm94_vm0, %v6919_v55  ;;  %v6914_v5 = vadd.f32 %v7353_v32, %v6913_v46 }
0x22e2   :  { %6936 = vst.msk [vmem:[%s11828_s22 + $0x20] sm:$0xff] %vm94_vm0, %v6914_v5 }
0x22e4   :  { %v8589_v23 = vpop.f32.mrf.mxu1 }
0x22e5   :  { %v6929_v61 = vadd.f32 %v8589_v23, %v7353_v32 }
0x22e6   :  { %v6923_v4 = vpop.f32.mrf.mxu1 }
0x22e7   :  { %6939 = vst.msk [vmem:[%s11828_s22 + $0x38] sm:$0xff] %vm94_vm0, %v6929_v61  ;;  %v6924_v12 = vadd.f32 %v7353_v32, %v6923_v4 }
0x22e9   :  { %6938 = vst.msk [vmem:[%s11828_s22 + $0x30] sm:$0xff] %vm94_vm0, %v6924_v12 }

</bundles_post_ra>
